<compile_context>
chip_gen: v5e
topology: v5e:2x2
jax: 0.10.0
libtpu: 0.0.40
codegen_flags: <defaults>
</compile_context>

<pallas_src>
import functools

import jax
import jax.numpy as jnp
from jax import lax
from jax.experimental import pallas as pl
from jax.experimental.pallas import tpu as pltpu


def _round_up(x, m):
    return ((x + m - 1) // m) * m


# ----------------------------------------------------------------------------
# One fused bidirectional LSTM stage (traced twice inside the kernel).
#
# Lane layout (GP = round_up(2H, 128)):
#   state h/c      : (Bp, GP)   lanes [0:H] = forward, [H:2H] = backward, rest 0
#   gates          : (Bp, 4*GP) 4 chunks (i, f, g, o), each 128-lane aligned,
#                               fwd in chunk lanes [0:H], bwd in [H:2H], rest 0
#   input proj gx  : (T*Bp, 8*GP) = [fwd gate chunks | bwd gate chunks], staged in VMEM
# Padding lanes provably stay zero (zero weights/bias, c0 = 0) and padded batch rows
# never interact with real rows (row-wise recurrence), so they are simply sliced off
# in the wrapper.
# ----------------------------------------------------------------------------
def _bilstm_stage(x_bf16, wx_ref, bx_ref, wh_ref, gx_ref, hs_ref, hsr_ref,
                  *, T, Bp, H, GP):
    G4 = 4 * GP

    # Hoisted input projection for all timesteps / both directions (bias folded in):
    # one big MXU call, result staged in VMEM scratch to bound vreg pressure.
    gx_ref[...] = (jnp.dot(x_bf16, wx_ref[...],
                           preferred_element_type=jnp.float32)
                   + bx_ref[...])                          # (T*Bp, 8*GP) f32

    h = jnp.zeros((Bp, GP), jnp.float32)
    c = jnp.zeros((Bp, GP), jnp.float32)

    # Fully unrolled recurrence (T is small & static) -> LLO can overlap the MXU
    # matmul of step s+1 with the EUP/VPU elementwise work of step s.
    for s in range(T):
        r_f = slice(s * Bp, (s + 1) * Bp)                  # fwd consumes time s
        r_b = slice((T - 1 - s) * Bp, (T - s) * Bp)        # bwd consumes time T-1-s
        # fwd / bwd occupy disjoint lanes inside every gate chunk -> plain add.
        # Full-sublane-tile, lane-aligned reads straight from VMEM scratch.
        gx = gx_ref[r_f, :G4] + gx_ref[r_b, G4:]           # (Bp, 4*GP)
        # wh read per step from its ref (short live range; compiler streams it
        # into the MXU instead of holding 256 KB live across the whole unroll).
        gates = gx + jnp.dot(h.astype(jnp.bfloat16), wh_ref[...],
                             preferred_element_type=jnp.float32)
        i = jax.nn.sigmoid(gates[:, 0 * GP:1 * GP])        # 128-lane aligned slices
        f = jax.nn.sigmoid(gates[:, 1 * GP:2 * GP])
        g = jnp.tanh(gates[:, 2 * GP:3 * GP])
        o = jax.nn.sigmoid(gates[:, 3 * GP:4 * GP])
        c = f * c + i * g
        h = o * jnp.tanh(c)
        # Lane-dense, full-tile (Bp, GP) stores; each half lands directly at its
        # final time index (fwd -> s, bwd -> T-1-s).
        hs_ref[r_f, :] = h
        hsr_ref[r_b, :] = h

    # Combine once, off the serial path: fwd lanes from hs, bwd lanes from hsr.
    # Single VPU select; hsr's padding lanes [2H:GP] are provably zero.
    lane = lax.broadcasted_iota(jnp.int32, (1, GP), 1)
    return jnp.where(lane < H, hs_ref[...], hsr_ref[...])  # (T*Bp, GP)


# ----------------------------------------------------------------------------
# Fused kernel: encoder BiLSTM -> decoder BiLSTM -> Linear+ReLU epilogue.
# ----------------------------------------------------------------------------
def _esim_ae_kernel(x_ref,
                    wxe_ref, bxe_ref, whe_ref,
                    wxd_ref, bxd_ref, whd_ref,
                    wm_ref, bmlp_ref,
                    out_ref,
                    hs_e, hsr_e, hs_d, hsr_d, gx_e, gx_d,
                    *, T, Bp, E, H, GPE, GPD):
    enc = _bilstm_stage(x_ref[...], wxe_ref, bxe_ref, whe_ref, gx_e, hs_e, hsr_e,
                        T=T, Bp=Bp, H=H, GP=GPE)           # (T*Bp, GPE), lanes[0:2H]
    dec = _bilstm_stage(enc.astype(jnp.bfloat16), wxd_ref, bxd_ref, whd_ref,
                        gx_d, hs_d, hsr_d,
                        T=T, Bp=Bp, H=E, GP=GPD)           # (T*Bp, GPD), lanes[0:2E]
    # Fused MLP epilogue: relu(dec @ Wm + b); output lanes [E:128] are zero columns,
    # so the store is a full 128-lane, unmasked slab.
    y = (jnp.dot(dec.astype(jnp.bfloat16), wm_ref[...],
                 preferred_element_type=jnp.float32)
         + bmlp_ref[...])                                  # (T*Bp, 128)
    out_ref[...] = jnp.maximum(y, 0.0)


# ----------------------------------------------------------------------------
# Parameter packing: PyTorch nn.LSTM layout -> fused lane-padded kernel layout.
#   p['w_ih_*'] : (4H, in_dim)   p['w_hh_*'] : (4H, H)   gate order i, f, g, o
# ----------------------------------------------------------------------------
def _pack_bilstm(p, in_dim, in_pad, H, GP):
    wx = jnp.zeros((in_pad, 8 * GP), jnp.float32)
    bx = jnp.zeros((1, 8 * GP), jnp.float32)
    wh = jnp.zeros((GP, 4 * GP), jnp.float32)
    for k in range(4):
        rows = slice(k * H, (k + 1) * H)
        # forward direction -> lanes [0:H] of gate chunk k (first half of wx/bx)
        wx = wx.at[:in_dim, k * GP:k * GP + H].set(jnp.transpose(p['w_ih_f'][rows, :]))
        bx = bx.at[0, k * GP:k * GP + H].set(p['b_ih_f'][rows] + p['b_hh_f'][rows])
        wh = wh.at[:H, k * GP:k * GP + H].set(jnp.transpose(p['w_hh_f'][rows, :]))
        # backward direction -> lanes [H:2H] of gate chunk k (second half of wx/bx)
        off = 4 * GP + k * GP + H
        wx = wx.at[:in_dim, off:off + H].set(jnp.transpose(p['w_ih_b'][rows, :]))
        bx = bx.at[0, off:off + H].set(p['b_ih_b'][rows] + p['b_hh_b'][rows])
        wh = wh.at[H:2 * H, k * GP + H:k * GP + 2 * H].set(
            jnp.transpose(p['w_hh_b'][rows, :]))
    return wx, bx, wh


# ----------------------------------------------------------------------------
# Full forward pass.
# ----------------------------------------------------------------------------
def esim_embed_layer_ae_forward(x_bte, params):
    B, T, E = x_bte.shape
    H = params['encoder']['w_hh_f'].shape[1]
    GPE = _round_up(2 * H, 128)   # encoder state / gate-chunk lane width
    GPD = _round_up(2 * E, 128)   # decoder state / gate-chunk lane width
    EIN = _round_up(E, 128)       # lane-padded input width
    OUTP = _round_up(E, 128)      # lane-padded output width
    Bp = _round_up(B, 8)          # sublane-padded batch

    wxe, bxe, whe = _pack_bilstm(params['encoder'], E, EIN, H, GPE)
    wxd, bxd, whd = _pack_bilstm(params['decoder'], 2 * H, GPE, E, GPD)
    wm = jnp.zeros((GPD, OUTP), jnp.float32).at[:2 * E, :E].set(
        jnp.transpose(params['mlp']['w']))
    bmlp = jnp.zeros((1, OUTP), jnp.float32).at[0, :E].set(params['mlp']['b'])

    # bf16 matmul operands (MXU-native); accumulation stays f32 in-kernel.
    wxe_b, whe_b = wxe.astype(jnp.bfloat16), whe.astype(jnp.bfloat16)
    wxd_b, whd_b = wxd.astype(jnp.bfloat16), whd.astype(jnp.bfloat16)
    wm_b = wm.astype(jnp.bfloat16)

    # Time-major, batch padded to the sublane tile, lanes padded to 128, bf16 input.
    # Rows (t*Bp + b) with b >= B are zero and are sliced off after the kernel.
    x_t = jnp.transpose(x_bte, (1, 0, 2))                                 # (T, B, E)
    x_pad = jnp.zeros((T, Bp, EIN), jnp.float32).at[:, :B, :E].set(x_t)
    x_flat = x_pad.reshape(T * Bp, EIN).astype(jnp.bfloat16)

    kernel = functools.partial(_esim_ae_kernel,
                               T=T, Bp=Bp, E=E, H=H, GPE=GPE, GPD=GPD)
    out_flat = pl.pallas_call(
        kernel,
        out_shape=jax.ShapeDtypeStruct((T * Bp, OUTP), jnp.float32),
        in_specs=[pl.BlockSpec(memory_space=pltpu.MemorySpace.VMEM)] * 9,
        out_specs=pl.BlockSpec(memory_space=pltpu.MemorySpace.VMEM),
        scratch_shapes=[
            pltpu.VMEM((T * Bp, GPE), jnp.float32),      # encoder h (loop order)
            pltpu.VMEM((T * Bp, GPE), jnp.float32),      # encoder h (time-reversed)
            pltpu.VMEM((T * Bp, GPD), jnp.float32),      # decoder h (loop order)
            pltpu.VMEM((T * Bp, GPD), jnp.float32),      # decoder h (time-reversed)
            pltpu.VMEM((T * Bp, 8 * GPE), jnp.float32),  # encoder gx staging
            pltpu.VMEM((T * Bp, 8 * GPD), jnp.float32),  # decoder gx staging
        ],
        compiler_params=pltpu.CompilerParams(vmem_limit_bytes=32 * 1024 * 1024),
    )(x_flat, wxe_b, bxe, whe_b, wxd_b, bxd, whd_b, wm_b, bmlp)

    # Free layout plumbing: drop batch / lane padding, back to (B, T, E).
    out = out_flat.reshape(T, Bp, OUTP)[:, :B, :E]
    return (jnp.transpose(out, (1, 0, 2)),)


# ----------------------------------------------------------------------------
# Deterministic parameter initialization (shapes follow nn.LSTM / nn.Linear).
# ----------------------------------------------------------------------------
def _uniform(key, shape, scale):
    return jax.random.uniform(key, shape, jnp.float32, -scale, scale)


def init_lstm_params(key, input_size, hidden_size):
    scale = 1.0 / jnp.sqrt(jnp.float32(hidden_size))
    ks = jax.random.split(key, 8)
    return {
        'w_ih_f': _uniform(ks[0], (4 * hidden_size, input_size), scale),
        'w_hh_f': _uniform(ks[1], (4 * hidden_size, hidden_size), scale),
        'b_ih_f': _uniform(ks[2], (4 * hidden_size,), scale),
        'b_hh_f': _uniform(ks[3], (4 * hidden_size,), scale),
        'w_ih_b': _uniform(ks[4], (4 * hidden_size, input_size), scale),
        'w_hh_b': _uniform(ks[5], (4 * hidden_size, hidden_size), scale),
        'b_ih_b': _uniform(ks[6], (4 * hidden_size,), scale),
        'b_hh_b': _uniform(ks[7], (4 * hidden_size,), scale),
    }


def init_params(key, word_embedding_size, first_bilstm_hidden_size):
    E, H = word_embedding_size, first_bilstm_hidden_size
    k_enc, k_dec, k_mlp_w, k_mlp_b = jax.random.split(key, 4)
    mlp_scale = 1.0 / jnp.sqrt(jnp.float32(2 * E))
    return {
        'encoder': init_lstm_params(k_enc, E, H),        # LSTM(E -> H, bidir)
        'decoder': init_lstm_params(k_dec, 2 * H, E),    # LSTM(2H -> E, bidir)
        'mlp': {
            'w': _uniform(k_mlp_w, (E, 2 * E), mlp_scale),   # Linear(2E -> E)
            'b': _uniform(k_mlp_b, (E,), mlp_scale),
        },
    }


if __name__ == "__main__":
    # Small shapes consistent with the module: batch=2, seq=8,
    # word_embedding_size=32, first_bilstm_hidden_size=32.
    B, T, E, H = 2, 8, 32, 32

    key = jax.random.PRNGKey(0)
    k_params, k_x = jax.random.split(key)
    params = init_params(k_params, word_embedding_size=E, first_bilstm_hidden_size=H)
    x = jax.random.normal(k_x, (B, T, E), jnp.float32)

    (out,) = jax.jit(esim_embed_layer_ae_forward)(x, params)
    jax.block_until_ready(out)
    assert out.shape == (B, T, E), out.shape
    print("KERNEL_OK")
</pallas_src>

<mosaic_0001>
module attributes {stable_mosaic.version = 11 : i64} {
  func.func @_esim_ae_kernel(%arg0: memref<64x128xbf16, #tpu.memory_space<vmem>>, %arg1: memref<128x1024xbf16, #tpu.memory_space<vmem>>, %arg2: memref<1x1024xf32, #tpu.memory_space<vmem>>, %arg3: memref<128x512xbf16, #tpu.memory_space<vmem>>, %arg4: memref<128x1024xbf16, #tpu.memory_space<vmem>>, %arg5: memref<1x1024xf32, #tpu.memory_space<vmem>>, %arg6: memref<128x512xbf16, #tpu.memory_space<vmem>>, %arg7: memref<128x128xbf16, #tpu.memory_space<vmem>>, %arg8: memref<1x128xf32, #tpu.memory_space<vmem>>, %arg9: memref<64x128xf32, #tpu.memory_space<vmem>>, %arg10: memref<64x128xf32, #tpu.memory_space<vmem>>, %arg11: memref<64x128xf32, #tpu.memory_space<vmem>>, %arg12: memref<64x128xf32, #tpu.memory_space<vmem>>, %arg13: memref<64x128xf32, #tpu.memory_space<vmem>>, %arg14: memref<64x1024xf32, #tpu.memory_space<vmem>>, %arg15: memref<64x1024xf32, #tpu.memory_space<vmem>>) attributes {dimension_semantics = [], scalar_prefetch = 0 : i64, scratch_operands = 6 : i64, tpu.core_type = #tpu.core_type<tc>} {
    %c0 = arith.constant 0 : index
    %c0_0 = arith.constant 0 : index
    %0 = vector.load %arg0[%c0, %c0_0] : memref<64x128xbf16, #tpu.memory_space<vmem>>, vector<64x128xbf16>
    %c0_1 = arith.constant 0 : index
    %c0_2 = arith.constant 0 : index
    %1 = vector.load %arg1[%c0_1, %c0_2] : memref<128x1024xbf16, #tpu.memory_space<vmem>>, vector<128x1024xbf16>
    %cst = arith.constant dense<0.000000e+00> : vector<64x1024xf32>
    %2 = tpu.matmul %0, %1, %cst {dimension_numbers = #tpu.dot_dimension_numbers<[1], [0], [0], [1], [0, 0, 1, 1], [], []>} : vector<64x128xbf16>, vector<128x1024xbf16>, vector<64x1024xf32> -> vector<64x1024xf32>
    %c0_3 = arith.constant 0 : index
    %c0_4 = arith.constant 0 : index
    %3 = vector.load %arg2[%c0_3, %c0_4] : memref<1x1024xf32, #tpu.memory_space<vmem>>, vector<1x1024xf32>
    %4 = vector.broadcast %3 : vector<1x1024xf32> to vector<64x1024xf32>
    %5 = arith.addf %2, %4 : vector<64x1024xf32>
    %c0_5 = arith.constant 0 : index
    %c0_6 = arith.constant 0 : index
    %6 = vector.load %arg14[%c0_5, %c0_6] : memref<64x1024xf32, #tpu.memory_space<vmem>>, vector<64x1024xf32>
    tpu.vector_store %arg14[%c0_5, %c0_6], %5 {strides = array<i32>} : memref<64x1024xf32, #tpu.memory_space<vmem>>, vector<64x1024xf32>,
    %cst_7 = arith.constant 0.000000e+00 : f32
    %7 = vector.broadcast %cst_7 : f32 to vector<8x128xf32>
    %cst_8 = arith.constant 0.000000e+00 : f32
    %8 = vector.broadcast %cst_8 : f32 to vector<8x128xf32>
    %c0_9 = arith.constant 0 : index
    %c0_10 = arith.constant 0 : index
    %9 = vector.load %arg14[%c0_9, %c0_10] : memref<64x1024xf32, #tpu.memory_space<vmem>>, vector<8x512xf32>
    %c56 = arith.constant 56 : index
    %c512 = arith.constant 512 : index
    %10 = vector.load %arg14[%c56, %c512] : memref<64x1024xf32, #tpu.memory_space<vmem>>, vector<8x512xf32>
    %11 = arith.addf %9, %10 : vector<8x512xf32>
    %12 = arith.truncf %7 : vector<8x128xf32> to vector<8x128xbf16>
    %c0_11 = arith.constant 0 : index
    %c0_12 = arith.constant 0 : index
    %13 = vector.load %arg3[%c0_11, %c0_12] : memref<128x512xbf16, #tpu.memory_space<vmem>>, vector<128x512xbf16>
    %cst_13 = arith.constant dense<0.000000e+00> : vector<8x512xf32>
    %14 = tpu.matmul %12, %13, %cst_13 {dimension_numbers = #tpu.dot_dimension_numbers<[1], [0], [0], [1], [0, 0, 1, 1], [], []>} : vector<8x128xbf16>, vector<128x512xbf16>, vector<8x512xf32> -> vector<8x512xf32>
    %15 = arith.addf %11, %14 : vector<8x512xf32>
    %16 = vector.extract_strided_slice %15 {offsets = [0, 0], sizes = [8, 128], strides = [1, 1]} : vector<8x512xf32> to vector<8x128xf32>
    %17 = arith.negf %16 : vector<8x128xf32>
    %18 = math.exp %17 : vector<8x128xf32>
    %cst_14 = arith.constant 1.000000e+00 : f32
    %19 = vector.broadcast %cst_14 : f32 to vector<8x128xf32>
    %20 = arith.addf %19, %18 : vector<8x128xf32>
    %21 = arith.divf %19, %20 : vector<8x128xf32>
    %22 = vector.extract_strided_slice %15 {offsets = [0, 128], sizes = [8, 128], strides = [1, 1]} : vector<8x512xf32> to vector<8x128xf32>
    %23 = arith.negf %22 : vector<8x128xf32>
    %24 = math.exp %23 : vector<8x128xf32>
    %cst_15 = arith.constant 1.000000e+00 : f32
    %25 = vector.broadcast %cst_15 : f32 to vector<8x128xf32>
    %26 = arith.addf %25, %24 : vector<8x128xf32>
    %27 = arith.divf %25, %26 : vector<8x128xf32>
    %28 = vector.extract_strided_slice %15 {offsets = [0, 256], sizes = [8, 128], strides = [1, 1]} : vector<8x512xf32> to vector<8x128xf32>
    %29 = math.tanh %28 : vector<8x128xf32>
    %30 = vector.extract_strided_slice %15 {offsets = [0, 384], sizes = [8, 128], strides = [1, 1]} : vector<8x512xf32> to vector<8x128xf32>
    %31 = arith.negf %30 : vector<8x128xf32>
    %32 = math.exp %31 : vector<8x128xf32>
    %cst_16 = arith.constant 1.000000e+00 : f32
    %33 = vector.broadcast %cst_16 : f32 to vector<8x128xf32>
    %34 = arith.addf %33, %32 : vector<8x128xf32>
    %35 = arith.divf %33, %34 : vector<8x128xf32>
    %36 = arith.mulf %27, %8 : vector<8x128xf32>
    %37 = arith.mulf %21, %29 : vector<8x128xf32>
    %38 = arith.addf %36, %37 : vector<8x128xf32>
    %39 = math.tanh %38 : vector<8x128xf32>
    %40 = arith.mulf %35, %39 : vector<8x128xf32>
    %c0_17 = arith.constant 0 : index
    %c0_18 = arith.constant 0 : index
    %41 = vector.load %arg10[%c0_17, %c0_18] : memref<64x128xf32, #tpu.memory_space<vmem>>, vector<8x128xf32>
    tpu.vector_store %arg10[%c0_17, %c0_18], %40 {strides = array<i32>} : memref<64x128xf32, #tpu.memory_space<vmem>>, vector<8x128xf32>,
    %c56_19 = arith.constant 56 : index
    %c0_20 = arith.constant 0 : index
    %42 = vector.load %arg11[%c56_19, %c0_20] : memref<64x128xf32, #tpu.memory_space<vmem>>, vector<8x128xf32>
    tpu.vector_store %arg11[%c56_19, %c0_20], %40 {strides = array<i32>} : memref<64x128xf32, #tpu.memory_space<vmem>>, vector<8x128xf32>,
    %c8 = arith.constant 8 : index
    %c0_21 = arith.constant 0 : index
    %43 = vector.load %arg14[%c8, %c0_21] : memref<64x1024xf32, #tpu.memory_space<vmem>>, vector<8x512xf32>
    %c48 = arith.constant 48 : index
    %c512_22 = arith.constant 512 : index
    %44 = vector.load %arg14[%c48, %c512_22] : memref<64x1024xf32, #tpu.memory_space<vmem>>, vector<8x512xf32>
    %45 = arith.addf %43, %44 : vector<8x512xf32>
    %46 = arith.truncf %40 : vector<8x128xf32> to vector<8x128xbf16>
    %c0_23 = arith.constant 0 : index
    %c0_24 = arith.constant 0 : index
    %47 = vector.load %arg3[%c0_23, %c0_24] : memref<128x512xbf16, #tpu.memory_space<vmem>>, vector<128x512xbf16>
    %cst_25 = arith.constant dense<0.000000e+00> : vector<8x512xf32>
    %48 = tpu.matmul %46, %47, %cst_25 {dimension_numbers = #tpu.dot_dimension_numbers<[1], [0], [0], [1], [0, 0, 1, 1], [], []>} : vector<8x128xbf16>, vector<128x512xbf16>, vector<8x512xf32> -> vector<8x512xf32>
    %49 = arith.addf %45, %48 : vector<8x512xf32>
    %50 = vector.extract_strided_slice %49 {offsets = [0, 0], sizes = [8, 128], strides = [1, 1]} : vector<8x512xf32> to vector<8x128xf32>
    %51 = arith.negf %50 : vector<8x128xf32>
    %52 = math.exp %51 : vector<8x128xf32>
    %cst_26 = arith.constant 1.000000e+00 : f32
    %53 = vector.broadcast %cst_26 : f32 to vector<8x128xf32>
    %54 = arith.addf %53, %52 : vector<8x128xf32>
    %55 = arith.divf %53, %54 : vector<8x128xf32>
    %56 = vector.extract_strided_slice %49 {offsets = [0, 128], sizes = [8, 128], strides = [1, 1]} : vector<8x512xf32> to vector<8x128xf32>
    %57 = arith.negf %56 : vector<8x128xf32>
    %58 = math.exp %57 : vector<8x128xf32>
    %cst_27 = arith.constant 1.000000e+00 : f32
    %59 = vector.broadcast %cst_27 : f32 to vector<8x128xf32>
    %60 = arith.addf %59, %58 : vector<8x128xf32>
    %61 = arith.divf %59, %60 : vector<8x128xf32>
    %62 = vector.extract_strided_slice %49 {offsets = [0, 256], sizes = [8, 128], strides = [1, 1]} : vector<8x512xf32> to vector<8x128xf32>
    %63 = math.tanh %62 : vector<8x128xf32>
    %64 = vector.extract_strided_slice %49 {offsets = [0, 384], sizes = [8, 128], strides = [1, 1]} : vector<8x512xf32> to vector<8x128xf32>
    %65 = arith.negf %64 : vector<8x128xf32>
    %66 = math.exp %65 : vector<8x128xf32>
    %cst_28 = arith.constant 1.000000e+00 : f32
    %67 = vector.broadcast %cst_28 : f32 to vector<8x128xf32>
    %68 = arith.addf %67, %66 : vector<8x128xf32>
    %69 = arith.divf %67, %68 : vector<8x128xf32>
    %70 = arith.mulf %61, %38 : vector<8x128xf32>
    %71 = arith.mulf %55, %63 : vector<8x128xf32>
    %72 = arith.addf %70, %71 : vector<8x128xf32>
    %73 = math.tanh %72 : vector<8x128xf32>
    %74 = arith.mulf %69, %73 : vector<8x128xf32>
    %c8_29 = arith.constant 8 : index
    %c0_30 = arith.constant 0 : index
    %75 = vector.load %arg10[%c8_29, %c0_30] : memref<64x128xf32, #tpu.memory_space<vmem>>, vector<8x128xf32>
    tpu.vector_store %arg10[%c8_29, %c0_30], %74 {strides = array<i32>} : memref<64x128xf32, #tpu.memory_space<vmem>>, vector<8x128xf32>,
    %c48_31 = arith.constant 48 : index
    %c0_32 = arith.constant 0 : index
    %76 = vector.load %arg11[%c48_31, %c0_32] : memref<64x128xf32, #tpu.memory_space<vmem>>, vector<8x128xf32>
    tpu.vector_store %arg11[%c48_31, %c0_32], %74 {strides = array<i32>} : memref<64x128xf32, #tpu.memory_space<vmem>>, vector<8x128xf32>,
    %c16 = arith.constant 16 : index
    %c0_33 = arith.constant 0 : index
    %77 = vector.load %arg14[%c16, %c0_33] : memref<64x1024xf32, #tpu.memory_space<vmem>>, vector<8x512xf32>
    %c40 = arith.constant 40 : index
    %c512_34 = arith.constant 512 : index
    %78 = vector.load %arg14[%c40, %c512_34] : memref<64x1024xf32, #tpu.memory_space<vmem>>, vector<8x512xf32>
    %79 = arith.addf %77, %78 : vector<8x512xf32>
    %80 = arith.truncf %74 : vector<8x128xf32> to vector<8x128xbf16>
    %c0_35 = arith.constant 0 : index
    %c0_36 = arith.constant 0 : index
    %81 = vector.load %arg3[%c0_35, %c0_36] : memref<128x512xbf16, #tpu.memory_space<vmem>>, vector<128x512xbf16>
    %cst_37 = arith.constant dense<0.000000e+00> : vector<8x512xf32>
    %82 = tpu.matmul %80, %81, %cst_37 {dimension_numbers = #tpu.dot_dimension_numbers<[1], [0], [0], [1], [0, 0, 1, 1], [], []>} : vector<8x128xbf16>, vector<128x512xbf16>, vector<8x512xf32> -> vector<8x512xf32>
    %83 = arith.addf %79, %82 : vector<8x512xf32>
    %84 = vector.extract_strided_slice %83 {offsets = [0, 0], sizes = [8, 128], strides = [1, 1]} : vector<8x512xf32> to vector<8x128xf32>
    %85 = arith.negf %84 : vector<8x128xf32>
    %86 = math.exp %85 : vector<8x128xf32>
    %cst_38 = arith.constant 1.000000e+00 : f32
    %87 = vector.broadcast %cst_38 : f32 to vector<8x128xf32>
    %88 = arith.addf %87, %86 : vector<8x128xf32>
    %89 = arith.divf %87, %88 : vector<8x128xf32>
    %90 = vector.extract_strided_slice %83 {offsets = [0, 128], sizes = [8, 128], strides = [1, 1]} : vector<8x512xf32> to vector<8x128xf32>
    %91 = arith.negf %90 : vector<8x128xf32>
    %92 = math.exp %91 : vector<8x128xf32>
    %cst_39 = arith.constant 1.000000e+00 : f32
    %93 = vector.broadcast %cst_39 : f32 to vector<8x128xf32>
    %94 = arith.addf %93, %92 : vector<8x128xf32>
    %95 = arith.divf %93, %94 : vector<8x128xf32>
    %96 = vector.extract_strided_slice %83 {offsets = [0, 256], sizes = [8, 128], strides = [1, 1]} : vector<8x512xf32> to vector<8x128xf32>
    %97 = math.tanh %96 : vector<8x128xf32>
    %98 = vector.extract_strided_slice %83 {offsets = [0, 384], sizes = [8, 128], strides = [1, 1]} : vector<8x512xf32> to vector<8x128xf32>
    %99 = arith.negf %98 : vector<8x128xf32>
    %100 = math.exp %99 : vector<8x128xf32>
    %cst_40 = arith.constant 1.000000e+00 : f32
    %101 = vector.broadcast %cst_40 : f32 to vector<8x128xf32>
    %102 = arith.addf %101, %100 : vector<8x128xf32>
    %103 = arith.divf %101, %102 : vector<8x128xf32>
    %104 = arith.mulf %95, %72 : vector<8x128xf32>
    %105 = arith.mulf %89, %97 : vector<8x128xf32>
    %106 = arith.addf %104, %105 : vector<8x128xf32>
    %107 = math.tanh %106 : vector<8x128xf32>
    %108 = arith.mulf %103, %107 : vector<8x128xf32>
    %c16_41 = arith.constant 16 : index
    %c0_42 = arith.constant 0 : index
    %109 = vector.load %arg10[%c16_41, %c0_42] : memref<64x128xf32, #tpu.memory_space<vmem>>, vector<8x128xf32>
    tpu.vector_store %arg10[%c16_41, %c0_42], %108 {strides = array<i32>} : memref<64x128xf32, #tpu.memory_space<vmem>>, vector<8x128xf32>,
    %c40_43 = arith.constant 40 : index
    %c0_44 = arith.constant 0 : index
    %110 = vector.load %arg11[%c40_43, %c0_44] : memref<64x128xf32, #tpu.memory_space<vmem>>, vector<8x128xf32>
    tpu.vector_store %arg11[%c40_43, %c0_44], %108 {strides = array<i32>} : memref<64x128xf32, #tpu.memory_space<vmem>>, vector<8x128xf32>,
    %c24 = arith.constant 24 : index
    %c0_45 = arith.constant 0 : index
    %111 = vector.load %arg14[%c24, %c0_45] : memref<64x1024xf32, #tpu.memory_space<vmem>>, vector<8x512xf32>
    %c32 = arith.constant 32 : index
    %c512_46 = arith.constant 512 : index
    %112 = vector.load %arg14[%c32, %c512_46] : memref<64x1024xf32, #tpu.memory_space<vmem>>, vector<8x512xf32>
    %113 = arith.addf %111, %112 : vector<8x512xf32>
    %114 = arith.truncf %108 : vector<8x128xf32> to vector<8x128xbf16>
    %c0_47 = arith.constant 0 : index
    %c0_48 = arith.constant 0 : index
    %115 = vector.load %arg3[%c0_47, %c0_48] : memref<128x512xbf16, #tpu.memory_space<vmem>>, vector<128x512xbf16>
    %cst_49 = arith.constant dense<0.000000e+00> : vector<8x512xf32>
    %116 = tpu.matmul %114, %115, %cst_49 {dimension_numbers = #tpu.dot_dimension_numbers<[1], [0], [0], [1], [0, 0, 1, 1], [], []>} : vector<8x128xbf16>, vector<128x512xbf16>, vector<8x512xf32> -> vector<8x512xf32>
    %117 = arith.addf %113, %116 : vector<8x512xf32>
    %118 = vector.extract_strided_slice %117 {offsets = [0, 0], sizes = [8, 128], strides = [1, 1]} : vector<8x512xf32> to vector<8x128xf32>
    %119 = arith.negf %118 : vector<8x128xf32>
    %120 = math.exp %119 : vector<8x128xf32>
    %cst_50 = arith.constant 1.000000e+00 : f32
    %121 = vector.broadcast %cst_50 : f32 to vector<8x128xf32>
    %122 = arith.addf %121, %120 : vector<8x128xf32>
    %123 = arith.divf %121, %122 : vector<8x128xf32>
    %124 = vector.extract_strided_slice %117 {offsets = [0, 128], sizes = [8, 128], strides = [1, 1]} : vector<8x512xf32> to vector<8x128xf32>
    %125 = arith.negf %124 : vector<8x128xf32>
    %126 = math.exp %125 : vector<8x128xf32>
    %cst_51 = arith.constant 1.000000e+00 : f32
    %127 = vector.broadcast %cst_51 : f32 to vector<8x128xf32>
    %128 = arith.addf %127, %126 : vector<8x128xf32>
    %129 = arith.divf %127, %128 : vector<8x128xf32>
    %130 = vector.extract_strided_slice %117 {offsets = [0, 256], sizes = [8, 128], strides = [1, 1]} : vector<8x512xf32> to vector<8x128xf32>
    %131 = math.tanh %130 : vector<8x128xf32>
    %132 = vector.extract_strided_slice %117 {offsets = [0, 384], sizes = [8, 128], strides = [1, 1]} : vector<8x512xf32> to vector<8x128xf32>
    %133 = arith.negf %132 : vector<8x128xf32>
    %134 = math.exp %133 : vector<8x128xf32>
    %cst_52 = arith.constant 1.000000e+00 : f32
    %135 = vector.broadcast %cst_52 : f32 to vector<8x128xf32>
    %136 = arith.addf %135, %134 : vector<8x128xf32>
    %137 = arith.divf %135, %136 : vector<8x128xf32>
    %138 = arith.mulf %129, %106 : vector<8x128xf32>
    %139 = arith.mulf %123, %131 : vector<8x128xf32>
    %140 = arith.addf %138, %139 : vector<8x128xf32>
    %141 = math.tanh %140 : vector<8x128xf32>
    %142 = arith.mulf %137, %141 : vector<8x128xf32>
    %c24_53 = arith.constant 24 : index
    %c0_54 = arith.constant 0 : index
    %143 = vector.load %arg10[%c24_53, %c0_54] : memref<64x128xf32, #tpu.memory_space<vmem>>, vector<8x128xf32>
    tpu.vector_store %arg10[%c24_53, %c0_54], %142 {strides = array<i32>} : memref<64x128xf32, #tpu.memory_space<vmem>>, vector<8x128xf32>,
    %c32_55 = arith.constant 32 : index
    %c0_56 = arith.constant 0 : index
    %144 = vector.load %arg11[%c32_55, %c0_56] : memref<64x128xf32, #tpu.memory_space<vmem>>, vector<8x128xf32>
    tpu.vector_store %arg11[%c32_55, %c0_56], %142 {strides = array<i32>} : memref<64x128xf32, #tpu.memory_space<vmem>>, vector<8x128xf32>,
    %c32_57 = arith.constant 32 : index
    %c0_58 = arith.constant 0 : index
    %145 = vector.load %arg14[%c32_57, %c0_58] : memref<64x1024xf32, #tpu.memory_space<vmem>>, vector<8x512xf32>
    %c24_59 = arith.constant 24 : index
    %c512_60 = arith.constant 512 : index
    %146 = vector.load %arg14[%c24_59, %c512_60] : memref<64x1024xf32, #tpu.memory_space<vmem>>, vector<8x512xf32>
    %147 = arith.addf %145, %146 : vector<8x512xf32>
    %148 = arith.truncf %142 : vector<8x128xf32> to vector<8x128xbf16>
    %c0_61 = arith.constant 0 : index
    %c0_62 = arith.constant 0 : index
    %149 = vector.load %arg3[%c0_61, %c0_62] : memref<128x512xbf16, #tpu.memory_space<vmem>>, vector<128x512xbf16>
    %cst_63 = arith.constant dense<0.000000e+00> : vector<8x512xf32>
    %150 = tpu.matmul %148, %149, %cst_63 {dimension_numbers = #tpu.dot_dimension_numbers<[1], [0], [0], [1], [0, 0, 1, 1], [], []>} : vector<8x128xbf16>, vector<128x512xbf16>, vector<8x512xf32> -> vector<8x512xf32>
    %151 = arith.addf %147, %150 : vector<8x512xf32>
    %152 = vector.extract_strided_slice %151 {offsets = [0, 0], sizes = [8, 128], strides = [1, 1]} : vector<8x512xf32> to vector<8x128xf32>
    %153 = arith.negf %152 : vector<8x128xf32>
    %154 = math.exp %153 : vector<8x128xf32>
    %cst_64 = arith.constant 1.000000e+00 : f32
    %155 = vector.broadcast %cst_64 : f32 to vector<8x128xf32>
    %156 = arith.addf %155, %154 : vector<8x128xf32>
    %157 = arith.divf %155, %156 : vector<8x128xf32>
    %158 = vector.extract_strided_slice %151 {offsets = [0, 128], sizes = [8, 128], strides = [1, 1]} : vector<8x512xf32> to vector<8x128xf32>
    %159 = arith.negf %158 : vector<8x128xf32>
    %160 = math.exp %159 : vector<8x128xf32>
    %cst_65 = arith.constant 1.000000e+00 : f32
    %161 = vector.broadcast %cst_65 : f32 to vector<8x128xf32>
    %162 = arith.addf %161, %160 : vector<8x128xf32>
    %163 = arith.divf %161, %162 : vector<8x128xf32>
    %164 = vector.extract_strided_slice %151 {offsets = [0, 256], sizes = [8, 128], strides = [1, 1]} : vector<8x512xf32> to vector<8x128xf32>
    %165 = math.tanh %164 : vector<8x128xf32>
    %166 = vector.extract_strided_slice %151 {offsets = [0, 384], sizes = [8, 128], strides = [1, 1]} : vector<8x512xf32> to vector<8x128xf32>
    %167 = arith.negf %166 : vector<8x128xf32>
    %168 = math.exp %167 : vector<8x128xf32>
    %cst_66 = arith.constant 1.000000e+00 : f32
    %169 = vector.broadcast %cst_66 : f32 to vector<8x128xf32>
    %170 = arith.addf %169, %168 : vector<8x128xf32>
    %171 = arith.divf %169, %170 : vector<8x128xf32>
    %172 = arith.mulf %163, %140 : vector<8x128xf32>
    %173 = arith.mulf %157, %165 : vector<8x128xf32>
    %174 = arith.addf %172, %173 : vector<8x128xf32>
    %175 = math.tanh %174 : vector<8x128xf32>
    %176 = arith.mulf %171, %175 : vector<8x128xf32>
    %c32_67 = arith.constant 32 : index
    %c0_68 = arith.constant 0 : index
    %177 = vector.load %arg10[%c32_67, %c0_68] : memref<64x128xf32, #tpu.memory_space<vmem>>, vector<8x128xf32>
    tpu.vector_store %arg10[%c32_67, %c0_68], %176 {strides = array<i32>} : memref<64x128xf32, #tpu.memory_space<vmem>>, vector<8x128xf32>,
    %c24_69 = arith.constant 24 : index
    %c0_70 = arith.constant 0 : index
    %178 = vector.load %arg11[%c24_69, %c0_70] : memref<64x128xf32, #tpu.memory_space<vmem>>, vector<8x128xf32>
    tpu.vector_store %arg11[%c24_69, %c0_70], %176 {strides = array<i32>} : memref<64x128xf32, #tpu.memory_space<vmem>>, vector<8x128xf32>,
    %c40_71 = arith.constant 40 : index
    %c0_72 = arith.constant 0 : index
    %179 = vector.load %arg14[%c40_71, %c0_72] : memref<64x1024xf32, #tpu.memory_space<vmem>>, vector<8x512xf32>
    %c16_73 = arith.constant 16 : index
    %c512_74 = arith.constant 512 : index
    %180 = vector.load %arg14[%c16_73, %c512_74] : memref<64x1024xf32, #tpu.memory_space<vmem>>, vector<8x512xf32>
    %181 = arith.addf %179, %180 : vector<8x512xf32>
    %182 = arith.truncf %176 : vector<8x128xf32> to vector<8x128xbf16>
    %c0_75 = arith.constant 0 : index
    %c0_76 = arith.constant 0 : index
    %183 = vector.load %arg3[%c0_75, %c0_76] : memref<128x512xbf16, #tpu.memory_space<vmem>>, vector<128x512xbf16>
    %cst_77 = arith.constant dense<0.000000e+00> : vector<8x512xf32>
    %184 = tpu.matmul %182, %183, %cst_77 {dimension_numbers = #tpu.dot_dimension_numbers<[1], [0], [0], [1], [0, 0, 1, 1], [], []>} : vector<8x128xbf16>, vector<128x512xbf16>, vector<8x512xf32> -> vector<8x512xf32>
    %185 = arith.addf %181, %184 : vector<8x512xf32>
    %186 = vector.extract_strided_slice %185 {offsets = [0, 0], sizes = [8, 128], strides = [1, 1]} : vector<8x512xf32> to vector<8x128xf32>
    %187 = arith.negf %186 : vector<8x128xf32>
    %188 = math.exp %187 : vector<8x128xf32>
    %cst_78 = arith.constant 1.000000e+00 : f32
    %189 = vector.broadcast %cst_78 : f32 to vector<8x128xf32>
    %190 = arith.addf %189, %188 : vector<8x128xf32>
    %191 = arith.divf %189, %190 : vector<8x128xf32>
    %192 = vector.extract_strided_slice %185 {offsets = [0, 128], sizes = [8, 128], strides = [1, 1]} : vector<8x512xf32> to vector<8x128xf32>
    %193 = arith.negf %192 : vector<8x128xf32>
    %194 = math.exp %193 : vector<8x128xf32>
    %cst_79 = arith.constant 1.000000e+00 : f32
    %195 = vector.broadcast %cst_79 : f32 to vector<8x128xf32>
    %196 = arith.addf %195, %194 : vector<8x128xf32>
    %197 = arith.divf %195, %196 : vector<8x128xf32>
    %198 = vector.extract_strided_slice %185 {offsets = [0, 256], sizes = [8, 128], strides = [1, 1]} : vector<8x512xf32> to vector<8x128xf32>
    %199 = math.tanh %198 : vector<8x128xf32>
    %200 = vector.extract_strided_slice %185 {offsets = [0, 384], sizes = [8, 128], strides = [1, 1]} : vector<8x512xf32> to vector<8x128xf32>
    %201 = arith.negf %200 : vector<8x128xf32>
    %202 = math.exp %201 : vector<8x128xf32>
    %cst_80 = arith.constant 1.000000e+00 : f32
    %203 = vector.broadcast %cst_80 : f32 to vector<8x128xf32>
    %204 = arith.addf %203, %202 : vector<8x128xf32>
    %205 = arith.divf %203, %204 : vector<8x128xf32>
    %206 = arith.mulf %197, %174 : vector<8x128xf32>
    %207 = arith.mulf %191, %199 : vector<8x128xf32>
    %208 = arith.addf %206, %207 : vector<8x128xf32>
    %209 = math.tanh %208 : vector<8x128xf32>
    %210 = arith.mulf %205, %209 : vector<8x128xf32>
    %c40_81 = arith.constant 40 : index
    %c0_82 = arith.constant 0 : index
    %211 = vector.load %arg10[%c40_81, %c0_82] : memref<64x128xf32, #tpu.memory_space<vmem>>, vector<8x128xf32>
    tpu.vector_store %arg10[%c40_81, %c0_82], %210 {strides = array<i32>} : memref<64x128xf32, #tpu.memory_space<vmem>>, vector<8x128xf32>,
    %c16_83 = arith.constant 16 : index
    %c0_84 = arith.constant 0 : index
    %212 = vector.load %arg11[%c16_83, %c0_84] : memref<64x128xf32, #tpu.memory_space<vmem>>, vector<8x128xf32>
    tpu.vector_store %arg11[%c16_83, %c0_84], %210 {strides = array<i32>} : memref<64x128xf32, #tpu.memory_space<vmem>>, vector<8x128xf32>,
    %c48_85 = arith.constant 48 : index
    %c0_86 = arith.constant 0 : index
    %213 = vector.load %arg14[%c48_85, %c0_86] : memref<64x1024xf32, #tpu.memory_space<vmem>>, vector<8x512xf32>
    %c8_87 = arith.constant 8 : index
    %c512_88 = arith.constant 512 : index
    %214 = vector.load %arg14[%c8_87, %c512_88] : memref<64x1024xf32, #tpu.memory_space<vmem>>, vector<8x512xf32>
    %215 = arith.addf %213, %214 : vector<8x512xf32>
    %216 = arith.truncf %210 : vector<8x128xf32> to vector<8x128xbf16>
    %c0_89 = arith.constant 0 : index
    %c0_90 = arith.constant 0 : index
    %217 = vector.load %arg3[%c0_89, %c0_90] : memref<128x512xbf16, #tpu.memory_space<vmem>>, vector<128x512xbf16>
    %cst_91 = arith.constant dense<0.000000e+00> : vector<8x512xf32>
    %218 = tpu.matmul %216, %217, %cst_91 {dimension_numbers = #tpu.dot_dimension_numbers<[1], [0], [0], [1], [0, 0, 1, 1], [], []>} : vector<8x128xbf16>, vector<128x512xbf16>, vector<8x512xf32> -> vector<8x512xf32>
    %219 = arith.addf %215, %218 : vector<8x512xf32>
    %220 = vector.extract_strided_slice %219 {offsets = [0, 0], sizes = [8, 128], strides = [1, 1]} : vector<8x512xf32> to vector<8x128xf32>
    %221 = arith.negf %220 : vector<8x128xf32>
    %222 = math.exp %221 : vector<8x128xf32>
    %cst_92 = arith.constant 1.000000e+00 : f32
    %223 = vector.broadcast %cst_92 : f32 to vector<8x128xf32>
    %224 = arith.addf %223, %222 : vector<8x128xf32>
    %225 = arith.divf %223, %224 : vector<8x128xf32>
    %226 = vector.extract_strided_slice %219 {offsets = [0, 128], sizes = [8, 128], strides = [1, 1]} : vector<8x512xf32> to vector<8x128xf32>
    %227 = arith.negf %226 : vector<8x128xf32>
    %228 = math.exp %227 : vector<8x128xf32>
    %cst_93 = arith.constant 1.000000e+00 : f32
    %229 = vector.broadcast %cst_93 : f32 to vector<8x128xf32>
    %230 = arith.addf %229, %228 : vector<8x128xf32>
    %231 = arith.divf %229, %230 : vector<8x128xf32>
    %232 = vector.extract_strided_slice %219 {offsets = [0, 256], sizes = [8, 128], strides = [1, 1]} : vector<8x512xf32> to vector<8x128xf32>
    %233 = math.tanh %232 : vector<8x128xf32>
    %234 = vector.extract_strided_slice %219 {offsets = [0, 384], sizes = [8, 128], strides = [1, 1]} : vector<8x512xf32> to vector<8x128xf32>
    %235 = arith.negf %234 : vector<8x128xf32>
    %236 = math.exp %235 : vector<8x128xf32>
    %cst_94 = arith.constant 1.000000e+00 : f32
    %237 = vector.broadcast %cst_94 : f32 to vector<8x128xf32>
    %238 = arith.addf %237, %236 : vector<8x128xf32>
    %239 = arith.divf %237, %238 : vector<8x128xf32>
    %240 = arith.mulf %231, %208 : vector<8x128xf32>
    %241 = arith.mulf %225, %233 : vector<8x128xf32>
    %242 = arith.addf %240, %241 : vector<8x128xf32>
    %243 = math.tanh %242 : vector<8x128xf32>
    %244 = arith.mulf %239, %243 : vector<8x128xf32>
    %c48_95 = arith.constant 48 : index
    %c0_96 = arith.constant 0 : index
    %245 = vector.load %arg10[%c48_95, %c0_96] : memref<64x128xf32, #tpu.memory_space<vmem>>, vector<8x128xf32>
    tpu.vector_store %arg10[%c48_95, %c0_96], %244 {strides = array<i32>} : memref<64x128xf32, #tpu.memory_space<vmem>>, vector<8x128xf32>,
    %c8_97 = arith.constant 8 : index
    %c0_98 = arith.constant 0 : index
    %246 = vector.load %arg11[%c8_97, %c0_98] : memref<64x128xf32, #tpu.memory_space<vmem>>, vector<8x128xf32>
    tpu.vector_store %arg11[%c8_97, %c0_98], %244 {strides = array<i32>} : memref<64x128xf32, #tpu.memory_space<vmem>>, vector<8x128xf32>,
    %c56_99 = arith.constant 56 : index
    %c0_100 = arith.constant 0 : index
    %247 = vector.load %arg14[%c56_99, %c0_100] : memref<64x1024xf32, #tpu.memory_space<vmem>>, vector<8x512xf32>
    %c0_101 = arith.constant 0 : index
    %c512_102 = arith.constant 512 : index
    %248 = vector.load %arg14[%c0_101, %c512_102] : memref<64x1024xf32, #tpu.memory_space<vmem>>, vector<8x512xf32>
    %249 = arith.addf %247, %248 : vector<8x512xf32>
    %250 = arith.truncf %244 : vector<8x128xf32> to vector<8x128xbf16>
    %c0_103 = arith.constant 0 : index
    %c0_104 = arith.constant 0 : index
    %251 = vector.load %arg3[%c0_103, %c0_104] : memref<128x512xbf16, #tpu.memory_space<vmem>>, vector<128x512xbf16>
    %cst_105 = arith.constant dense<0.000000e+00> : vector<8x512xf32>
    %252 = tpu.matmul %250, %251, %cst_105 {dimension_numbers = #tpu.dot_dimension_numbers<[1], [0], [0], [1], [0, 0, 1, 1], [], []>} : vector<8x128xbf16>, vector<128x512xbf16>, vector<8x512xf32> -> vector<8x512xf32>
    %253 = arith.addf %249, %252 : vector<8x512xf32>
    %254 = vector.extract_strided_slice %253 {offsets = [0, 0], sizes = [8, 128], strides = [1, 1]} : vector<8x512xf32> to vector<8x128xf32>
    %255 = arith.negf %254 : vector<8x128xf32>
    %256 = math.exp %255 : vector<8x128xf32>
    %cst_106 = arith.constant 1.000000e+00 : f32
    %257 = vector.broadcast %cst_106 : f32 to vector<8x128xf32>
    %258 = arith.addf %257, %256 : vector<8x128xf32>
    %259 = arith.divf %257, %258 : vector<8x128xf32>
    %260 = vector.extract_strided_slice %253 {offsets = [0, 128], sizes = [8, 128], strides = [1, 1]} : vector<8x512xf32> to vector<8x128xf32>
    %261 = arith.negf %260 : vector<8x128xf32>
    %262 = math.exp %261 : vector<8x128xf32>
    %cst_107 = arith.constant 1.000000e+00 : f32
    %263 = vector.broadcast %cst_107 : f32 to vector<8x128xf32>
    %264 = arith.addf %263, %262 : vector<8x128xf32>
    %265 = arith.divf %263, %264 : vector<8x128xf32>
    %266 = vector.extract_strided_slice %253 {offsets = [0, 256], sizes = [8, 128], strides = [1, 1]} : vector<8x512xf32> to vector<8x128xf32>
    %267 = math.tanh %266 : vector<8x128xf32>
    %268 = vector.extract_strided_slice %253 {offsets = [0, 384], sizes = [8, 128], strides = [1, 1]} : vector<8x512xf32> to vector<8x128xf32>
    %269 = arith.negf %268 : vector<8x128xf32>
    %270 = math.exp %269 : vector<8x128xf32>
    %cst_108 = arith.constant 1.000000e+00 : f32
    %271 = vector.broadcast %cst_108 : f32 to vector<8x128xf32>
    %272 = arith.addf %271, %270 : vector<8x128xf32>
    %273 = arith.divf %271, %272 : vector<8x128xf32>
    %274 = arith.mulf %265, %242 : vector<8x128xf32>
    %275 = arith.mulf %259, %267 : vector<8x128xf32>
    %276 = arith.addf %274, %275 : vector<8x128xf32>
    %277 = math.tanh %276 : vector<8x128xf32>
    %278 = arith.mulf %273, %277 : vector<8x128xf32>
    %c56_109 = arith.constant 56 : index
    %c0_110 = arith.constant 0 : index
    %279 = vector.load %arg10[%c56_109, %c0_110] : memref<64x128xf32, #tpu.memory_space<vmem>>, vector<8x128xf32>
    tpu.vector_store %arg10[%c56_109, %c0_110], %278 {strides = array<i32>} : memref<64x128xf32, #tpu.memory_space<vmem>>, vector<8x128xf32>,
    %c0_111 = arith.constant 0 : index
    %c0_112 = arith.constant 0 : index
    %280 = vector.load %arg11[%c0_111, %c0_112] : memref<64x128xf32, #tpu.memory_space<vmem>>, vector<8x128xf32>
    tpu.vector_store %arg11[%c0_111, %c0_112], %278 {strides = array<i32>} : memref<64x128xf32, #tpu.memory_space<vmem>>, vector<8x128xf32>,
    %281 = tpu.iota {dimensions = array<i32: 1>} : vector<1x128xi32>
    %c32_i32 = arith.constant 32 : i32
    %282 = vector.broadcast %c32_i32 : i32 to vector<1x128xi32>
    %283 = arith.cmpi slt, %281, %282 : vector<1x128xi32>
    %c0_113 = arith.constant 0 : index
    %c0_114 = arith.constant 0 : index
    %284 = vector.load %arg10[%c0_113, %c0_114] : memref<64x128xf32, #tpu.memory_space<vmem>>, vector<64x128xf32>
    %c0_115 = arith.constant 0 : index
    %c0_116 = arith.constant 0 : index
    %285 = vector.load %arg11[%c0_115, %c0_116] : memref<64x128xf32, #tpu.memory_space<vmem>>, vector<64x128xf32>
    %286 = vector.shape_cast %283 : vector<1x128xi1> to vector<1x128xi1>
    %287 = vector.broadcast %286 : vector<1x128xi1> to vector<64x128xi1>
    %288 = arith.select %287, %284, %285 : vector<64x128xi1>, vector<64x128xf32>
    %289 = arith.truncf %288 : vector<64x128xf32> to vector<64x128xbf16>
    %c0_117 = arith.constant 0 : index
    %c0_118 = arith.constant 0 : index
    %290 = vector.load %arg4[%c0_117, %c0_118] : memref<128x1024xbf16, #tpu.memory_space<vmem>>, vector<128x1024xbf16>
    %cst_119 = arith.constant dense<0.000000e+00> : vector<64x1024xf32>
    %291 = tpu.matmul %289, %290, %cst_119 {dimension_numbers = #tpu.dot_dimension_numbers<[1], [0], [0], [1], [0, 0, 1, 1], [], []>} : vector<64x128xbf16>, vector<128x1024xbf16>, vector<64x1024xf32> -> vector<64x1024xf32>
    %c0_120 = arith.constant 0 : index
    %c0_121 = arith.constant 0 : index
    %292 = vector.load %arg5[%c0_120, %c0_121] : memref<1x1024xf32, #tpu.memory_space<vmem>>, vector<1x1024xf32>
    %293 = vector.broadcast %292 : vector<1x1024xf32> to vector<64x1024xf32>
    %294 = arith.addf %291, %293 : vector<64x1024xf32>
    %c0_122 = arith.constant 0 : index
    %c0_123 = arith.constant 0 : index
    %295 = vector.load %arg15[%c0_122, %c0_123] : memref<64x1024xf32, #tpu.memory_space<vmem>>, vector<64x1024xf32>
    tpu.vector_store %arg15[%c0_122, %c0_123], %294 {strides = array<i32>} : memref<64x1024xf32, #tpu.memory_space<vmem>>, vector<64x1024xf32>,
    %cst_124 = arith.constant 0.000000e+00 : f32
    %296 = vector.broadcast %cst_124 : f32 to vector<8x128xf32>
    %cst_125 = arith.constant 0.000000e+00 : f32
    %297 = vector.broadcast %cst_125 : f32 to vector<8x128xf32>
    %c0_126 = arith.constant 0 : index
    %c0_127 = arith.constant 0 : index
    %298 = vector.load %arg15[%c0_126, %c0_127] : memref<64x1024xf32, #tpu.memory_space<vmem>>, vector<8x512xf32>
    %c56_128 = arith.constant 56 : index
    %c512_129 = arith.constant 512 : index
    %299 = vector.load %arg15[%c56_128, %c512_129] : memref<64x1024xf32, #tpu.memory_space<vmem>>, vector<8x512xf32>
    %300 = arith.addf %298, %299 : vector<8x512xf32>
    %301 = arith.truncf %296 : vector<8x128xf32> to vector<8x128xbf16>
    %c0_130 = arith.constant 0 : index
    %c0_131 = arith.constant 0 : index
    %302 = vector.load %arg6[%c0_130, %c0_131] : memref<128x512xbf16, #tpu.memory_space<vmem>>, vector<128x512xbf16>
    %cst_132 = arith.constant dense<0.000000e+00> : vector<8x512xf32>
    %303 = tpu.matmul %301, %302, %cst_132 {dimension_numbers = #tpu.dot_dimension_numbers<[1], [0], [0], [1], [0, 0, 1, 1], [], []>} : vector<8x128xbf16>, vector<128x512xbf16>, vector<8x512xf32> -> vector<8x512xf32>
    %304 = arith.addf %300, %303 : vector<8x512xf32>
    %305 = vector.extract_strided_slice %304 {offsets = [0, 0], sizes = [8, 128], strides = [1, 1]} : vector<8x512xf32> to vector<8x128xf32>
    %306 = arith.negf %305 : vector<8x128xf32>
    %307 = math.exp %306 : vector<8x128xf32>
    %cst_133 = arith.constant 1.000000e+00 : f32
    %308 = vector.broadcast %cst_133 : f32 to vector<8x128xf32>
    %309 = arith.addf %308, %307 : vector<8x128xf32>
    %310 = arith.divf %308, %309 : vector<8x128xf32>
    %311 = vector.extract_strided_slice %304 {offsets = [0, 128], sizes = [8, 128], strides = [1, 1]} : vector<8x512xf32> to vector<8x128xf32>
    %312 = arith.negf %311 : vector<8x128xf32>
    %313 = math.exp %312 : vector<8x128xf32>
    %cst_134 = arith.constant 1.000000e+00 : f32
    %314 = vector.broadcast %cst_134 : f32 to vector<8x128xf32>
    %315 = arith.addf %314, %313 : vector<8x128xf32>
    %316 = arith.divf %314, %315 : vector<8x128xf32>
    %317 = vector.extract_strided_slice %304 {offsets = [0, 256], sizes = [8, 128], strides = [1, 1]} : vector<8x512xf32> to vector<8x128xf32>
    %318 = math.tanh %317 : vector<8x128xf32>
    %319 = vector.extract_strided_slice %304 {offsets = [0, 384], sizes = [8, 128], strides = [1, 1]} : vector<8x512xf32> to vector<8x128xf32>
    %320 = arith.negf %319 : vector<8x128xf32>
    %321 = math.exp %320 : vector<8x128xf32>
    %cst_135 = arith.constant 1.000000e+00 : f32
    %322 = vector.broadcast %cst_135 : f32 to vector<8x128xf32>
    %323 = arith.addf %322, %321 : vector<8x128xf32>
    %324 = arith.divf %322, %323 : vector<8x128xf32>
    %325 = arith.mulf %316, %297 : vector<8x128xf32>
    %326 = arith.mulf %310, %318 : vector<8x128xf32>
    %327 = arith.addf %325, %326 : vector<8x128xf32>
    %328 = math.tanh %327 : vector<8x128xf32>
    %329 = arith.mulf %324, %328 : vector<8x128xf32>
    %c0_136 = arith.constant 0 : index
    %c0_137 = arith.constant 0 : index
    %330 = vector.load %arg12[%c0_136, %c0_137] : memref<64x128xf32, #tpu.memory_space<vmem>>, vector<8x128xf32>
    tpu.vector_store %arg12[%c0_136, %c0_137], %329 {strides = array<i32>} : memref<64x128xf32, #tpu.memory_space<vmem>>, vector<8x128xf32>,
    %c56_138 = arith.constant 56 : index
    %c0_139 = arith.constant 0 : index
    %331 = vector.load %arg13[%c56_138, %c0_139] : memref<64x128xf32, #tpu.memory_space<vmem>>, vector<8x128xf32>
    tpu.vector_store %arg13[%c56_138, %c0_139], %329 {strides = array<i32>} : memref<64x128xf32, #tpu.memory_space<vmem>>, vector<8x128xf32>,
    %c8_140 = arith.constant 8 : index
    %c0_141 = arith.constant 0 : index
    %332 = vector.load %arg15[%c8_140, %c0_141] : memref<64x1024xf32, #tpu.memory_space<vmem>>, vector<8x512xf32>
    %c48_142 = arith.constant 48 : index
    %c512_143 = arith.constant 512 : index
    %333 = vector.load %arg15[%c48_142, %c512_143] : memref<64x1024xf32, #tpu.memory_space<vmem>>, vector<8x512xf32>
    %334 = arith.addf %332, %333 : vector<8x512xf32>
    %335 = arith.truncf %329 : vector<8x128xf32> to vector<8x128xbf16>
    %c0_144 = arith.constant 0 : index
    %c0_145 = arith.constant 0 : index
    %336 = vector.load %arg6[%c0_144, %c0_145] : memref<128x512xbf16, #tpu.memory_space<vmem>>, vector<128x512xbf16>
    %cst_146 = arith.constant dense<0.000000e+00> : vector<8x512xf32>
    %337 = tpu.matmul %335, %336, %cst_146 {dimension_numbers = #tpu.dot_dimension_numbers<[1], [0], [0], [1], [0, 0, 1, 1], [], []>} : vector<8x128xbf16>, vector<128x512xbf16>, vector<8x512xf32> -> vector<8x512xf32>
    %338 = arith.addf %334, %337 : vector<8x512xf32>
    %339 = vector.extract_strided_slice %338 {offsets = [0, 0], sizes = [8, 128], strides = [1, 1]} : vector<8x512xf32> to vector<8x128xf32>
    %340 = arith.negf %339 : vector<8x128xf32>
    %341 = math.exp %340 : vector<8x128xf32>
    %cst_147 = arith.constant 1.000000e+00 : f32
    %342 = vector.broadcast %cst_147 : f32 to vector<8x128xf32>
    %343 = arith.addf %342, %341 : vector<8x128xf32>
    %344 = arith.divf %342, %343 : vector<8x128xf32>
    %345 = vector.extract_strided_slice %338 {offsets = [0, 128], sizes = [8, 128], strides = [1, 1]} : vector<8x512xf32> to vector<8x128xf32>
    %346 = arith.negf %345 : vector<8x128xf32>
    %347 = math.exp %346 : vector<8x128xf32>
    %cst_148 = arith.constant 1.000000e+00 : f32
    %348 = vector.broadcast %cst_148 : f32 to vector<8x128xf32>
    %349 = arith.addf %348, %347 : vector<8x128xf32>
    %350 = arith.divf %348, %349 : vector<8x128xf32>
    %351 = vector.extract_strided_slice %338 {offsets = [0, 256], sizes = [8, 128], strides = [1, 1]} : vector<8x512xf32> to vector<8x128xf32>
    %352 = math.tanh %351 : vector<8x128xf32>
    %353 = vector.extract_strided_slice %338 {offsets = [0, 384], sizes = [8, 128], strides = [1, 1]} : vector<8x512xf32> to vector<8x128xf32>
    %354 = arith.negf %353 : vector<8x128xf32>
    %355 = math.exp %354 : vector<8x128xf32>
    %cst_149 = arith.constant 1.000000e+00 : f32
    %356 = vector.broadcast %cst_149 : f32 to vector<8x128xf32>
    %357 = arith.addf %356, %355 : vector<8x128xf32>
    %358 = arith.divf %356, %357 : vector<8x128xf32>
    %359 = arith.mulf %350, %327 : vector<8x128xf32>
    %360 = arith.mulf %344, %352 : vector<8x128xf32>
    %361 = arith.addf %359, %360 : vector<8x128xf32>
    %362 = math.tanh %361 : vector<8x128xf32>
    %363 = arith.mulf %358, %362 : vector<8x128xf32>
    %c8_150 = arith.constant 8 : index
    %c0_151 = arith.constant 0 : index
    %364 = vector.load %arg12[%c8_150, %c0_151] : memref<64x128xf32, #tpu.memory_space<vmem>>, vector<8x128xf32>
    tpu.vector_store %arg12[%c8_150, %c0_151], %363 {strides = array<i32>} : memref<64x128xf32, #tpu.memory_space<vmem>>, vector<8x128xf32>,
    %c48_152 = arith.constant 48 : index
    %c0_153 = arith.constant 0 : index
    %365 = vector.load %arg13[%c48_152, %c0_153] : memref<64x128xf32, #tpu.memory_space<vmem>>, vector<8x128xf32>
    tpu.vector_store %arg13[%c48_152, %c0_153], %363 {strides = array<i32>} : memref<64x128xf32, #tpu.memory_space<vmem>>, vector<8x128xf32>,
    %c16_154 = arith.constant 16 : index
    %c0_155 = arith.constant 0 : index
    %366 = vector.load %arg15[%c16_154, %c0_155] : memref<64x1024xf32, #tpu.memory_space<vmem>>, vector<8x512xf32>
    %c40_156 = arith.constant 40 : index
    %c512_157 = arith.constant 512 : index
    %367 = vector.load %arg15[%c40_156, %c512_157] : memref<64x1024xf32, #tpu.memory_space<vmem>>, vector<8x512xf32>
    %368 = arith.addf %366, %367 : vector<8x512xf32>
    %369 = arith.truncf %363 : vector<8x128xf32> to vector<8x128xbf16>
    %c0_158 = arith.constant 0 : index
    %c0_159 = arith.constant 0 : index
    %370 = vector.load %arg6[%c0_158, %c0_159] : memref<128x512xbf16, #tpu.memory_space<vmem>>, vector<128x512xbf16>
    %cst_160 = arith.constant dense<0.000000e+00> : vector<8x512xf32>
    %371 = tpu.matmul %369, %370, %cst_160 {dimension_numbers = #tpu.dot_dimension_numbers<[1], [0], [0], [1], [0, 0, 1, 1], [], []>} : vector<8x128xbf16>, vector<128x512xbf16>, vector<8x512xf32> -> vector<8x512xf32>
    %372 = arith.addf %368, %371 : vector<8x512xf32>
    %373 = vector.extract_strided_slice %372 {offsets = [0, 0], sizes = [8, 128], strides = [1, 1]} : vector<8x512xf32> to vector<8x128xf32>
    %374 = arith.negf %373 : vector<8x128xf32>
    %375 = math.exp %374 : vector<8x128xf32>
    %cst_161 = arith.constant 1.000000e+00 : f32
    %376 = vector.broadcast %cst_161 : f32 to vector<8x128xf32>
    %377 = arith.addf %376, %375 : vector<8x128xf32>
    %378 = arith.divf %376, %377 : vector<8x128xf32>
    %379 = vector.extract_strided_slice %372 {offsets = [0, 128], sizes = [8, 128], strides = [1, 1]} : vector<8x512xf32> to vector<8x128xf32>
    %380 = arith.negf %379 : vector<8x128xf32>
    %381 = math.exp %380 : vector<8x128xf32>
    %cst_162 = arith.constant 1.000000e+00 : f32
    %382 = vector.broadcast %cst_162 : f32 to vector<8x128xf32>
    %383 = arith.addf %382, %381 : vector<8x128xf32>
    %384 = arith.divf %382, %383 : vector<8x128xf32>
    %385 = vector.extract_strided_slice %372 {offsets = [0, 256], sizes = [8, 128], strides = [1, 1]} : vector<8x512xf32> to vector<8x128xf32>
    %386 = math.tanh %385 : vector<8x128xf32>
    %387 = vector.extract_strided_slice %372 {offsets = [0, 384], sizes = [8, 128], strides = [1, 1]} : vector<8x512xf32> to vector<8x128xf32>
    %388 = arith.negf %387 : vector<8x128xf32>
    %389 = math.exp %388 : vector<8x128xf32>
    %cst_163 = arith.constant 1.000000e+00 : f32
    %390 = vector.broadcast %cst_163 : f32 to vector<8x128xf32>
    %391 = arith.addf %390, %389 : vector<8x128xf32>
    %392 = arith.divf %390, %391 : vector<8x128xf32>
    %393 = arith.mulf %384, %361 : vector<8x128xf32>
    %394 = arith.mulf %378, %386 : vector<8x128xf32>
    %395 = arith.addf %393, %394 : vector<8x128xf32>
    %396 = math.tanh %395 : vector<8x128xf32>
    %397 = arith.mulf %392, %396 : vector<8x128xf32>
    %c16_164 = arith.constant 16 : index
    %c0_165 = arith.constant 0 : index
    %398 = vector.load %arg12[%c16_164, %c0_165] : memref<64x128xf32, #tpu.memory_space<vmem>>, vector<8x128xf32>
    tpu.vector_store %arg12[%c16_164, %c0_165], %397 {strides = array<i32>} : memref<64x128xf32, #tpu.memory_space<vmem>>, vector<8x128xf32>,
    %c40_166 = arith.constant 40 : index
    %c0_167 = arith.constant 0 : index
    %399 = vector.load %arg13[%c40_166, %c0_167] : memref<64x128xf32, #tpu.memory_space<vmem>>, vector<8x128xf32>
    tpu.vector_store %arg13[%c40_166, %c0_167], %397 {strides = array<i32>} : memref<64x128xf32, #tpu.memory_space<vmem>>, vector<8x128xf32>,
    %c24_168 = arith.constant 24 : index
    %c0_169 = arith.constant 0 : index
    %400 = vector.load %arg15[%c24_168, %c0_169] : memref<64x1024xf32, #tpu.memory_space<vmem>>, vector<8x512xf32>
    %c32_170 = arith.constant 32 : index
    %c512_171 = arith.constant 512 : index
    %401 = vector.load %arg15[%c32_170, %c512_171] : memref<64x1024xf32, #tpu.memory_space<vmem>>, vector<8x512xf32>
    %402 = arith.addf %400, %401 : vector<8x512xf32>
    %403 = arith.truncf %397 : vector<8x128xf32> to vector<8x128xbf16>
    %c0_172 = arith.constant 0 : index
    %c0_173 = arith.constant 0 : index
    %404 = vector.load %arg6[%c0_172, %c0_173] : memref<128x512xbf16, #tpu.memory_space<vmem>>, vector<128x512xbf16>
    %cst_174 = arith.constant dense<0.000000e+00> : vector<8x512xf32>
    %405 = tpu.matmul %403, %404, %cst_174 {dimension_numbers = #tpu.dot_dimension_numbers<[1], [0], [0], [1], [0, 0, 1, 1], [], []>} : vector<8x128xbf16>, vector<128x512xbf16>, vector<8x512xf32> -> vector<8x512xf32>
    %406 = arith.addf %402, %405 : vector<8x512xf32>
    %407 = vector.extract_strided_slice %406 {offsets = [0, 0], sizes = [8, 128], strides = [1, 1]} : vector<8x512xf32> to vector<8x128xf32>
    %408 = arith.negf %407 : vector<8x128xf32>
    %409 = math.exp %408 : vector<8x128xf32>
    %cst_175 = arith.constant 1.000000e+00 : f32
    %410 = vector.broadcast %cst_175 : f32 to vector<8x128xf32>
    %411 = arith.addf %410, %409 : vector<8x128xf32>
    %412 = arith.divf %410, %411 : vector<8x128xf32>
    %413 = vector.extract_strided_slice %406 {offsets = [0, 128], sizes = [8, 128], strides = [1, 1]} : vector<8x512xf32> to vector<8x128xf32>
    %414 = arith.negf %413 : vector<8x128xf32>
    %415 = math.exp %414 : vector<8x128xf32>
    %cst_176 = arith.constant 1.000000e+00 : f32
    %416 = vector.broadcast %cst_176 : f32 to vector<8x128xf32>
    %417 = arith.addf %416, %415 : vector<8x128xf32>
    %418 = arith.divf %416, %417 : vector<8x128xf32>
    %419 = vector.extract_strided_slice %406 {offsets = [0, 256], sizes = [8, 128], strides = [1, 1]} : vector<8x512xf32> to vector<8x128xf32>
    %420 = math.tanh %419 : vector<8x128xf32>
    %421 = vector.extract_strided_slice %406 {offsets = [0, 384], sizes = [8, 128], strides = [1, 1]} : vector<8x512xf32> to vector<8x128xf32>
    %422 = arith.negf %421 : vector<8x128xf32>
    %423 = math.exp %422 : vector<8x128xf32>
    %cst_177 = arith.constant 1.000000e+00 : f32
    %424 = vector.broadcast %cst_177 : f32 to vector<8x128xf32>
    %425 = arith.addf %424, %423 : vector<8x128xf32>
    %426 = arith.divf %424, %425 : vector<8x128xf32>
    %427 = arith.mulf %418, %395 : vector<8x128xf32>
    %428 = arith.mulf %412, %420 : vector<8x128xf32>
    %429 = arith.addf %427, %428 : vector<8x128xf32>
    %430 = math.tanh %429 : vector<8x128xf32>
    %431 = arith.mulf %426, %430 : vector<8x128xf32>
    %c24_178 = arith.constant 24 : index
    %c0_179 = arith.constant 0 : index
    %432 = vector.load %arg12[%c24_178, %c0_179] : memref<64x128xf32, #tpu.memory_space<vmem>>, vector<8x128xf32>
    tpu.vector_store %arg12[%c24_178, %c0_179], %431 {strides = array<i32>} : memref<64x128xf32, #tpu.memory_space<vmem>>, vector<8x128xf32>,
    %c32_180 = arith.constant 32 : index
    %c0_181 = arith.constant 0 : index
    %433 = vector.load %arg13[%c32_180, %c0_181] : memref<64x128xf32, #tpu.memory_space<vmem>>, vector<8x128xf32>
    tpu.vector_store %arg13[%c32_180, %c0_181], %431 {strides = array<i32>} : memref<64x128xf32, #tpu.memory_space<vmem>>, vector<8x128xf32>,
    %c32_182 = arith.constant 32 : index
    %c0_183 = arith.constant 0 : index
    %434 = vector.load %arg15[%c32_182, %c0_183] : memref<64x1024xf32, #tpu.memory_space<vmem>>, vector<8x512xf32>
    %c24_184 = arith.constant 24 : index
    %c512_185 = arith.constant 512 : index
    %435 = vector.load %arg15[%c24_184, %c512_185] : memref<64x1024xf32, #tpu.memory_space<vmem>>, vector<8x512xf32>
    %436 = arith.addf %434, %435 : vector<8x512xf32>
    %437 = arith.truncf %431 : vector<8x128xf32> to vector<8x128xbf16>
    %c0_186 = arith.constant 0 : index
    %c0_187 = arith.constant 0 : index
    %438 = vector.load %arg6[%c0_186, %c0_187] : memref<128x512xbf16, #tpu.memory_space<vmem>>, vector<128x512xbf16>
    %cst_188 = arith.constant dense<0.000000e+00> : vector<8x512xf32>
    %439 = tpu.matmul %437, %438, %cst_188 {dimension_numbers = #tpu.dot_dimension_numbers<[1], [0], [0], [1], [0, 0, 1, 1], [], []>} : vector<8x128xbf16>, vector<128x512xbf16>, vector<8x512xf32> -> vector<8x512xf32>
    %440 = arith.addf %436, %439 : vector<8x512xf32>
    %441 = vector.extract_strided_slice %440 {offsets = [0, 0], sizes = [8, 128], strides = [1, 1]} : vector<8x512xf32> to vector<8x128xf32>
    %442 = arith.negf %441 : vector<8x128xf32>
    %443 = math.exp %442 : vector<8x128xf32>
    %cst_189 = arith.constant 1.000000e+00 : f32
    %444 = vector.broadcast %cst_189 : f32 to vector<8x128xf32>
    %445 = arith.addf %444, %443 : vector<8x128xf32>
    %446 = arith.divf %444, %445 : vector<8x128xf32>
    %447 = vector.extract_strided_slice %440 {offsets = [0, 128], sizes = [8, 128], strides = [1, 1]} : vector<8x512xf32> to vector<8x128xf32>
    %448 = arith.negf %447 : vector<8x128xf32>
    %449 = math.exp %448 : vector<8x128xf32>
    %cst_190 = arith.constant 1.000000e+00 : f32
    %450 = vector.broadcast %cst_190 : f32 to vector<8x128xf32>
    %451 = arith.addf %450, %449 : vector<8x128xf32>
    %452 = arith.divf %450, %451 : vector<8x128xf32>
    %453 = vector.extract_strided_slice %440 {offsets = [0, 256], sizes = [8, 128], strides = [1, 1]} : vector<8x512xf32> to vector<8x128xf32>
    %454 = math.tanh %453 : vector<8x128xf32>
    %455 = vector.extract_strided_slice %440 {offsets = [0, 384], sizes = [8, 128], strides = [1, 1]} : vector<8x512xf32> to vector<8x128xf32>
    %456 = arith.negf %455 : vector<8x128xf32>
    %457 = math.exp %456 : vector<8x128xf32>
    %cst_191 = arith.constant 1.000000e+00 : f32
    %458 = vector.broadcast %cst_191 : f32 to vector<8x128xf32>
    %459 = arith.addf %458, %457 : vector<8x128xf32>
    %460 = arith.divf %458, %459 : vector<8x128xf32>
    %461 = arith.mulf %452, %429 : vector<8x128xf32>
    %462 = arith.mulf %446, %454 : vector<8x128xf32>
    %463 = arith.addf %461, %462 : vector<8x128xf32>
    %464 = math.tanh %463 : vector<8x128xf32>
    %465 = arith.mulf %460, %464 : vector<8x128xf32>
    %c32_192 = arith.constant 32 : index
    %c0_193 = arith.constant 0 : index
    %466 = vector.load %arg12[%c32_192, %c0_193] : memref<64x128xf32, #tpu.memory_space<vmem>>, vector<8x128xf32>
    tpu.vector_store %arg12[%c32_192, %c0_193], %465 {strides = array<i32>} : memref<64x128xf32, #tpu.memory_space<vmem>>, vector<8x128xf32>,
    %c24_194 = arith.constant 24 : index
    %c0_195 = arith.constant 0 : index
    %467 = vector.load %arg13[%c24_194, %c0_195] : memref<64x128xf32, #tpu.memory_space<vmem>>, vector<8x128xf32>
    tpu.vector_store %arg13[%c24_194, %c0_195], %465 {strides = array<i32>} : memref<64x128xf32, #tpu.memory_space<vmem>>, vector<8x128xf32>,
    %c40_196 = arith.constant 40 : index
    %c0_197 = arith.constant 0 : index
    %468 = vector.load %arg15[%c40_196, %c0_197] : memref<64x1024xf32, #tpu.memory_space<vmem>>, vector<8x512xf32>
    %c16_198 = arith.constant 16 : index
    %c512_199 = arith.constant 512 : index
    %469 = vector.load %arg15[%c16_198, %c512_199] : memref<64x1024xf32, #tpu.memory_space<vmem>>, vector<8x512xf32>
    %470 = arith.addf %468, %469 : vector<8x512xf32>
    %471 = arith.truncf %465 : vector<8x128xf32> to vector<8x128xbf16>
    %c0_200 = arith.constant 0 : index
    %c0_201 = arith.constant 0 : index
    %472 = vector.load %arg6[%c0_200, %c0_201] : memref<128x512xbf16, #tpu.memory_space<vmem>>, vector<128x512xbf16>
    %cst_202 = arith.constant dense<0.000000e+00> : vector<8x512xf32>
    %473 = tpu.matmul %471, %472, %cst_202 {dimension_numbers = #tpu.dot_dimension_numbers<[1], [0], [0], [1], [0, 0, 1, 1], [], []>} : vector<8x128xbf16>, vector<128x512xbf16>, vector<8x512xf32> -> vector<8x512xf32>
    %474 = arith.addf %470, %473 : vector<8x512xf32>
    %475 = vector.extract_strided_slice %474 {offsets = [0, 0], sizes = [8, 128], strides = [1, 1]} : vector<8x512xf32> to vector<8x128xf32>
    %476 = arith.negf %475 : vector<8x128xf32>
    %477 = math.exp %476 : vector<8x128xf32>
    %cst_203 = arith.constant 1.000000e+00 : f32
    %478 = vector.broadcast %cst_203 : f32 to vector<8x128xf32>
    %479 = arith.addf %478, %477 : vector<8x128xf32>
    %480 = arith.divf %478, %479 : vector<8x128xf32>
    %481 = vector.extract_strided_slice %474 {offsets = [0, 128], sizes = [8, 128], strides = [1, 1]} : vector<8x512xf32> to vector<8x128xf32>
    %482 = arith.negf %481 : vector<8x128xf32>
    %483 = math.exp %482 : vector<8x128xf32>
    %cst_204 = arith.constant 1.000000e+00 : f32
    %484 = vector.broadcast %cst_204 : f32 to vector<8x128xf32>
    %485 = arith.addf %484, %483 : vector<8x128xf32>
    %486 = arith.divf %484, %485 : vector<8x128xf32>
    %487 = vector.extract_strided_slice %474 {offsets = [0, 256], sizes = [8, 128], strides = [1, 1]} : vector<8x512xf32> to vector<8x128xf32>
    %488 = math.tanh %487 : vector<8x128xf32>
    %489 = vector.extract_strided_slice %474 {offsets = [0, 384], sizes = [8, 128], strides = [1, 1]} : vector<8x512xf32> to vector<8x128xf32>
    %490 = arith.negf %489 : vector<8x128xf32>
    %491 = math.exp %490 : vector<8x128xf32>
    %cst_205 = arith.constant 1.000000e+00 : f32
    %492 = vector.broadcast %cst_205 : f32 to vector<8x128xf32>
    %493 = arith.addf %492, %491 : vector<8x128xf32>
    %494 = arith.divf %492, %493 : vector<8x128xf32>
    %495 = arith.mulf %486, %463 : vector<8x128xf32>
    %496 = arith.mulf %480, %488 : vector<8x128xf32>
    %497 = arith.addf %495, %496 : vector<8x128xf32>
    %498 = math.tanh %497 : vector<8x128xf32>
    %499 = arith.mulf %494, %498 : vector<8x128xf32>
    %c40_206 = arith.constant 40 : index
    %c0_207 = arith.constant 0 : index
    %500 = vector.load %arg12[%c40_206, %c0_207] : memref<64x128xf32, #tpu.memory_space<vmem>>, vector<8x128xf32>
    tpu.vector_store %arg12[%c40_206, %c0_207], %499 {strides = array<i32>} : memref<64x128xf32, #tpu.memory_space<vmem>>, vector<8x128xf32>,
    %c16_208 = arith.constant 16 : index
    %c0_209 = arith.constant 0 : index
    %501 = vector.load %arg13[%c16_208, %c0_209] : memref<64x128xf32, #tpu.memory_space<vmem>>, vector<8x128xf32>
    tpu.vector_store %arg13[%c16_208, %c0_209], %499 {strides = array<i32>} : memref<64x128xf32, #tpu.memory_space<vmem>>, vector<8x128xf32>,
    %c48_210 = arith.constant 48 : index
    %c0_211 = arith.constant 0 : index
    %502 = vector.load %arg15[%c48_210, %c0_211] : memref<64x1024xf32, #tpu.memory_space<vmem>>, vector<8x512xf32>
    %c8_212 = arith.constant 8 : index
    %c512_213 = arith.constant 512 : index
    %503 = vector.load %arg15[%c8_212, %c512_213] : memref<64x1024xf32, #tpu.memory_space<vmem>>, vector<8x512xf32>
    %504 = arith.addf %502, %503 : vector<8x512xf32>
    %505 = arith.truncf %499 : vector<8x128xf32> to vector<8x128xbf16>
    %c0_214 = arith.constant 0 : index
    %c0_215 = arith.constant 0 : index
    %506 = vector.load %arg6[%c0_214, %c0_215] : memref<128x512xbf16, #tpu.memory_space<vmem>>, vector<128x512xbf16>
    %cst_216 = arith.constant dense<0.000000e+00> : vector<8x512xf32>
    %507 = tpu.matmul %505, %506, %cst_216 {dimension_numbers = #tpu.dot_dimension_numbers<[1], [0], [0], [1], [0, 0, 1, 1], [], []>} : vector<8x128xbf16>, vector<128x512xbf16>, vector<8x512xf32> -> vector<8x512xf32>
    %508 = arith.addf %504, %507 : vector<8x512xf32>
    %509 = vector.extract_strided_slice %508 {offsets = [0, 0], sizes = [8, 128], strides = [1, 1]} : vector<8x512xf32> to vector<8x128xf32>
    %510 = arith.negf %509 : vector<8x128xf32>
    %511 = math.exp %510 : vector<8x128xf32>
    %cst_217 = arith.constant 1.000000e+00 : f32
    %512 = vector.broadcast %cst_217 : f32 to vector<8x128xf32>
    %513 = arith.addf %512, %511 : vector<8x128xf32>
    %514 = arith.divf %512, %513 : vector<8x128xf32>
    %515 = vector.extract_strided_slice %508 {offsets = [0, 128], sizes = [8, 128], strides = [1, 1]} : vector<8x512xf32> to vector<8x128xf32>
    %516 = arith.negf %515 : vector<8x128xf32>
    %517 = math.exp %516 : vector<8x128xf32>
    %cst_218 = arith.constant 1.000000e+00 : f32
    %518 = vector.broadcast %cst_218 : f32 to vector<8x128xf32>
    %519 = arith.addf %518, %517 : vector<8x128xf32>
    %520 = arith.divf %518, %519 : vector<8x128xf32>
    %521 = vector.extract_strided_slice %508 {offsets = [0, 256], sizes = [8, 128], strides = [1, 1]} : vector<8x512xf32> to vector<8x128xf32>
    %522 = math.tanh %521 : vector<8x128xf32>
    %523 = vector.extract_strided_slice %508 {offsets = [0, 384], sizes = [8, 128], strides = [1, 1]} : vector<8x512xf32> to vector<8x128xf32>
    %524 = arith.negf %523 : vector<8x128xf32>
    %525 = math.exp %524 : vector<8x128xf32>
    %cst_219 = arith.constant 1.000000e+00 : f32
    %526 = vector.broadcast %cst_219 : f32 to vector<8x128xf32>
    %527 = arith.addf %526, %525 : vector<8x128xf32>
    %528 = arith.divf %526, %527 : vector<8x128xf32>
    %529 = arith.mulf %520, %497 : vector<8x128xf32>
    %530 = arith.mulf %514, %522 : vector<8x128xf32>
    %531 = arith.addf %529, %530 : vector<8x128xf32>
    %532 = math.tanh %531 : vector<8x128xf32>
    %533 = arith.mulf %528, %532 : vector<8x128xf32>
    %c48_220 = arith.constant 48 : index
    %c0_221 = arith.constant 0 : index
    %534 = vector.load %arg12[%c48_220, %c0_221] : memref<64x128xf32, #tpu.memory_space<vmem>>, vector<8x128xf32>
    tpu.vector_store %arg12[%c48_220, %c0_221], %533 {strides = array<i32>} : memref<64x128xf32, #tpu.memory_space<vmem>>, vector<8x128xf32>,
    %c8_222 = arith.constant 8 : index
    %c0_223 = arith.constant 0 : index
    %535 = vector.load %arg13[%c8_222, %c0_223] : memref<64x128xf32, #tpu.memory_space<vmem>>, vector<8x128xf32>
    tpu.vector_store %arg13[%c8_222, %c0_223], %533 {strides = array<i32>} : memref<64x128xf32, #tpu.memory_space<vmem>>, vector<8x128xf32>,
    %c56_224 = arith.constant 56 : index
    %c0_225 = arith.constant 0 : index
    %536 = vector.load %arg15[%c56_224, %c0_225] : memref<64x1024xf32, #tpu.memory_space<vmem>>, vector<8x512xf32>
    %c0_226 = arith.constant 0 : index
    %c512_227 = arith.constant 512 : index
    %537 = vector.load %arg15[%c0_226, %c512_227] : memref<64x1024xf32, #tpu.memory_space<vmem>>, vector<8x512xf32>
    %538 = arith.addf %536, %537 : vector<8x512xf32>
    %539 = arith.truncf %533 : vector<8x128xf32> to vector<8x128xbf16>
    %c0_228 = arith.constant 0 : index
    %c0_229 = arith.constant 0 : index
    %540 = vector.load %arg6[%c0_228, %c0_229] : memref<128x512xbf16, #tpu.memory_space<vmem>>, vector<128x512xbf16>
    %cst_230 = arith.constant dense<0.000000e+00> : vector<8x512xf32>
    %541 = tpu.matmul %539, %540, %cst_230 {dimension_numbers = #tpu.dot_dimension_numbers<[1], [0], [0], [1], [0, 0, 1, 1], [], []>} : vector<8x128xbf16>, vector<128x512xbf16>, vector<8x512xf32> -> vector<8x512xf32>
    %542 = arith.addf %538, %541 : vector<8x512xf32>
    %543 = vector.extract_strided_slice %542 {offsets = [0, 0], sizes = [8, 128], strides = [1, 1]} : vector<8x512xf32> to vector<8x128xf32>
    %544 = arith.negf %543 : vector<8x128xf32>
    %545 = math.exp %544 : vector<8x128xf32>
    %cst_231 = arith.constant 1.000000e+00 : f32
    %546 = vector.broadcast %cst_231 : f32 to vector<8x128xf32>
    %547 = arith.addf %546, %545 : vector<8x128xf32>
    %548 = arith.divf %546, %547 : vector<8x128xf32>
    %549 = vector.extract_strided_slice %542 {offsets = [0, 128], sizes = [8, 128], strides = [1, 1]} : vector<8x512xf32> to vector<8x128xf32>
    %550 = arith.negf %549 : vector<8x128xf32>
    %551 = math.exp %550 : vector<8x128xf32>
    %cst_232 = arith.constant 1.000000e+00 : f32
    %552 = vector.broadcast %cst_232 : f32 to vector<8x128xf32>
    %553 = arith.addf %552, %551 : vector<8x128xf32>
    %554 = arith.divf %552, %553 : vector<8x128xf32>
    %555 = vector.extract_strided_slice %542 {offsets = [0, 256], sizes = [8, 128], strides = [1, 1]} : vector<8x512xf32> to vector<8x128xf32>
    %556 = math.tanh %555 : vector<8x128xf32>
    %557 = vector.extract_strided_slice %542 {offsets = [0, 384], sizes = [8, 128], strides = [1, 1]} : vector<8x512xf32> to vector<8x128xf32>
    %558 = arith.negf %557 : vector<8x128xf32>
    %559 = math.exp %558 : vector<8x128xf32>
    %cst_233 = arith.constant 1.000000e+00 : f32
    %560 = vector.broadcast %cst_233 : f32 to vector<8x128xf32>
    %561 = arith.addf %560, %559 : vector<8x128xf32>
    %562 = arith.divf %560, %561 : vector<8x128xf32>
    %563 = arith.mulf %554, %531 : vector<8x128xf32>
    %564 = arith.mulf %548, %556 : vector<8x128xf32>
    %565 = arith.addf %563, %564 : vector<8x128xf32>
    %566 = math.tanh %565 : vector<8x128xf32>
    %567 = arith.mulf %562, %566 : vector<8x128xf32>
    %c56_234 = arith.constant 56 : index
    %c0_235 = arith.constant 0 : index
    %568 = vector.load %arg12[%c56_234, %c0_235] : memref<64x128xf32, #tpu.memory_space<vmem>>, vector<8x128xf32>
    tpu.vector_store %arg12[%c56_234, %c0_235], %567 {strides = array<i32>} : memref<64x128xf32, #tpu.memory_space<vmem>>, vector<8x128xf32>,
    %c0_236 = arith.constant 0 : index
    %c0_237 = arith.constant 0 : index
    %569 = vector.load %arg13[%c0_236, %c0_237] : memref<64x128xf32, #tpu.memory_space<vmem>>, vector<8x128xf32>
    tpu.vector_store %arg13[%c0_236, %c0_237], %567 {strides = array<i32>} : memref<64x128xf32, #tpu.memory_space<vmem>>, vector<8x128xf32>,
    %570 = tpu.iota {dimensions = array<i32: 1>} : vector<1x128xi32>
    %c32_i32_238 = arith.constant 32 : i32
    %571 = vector.broadcast %c32_i32_238 : i32 to vector<1x128xi32>
    %572 = arith.cmpi slt, %570, %571 : vector<1x128xi32>
    %c0_239 = arith.constant 0 : index
    %c0_240 = arith.constant 0 : index
    %573 = vector.load %arg12[%c0_239, %c0_240] : memref<64x128xf32, #tpu.memory_space<vmem>>, vector<64x128xf32>
    %c0_241 = arith.constant 0 : index
    %c0_242 = arith.constant 0 : index
    %574 = vector.load %arg13[%c0_241, %c0_242] : memref<64x128xf32, #tpu.memory_space<vmem>>, vector<64x128xf32>
    %575 = vector.shape_cast %572 : vector<1x128xi1> to vector<1x128xi1>
    %576 = vector.broadcast %575 : vector<1x128xi1> to vector<64x128xi1>
    %577 = arith.select %576, %573, %574 : vector<64x128xi1>, vector<64x128xf32>
    %578 = arith.truncf %577 : vector<64x128xf32> to vector<64x128xbf16>
    %c0_243 = arith.constant 0 : index
    %c0_244 = arith.constant 0 : index
    %579 = vector.load %arg7[%c0_243, %c0_244] : memref<128x128xbf16, #tpu.memory_space<vmem>>, vector<128x128xbf16>
    %cst_245 = arith.constant dense<0.000000e+00> : vector<64x128xf32>
    %580 = tpu.matmul %578, %579, %cst_245 {dimension_numbers = #tpu.dot_dimension_numbers<[1], [0], [0], [1], [0, 0, 1, 1], [], []>} : vector<64x128xbf16>, vector<128x128xbf16>, vector<64x128xf32> -> vector<64x128xf32>
    %c0_246 = arith.constant 0 : index
    %c0_247 = arith.constant 0 : index
    %581 = vector.load %arg8[%c0_246, %c0_247] : memref<1x128xf32, #tpu.memory_space<vmem>>, vector<1x128xf32>
    %582 = vector.broadcast %581 : vector<1x128xf32> to vector<64x128xf32>
    %583 = arith.addf %580, %582 : vector<64x128xf32>
    %cst_248 = arith.constant 0.000000e+00 : f32
    %584 = vector.broadcast %cst_248 : f32 to vector<64x128xf32>
    %585 = arith.maximumf %583, %584 : vector<64x128xf32>
    %c0_249 = arith.constant 0 : index
    %c0_250 = arith.constant 0 : index
    %586 = vector.load %arg9[%c0_249, %c0_250] : memref<64x128xf32, #tpu.memory_space<vmem>>, vector<64x128xf32>
    tpu.vector_store %arg9[%c0_249, %c0_250], %585 {strides = array<i32>} : memref<64x128xf32, #tpu.memory_space<vmem>>, vector<64x128xf32>,
    return
  }
}

</mosaic_0001>

<bundles_post_ra>
// kernel: esim_embed_layer_ae_forward.1
= control target key start
LH: loop header
LB: loop body
LE: loop exit
PB: predicated region body
PF: predicated region fallthrough
CT: control target
= control target key end

     0   :  { %s15162_s1 = inlined_call_operand.vmem [shape: bf16[128,1024], index: 1, kind: input, shape index: {}]   ;;  %s15163_s0 = inlined_call_operand.vmem [shape: bf16[64,128], index: 0, kind: input, shape index: {}]   ;;  %s15164_s3 = inlined_call_operand.vmem [shape: bf16[128,512], index: 3, kind: input, shape index: {}]   ;;  %s15165_s2 = inlined_call_operand.vmem [shape: f32[1,1024], index: 2, kind: input, shape index: {}]   ;;  %s15166_s4 = inlined_call_operand.vmem [shape: bf16[128,1024], index: 4, kind: input, shape index: {}]   ;;  %s15167_s6 = inlined_call_operand.vmem [shape: bf16[128,512], index: 6, kind: input, shape index: {}]   ;;  %s15168_s5 = inlined_call_operand.vmem [shape: f32[1,1024], index: 5, kind: input, shape index: {}]   ;;  %s15169_s8 = inlined_call_operand.vmem [shape: f32[1,128], index: 8, kind: input, shape index: {}]   ;;  %s15170_s7 = inlined_call_operand.vmem [shape: bf16[128,128], index: 7, kind: input, shape index: {}]   ;;  %s15171_s9 = inlined_call_operand.vmem [shape: f32[64,128], index: 9, kind: output, shape index: {}]  }
   0x1   :  { %v7095_v0 = vld [vmem:[%s15162_s1 + $0x1c0] sm:$0xf]  ;;  %v9570_v2 = vld [vmem:[%s15162_s1 + $0x1cc] sm:$0xf]  ;;  %v7111_v5 = vld [vmem:[%s15162_s1 + $0x1d0] sm:$0xf] }
   0x2   :  { %v9573_v1 = vld [vmem:[%s15162_s1 + $0x1dc] sm:$0xf0]  ;;  %v7105_v4 = vld [vmem:[%s15162_s1 + $0x1e8] sm:$0xf0]  ;;  %v9575_v6 = vld [vmem:[%s15162_s1 + $0x1ec] sm:$0xf0] }
   0x3   :  { %v7096_v3 = vor.u32 %v9573_v1, %v7095_v0  ;;  %v7108_v7 = vor.u32 %v9570_v2, %v7105_v4  ;;  %v7112_v8 = vor.u32 %v9575_v6, %v7111_v5  ;;  %v7063_v9 = vld [vmem:[%s15162_s1 + $0x180] sm:$0xf]  ;;  %v9562_v11 = vld [vmem:[%s15162_s1 + $0x18c] sm:$0xf]  ;;  %v7079_v14 = vld [vmem:[%s15162_s1 + $0x190] sm:$0xf] }
   0x4   :  { %v9565_v10 = vld [vmem:[%s15162_s1 + $0x19c] sm:$0xf0]  ;;  %v7073_v13 = vld [vmem:[%s15162_s1 + $0x1a8] sm:$0xf0]  ;;  %v9567_v15 = vld [vmem:[%s15162_s1 + $0x1ac] sm:$0xf0] }
   0x5   :  { %467 = vmatpush.bf16.msra.mxu1 %v7096_v3  ;;  %10161 = vmatpush.bf16.msra.mxu2 %v7096_v3  ;;  %v7064_v12 = vor.u32 %v9565_v10, %v7063_v9  ;;  %v7076_v16 = vor.u32 %v9562_v11, %v7073_v13  ;;  %v7080_v17 = vor.u32 %v9567_v15, %v7079_v14  ;;  %v7031_v18 = vld [vmem:[%s15162_s1 + $0x140] sm:$0xf]  ;;  %v9554_v20 = vld [vmem:[%s15162_s1 + $0x14c] sm:$0xf]  ;;  %v7047_v22 = vld [vmem:[%s15162_s1 + $0x150] sm:$0xf] }
   0x6   :  { %554 = vmatpush.bf16.msra.mxu3 %v7108_v7  ;;  %583 = vmatpush.bf16.msra.mxu0 %v7112_v8  ;;  %v9557_v19 = vld [vmem:[%s15162_s1 + $0x15c] sm:$0xf0]  ;;  %v7041_v21 = vld [vmem:[%s15162_s1 + $0x168] sm:$0xf0]  ;;  %v9559_v23 = vld [vmem:[%s15162_s1 + $0x16c] sm:$0xf0] }
   0x7   :  { %v7032_v24 = vor.u32 %v9557_v19, %v7031_v18  ;;  %v7044_v25 = vor.u32 %v9554_v20, %v7041_v21  ;;  %v7048_v26 = vor.u32 %v9559_v23, %v7047_v22  ;;  %v6999_v27 = vld [vmem:[%s15162_s1 + $0x100] sm:$0xf]  ;;  %v9546_v29 = vld [vmem:[%s15162_s1 + $0x10c] sm:$0xf]  ;;  %v7015_v31 = vld [vmem:[%s15162_s1 + $0x110] sm:$0xf] }
   0x8   :  { %v9549_v28 = vld [vmem:[%s15162_s1 + $0x11c] sm:$0xf0]  ;;  %v7009_v30 = vld [vmem:[%s15162_s1 + $0x128] sm:$0xf0]  ;;  %v9551_v32 = vld [vmem:[%s15162_s1 + $0x12c] sm:$0xf0] }
   0x9   :  { %468 = vmatpush.bf16.msra.mxu1 %v7064_v12  ;;  %10162 = vmatpush.bf16.msra.mxu2 %v7064_v12  ;;  %v7000_v33 = vor.u32 %v9549_v28, %v6999_v27  ;;  %v7012_v34 = vor.u32 %v9546_v29, %v7009_v30  ;;  %v7016_v35 = vor.u32 %v9551_v32, %v7015_v31  ;;  %v6967_v36 = vld [vmem:[%s15162_s1 + $0xc0] sm:$0xf]  ;;  %v9538_v38 = vld [vmem:[%s15162_s1 + $0xcc] sm:$0xf]  ;;  %v6983_v40 = vld [vmem:[%s15162_s1 + $0xd0] sm:$0xf] }
   0xa   :  { %555 = vmatpush.bf16.msra.mxu3 %v7076_v16  ;;  %584 = vmatpush.bf16.msra.mxu0 %v7080_v17  ;;  %v9541_v37 = vld [vmem:[%s15162_s1 + $0xdc] sm:$0xf0]  ;;  %v6977_v39 = vld [vmem:[%s15162_s1 + $0xe8] sm:$0xf0]  ;;  %v9543_v41 = vld [vmem:[%s15162_s1 + $0xec] sm:$0xf0] }
   0xb   :  { %v6968_v42 = vor.u32 %v9541_v37, %v6967_v36  ;;  %v6980_v43 = vor.u32 %v9538_v38, %v6977_v39  ;;  %v6984_v44 = vor.u32 %v9543_v41, %v6983_v40  ;;  %v6935_v45 = vld [vmem:[%s15162_s1 + $0x80] sm:$0xf]  ;;  %v9530_v47 = vld [vmem:[%s15162_s1 + $0x8c] sm:$0xf]  ;;  %v6951_v49 = vld [vmem:[%s15162_s1 + $0x90] sm:$0xf] }
   0xc   :  { %v9533_v46 = vld [vmem:[%s15162_s1 + $0x9c] sm:$0xf0]  ;;  %v6945_v48 = vld [vmem:[%s15162_s1 + $0xa8] sm:$0xf0]  ;;  %v9535_v50 = vld [vmem:[%s15162_s1 + $0xac] sm:$0xf0] }
   0xd   :  { %469 = vmatpush.bf16.msra.mxu1 %v7032_v24  ;;  %10163 = vmatpush.bf16.msra.mxu2 %v7032_v24  ;;  %v6936_v51 = vor.u32 %v9533_v46, %v6935_v45  ;;  %v6948_v52 = vor.u32 %v9530_v47, %v6945_v48  ;;  %v6952_v53 = vor.u32 %v9535_v50, %v6951_v49  ;;  %v6903_v54 = vld [vmem:[%s15162_s1 + $0x40] sm:$0xf]  ;;  %v9522_v56 = vld [vmem:[%s15162_s1 + $0x4c] sm:$0xf]  ;;  %v6919_v58 = vld [vmem:[%s15162_s1 + $0x50] sm:$0xf] }
   0xe   :  { %556 = vmatpush.bf16.msra.mxu3 %v7044_v25  ;;  %585 = vmatpush.bf16.msra.mxu0 %v7048_v26  ;;  %v9525_v55 = vld [vmem:[%s15162_s1 + $0x5c] sm:$0xf0]  ;;  %v6913_v57 = vld [vmem:[%s15162_s1 + $0x68] sm:$0xf0]  ;;  %v9527_v59 = vld [vmem:[%s15162_s1 + $0x6c] sm:$0xf0] }
   0xf   :  { %v6904_v60 = vor.u32 %v9525_v55, %v6903_v54  ;;  %v6871_v61 = vld [vmem:[%s15162_s1] sm:$0xf]  ;;  %v6916_v62 = vor.u32 %v9522_v56, %v6913_v57  ;;  %v6920_v63 = vor.u32 %v9527_v59, %v6919_v58  ;;  %v9514_v1 = vld [vmem:[%s15162_s1 + $0xc] sm:$0xf]  ;;  %v6887_v3 = vld [vmem:[%s15162_s1 + $0x10] sm:$0xf] }
  0x10   :  { %v9517_v0 = vld [vmem:[%s15162_s1 + $0x1c] sm:$0xf0]  ;;  %v6881_v2 = vld [vmem:[%s15162_s1 + $0x28] sm:$0xf0]  ;;  %v9519_v4 = vld [vmem:[%s15162_s1 + $0x2c] sm:$0xf0] }
  0x11   :  { %470 = vmatpush.bf16.msra.mxu1 %v7000_v33  ;;  %10164 = vmatpush.bf16.msra.mxu2 %v7000_v33  ;;  %v9569_v5 = vld [vmem:[%s15162_s1 + $0x1c4] sm:$0xf]  ;;  %v7103_v7 = vld [vmem:[%s15162_s1 + $0x1c8] sm:$0xf]  ;;  %v6872_v9 = vor.u32 %v9517_v0, %v6871_v61  ;;  %v6884_v10 = vor.u32 %v9514_v1, %v6881_v2  ;;  %v6888_v11 = vor.u32 %v9519_v4, %v6887_v3  ;;  %v10642_v13 = vld [vmem:[%s15163_s0 + $0x10] sm:$0xff] }
  0x12   :  { %557 = vmatpush.bf16.msra.mxu3 %v7012_v34  ;;  %586 = vmatpush.bf16.msra.mxu0 %v7016_v35  ;;  %v7097_v6 = vld [vmem:[%s15162_s1 + $0x1e0] sm:$0xf0]  ;;  %v9574_v8 = vld [vmem:[%s15162_s1 + $0x1e4] sm:$0xf0]  ;;  %v9572_v24 = vld [vmem:[%s15162_s1 + $0x1dc] sm:$0xf] }
  0x13   :  { %v10637_v12 = vld [vmem:[%s15163_s0] sm:$0xff]  ;;  %v7100_v14 = vor.u32 %v9569_v5, %v7097_v6  ;;  %v7104_v15 = vor.u32 %v9574_v8, %v7103_v7  ;;  %v7071_v18 = vld [vmem:[%s15162_s1 + $0x188] sm:$0xf]  ;;  %v7121_v25 = vld [vmem:[%s15162_s1 + $0x1f8] sm:$0xf0] }
  0x14   :  { %v9561_v16 = vld [vmem:[%s15162_s1 + $0x184] sm:$0xf]  ;;  %v9566_v19 = vld [vmem:[%s15162_s1 + $0x1a4] sm:$0xf0]  ;;  %v7239_v26 = vld [vmem:[%s15164_s3 + $0xe0] sm:$0xf]  ;;  %v7124_v29 = vor.u32 %v9572_v24, %v7121_v25 }
  0x15   :  { %471 = vmatpush.bf16.msra.mxu1 %v6968_v42  ;;  %10165 = vmatpush.bf16.msra.mxu2 %v6968_v42  ;;  %v7065_v17 = vld [vmem:[%s15162_s1 + $0x1a0] sm:$0xf0]  ;;  %v7072_v23 = vor.u32 %v9566_v19, %v7071_v18  ;;  %v7039_v27 = vld [vmem:[%s15162_s1 + $0x148] sm:$0xf]  ;;  %v9607_v30 = vld [vmem:[%s15164_s3 + $0xec] sm:$0xf0] }
  0x16   :  { %558 = vmatpush.bf16.msra.mxu3 %v6980_v43  ;;  %587 = vmatpush.bf16.msra.mxu0 %v6984_v44  ;;  %v9553_v20 = vld [vmem:[%s15162_s1 + $0x144] sm:$0xf]  ;;  %v7068_v22 = vor.u32 %v9561_v16, %v7065_v17  ;;  %v9558_v28 = vld [vmem:[%s15162_s1 + $0x164] sm:$0xf0]  ;;  %v7240_v31 = vor.u32 %v9607_v30, %v7239_v26  ;;  %v9564_v32 = vld [vmem:[%s15162_s1 + $0x19c] sm:$0xf] }
  0x17   :  { %v7033_v21 = vld [vmem:[%s15162_s1 + $0x160] sm:$0xf0]  ;;  %v7089_v33 = vld [vmem:[%s15162_s1 + $0x1b8] sm:$0xf0]  ;;  %v7223_v34 = vld [vmem:[%s15164_s3 + $0xc0] sm:$0xf]  ;;  %v7040_v37 = vor.u32 %v9558_v28, %v7039_v27 }
  0x18   :  { %v9603_v35 = vld [vmem:[%s15164_s3 + $0xcc] sm:$0xf0]  ;;  %v7036_v36 = vor.u32 %v9553_v20, %v7033_v21  ;;  %v9545_v38 = vld [vmem:[%s15162_s1 + $0x104] sm:$0xf]  ;;  %v7092_v40 = vor.u32 %v9564_v32, %v7089_v33  ;;  %v9556_v41 = vld [vmem:[%s15162_s1 + $0x15c] sm:$0xf] }
  0x19   :  { %472 = vmatpush.bf16.msra.mxu1 %v6936_v51  ;;  %10166 = vmatpush.bf16.msra.mxu2 %v6936_v51  ;;  %v7001_v39 = vld [vmem:[%s15162_s1 + $0x120] sm:$0xf0]  ;;  %v7007_v42 = vld [vmem:[%s15162_s1 + $0x108] sm:$0xf]  ;;  %v7224_v44 = vor.u32 %v9603_v35, %v7223_v34  ;;  %v7057_v45 = vld [vmem:[%s15162_s1 + $0x178] sm:$0xf0] }
  0x1a   :  { %559 = vmatpush.bf16.msra.mxu3 %v6948_v52  ;;  %588 = vmatpush.bf16.msra.mxu0 %v6952_v53  ;;  %v9550_v43 = vld [vmem:[%s15162_s1 + $0x124] sm:$0xf0]  ;;  %v7207_v46 = vld [vmem:[%s15164_s3 + $0xa0] sm:$0xf]  ;;  %v9599_v47 = vld [vmem:[%s15164_s3 + $0xac] sm:$0xf0]  ;;  %v7060_v48 = vor.u32 %v9556_v41, %v7057_v45  ;;  %v7004_v49 = vor.u32 %v9545_v38, %v7001_v39 }
  0x1b   :  { %v7008_v50 = vor.u32 %v9550_v43, %v7007_v42  ;;  %v9537_v51 = vld [vmem:[%s15162_s1 + $0xc4] sm:$0xf]  ;;  %v9548_v52 = vld [vmem:[%s15162_s1 + $0x11c] sm:$0xf]  ;;  %v6975_v55 = vld [vmem:[%s15162_s1 + $0xc8] sm:$0xf]  ;;  %v7208_v57 = vor.u32 %v9599_v47, %v7207_v46 }
  0x1c   :  { %v7025_v53 = vld [vmem:[%s15162_s1 + $0x138] sm:$0xf0]  ;;  %v6969_v54 = vld [vmem:[%s15162_s1 + $0xe0] sm:$0xf0]  ;;  %v9542_v56 = vld [vmem:[%s15162_s1 + $0xe4] sm:$0xf0] }
  0x1d   :  { %473 = vmatpush.bf16.msra.mxu1 %v6904_v60  ;;  %10167 = vmatpush.bf16.msra.mxu2 %v6904_v60  ;;  %v10741_v58 = vld [vmem:[%s15163_s0 + $0x8] sm:$0xff]  ;;  %v10746_v59 = vld [vmem:[%s15163_s0 + $0x18] sm:$0xff]  ;;  %v7028_v60 = vor.u32 %v9548_v52, %v7025_v53  ;;  %v6972_v61 = vor.u32 %v9537_v51, %v6969_v54  ;;  %v7191_v0 = vld [vmem:[%s15164_s3 + $0x80] sm:$0xf] }
  0x1e   :  { %560 = vmatpush.bf16.msra.mxu3 %v6916_v62  ;;  %589 = vmatpush.bf16.msra.mxu0 %v6920_v63  ;;  %v6976_v62 = vor.u32 %v9542_v56, %v6975_v55  ;;  %v9529_v63 = vld [vmem:[%s15162_s1 + $0x84] sm:$0xf]  ;;  %v9595_v1 = vld [vmem:[%s15164_s3 + $0x8c] sm:$0xf0]  ;;  %v6943_v3 = vld [vmem:[%s15162_s1 + $0x88] sm:$0xf] }
  0x1f   :  { %v6937_v2 = vld [vmem:[%s15162_s1 + $0xa0] sm:$0xf0]  ;;  %v9534_v4 = vld [vmem:[%s15162_s1 + $0xa4] sm:$0xf0]  ;;  %v7192_v7 = vor.u32 %v9595_v1, %v7191_v0  ;;  %v9591_v18 = vld [vmem:[%s15164_s3 + $0x6c] sm:$0xf0] }
  0x20   :  { %v9521_v5 = vld [vmem:[%s15162_s1 + $0x44] sm:$0xf]  ;;  %v6940_v8 = vor.u32 %v9529_v63, %v6937_v2  ;;  %v9526_v16 = vld [vmem:[%s15162_s1 + $0x64] sm:$0xf0]  ;;  %v9532_v19 = vld [vmem:[%s15162_s1 + $0x9c] sm:$0xf] }
  0x21   :  { %474 = vmatpush.bf16.msra.mxu1 %v6872_v9  ;;  %10168 = vmatpush.bf16.msra.mxu2 %v6872_v9  ;;  %v6905_v6 = vld [vmem:[%s15162_s1 + $0x60] sm:$0xf0]  ;;  %v6944_v9 = vor.u32 %v9534_v4, %v6943_v3  ;;  %v6961_v24 = vld [vmem:[%s15162_s1 + $0xb8] sm:$0xf0]  ;;  %v9518_v27 = vld [vmem:[%s15162_s1 + $0x24] sm:$0xf0] }
  0x22   :  { %561 = vmatpush.bf16.msra.mxu3 %v6884_v10  ;;  %590 = vmatpush.bf16.msra.mxu0 %v6888_v11  ;;  %v9540_v10 = vld [vmem:[%s15162_s1 + $0xdc] sm:$0xf]  ;;  %v9513_v20 = vld [vmem:[%s15162_s1 + $0x4] sm:$0xf]  ;;  %v6908_v25 = vor.u32 %v9521_v5, %v6905_v6  ;;  %v6964_v28 = vor.u32 %v9532_v19, %v6961_v24  ;;  %v9587_v30 = vld [vmem:[%s15164_s3 + $0x4c] sm:$0xf0] }
  0x23   :  { %v6993_v11 = vld [vmem:[%s15162_s1 + $0xf8] sm:$0xf0]  ;;  %v6873_v21 = vld [vmem:[%s15162_s1 + $0x20] sm:$0xf0]  ;;  %v7113_v34 = vld [vmem:[%s15162_s1 + $0x1f0] sm:$0xf0] }
  0x24   :  { %475 = vmatmul.bf16.vlgmr.msra.gmra.mxu1 %v10637_v12  ;;  %485 = vmatmul.bf16.vlgmr.msra.gmra.mxu2 %v10642_v13  ;;  %v6996_v17 = vor.u32 %v9540_v10, %v6993_v11  ;;  %v9524_v32 = vld [vmem:[%s15162_s1 + $0x5c] sm:$0xf]  ;;  %v7119_v35 = vld [vmem:[%s15162_s1 + $0x1d8] sm:$0xf]  ;;  %v7143_v39 = vld [vmem:[%s15164_s3 + $0x20] sm:$0xf] }
  0x25   :  { %496 = vmatpush.bf16.msrb.mxu1 %v7100_v14  ;;  %525 = vmatpush.bf16.msrb.mxu2 %v7104_v15  ;;  %v7175_v14 = vld [vmem:[%s15164_s3 + $0x60] sm:$0xf]  ;;  %v6911_v15 = vld [vmem:[%s15162_s1 + $0x48] sm:$0xf]  ;;  %v6929_v33 = vld [vmem:[%s15162_s1 + $0x78] sm:$0xf0] }
  0x26   :  { %562 = vmatmul.bf16.vlgmr.msra.gmra.mxu3 %v10637_v12  ;;  %591 = vmatmul.bf16.vlgmr.msra.gmra.mxu0 %v10637_v12  ;;  %v6912_v26 = vor.u32 %v9526_v16, %v6911_v15  ;;  %v6932_v38 = vor.u32 %v9524_v32, %v6929_v33  ;;  %v9583_v42 = vld [vmem:[%s15164_s3 + $0x2c] sm:$0xf0]  ;;  %v9516_v43 = vld [vmem:[%s15162_s1 + $0x1c] sm:$0xf]  ;;  %v9563_v47 = vld [vmem:[%s15162_s1 + $0x194] sm:$0xf] }
  0x27   :  { %670 = vmatpush.bf16.msrb.mxu3 %v7124_v29  ;;  %967 = vmatpush.bf16.msrb.mxu0 %v7240_v31  ;;  %v7159_v29 = vld [vmem:[%s15164_s3 + $0x40] sm:$0xf]  ;;  %v9571_v31 = vld [vmem:[%s15162_s1 + $0x1d4] sm:$0xf]  ;;  %v7087_v51 = vld [vmem:[%s15162_s1 + $0x198] sm:$0xf] }
  0x28   :  { %v7116_v45 = vor.u32 %v9571_v31, %v7113_v34  ;;  %v9568_v52 = vld [vmem:[%s15162_s1 + $0x1b4] sm:$0xf0]  ;;  %v7127_v53 = vld [vmem:[%s15164_s3] sm:$0xf]  ;;  %v9579_v54 = vld [vmem:[%s15164_s3 + $0xc] sm:$0xf0] }
  0x29   :  { %497 = vmatpush.bf16.msrb.mxu1 %v7068_v22  ;;  %526 = vmatpush.bf16.msrb.mxu2 %v7072_v23  ;;  %v6879_v22 = vld [vmem:[%s15162_s1 + $0x8] sm:$0xf]  ;;  %v7176_v23 = vor.u32 %v9591_v18, %v7175_v14  ;;  %v9555_v56 = vld [vmem:[%s15162_s1 + $0x154] sm:$0xf]  ;;  %v9560_v63 = vld [vmem:[%s15162_s1 + $0x174] sm:$0xf0] }
  0x2a   :  { %v6880_v41 = vor.u32 %v9518_v27, %v6879_v22  ;;  %v9547_v1 = vld [vmem:[%s15162_s1 + $0x114] sm:$0xf]  ;;  %v7023_v4 = vld [vmem:[%s15162_s1 + $0x118] sm:$0xf]  ;;  %v9606_v34 = vld [vmem:[%s15164_s3 + $0xec] sm:$0xf] }
  0x2b   :  { %671 = vmatpush.bf16.msrb.mxu3 %v7092_v40  ;;  %968 = vmatpush.bf16.msrb.mxu0 %v7224_v44  ;;  %v6876_v40 = vor.u32 %v9513_v20, %v6873_v21  ;;  %v6897_v44 = vld [vmem:[%s15162_s1 + $0x38] sm:$0xf0]  ;;  %v7017_v3 = vld [vmem:[%s15162_s1 + $0x130] sm:$0xf0]  ;;  %v9552_v5 = vld [vmem:[%s15162_s1 + $0x134] sm:$0xf0] }
  0x2c   :  { %v7020_v6 = vor.u32 %v9547_v1, %v7017_v3  ;;  %v6991_v10 = vld [vmem:[%s15162_s1 + $0xd8] sm:$0xf]  ;;  %v9531_v16 = vld [vmem:[%s15162_s1 + $0x94] sm:$0xf]  ;;  %v7169_v1 = vld [vmem:[%s15164_s3 + $0x58] sm:$0xf0] }
  0x2d   :  { %498 = vmatpush.bf16.msrb.mxu1 %v7036_v36  ;;  %527 = vmatpush.bf16.msrb.mxu2 %v7040_v37  ;;  %v9576_v36 = vld [vmem:[%s15162_s1 + $0x1f4] sm:$0xf0]  ;;  %v7160_v37 = vor.u32 %v9587_v30, %v7159_v29  ;;  %v9523_v19 = vld [vmem:[%s15162_s1 + $0x54] sm:$0xf] }
  0x2e   :  { %v7120_v46 = vor.u32 %v9576_v36, %v7119_v35  ;;  %v9544_v11 = vld [vmem:[%s15162_s1 + $0xf4] sm:$0xf0]  ;;  %v6921_v20 = vld [vmem:[%s15162_s1 + $0x70] sm:$0xf0]  ;;  %v7249_v35 = vld [vmem:[%s15164_s3 + $0xf8] sm:$0xf0] }
  0x2f   :  { %672 = vmatpush.bf16.msrb.mxu3 %v7060_v48  ;;  %969 = vmatpush.bf16.msrb.mxu0 %v7208_v57  ;;  %v7144_v48 = vor.u32 %v9583_v42, %v7143_v39  ;;  %v7088_v57 = vor.u32 %v9568_v52, %v7087_v51  ;;  %v6992_v15 = vor.u32 %v9544_v11, %v6991_v10  ;;  %v6959_v21 = vld [vmem:[%s15162_s1 + $0x98] sm:$0xf]  ;;  %v9515_v27 = vld [vmem:[%s15162_s1 + $0x14] sm:$0xf]  ;;  %v7233_v42 = vld [vmem:[%s15164_s3 + $0xd8] sm:$0xf0] }
  0x30   :  { %v9536_v22 = vld [vmem:[%s15162_s1 + $0xb4] sm:$0xf0]  ;;  %v7252_v36 = vor.u32 %v9606_v34, %v7249_v35  ;;  %v7241_v39 = vld [vmem:[%s15164_s3 + $0xf0] sm:$0xf0]  ;;  %v7153_v10 = vld [vmem:[%s15164_s3 + $0x38] sm:$0xf0] }
  0x31   :  { %499 = vmatpush.bf16.msrb.mxu1 %v7004_v49  ;;  %528 = vmatpush.bf16.msrb.mxu2 %v7008_v50  ;;  %v6900_v49 = vor.u32 %v9516_v43, %v6897_v44  ;;  %v7081_v50 = vld [vmem:[%s15162_s1 + $0x1b0] sm:$0xf0]  ;;  %v6960_v24 = vor.u32 %v9536_v22, %v6959_v21  ;;  %v6895_v30 = vld [vmem:[%s15162_s1 + $0x18] sm:$0xf]  ;;  %v9601_v43 = vld [vmem:[%s15164_s3 + $0xc4] sm:$0xf] }
  0x32   :  { %v7084_v55 = vor.u32 %v9563_v47, %v7081_v50  ;;  %v9520_v31 = vld [vmem:[%s15162_s1 + $0x34] sm:$0xf0]  ;;  %v7225_v44 = vld [vmem:[%s15164_s3 + $0xd0] sm:$0xf0]  ;;  %v7217_v47 = vld [vmem:[%s15164_s3 + $0xb8] sm:$0xf0] }
  0x33   :  { %673 = vmatpush.bf16.msrb.mxu3 %v7028_v60  ;;  %970 = vmatpush.bf16.msrb.mxu0 %v7192_v7  ;;  %v7049_v60 = vld [vmem:[%s15162_s1 + $0x170] sm:$0xf0]  ;;  %v6896_v33 = vor.u32 %v9520_v31, %v6895_v30  ;;  %v9608_v50 = vld [vmem:[%s15164_s3 + $0xf4] sm:$0xf0]  ;;  %v9581_v31 = vld [vmem:[%s15164_s3 + $0x24] sm:$0xf] }
  0x34   :  { %480 = vmatmul.bf16.gmra.mxu1 %v10741_v58  ;;  %490 = vmatmul.bf16.gmra.mxu2 %v10746_v59  ;;  %v7052_v0 = vor.u32 %v9555_v56, %v7049_v60  ;;  %v9539_v7 = vld [vmem:[%s15162_s1 + $0xd4] sm:$0xf]  ;;  %v9590_v56 = vld [vmem:[%s15164_s3 + $0x6c] sm:$0xf]  ;;  %v9604_v3 = vld [vmem:[%s15164_s3 + $0xd4] sm:$0xf0] }
  0x35   :  { %500 = vmatpush.bf16.msrb.mxu1 %v6972_v61  ;;  %529 = vmatpush.bf16.msrb.mxu2 %v6976_v62  ;;  %v7128_v61 = vor.u32 %v9579_v54, %v7127_v53  ;;  %v7055_v62 = vld [vmem:[%s15162_s1 + $0x158] sm:$0xf]  ;;  %v9594_v53 = vld [vmem:[%s15164_s3 + $0x8c] sm:$0xf]  ;;  %v7201_v54 = vld [vmem:[%s15164_s3 + $0x98] sm:$0xf0] }
  0x36   :  { %567 = vmatmul.bf16.gmra.mxu3 %v10741_v58  ;;  %596 = vmatmul.bf16.gmra.mxu0 %v10741_v58  ;;  %v7056_v2 = vor.u32 %v9560_v63, %v7055_v62  ;;  %v7209_v62 = vld [vmem:[%s15164_s3 + $0xb0] sm:$0xf0]  ;;  %v9586_v63 = vld [vmem:[%s15164_s3 + $0x4c] sm:$0xf]  ;;  %v7167_v34 = vld [vmem:[%s15164_s3 + $0x48] sm:$0xf] }
  0x37   :  { %674 = vmatpush.bf16.msrb.mxu3 %v6996_v17  ;;  %971 = vmatpush.bf16.msrb.mxu0 %v7176_v23  ;;  %v6953_v17 = vld [vmem:[%s15162_s1 + $0xb0] sm:$0xf0]  ;;  %v6924_v23 = vor.u32 %v9523_v19, %v6921_v20  ;;  %v9589_v20 = vld [vmem:[%s15164_s3 + $0x64] sm:$0xf] }
  0x38   :  { %v6956_v18 = vor.u32 %v9531_v16, %v6953_v17  ;;  %v7215_v17 = vld [vmem:[%s15164_s3 + $0xa8] sm:$0xf]  ;;  %v7177_v21 = vld [vmem:[%s15164_s3 + $0x70] sm:$0xf0] }
  0x39   :  { %501 = vmatpush.bf16.msrb.mxu1 %v6940_v8  ;;  %530 = vmatpush.bf16.msrb.mxu2 %v6944_v9  ;;  %v7024_v8 = vor.u32 %v9552_v5, %v7023_v4  ;;  %v6985_v9 = vld [vmem:[%s15162_s1 + $0xf0] sm:$0xf0]  ;;  %v7172_v4 = vor.u32 %v9586_v63, %v7169_v1  ;;  %v7180_v22 = vor.u32 %v9589_v20, %v7177_v21 }
  0x3a   :  { %v6988_v14 = vor.u32 %v9539_v7, %v6985_v9  ;;  %v7193_v7 = vld [vmem:[%s15164_s3 + $0x90] sm:$0xf0] }
  0x3b   :  { %675 = vmatpush.bf16.msrb.mxu3 %v6964_v28  ;;  %972 = vmatpush.bf16.msrb.mxu0 %v7160_v37  ;;  %v6889_v28 = vld [vmem:[%s15162_s1 + $0x30] sm:$0xf0]  ;;  %v10427_v37 = vmov 0  }
  0x3c   :  { %v6892_v32 = vor.u32 %v9515_v27, %v6889_v28  ;;  %v7183_v28 = vld [vmem:[%s15164_s3 + $0x68] sm:$0xf] }
  0x3d   :  { %502 = vmatpush.bf16.msrb.mxu1 %v6908_v25  ;;  %531 = vmatpush.bf16.msrb.mxu2 %v6912_v26  ;;  %v6927_v25 = vld [vmem:[%s15162_s1 + $0x58] sm:$0xf] }
  0x3e   :  { %v9528_v26 = vld [vmem:[%s15162_s1 + $0x74] sm:$0xf0] }
  0x3f   :  { %676 = vmatpush.bf16.msrb.mxu3 %v6932_v38  ;;  %973 = vmatpush.bf16.msrb.mxu0 %v7144_v48  ;;  %v6928_v29 = vor.u32 %v9528_v26, %v6927_v25  ;;  %v9605_v38 = vld [vmem:[%s15164_s3 + $0xe4] sm:$0xf]  ;;  %v7228_v48 = vor.u32 %v9601_v43, %v7225_v44  ;;  %v7161_v26 = vld [vmem:[%s15164_s3 + $0x50] sm:$0xf0]  ;;  %v7135_v43 = vld [vmem:[%s15164_s3 + $0x8] sm:$0xf] }
  0x40   :  { %v9580_v44 = vld [vmem:[%s15164_s3 + $0x14] sm:$0xf0] }
  0x41   :  { %503 = vmatpush.bf16.msrb.mxu1 %v6876_v40  ;;  %532 = vmatpush.bf16.msrb.mxu2 %v6880_v41  ;;  %v9602_v40 = vld [vmem:[%s15164_s3 + $0xcc] sm:$0xf]  ;;  %v7244_v41 = vor.u32 %v9605_v38, %v7241_v39  ;;  %v7129_v38 = vld [vmem:[%s15164_s3 + $0x10] sm:$0xf0]  ;;  %v7151_v39 = vld [vmem:[%s15164_s3 + $0x28] sm:$0xf] }
  0x43   :  { %677 = vmatpush.bf16.msrb.mxu3 %v6900_v49  ;;  %974 = vmatpush.bf16.msrb.mxu0 %v7128_v61  ;;  %v7247_v49 = vld [vmem:[%s15164_s3 + $0xe8] sm:$0xf]  ;;  %v9597_v61 = vld [vmem:[%s15164_s3 + $0xa4] sm:$0xf] }
  0x44   :  { %504 = vmatmul.bf16.vlgmr.msrb.gmra.mxu1 %v10637_v12  ;;  %533 = vmatmul.bf16.vlgmr.msrb.gmra.mxu2 %v10637_v12  ;;  %v7248_v51 = vor.u32 %v9608_v50, %v7247_v49 }
  0x45   :  { %612 = vmatpush.bf16.msra.mxu1 %v7116_v45  ;;  %641 = vmatpush.bf16.msra.mxu2 %v7120_v46  ;;  %v7236_v45 = vor.u32 %v9602_v40, %v7233_v42  ;;  %v9598_v46 = vld [vmem:[%s15164_s3 + $0xac] sm:$0xf] }
  0x46   :  { %572 = vmatmul.bf16.gmra.mxu3 %v10642_v13  ;;  %601 = vmatmul.bf16.gmra.mxu0 %v10642_v13  ;;  %v7220_v52 = vor.u32 %v9598_v46, %v7217_v47  ;;  %v7136_v46 = vor.u32 %v9580_v44, %v7135_v43 }
  0x47   :  { %1006 = vmatpush.bf16.msra.mxu3 %v7252_v36  ;;  %v9577_v36 = vld [vmem:[%s15164_s3 + $0x4] sm:$0xf] }
  0x48   :  { %v7132_v40 = vor.u32 %v9577_v36, %v7129_v38 }
  0x49   :  { %613 = vmatpush.bf16.msra.mxu1 %v7084_v55  ;;  %642 = vmatpush.bf16.msra.mxu2 %v7088_v57  ;;  %v7204_v55 = vor.u32 %v9594_v53, %v7201_v54  ;;  %v7185_v57 = vld [vmem:[%s15164_s3 + $0x78] sm:$0xf0] }
  0x4a   :  { %v7188_v60 = vor.u32 %v9590_v56, %v7185_v57 }
  0x4b   :  { %1007 = vmatpush.bf16.msra.mxu3 %v7236_v45  ;;  %v11106_v45 = vld [vmem:[%s15165_s2] sm:$0xff] }
  0x4c   :  { %v11170_v38 = vperm.slane %v11106_v45, 2 }
  0x4d   :  { %614 = vmatpush.bf16.msra.mxu1 %v7052_v0  ;;  %643 = vmatpush.bf16.msra.mxu2 %v7056_v2  ;;  %v7212_v0 = vor.u32 %v9597_v61, %v7209_v62  ;;  %v7231_v2 = vld [vmem:[%s15164_s3 + $0xc8] sm:$0xf] }
  0x4e   :  { %v7232_v5 = vor.u32 %v9604_v3, %v7231_v2  ;;  %v11129_v3 = vperm.slane %v11106_v45, 3 }
  0x4f   :  { %1008 = vmatpush.bf16.msra.mxu3 %v7220_v52 }
  0x51   :  { %615 = vmatpush.bf16.msra.mxu1 %v7020_v6  ;;  %644 = vmatpush.bf16.msra.mxu2 %v7024_v8  ;;  %v9593_v6 = vld [vmem:[%s15164_s3 + $0x84] sm:$0xf]  ;;  %v9582_v8 = vld [vmem:[%s15164_s3 + $0x2c] sm:$0xf] }
  0x52   :  { %v7196_v9 = vor.u32 %v9593_v6, %v7193_v7  ;;  %v7156_v11 = vor.u32 %v9582_v8, %v7153_v10 }
  0x53   :  { %1009 = vmatpush.bf16.msra.mxu3 %v7204_v55 }
  0x54   :  { %509 = vmatmul.bf16.gmra.mxu1 %v10741_v58  ;;  %538 = vmatmul.bf16.gmra.mxu2 %v10741_v58 }
  0x55   :  { %616 = vmatpush.bf16.msra.mxu1 %v6988_v14  ;;  %645 = vmatpush.bf16.msra.mxu2 %v6992_v15  ;;  %v9578_v14 = vld [vmem:[%s15164_s3 + $0xc] sm:$0xf]  ;;  %v7137_v15 = vld [vmem:[%s15164_s3 + $0x18] sm:$0xf0] }
  0x56   :  { %577 = vmatmul.bf16.gmra.mxu3 %v10746_v59  ;;  %606 = vmatmul.bf16.gmra.mxu0 %v10746_v59  ;;  %v7140_v16 = vor.u32 %v9578_v14, %v7137_v15 }
  0x57   :  { %1010 = vmatpush.bf16.msra.mxu3 %v7188_v60 }
  0x59   :  { %617 = vmatpush.bf16.msra.mxu1 %v6956_v18  ;;  %646 = vmatpush.bf16.msra.mxu2 %v6960_v24  ;;  %v9600_v18 = vld [vmem:[%s15164_s3 + $0xb4] sm:$0xf0]  ;;  %v9585_v24 = vld [vmem:[%s15164_s3 + $0x44] sm:$0xf] }
  0x5a   :  { %v7216_v19 = vor.u32 %v9600_v18, %v7215_v17  ;;  %v7164_v27 = vor.u32 %v9585_v24, %v7161_v26 }
  0x5b   :  { %1011 = vmatpush.bf16.msra.mxu3 %v7172_v4 }
  0x5d   :  { %618 = vmatpush.bf16.msra.mxu1 %v6924_v23  ;;  %647 = vmatpush.bf16.msra.mxu2 %v6928_v29  ;;  %v7199_v23 = vld [vmem:[%s15164_s3 + $0x88] sm:$0xf]  ;;  %v9592_v29 = vld [vmem:[%s15164_s3 + $0x74] sm:$0xf0] }
  0x5e   :  { %v7184_v30 = vor.u32 %v9592_v29, %v7183_v28 }
  0x5f   :  { %1012 = vmatpush.bf16.msra.mxu3 %v7156_v11 }
  0x61   :  { %619 = vmatpush.bf16.msra.mxu1 %v6892_v32  ;;  %648 = vmatpush.bf16.msra.mxu2 %v6896_v33  ;;  %v7145_v32 = vld [vmem:[%s15164_s3 + $0x30] sm:$0xf0] }
  0x62   :  { %v7148_v33 = vor.u32 %v9581_v31, %v7145_v32 }
  0x63   :  { %1013 = vmatpush.bf16.msra.mxu3 %v7140_v16 }
  0x64   :  { %514 = vmatmul.bf16.gmra.mxu1 %v10642_v13  ;;  %543 = vmatmul.bf16.gmra.mxu2 %v10642_v13 }
  0x65   :  { %980 = vmatpush.bf16.msrb.mxu1 %v7244_v41  ;;  %993 = vmatpush.bf16.msrb.mxu2 %v7248_v51  ;;  %v9584_v41 = vld [vmem:[%s15164_s3 + $0x34] sm:$0xf0]  ;;  %v107_v51 = vperm.slane %v11106_v45, 0 }
  0x66   :  { %678 = vmatmul.bf16.vlgmr.msrb.gmra.mxu3 %v10637_v12  ;;  %975 = vmatmul.bf16.vlgmr.msrb.gmra.mxu0 %v10427_v37  ;;  %v7152_v42 = vor.u32 %v9584_v41, %v7151_v39 }
  0x69   :  { %981 = vmatpush.bf16.msrb.mxu1 %v7228_v48  ;;  %994 = vmatpush.bf16.msrb.mxu2 %v7232_v5  ;;  %v11111_v48 = vperm.slane %v11106_v45, 4 }
  0x6d   :  { %982 = vmatpush.bf16.msrb.mxu1 %v7212_v0  ;;  %995 = vmatpush.bf16.msrb.mxu2 %v7216_v19 }
  0x71   :  { %983 = vmatpush.bf16.msrb.mxu1 %v7196_v9 }
  0x74   :  { %519 = vmatmul.bf16.gmra.mxu1 %v10746_v59  ;;  %548 = vmatmul.bf16.gmra.mxu2 %v10746_v59 }
  0x75   :  { %984 = vmatpush.bf16.msrb.mxu1 %v7180_v22 }
  0x76   :  { %683 = vmatmul.bf16.gmra.mxu3 %v10741_v58 }
  0x79   :  { %985 = vmatpush.bf16.msrb.mxu1 %v7164_v27 }
  0x7d   :  { %986 = vmatpush.bf16.msrb.mxu1 %v7148_v33 }
  0x81   :  { %987 = vmatpush.bf16.msrb.mxu1 %v7132_v40 }
  0x84   :  { %620 = vmatmul.bf16.vlgmr.msra.gmra.mxu1 %v10637_v12  ;;  %649 = vmatmul.bf16.vlgmr.msra.gmra.mxu2 %v10637_v12  ;;  %v9596_v12 = vld [vmem:[%s15164_s3 + $0x94] sm:$0xf0] }
  0x85   :  { %v7200_v25 = vor.u32 %v9596_v12, %v7199_v23 }
  0x86   :  { %688 = vmatmul.bf16.gmra.mxu3 %v10642_v13 }
  0x87   :  { %996 = vmatpush.bf16.msrb.mxu2 %v7200_v25 }
  0x8b   :  { %997 = vmatpush.bf16.msrb.mxu2 %v7184_v30  ;;  %v11161_v30 = vperm.slane %v11106_v45, 1 }
  0x94   :  { %625 = vmatmul.bf16.gmra.mxu1 %v10741_v58  ;;  %654 = vmatmul.bf16.gmra.mxu2 %v10741_v58  ;;  %v9588_v58 = vld [vmem:[%s15164_s3 + $0x54] sm:$0xf0] }
  0x95   :  { %v7168_v35 = vor.u32 %v9588_v58, %v7167_v34 }
  0x96   :  { %693 = vmatmul.bf16.gmra.mxu3 %v10746_v59 }
  0x97   :  { %998 = vmatpush.bf16.msrb.mxu2 %v7168_v35 }
  0x9b   :  { %999 = vmatpush.bf16.msrb.mxu2 %v7152_v42 }
  0x9f   :  { %1000 = vmatpush.bf16.msrb.mxu2 %v7136_v46 }
  0xa1   :  { %v11108_v47 = vpop.f32.mrf.mxu1 }
  0xa3   :  { %v592_v49 = vpop.f32.mrf.mxu0 }
  0xa4   :  { %v593_v50 = vadd.f32 %v592_v49, %v11111_v48  ;;  %630 = vmatmul.bf16.gmra.mxu1 %v10642_v13  ;;  %659 = vmatmul.bf16.gmra.mxu2 %v10642_v13  ;;  %v477_v49 = vadd.f32 %v11108_v47, %v107_v51 }
  0xa6   :  { %1014 = vmatmul.bf16.vlgmr.msra.gmra.mxu3 %v10427_v37 }
  0xa7   :  { %v486_v52 = vpop.f32.mrf.mxu2 }
  0xa8   :  { %v487_v53 = vadd.f32 %v486_v52, %v107_v51 }
  0xa9   :  { %v11118_v54 = vpop.f32.mrf.mxu3  ;;  %v478_v55 = vpop.f32.mrf.mxu1 }
  0xaa   :  { %v479_v58 = vadd.f32 %v478_v55, %v107_v51 }
  0xab   :  { %v594_v56 = vpop.f32.mrf.mxu0 }
  0xac   :  { %v595_v2 = vadd.f32 %v594_v56, %v11111_v48 }
  0xaf   :  { %v488_v57 = vpop.f32.mrf.mxu2 }
  0xb0   :  { %v489_v61 = vadd.f32 %v488_v57, %v107_v51 }
  0xb1   :  { %v11120_v60 = vpop.f32.mrf.mxu3  ;;  %v481_v62 = vpop.f32.mrf.mxu1 }
  0xb2   :  { %v482_v63 = vadd.f32 %v481_v62, %v107_v51 }
  0xb3   :  { %v597_v0 = vpop.f32.mrf.mxu0 }
  0xb4   :  { %v598_v1 = vadd.f32 %v597_v0, %v11111_v48  ;;  %635 = vmatmul.bf16.gmra.mxu1 %v10746_v59  ;;  %664 = vmatmul.bf16.gmra.mxu2 %v10746_v59  ;;  %v11189_v0 = vperm.slane %v11106_v45, 7 }
  0xb6   :  { %v11125_v13 = vadd.f32 %v598_v1, %v489_v61 }
  0xb7   :  { %v491_v4 = vpop.f32.mrf.mxu2 }
  0xb8   :  { %v492_v5 = vadd.f32 %v491_v4, %v107_v51 }
  0xb9   :  { %v568_v6 = vpop.f32.mrf.mxu3  ;;  %v483_v8 = vpop.f32.mrf.mxu1 }
  0xba   :  { %v11132_v7 = vadd.f32 %v568_v6, %v11129_v3  ;;  %v11134_v10 = vadd.f32 %v595_v2, %v492_v5  ;;  %v484_v20 = vadd.f32 %v483_v8, %v107_v51 }
  0xbb   :  { %v599_v9 = vpop.f32.mrf.mxu0 }
  0xbc   :  { %v600_v11 = vadd.f32 %v599_v9, %v11111_v48 }
  0xbe   :  { %v11137_v59 = vadd.f32 %v600_v11, %v487_v53 }
  0xbf   :  { %v493_v14 = vpop.f32.mrf.mxu2 }
  0xc0   :  { %v494_v15 = vadd.f32 %v493_v14, %v107_v51 }
  0xc1   :  { %v11139_v16 = vpop.f32.mrf.mxu3  ;;  %v11141_v17 = vpop.f32.mrf.mxu1 }
  0xc2   :  { %v11143_v19 = vadd.f32 %v593_v50, %v494_v15 }
  0xc3   :  { %v602_v18 = vpop.f32.mrf.mxu0 }
  0xc4   :  { %v603_v21 = vadd.f32 %v602_v18, %v11111_v48  ;;  %988 = vmatmul.bf16.vlgmr.msrb.gmra.mxu1 %v10427_v37  ;;  %1001 = vmatmul.bf16.vlgmr.msrb.gmra.mxu2 %v10427_v37 }
  0xc6   :  { %v11148_v22 = vadd.f32 %v603_v21, %v484_v20 }
  0xc7   :  { %v11150_v23 = vpop.f32.mrf.mxu2 }
  0xc9   :  { %v573_v12 = vpop.f32.mrf.mxu3  ;;  %v11153_v25 = vpop.f32.mrf.mxu1 }
  0xca   :  { %v574_v24 = vadd.f32 %v573_v12, %v11129_v3 }
  0xcb   :  { %v604_v26 = vpop.f32.mrf.mxu0 }
  0xcc   :  { %v605_v27 = vadd.f32 %v604_v26, %v11111_v48 }
  0xce   :  { %v11156_v28 = vadd.f32 %v605_v27, %v482_v63 }
  0xcf   :  { %v11158_v29 = vpop.f32.mrf.mxu2 }
  0xd1   :  { %v575_v31 = vpop.f32.mrf.mxu3  ;;  %v510_v32 = vpop.f32.mrf.mxu1 }
  0xd2   :  { %v11164_v33 = vadd.f32 %v510_v32, %v11161_v30  ;;  %v576_v21 = vadd.f32 %v575_v31, %v11129_v3  ;;  %v11207_v32 = vperm.slane %v11106_v45, 5  ;;  %v11215_v31 = vperm.slane %v11106_v45, 6 }
  0xd3   :  { %v607_v34 = vpop.f32.mrf.mxu0 }
  0xd4   :  { %v608_v35 = vadd.f32 %v607_v34, %v11111_v48 }
  0xd6   :  { %v11167_v36 = vadd.f32 %v608_v35, %v479_v58 }
  0xd7   :  { %v539_v39 = vpop.f32.mrf.mxu2 }
  0xd8   :  { %v11173_v40 = vadd.f32 %v539_v39, %v11170_v38 }
  0xd9   :  { %v578_v41 = vpop.f32.mrf.mxu3  ;;  %v11176_v43 = vpop.f32.mrf.mxu1 }
  0xda   :  { %v579_v42 = vadd.f32 %v578_v41, %v11129_v3 }
  0xdb   :  { %v609_v44 = vpop.f32.mrf.mxu0 }
  0xdc   :  { %v610_v46 = vadd.f32 %v609_v44, %v11111_v48 }
  0xde   :  { %v771_v55 = vadd.f32 %v610_v46, %v477_v49 }
  0xdf   :  { %v11180_v50 = vpop.f32.mrf.mxu2 }
  0xe1   :  { %v580_v52 = vpop.f32.mrf.mxu3  ;;  %v515_v53 = vpop.f32.mrf.mxu1 }
  0xe2   :  { %v11183_v56 = vadd.f32 %v515_v53, %v11161_v30  ;;  %v581_v62 = vadd.f32 %v580_v52, %v11129_v3 }
  0xe3   :  { %v976_v57 = vpop.f32.mrf.mxu0 }
  0xe4   :  { %v11185_v61 = vadd.f32 %v976_v57, %v771_v55  ;;  %v571_v57 = vadd.f32 %v11139_v16, %v11129_v3 }
  0xe7   :  { %v544_v63 = vpop.f32.mrf.mxu2 }
  0xe8   :  { %v11192_v48 = vadd.f32 %v544_v63, %v11170_v38 }
  0xe9   :  { %v679_v47 = vpop.f32.mrf.mxu3  ;;  %v517_v1 = vpop.f32.mrf.mxu1 }
  0xea   :  { %v680_v51 = vadd.f32 %v679_v47, %v11189_v0  ;;  %v518_v16 = vadd.f32 %v517_v1, %v11161_v30 }
  0xeb   :  { %v978_v2 = vpop.f32.mrf.mxu0 }
  0xec   :  { %v11195_v4 = vadd.f32 %v680_v51, %v581_v62 }
  0xef   :  { %v546_v5 = vpop.f32.mrf.mxu2 }
  0xf1   :  { %v681_v6 = vpop.f32.mrf.mxu3  ;;  %v520_v9 = vpop.f32.mrf.mxu1 }
  0xf2   :  { %v682_v8 = vadd.f32 %v681_v6, %v11189_v0  ;;  %v521_v11 = vadd.f32 %v520_v9, %v11161_v30 }
  0xf4   :  { %v11199_v14 = vadd.f32 %v682_v8, %v579_v42 }
  0xf7   :  { %v549_v15 = vpop.f32.mrf.mxu2 }
  0xf8   :  { %v550_v18 = vadd.f32 %v549_v15, %v11170_v38 }
  0xf9   :  { %v684_v20 = vpop.f32.mrf.mxu3  ;;  %v522_v26 = vpop.f32.mrf.mxu1 }
  0xfa   :  { %v685_v12 = vadd.f32 %v684_v20, %v11189_v0  ;;  %v523_v41 = vadd.f32 %v522_v26, %v11161_v30 }
  0xfc   :  { %v11204_v27 = vadd.f32 %v685_v12, %v576_v21 }
  0xff   :  { %v551_v34 = vpop.f32.mrf.mxu2 }
 0x100   :  { %v552_v49 = vadd.f32 %v551_v34, %v11170_v38  ;;  %v547_v34 = vadd.f32 %v546_v5, %v11170_v38  ;;  %v7253_v5 = vmul.f32 -1.442695, %v11185_v61 }
 0x101   :  { %v686_v58 = vpop.f32.mrf.mxu3  ;;  %v621_v39 = vpop.f32.mrf.mxu1 }
 0x102   :  { %v687_v35 = vadd.f32 %v686_v58, %v11189_v0  ;;  %v622_v42 = vadd.f32 %v621_v39, %v11207_v32  ;;  %v566_v39 = vadd.f32 %v11120_v60, %v11129_v3  ;;  %v513_v60 = vadd.f32 %v11176_v43, %v11161_v30 }
 0x103   :  { %10171 = vpow2.f32 %v7253_v5  ;;  %v564_v43 = vadd.f32 %v11118_v54, %v11129_v3  ;;  %v9639_v54 = vld [vmem:[%s15164_s3 + $0xec] sm:$0xf0]  ;;  %v9637_v3 = vld [vmem:[%s15164_s3 + $0xe4] sm:$0xf] }
 0x104   :  { %v11212_v44 = vadd.f32 %v687_v35, %v574_v24  ;;  %v11217_v46 = vadd.f32 %v622_v42, %v523_v41 }
 0x107   :  { %v650_v52 = vpop.f32.mrf.mxu2 }
 0x108   :  { %v651_v53 = vadd.f32 %v650_v52, %v11215_v31 }
 0x109   :  { %v689_v55 = vpop.f32.mrf.mxu3  ;;  %v623_v63 = vpop.f32.mrf.mxu1 }
 0x10a   :  { %v690_v62 = vadd.f32 %v689_v55, %v11189_v0  ;;  %v624_v24 = vadd.f32 %v623_v63, %v11207_v32  ;;  %v11225_v47 = vadd.f32 %v651_v53, %v552_v49 }
 0x10c   :  { %v11227_v45 = vadd.f32 %v690_v62, %v571_v57  ;;  %v11229_v51 = vadd.f32 %v624_v24, %v521_v11 }
 0x10f   :  { %v652_v2 = vpop.f32.mrf.mxu2 }
 0x110   :  { %v653_v6 = vadd.f32 %v652_v2, %v11215_v31  ;;  %v542_v2 = vadd.f32 %v11180_v50, %v11170_v38 }
 0x111   :  { %v691_v8 = vpop.f32.mrf.mxu3  ;;  %v626_v15 = vpop.f32.mrf.mxu1 }
 0x112   :  { %v692_v9 = vadd.f32 %v691_v8, %v11189_v0  ;;  %v627_v20 = vadd.f32 %v626_v15, %v11207_v32  ;;  %v11235_v21 = vadd.f32 %v653_v6, %v550_v18  ;;  %v10172_v15 = vpop.eup %10171 }
 0x114   :  { %v11238_v12 = vadd.f32 %v692_v9, %v11132_v7  ;;  %v11240_v26 = vadd.f32 %v627_v20, %v518_v16 }
 0x117   :  { %v655_v11 = vpop.f32.mrf.mxu2 }
 0x118   :  { %v656_v58 = vadd.f32 %v655_v11, %v11215_v31 }
 0x119   :  { %v694_v35 = vpop.f32.mrf.mxu3  ;;  %v628_v41 = vpop.f32.mrf.mxu1 }
 0x11a   :  { %v695_v1 = vadd.f32 %v694_v35, %v11189_v0  ;;  %v629_v18 = vadd.f32 %v628_v41, %v11207_v32  ;;  %v11248_v42 = vadd.f32 %v656_v58, %v547_v34  ;;  %v11277_v34 = vadd.f32 1.0, %v10172_v15  ;;  %v7370_v58 = vld [vmem:[%s15164_s3 + $0xe0] sm:$0xf]  ;;  %v7378_v41 = vld [vmem:[%s15164_s3 + $0xe8] sm:$0xf] }
 0x11b   :  { %v7362_v15 = vld [vmem:[%s15164_s3 + $0xc8] sm:$0xf] }
 0x11c   :  { %v11250_v7 = vadd.f32 %v695_v1, %v566_v39  ;;  %v11253_v49 = vadd.f32 %v629_v18, %v11183_v56  ;;  %v7371_v39 = vor.u32 %v9639_v54, %v7370_v58  ;;  %v7372_v1 = vld [vmem:[%s15164_s3 + $0xf0] sm:$0xf0]  ;;  %v9640_v18 = vld [vmem:[%s15164_s3 + $0xf4] sm:$0xf0]  ;;  %10173 = vrcp.f32 %v11277_v34 }
 0x11d   :  { %vm1032_vm1 = vweird.f32 %v11277_v34 }
 0x11e   :  { %1293 = vmatpush.bf16.msra.mxu0 %v7371_v39  ;;  %v9631_v39 = vld [vmem:[%s15164_s3 + $0xac] sm:$0xf0] }
 0x11f   :  { %v657_v52 = vpop.f32.mrf.mxu2 }
 0x120   :  { %v658_v53 = vadd.f32 %v657_v52, %v11215_v31  ;;  %v508_v52 = vadd.f32 %v11153_v25, %v11161_v30 }
 0x121   :  { %v696_v55 = vpop.f32.mrf.mxu3  ;;  %v631_v57 = vpop.f32.mrf.mxu1 }
 0x122   :  { %v632_v62 = vadd.f32 %v631_v57, %v11207_v32  ;;  %v11261_v63 = vadd.f32 %v658_v53, %v11192_v48  ;;  %v697_v61 = vadd.f32 %v696_v55, %v11189_v0  ;;  %v7375_v53 = vor.u32 %v9637_v3, %v7372_v1  ;;  %v9638_v57 = vld [vmem:[%s15164_s3 + $0xec] sm:$0xf]  ;;  %v11337_v54 = vpop.eup %10173  ;;  %v9629_v1 = vld [vmem:[%s15164_s3 + $0xa4] sm:$0xf] }
 0x123   :  { %v7379_v55 = vor.u32 %v9640_v18, %v7378_v41  ;;  %vm1033_vm0 = vweird.f32 %v11337_v54 }
 0x124   :  { %v11263_v24 = vadd.f32 %v632_v62, %v513_v60  ;;  %v774_v20 = vadd.f32 %v697_v61, %v564_v43  ;;  %v7380_v60 = vld [vmem:[%s15164_s3 + $0xf8] sm:$0xf0]  ;;  %1306 = vmatpush.bf16.msra.mxu1 %v7375_v53  ;;  %v7354_v61 = vld [vmem:[%s15164_s3 + $0xc0] sm:$0xf]  ;;  %v537_v53 = vadd.f32 %v11158_v29, %v11170_v38  ;;  %v1028_v29 = vmul.f32 %v11337_v54, %v11277_v34  ;;  %vm11506_vm2 = vmor %vm1032_vm1, %vm1033_vm0 }
 0x125   :  { %1319 = vmatpush.bf16.msra.mxu2 %v7379_v55 }
 0x127   :  { %v660_v56 = vpop.f32.mrf.mxu2 }
 0x128   :  { %v661_v6 = vadd.f32 %v660_v56, %v11215_v31 }
 0x129   :  { %v1015_v8 = vpop.f32.mrf.mxu3  ;;  %v633_v9 = vpop.f32.mrf.mxu1 }
 0x12a   :  { %v634_v48 = vadd.f32 %v633_v9, %v11207_v32  ;;  %v11272_v16 = vadd.f32 %v661_v6, %v542_v2  ;;  %v1022_v50 = vadd.f32 %v1015_v8, %v774_v20  ;;  %v7383_v2 = vor.u32 %v9638_v57, %v7380_v60  ;;  %v9635_v6 = vld [vmem:[%s15164_s3 + $0xcc] sm:$0xf0]  ;;  %v9633_v8 = vld [vmem:[%s15164_s3 + $0xc4] sm:$0xf]  ;;  %v9636_v20 = vld [vmem:[%s15164_s3 + $0xd4] sm:$0xf0] }
 0x12b   :  { %v7355_v9 = vor.u32 %v9635_v6, %v7354_v61  ;;  %v7363_v58 = vor.u32 %v9636_v20, %v7362_v15  ;;  %v9632_v60 = vld [vmem:[%s15164_s3 + $0xb4] sm:$0xf0]  ;;  %v7322_v6 = vld [vmem:[%s15164_s3 + $0x80] sm:$0xf] }
 0x12c   :  { %v11275_v11 = vadd.f32 %v634_v48, %v11164_v33  ;;  %v7255_v62 = vmul.f32 -1.442695, %v1022_v50  ;;  %1332 = vmatpush.bf16.msrb.mxu3 %v7383_v2  ;;  %v9634_v50 = vld [vmem:[%s15164_s3 + $0xcc] sm:$0xf] }
 0x12d   :  { %1294 = vmatpush.bf16.msra.mxu0 %v7355_v9  ;;  %1320 = vmatpush.bf16.msra.mxu2 %v7363_v58  ;;  %v9625_v9 = vld [vmem:[%s15164_s3 + $0x84] sm:$0xf]  ;;  %v9628_v58 = vld [vmem:[%s15164_s3 + $0x94] sm:$0xf0] }
 0x12e   :  { %10175 = vpow2.f32 %v7255_v62  ;;  %v9630_v62 = vld [vmem:[%s15164_s3 + $0xac] sm:$0xf] }
 0x12f   :  { %v662_v0 = vpop.f32.mrf.mxu2 }
 0x130   :  { %v663_v35 = vadd.f32 %v662_v0, %v11215_v31  ;;  %v7364_v0 = vld [vmem:[%s15164_s3 + $0xd8] sm:$0xf0] }
 0x131   :  { %v1017_v33 = vpop.f32.mrf.mxu3  ;;  %v636_v5 = vpop.f32.mrf.mxu1 }
 0x132   :  { %v637_v56 = vadd.f32 %v636_v5, %v11207_v32  ;;  %v11309_v25 = vadd.f32 %v663_v35, %v11173_v40  ;;  %v7356_v40 = vld [vmem:[%s15164_s3 + $0xd0] sm:$0xf0]  ;;  %v7367_v35 = vor.u32 %v9634_v50, %v7364_v0  ;;  %v7338_v33 = vld [vmem:[%s15164_s3 + $0xa0] sm:$0xf]  ;;  %v7346_v5 = vld [vmem:[%s15164_s3 + $0xa8] sm:$0xf] }
 0x133   :  { %v7359_v48 = vor.u32 %v9633_v8, %v7356_v40  ;;  %v7339_v18 = vor.u32 %v9631_v39, %v7338_v33  ;;  %v7347_v2 = vor.u32 %v9632_v60, %v7346_v5  ;;  %v9627_v8 = vld [vmem:[%s15164_s3 + $0x8c] sm:$0xf0]  ;;  %v7324_v50 = vld [vmem:[%s15164_s3 + $0x90] sm:$0xf0]  ;;  %v7330_v0 = vld [vmem:[%s15164_s3 + $0x88] sm:$0xf]  ;;  %v506_v39 = vadd.f32 %v11141_v17, %v11161_v30 }
 0x134   :  { %v11326_v43 = vadd.f32 %v637_v56, %v508_v52  ;;  %v7340_v52 = vld [vmem:[%s15164_s3 + $0xb0] sm:$0xf0]  ;;  %1333 = vmatpush.bf16.msrb.mxu3 %v7367_v35  ;;  %v7348_v56 = vld [vmem:[%s15164_s3 + $0xb8] sm:$0xf0]  ;;  %v10176_v15 = vpop.eup %10175  ;;  %v7323_v20 = vor.u32 %v9627_v8, %v7322_v6  ;;  %v7331_v35 = vor.u32 %v9628_v58, %v7330_v0  ;;  %v9621_v30 = vld [vmem:[%s15164_s3 + $0x64] sm:$0xf] }
 0x135   :  { %1307 = vmatpush.bf16.msra.mxu1 %v7359_v48  ;;  %v7343_v57 = vor.u32 %v9629_v1, %v7340_v52  ;;  %1295 = vmatpush.bf16.msra.mxu0 %v7339_v18  ;;  %v7351_v61 = vor.u32 %v9630_v62, %v7348_v56  ;;  %v7332_v33 = vld [vmem:[%s15164_s3 + $0x98] sm:$0xf0]  ;;  %v1038_v1 = vand.u32 2147483648, %v11277_v34  ;;  %v1029_v18 = vsub.f32 1.0, %v1028_v29  ;;  %v7308_v60 = vld [vmem:[%s15164_s3 + $0x70] sm:$0xf0] }
 0x136   :  { %1321 = vmatpush.bf16.msra.mxu2 %v7347_v2  ;;  %v11398_v52 = vadd.f32 1.0, %v10176_v15  ;;  %v7314_v62 = vld [vmem:[%s15164_s3 + $0x68] sm:$0xf]  ;;  %v7311_v2 = vor.u32 %v9621_v30, %v7308_v60  ;;  %v9622_v29 = vld [vmem:[%s15164_s3 + $0x6c] sm:$0xf] }
 0x137   :  { %v665_v3 = vpop.f32.mrf.mxu2  ;;  %v7316_v6 = vld [vmem:[%s15164_s3 + $0x78] sm:$0xf0]  ;;  %v9617_v0 = vld [vmem:[%s15164_s3 + $0x44] sm:$0xf] }
 0x138   :  { %v666_v41 = vadd.f32 %v665_v3, %v11215_v31  ;;  %1334 = vmatpush.bf16.msrb.mxu3 %v7351_v61  ;;  %v7327_v3 = vor.u32 %v9625_v9, %v7324_v50  ;;  %v9624_v61 = vld [vmem:[%s15164_s3 + $0x74] sm:$0xf0]  ;;  %v9619_v50 = vld [vmem:[%s15164_s3 + $0x4c] sm:$0xf0]  ;;  %vm1071_vm9 = vweird.f32 %v11398_v52 }
 0x139   :  { %v638_v55 = vpop.f32.mrf.mxu1  ;;  %1308 = vmatpush.bf16.msra.mxu1 %v7343_v57  ;;  %1296 = vmatpush.bf16.msra.mxu0 %v7323_v20  ;;  %v7315_v15 = vor.u32 %v9624_v61, %v7314_v62  ;;  %v7290_v20 = vld [vmem:[%s15164_s3 + $0x40] sm:$0xf]  ;;  %v7276_v62 = vld [vmem:[%s15164_s3 + $0x30] sm:$0xf0] }
 0x13a   :  { %v11377_v40 = vadd.f32 %v666_v41, %v537_v53  ;;  %v639_v48 = vadd.f32 %v638_v55, %v11207_v32  ;;  %v9626_v32 = vld [vmem:[%s15164_s3 + $0x8c] sm:$0xf]  ;;  %v7306_v53 = vld [vmem:[%s15164_s3 + $0x60] sm:$0xf]  ;;  %v9623_v55 = vld [vmem:[%s15164_s3 + $0x6c] sm:$0xf0]  ;;  %1322 = vmatpush.bf16.msra.mxu2 %v7331_v35 }
 0x13b   :  { %v7335_v41 = vor.u32 %v9626_v32, %v7332_v33  ;;  %v7307_v17 = vor.u32 %v9623_v55, %v7306_v53  ;;  %v7292_v35 = vld [vmem:[%s15164_s3 + $0x50] sm:$0xf0]  ;;  %v7298_v32 = vld [vmem:[%s15164_s3 + $0x48] sm:$0xf]  ;;  %v1030_v33 = vmul.f32 %v11337_v54, %v1029_v18  ;;  %v7274_v18 = vld [vmem:[%s15164_s3 + $0x20] sm:$0xf] }
 0x13c   :  { %v772_v57 = vadd.f32 %v639_v48, %v506_v39  ;;  %v7319_v48 = vor.u32 %v9622_v29, %v7316_v6  ;;  %v7295_v39 = vor.u32 %v9617_v0, %v7292_v35  ;;  %v9611_v0 = vld [vmem:[%s15164_s3 + $0xc] sm:$0xf0]  ;;  %v7266_v35 = vld [vmem:[%s15164_s3 + $0x8] sm:$0xf] }
 0x13d   :  { %1309 = vmatpush.bf16.msra.mxu1 %v7327_v3  ;;  %1335 = vmatpush.bf16.msrb.mxu3 %v7335_v41  ;;  %v7291_v3 = vor.u32 %v9619_v50, %v7290_v20  ;;  %v9620_v41 = vld [vmem:[%s15164_s3 + $0x54] sm:$0xf0] }
 0x13e   :  { %1297 = vmatpush.bf16.msra.mxu0 %v7307_v17  ;;  %1323 = vmatpush.bf16.msra.mxu2 %v7315_v15  ;;  %v7299_v53 = vor.u32 %v9620_v41, %v7298_v32  ;;  %v9613_v17 = vld [vmem:[%s15164_s3 + $0x24] sm:$0xf]  ;;  %v7258_v15 = vld [vmem:[%s15164_s3] sm:$0xf]  ;;  %v9612_v32 = vld [vmem:[%s15164_s3 + $0x14] sm:$0xf0] }
 0x13f   :  { %v667_v5 = vpop.f32.mrf.mxu2  ;;  %v7279_v29 = vor.u32 %v9613_v17, %v7276_v62  ;;  %v1039_v17 = vor.u32 1.1754944e-38, %v1038_v1 }
 0x140   :  { %v668_v8 = vadd.f32 %v667_v5, %v11215_v31  ;;  %v535_v31 = vadd.f32 %v11150_v23, %v11170_v38  ;;  %v9618_v23 = vld [vmem:[%s15164_s3 + $0x4c] sm:$0xf]  ;;  %v7300_v38 = vld [vmem:[%s15164_s3 + $0x58] sm:$0xf0] }
 0x141   :  { %v989_v56 = vpop.f32.mrf.mxu1  ;;  %1310 = vmatpush.bf16.msra.mxu1 %v7311_v2  ;;  %1336 = vmatpush.bf16.msrb.mxu3 %v7319_v48  ;;  %v7303_v55 = vor.u32 %v9618_v23, %v7300_v38  ;;  %v9616_v2 = vld [vmem:[%s15164_s3 + $0x34] sm:$0xf0]  ;;  %v1031_v48 = vadd.f32 %v11337_v54, %v1030_v33  ;;  %v9610_v33 = vld [vmem:[%s15164_s3 + $0xc] sm:$0xf]  ;;  %v7268_v23 = vld [vmem:[%s15164_s3 + $0x18] sm:$0xf0] }
 0x142   :  { %v1020_v9 = vadd.f32 %v989_v56, %v772_v57  ;;  %v773_v5 = vadd.f32 %v668_v8, %v535_v31  ;;  %1298 = vmatpush.bf16.msra.mxu0 %v7291_v3  ;;  %v9615_v57 = vld [vmem:[%s15164_s3 + $0x2c] sm:$0xf0]  ;;  %v7282_v56 = vld [vmem:[%s15164_s3 + $0x28] sm:$0xf]  ;;  %1324 = vmatpush.bf16.msra.mxu2 %v7299_v53  ;;  %v9614_v8 = vld [vmem:[%s15164_s3 + $0x2c] sm:$0xf]  ;;  %v7259_v3 = vor.u32 %v9611_v0, %v7258_v15 }
 0x143   :  { %v7275_v60 = vor.u32 %v9615_v57, %v7274_v18  ;;  %v7283_v6 = vor.u32 %v9616_v2, %v7282_v56  ;;  %v9609_v31 = vld [vmem:[%s15164_s3 + $0x4] sm:$0xf]  ;;  %v7267_v53 = vor.u32 %v9612_v32, %v7266_v35  ;;  %v1035_v18 = vsel %vm11506_vm2, %v11337_v54, %v1031_v48 }
 0x144   :  { %v7254_v58 = vmul.f32 -1.442695, %v1020_v9  ;;  %v7284_v9 = vld [vmem:[%s15164_s3 + $0x38] sm:$0xf0]  ;;  %v7271_v57 = vor.u32 %v9610_v33, %v7268_v23  ;;  %v1077_v35 = vand.u32 2147483648, %v11398_v52 }
 0x145   :  { %1311 = vmatpush.bf16.msra.mxu1 %v7295_v39  ;;  %1337 = vmatpush.bf16.msrb.mxu3 %v7303_v55  ;;  %v7287_v50 = vor.u32 %v9614_v8, %v7284_v9  ;;  %v1036_v39 = vand.u32 2147483647, %v11277_v34  ;;  %v1075_v32 = vand.u32 2147483647, %v11398_v52 }
 0x146   :  { %10177 = vpow2.f32 %v7254_v58  ;;  %v7260_v58 = vld [vmem:[%s15164_s3 + $0x10] sm:$0xf0]  ;;  %1299 = vmatpush.bf16.msra.mxu0 %v7275_v60  ;;  %1325 = vmatpush.bf16.msra.mxu2 %v7283_v6 }
 0x147   :  { %v1002_v30 = vpop.f32.mrf.mxu2  ;;  %v7263_v41 = vor.u32 %v9609_v31, %v7260_v58  ;;  %vm1037_vm3 = vcmp.eq.f32.partialorder %v1036_v39, 8.507059e+37  ;;  %v1078_v39 = vor.u32 1.1754944e-38, %v1077_v35  ;;  %vm1076_vm11 = vcmp.eq.f32.partialorder %v1075_v32, 8.507059e+37  ;;  %v9661_v35 = vld [vmem:[%s15164_s3 + $0xa4] sm:$0xf] }
 0x148   :  { %v1021_v61 = vadd.f32 %v1002_v30, %v773_v5  ;;  %v1040_v62 = vsel %vm1037_vm3, %v1039_v17, %v1035_v18  ;;  %v7509_v17 = vld [vmem:[%s15164_s3 + $0xe8] sm:$0xf] }
 0x149   :  { %v991_v20 = vpop.f32.mrf.mxu1  ;;  %1312 = vmatpush.bf16.msra.mxu1 %v7279_v29  ;;  %1338 = vmatpush.bf16.msrb.mxu3 %v7287_v50 }
 0x14a   :  { %10179 = vtanh.f32 %v1021_v61  ;;  %1300 = vmatpush.bf16.msra.mxu0 %v7259_v3  ;;  %1326 = vmatpush.bf16.msra.mxu2 %v7267_v53  ;;  %v7501_v53 = vld [vmem:[%s15164_s3 + $0xe0] sm:$0xf] }
 0x14b   :  { %10181 = vrcp.f32 %v11398_v52 }
 0x14c   :  { %v10178_v38 = vpop.eup %10177 }
 0x14d   :  { %v1045_v55 = vadd.f32 1.0, %v10178_v38  ;;  %1313 = vmatpush.bf16.msra.mxu1 %v7263_v41  ;;  %1339 = vmatpush.bf16.msrb.mxu3 %v7271_v57  ;;  %v7503_v57 = vld [vmem:[%s15164_s3 + $0xf0] sm:$0xf0] }
 0x14f   :  { %10183 = vrcp.f32 %v1045_v55  ;;  %v1004_v30 = vpop.f32.mrf.mxu2  ;;  %v1057_v8 = vand.u32 2147483648, %v1045_v55  ;;  %v1055_v34 = vand.u32 2147483647, %v1045_v55  ;;  %vm1051_vm5 = vweird.f32 %v1045_v55 }
 0x150   :  { %v10180_v60 = vpop.eup %10179  ;;  %v9672_v30 = vld [vmem:[%s15164_s3 + $0xf4] sm:$0xf0] }
 0x151   :  { %v1082_v56 = vmul.f32 %v10180_v60, %v1040_v62  ;;  %v10182_v2 = vpop.eup %10181  ;;  %v1058_v48 = vor.u32 1.1754944e-38, %v1057_v8  ;;  %vm1056_vm7 = vcmp.eq.f32.partialorder %v1055_v34, 8.507059e+37  ;;  %v7510_v62 = vor.u32 %v9672_v30, %v7509_v17  ;;  %v7493_v34 = vld [vmem:[%s15164_s3 + $0xc8] sm:$0xf]  ;;  %v9657_v17 = vld [vmem:[%s15164_s3 + $0x84] sm:$0xf] }
 0x152   :  { %v1067_v29 = vmul.f32 %v10182_v2, %v11398_v52  ;;  %vm1072_vm8 = vweird.f32 %v10182_v2  ;;  %v9671_v52 = vld [vmem:[%s15164_s3 + $0xec] sm:$0xf0] }
 0x153   :  { %vm1073_vm10 = vmor %vm1071_vm9, %vm1072_vm8  ;;  %v7502_v18 = vor.u32 %v9671_v52, %v7501_v53  ;;  %1645 = vmatpush.bf16.msrb.mxu2 %v7510_v62  ;;  %v9662_v53 = vld [vmem:[%s15164_s3 + $0xac] sm:$0xf]  ;;  %v7479_v52 = vld [vmem:[%s15164_s3 + $0xb8] sm:$0xf0] }
 0x154   :  { %v1068_v1 = vsub.f32 1.0, %v1067_v29  ;;  %v9667_v29 = vld [vmem:[%s15164_s3 + $0xcc] sm:$0xf0] }
 0x155   :  { %v10184_v61 = vpop.eup %10183  ;;  %1619 = vmatpush.bf16.msrb.mxu0 %v7502_v18  ;;  %v7453_v18 = vld [vmem:[%s15164_s3 + $0x80] sm:$0xf] }
 0x156   :  { %v1047_v54 = vmul.f32 %v10184_v61, %v1045_v55  ;;  %vm1052_vm4 = vweird.f32 %v10184_v61  ;;  %v1069_v50 = vmul.f32 %v10182_v2, %v1068_v1  ;;  %v9669_v55 = vld [vmem:[%s15164_s3 + $0xe4] sm:$0xf]  ;;  %v9668_v1 = vld [vmem:[%s15164_s3 + $0xd4] sm:$0xf0] }
 0x157   :  { %vm1053_vm6 = vmor %vm1051_vm5, %vm1052_vm4  ;;  %v7506_v60 = vor.u32 %v9669_v55, %v7503_v57  ;;  %v7482_v55 = vor.u32 %v9662_v53, %v7479_v52  ;;  %v9659_v57 = vld [vmem:[%s15164_s3 + $0x8c] sm:$0xf0] }
 0x158   :  { %v1048_v6 = vsub.f32 1.0, %v1047_v54  ;;  %v1070_v3 = vadd.f32 %v10182_v2, %v1069_v50  ;;  %v7485_v54 = vld [vmem:[%s15164_s3 + $0xc0] sm:$0xf]  ;;  %v7495_v50 = vld [vmem:[%s15164_s3 + $0xd8] sm:$0xf0]  ;;  %v7454_v62 = vor.u32 %v9659_v57, %v7453_v18 }
 0x159   :  { %1632 = vmatpush.bf16.msrb.mxu1 %v7506_v60  ;;  %v7486_v8 = vor.u32 %v9667_v29, %v7485_v54  ;;  %v9649_v18 = vld [vmem:[%s15164_s3 + $0x44] sm:$0xf]  ;;  %v7423_v57 = vld [vmem:[%s15164_s3 + $0x50] sm:$0xf0] }
 0x15a   :  { %v1049_v9 = vmul.f32 %v10184_v61, %v1048_v6  ;;  %v1074_v33 = vsel %vm1073_vm10, %v10182_v2, %v1070_v3  ;;  %v7511_v2 = vld [vmem:[%s15164_s3 + $0xf8] sm:$0xf0]  ;;  %v9665_v6 = vld [vmem:[%s15164_s3 + $0xc4] sm:$0xf]  ;;  %v9663_v3 = vld [vmem:[%s15164_s3 + $0xac] sm:$0xf0] }
 0x15b   :  { %v1079_v23 = vsel %vm1076_vm11, %v1078_v39, %v1074_v33  ;;  %1620 = vmatpush.bf16.msrb.mxu0 %v7486_v8  ;;  %v7471_v33 = vld [vmem:[%s15164_s3 + $0xb0] sm:$0xf0]  ;;  %v7477_v39 = vld [vmem:[%s15164_s3 + $0xa8] sm:$0xf] }
 0x15c   :  { %v1050_v15 = vadd.f32 %v10184_v61, %v1049_v9  ;;  %v7487_v9 = vld [vmem:[%s15164_s3 + $0xd0] sm:$0xf0] }
 0x15e   :  { %v1054_v20 = vsel %vm1053_vm6, %v10184_v61, %v1050_v15  ;;  %v7490_v15 = vor.u32 %v9665_v6, %v7487_v9  ;;  %v9658_v9 = vld [vmem:[%s15164_s3 + $0x8c] sm:$0xf] }
 0x15f   :  { %v1059_v0 = vsel %vm1056_vm7, %v1058_v48, %v1054_v20  ;;  %v7494_v48 = vor.u32 %v9668_v1, %v7493_v34  ;;  %v9666_v20 = vld [vmem:[%s15164_s3 + $0xcc] sm:$0xf]  ;;  %v7463_v34 = vld [vmem:[%s15164_s3 + $0x98] sm:$0xf0] }
 0x160   :  { %v1081_v31 = vmul.f32 0.0, %v1059_v0  ;;  %v7498_v0 = vor.u32 %v9666_v20, %v7495_v50  ;;  %1633 = vmatpush.bf16.msrb.mxu1 %v7490_v15  ;;  %v7466_v1 = vor.u32 %v9658_v9, %v7463_v34  ;;  %v9653_v20 = vld [vmem:[%s15164_s3 + $0x64] sm:$0xf]  ;;  %v7439_v50 = vld [vmem:[%s15164_s3 + $0x70] sm:$0xf0] }
 0x161   :  { %1646 = vmatpush.bf16.msrb.mxu2 %v7494_v48  ;;  %v9645_v9 = vld [vmem:[%s15164_s3 + $0x24] sm:$0xf] }
 0x162   :  { %v11517_v58 = vadd.f32 %v1082_v56, %v1081_v31  ;;  %v9670_v56 = vld [vmem:[%s15164_s3 + $0xec] sm:$0xf]  ;;  %v7469_v31 = vld [vmem:[%s15164_s3 + $0xa0] sm:$0xf] }
 0x163   :  { %v7514_v61 = vor.u32 %v9670_v56, %v7511_v2  ;;  %v7470_v32 = vor.u32 %v9663_v3, %v7469_v31  ;;  %v7455_v56 = vld [vmem:[%s15164_s3 + $0x90] sm:$0xf0]  ;;  %v7461_v2 = vld [vmem:[%s15164_s3 + $0x88] sm:$0xf]  ;;  %v7442_v31 = vor.u32 %v9653_v20, %v7439_v50  ;;  %v9648_v20 = vld [vmem:[%s15164_s3 + $0x34] sm:$0xf0] }
 0x164   :  { %10185 = vtanh.f32 %v11517_v58  ;;  %v7458_v6 = vor.u32 %v9657_v17, %v7455_v56  ;;  %v7445_v3 = vld [vmem:[%s15164_s3 + $0x68] sm:$0xf]  ;;  %v7426_v56 = vor.u32 %v9649_v18, %v7423_v57  ;;  %v9646_v50 = vld [vmem:[%s15164_s3 + $0x2c] sm:$0xf] }
 0x165   :  { %1658 = vmatpush.bf16.msra.mxu3 %v7514_v61  ;;  %1621 = vmatpush.bf16.msrb.mxu0 %v7470_v32  ;;  %v9660_v61 = vld [vmem:[%s15164_s3 + $0x94] sm:$0xf0]  ;;  %v9654_v32 = vld [vmem:[%s15164_s3 + $0x6c] sm:$0xf]  ;;  %v7429_v17 = vld [vmem:[%s15164_s3 + $0x48] sm:$0xf] }
 0x166   :  { %v7462_v8 = vor.u32 %v9660_v61, %v7461_v2  ;;  %v9652_v2 = vld [vmem:[%s15164_s3 + $0x54] sm:$0xf0]  ;;  %v9650_v61 = vld [vmem:[%s15164_s3 + $0x4c] sm:$0xf] }
 0x169   :  { %1659 = vmatpush.bf16.msra.mxu3 %v7498_v0  ;;  %1622 = vmatpush.bf16.msrb.mxu0 %v7454_v62 }
 0x16a   :  { %v10186_v41 = vpop.eup %10185 }
 0x16b   :  { %v11523_v38 = vmul.f32 %v10186_v41, %v1079_v23  ;;  %v9664_v41 = vld [vmem:[%s15164_s3 + $0xb4] sm:$0xf0]  ;;  %v7474_v23 = vor.u32 %v9661_v35, %v7471_v33 }
 0x16c   :  { %v9656_v35 = vld [vmem:[%s15164_s3 + $0x74] sm:$0xf0] }
 0x16d   :  { %v1100_v5 = vpack.c.bf16 %v11523_v38, %v11523_v38  ;;  %1634 = vmatpush.bf16.msrb.mxu1 %v7474_v23  ;;  %1660 = vmatpush.bf16.msra.mxu3 %v7482_v55  ;;  %v7446_v33 = vor.u32 %v9656_v35, %v7445_v3  ;;  %v9651_v23 = vld [vmem:[%s15164_s3 + $0x4c] sm:$0xf0] }
 0x16f   :  { %1301 = vmatmul.bf16.vlgmr.msra.gmra.mxu0 %v1100_v5  ;;  %1314 = vmatmul.bf16.vlgmr.msra.gmra.mxu1 %v1100_v5 }
 0x170   :  { %1327 = vmatmul.bf16.vlgmr.msra.gmra.mxu2 %v1100_v5  ;;  %1340 = vmatmul.bf16.vlgmr.msrb.gmra.mxu3 %v1100_v5  ;;  %v7478_v5 = vor.u32 %v9664_v41, %v7477_v39  ;;  %v7447_v39 = vld [vmem:[%s15164_s3 + $0x78] sm:$0xf0]  ;;  %v7421_v41 = vld [vmem:[%s15164_s3 + $0x40] sm:$0xf] }
 0x171   :  { %1635 = vmatpush.bf16.msrb.mxu1 %v7458_v6  ;;  %1661 = vmatpush.bf16.msra.mxu3 %v7466_v1  ;;  %v7450_v52 = vor.u32 %v9654_v32, %v7447_v39  ;;  %v7422_v55 = vor.u32 %v9651_v23, %v7421_v41  ;;  %v7407_v1 = vld [vmem:[%s15164_s3 + $0x30] sm:$0xf0]  ;;  %v7389_v32 = vld [vmem:[%s15164_s3] sm:$0xf]  ;;  %v9641_v23 = vld [vmem:[%s15164_s3 + $0x4] sm:$0xf] }
 0x172   :  { %1647 = vmatpush.bf16.msrb.mxu2 %v7478_v5 }
 0x175   :  { %1636 = vmatpush.bf16.msrb.mxu1 %v7442_v31  ;;  %1662 = vmatpush.bf16.msra.mxu3 %v7450_v52  ;;  %v7397_v52 = vld [vmem:[%s15164_s3 + $0x8] sm:$0xf] }
 0x176   :  { %1648 = vmatpush.bf16.msrb.mxu2 %v7462_v8  ;;  %v9647_v8 = vld [vmem:[%s15164_s3 + $0x2c] sm:$0xf0] }
 0x179   :  { %1637 = vmatpush.bf16.msrb.mxu1 %v7426_v56  ;;  %v7399_v56 = vld [vmem:[%s15164_s3 + $0x18] sm:$0xf0] }
 0x17a   :  { %1649 = vmatpush.bf16.msrb.mxu2 %v7446_v33  ;;  %v9643_v33 = vld [vmem:[%s15164_s3 + $0xc] sm:$0xf0] }
 0x17b   :  { %v7390_v57 = vor.u32 %v9643_v33, %v7389_v32 }
 0x1ec   :  { %v1302_v30 = vpop.f32.mrf.mxu0  ;;  %v1315_v60 = vpop.f32.mrf.mxu1 }
 0x1ed   :  { %v1345_v54 = vadd.f32 %v1302_v30, %v11167_v36  ;;  %v1346_v29 = vadd.f32 %v1315_v60, %v11326_v43  ;;  %v7437_v36 = vld [vmem:[%s15164_s3 + $0x60] sm:$0xf]  ;;  %v9655_v43 = vld [vmem:[%s15164_s3 + $0x6c] sm:$0xf0] }
 0x1ee   :  { %v7438_v0 = vor.u32 %v9655_v43, %v7437_v36  ;;  %v7410_v43 = vor.u32 %v9645_v9, %v7407_v1 }
 0x1ef   :  { %v7384_v15 = vmul.f32 -1.442695, %v1345_v54  ;;  %v7385_v48 = vmul.f32 -1.442695, %v1346_v29  ;;  %v7431_v54 = vld [vmem:[%s15164_s3 + $0x58] sm:$0xf0]  ;;  %v7430_v29 = vor.u32 %v9652_v2, %v7429_v17 }
 0x1f0   :  { %1623 = vmatpush.bf16.msrb.mxu0 %v7438_v0  ;;  %v7434_v6 = vor.u32 %v9650_v61, %v7431_v54  ;;  %v7415_v0 = vld [vmem:[%s15164_s3 + $0x38] sm:$0xf0]  ;;  %1638 = vmatpush.bf16.msrb.mxu1 %v7410_v43  ;;  %v9644_v17 = vld [vmem:[%s15164_s3 + $0x14] sm:$0xf0] }
 0x1f1   :  { %10187 = vpow2.f32 %v7384_v15  ;;  %v7413_v15 = vld [vmem:[%s15164_s3 + $0x28] sm:$0xf]  ;;  %1650 = vmatpush.bf16.msrb.mxu2 %v7430_v29  ;;  %v7418_v41 = vor.u32 %v9646_v50, %v7415_v0 }
 0x1f2   :  { %10189 = vpow2.f32 %v7385_v48  ;;  %v7414_v35 = vor.u32 %v9648_v20, %v7413_v15  ;;  %1663 = vmatpush.bf16.msra.mxu3 %v7434_v6 }
 0x1f3   :  { %v11655_v5 = vpop.f32.mrf.mxu2  ;;  %v1341_v53 = vpop.f32.mrf.mxu3 }
 0x1f4   :  { %v1348_v30 = vadd.f32 %v1341_v53, %v11250_v7  ;;  %v1304_v60 = vpop.f32.mrf.mxu0  ;;  %v1317_v62 = vpop.f32.mrf.mxu1  ;;  %v7405_v7 = vld [vmem:[%s15164_s3 + $0x20] sm:$0xf]  ;;  %1624 = vmatpush.bf16.msrb.mxu0 %v7422_v55  ;;  %v7391_v53 = vld [vmem:[%s15164_s3 + $0x10] sm:$0xf0]  ;;  %v1347_v6 = vadd.f32 %v11655_v5, %v11377_v40 }
 0x1f5   :  { %v7406_v36 = vor.u32 %v9647_v8, %v7405_v7  ;;  %1651 = vmatpush.bf16.msrb.mxu2 %v7414_v35  ;;  %v7398_v60 = vor.u32 %v9644_v17, %v7397_v52  ;;  %v9642_v62 = vld [vmem:[%s15164_s3 + $0xc] sm:$0xf] }
 0x1f6   :  { %v7386_v34 = vmul.f32 -1.442695, %v1348_v30  ;;  %v7394_v30 = vor.u32 %v9641_v23, %v7391_v53  ;;  %1664 = vmatpush.bf16.msra.mxu3 %v7418_v41  ;;  %v7402_v2 = vor.u32 %v9642_v62, %v7399_v56 }
 0x1f7   :  { %v10188_v48 = vpop.eup %10187 }
 0x1f8   :  { %v10190_v31 = vpop.eup %10189  ;;  %v1352_v3 = vadd.f32 1.0, %v10188_v48  ;;  %10191 = vpow2.f32 %v7386_v34  ;;  %1625 = vmatpush.bf16.msrb.mxu0 %v7406_v36  ;;  %1639 = vmatpush.bf16.msrb.mxu1 %v7394_v30 }
 0x1f9   :  { %v1371_v39 = vadd.f32 1.0, %v10190_v31  ;;  %1652 = vmatpush.bf16.msrb.mxu2 %v7398_v60 }
 0x1fa   :  { %10193 = vrcp.f32 %v1352_v3  ;;  %1665 = vmatpush.bf16.msra.mxu3 %v7402_v2  ;;  %v1364_v15 = vand.u32 2147483648, %v1352_v3  ;;  %v1362_v43 = vand.u32 2147483647, %v1352_v3  ;;  %vm1358_vm14 = vweird.f32 %v1352_v3 }
 0x1fb   :  { %10195 = vrcp.f32 %v1371_v39  ;;  %v1330_v55 = vpop.f32.mrf.mxu2  ;;  %v1343_v18 = vpop.f32.mrf.mxu3  ;;  %v1383_v48 = vand.u32 2147483648, %v1371_v39  ;;  %v1381_v50 = vand.u32 2147483647, %v1371_v39  ;;  %vm1377_vm15 = vweird.f32 %v1371_v39 }
 0x1fc   :  { %1626 = vmatpush.bf16.msrb.mxu0 %v7390_v57  ;;  %v1365_v40 = vor.u32 1.1754944e-38, %v1364_v15  ;;  %vm1363_vm2 = vcmp.eq.f32.partialorder %v1362_v43, 8.507059e+37  ;;  %v7642_v43 = vld [vmem:[%s15164_s3 + $0xf8] sm:$0xf0] }
 0x1fd   :  { %v1384_v32 = vor.u32 1.1754944e-38, %v1383_v48  ;;  %vm1382_vm3 = vcmp.eq.f32.partialorder %v1381_v50, 8.507059e+37  ;;  %v7616_v50 = vld [vmem:[%s15164_s3 + $0xc0] sm:$0xf] }
 0x1fe   :  { %v10192_v61 = vpop.eup %10191 }
 0x1ff   :  { %v1391_v54 = vadd.f32 1.0, %v10192_v61 }
 0x200   :  { %v10194_v29 = vpop.eup %10193 }
 0x201   :  { %v10196_v7 = vpop.eup %10195  ;;  %v1354_v8 = vmul.f32 %v10194_v29, %v1352_v3  ;;  %10197 = vrcp.f32 %v1391_v54  ;;  %vm1359_vm12 = vweird.f32 %v10194_v29  ;;  %v1403_v30 = vand.u32 2147483648, %v1391_v54 }
 0x202   :  { %v1373_v9 = vmul.f32 %v10196_v7, %v1371_v39  ;;  %10199 = vtanh.f32 %v1347_v6  ;;  %vm1378_vm13 = vweird.f32 %v10196_v7  ;;  %vm1360_vm0 = vmor %vm1358_vm14, %vm1359_vm12  ;;  %vm1397_vm5 = vweird.f32 %v1391_v54  ;;  %v7632_v6 = vld [vmem:[%s15164_s3 + $0xe0] sm:$0xf] }
 0x203   :  { %v1355_v34 = vsub.f32 1.0, %v1354_v8  ;;  %vm1379_vm1 = vmor %vm1377_vm15, %vm1378_vm13  ;;  %v1401_v60 = vand.u32 2147483647, %v1391_v54  ;;  %v1404_v56 = vor.u32 1.1754944e-38, %v1403_v30  ;;  %v7608_v30 = vld [vmem:[%s15164_s3 + $0xa8] sm:$0xf] }
 0x204   :  { %v1374_v1 = vsub.f32 1.0, %v1373_v9  ;;  %v7634_v9 = vld [vmem:[%s15164_s3 + $0xf0] sm:$0xf0] }
 0x205   :  { %v1356_v36 = vmul.f32 %v10194_v29, %v1355_v34  ;;  %vm1402_vm7 = vcmp.eq.f32.partialorder %v1401_v60, 8.507059e+37  ;;  %v7640_v34 = vld [vmem:[%s15164_s3 + $0xe8] sm:$0xf]  ;;  %v9696_v60 = vld [vmem:[%s15164_s3 + $0xb4] sm:$0xf0] }
 0x206   :  { %v1375_v20 = vmul.f32 %v10196_v7, %v1374_v1  ;;  %v9704_v1 = vld [vmem:[%s15164_s3 + $0xf4] sm:$0xf0] }
 0x207   :  { %v10198_v0 = vpop.eup %10197  ;;  %v1357_v31 = vadd.f32 %v10194_v29, %v1356_v36  ;;  %v7641_v48 = vor.u32 %v9704_v1, %v7640_v34  ;;  %v9702_v36 = vld [vmem:[%s15164_s3 + $0xec] sm:$0xf]  ;;  %v7592_v34 = vld [vmem:[%s15164_s3 + $0x88] sm:$0xf]  ;;  %v9692_v1 = vld [vmem:[%s15164_s3 + $0x94] sm:$0xf0] }
 0x208   :  { %v1376_v5 = vadd.f32 %v10196_v7, %v1375_v20  ;;  %v1393_v35 = vmul.f32 %v10198_v0, %v1391_v54  ;;  %v10200_v41 = vpop.eup %10199  ;;  %vm1398_vm4 = vweird.f32 %v10198_v0  ;;  %v9703_v54 = vld [vmem:[%s15164_s3 + $0xec] sm:$0xf0]  ;;  %v7645_v20 = vor.u32 %v9702_v36, %v7642_v43 }
 0x209   :  { %v1361_v33 = vsel %vm1360_vm0, %v10194_v29, %v1357_v31  ;;  %vm1399_vm6 = vmor %vm1397_vm5, %vm1398_vm4  ;;  %v7633_v8 = vor.u32 %v9703_v54, %v7632_v6  ;;  %1971 = vmatpush.bf16.msra.mxu2 %v7641_v48  ;;  %v9697_v31 = vld [vmem:[%s15164_s3 + $0xc4] sm:$0xf]  ;;  %v7584_v6 = vld [vmem:[%s15164_s3 + $0x80] sm:$0xf]  ;;  %v7593_v43 = vor.u32 %v9692_v1, %v7592_v34 }
 0x20a   :  { %v1366_v23 = vsel %vm1363_vm2, %v1365_v40, %v1361_v33  ;;  %v1380_v53 = vsel %vm1379_vm1, %v10196_v7, %v1376_v5  ;;  %v1394_v52 = vsub.f32 1.0, %v1393_v35  ;;  %v9701_v7 = vld [vmem:[%s15164_s3 + $0xe4] sm:$0xf]  ;;  %1984 = vmatpush.bf16.msrb.mxu3 %v7645_v20  ;;  %v7618_v5 = vld [vmem:[%s15164_s3 + $0xd0] sm:$0xf0] }
 0x20b   :  { %v1385_v55 = vsel %vm1382_vm3, %v1384_v32, %v1380_v53  ;;  %v1408_v18 = vmul.f32 %v10200_v41, %v1366_v23  ;;  %v7637_v15 = vor.u32 %v9701_v7, %v7634_v9  ;;  %1945 = vmatpush.bf16.msra.mxu0 %v7633_v8  ;;  %v7624_v35 = vld [vmem:[%s15164_s3 + $0xc8] sm:$0xf]  ;;  %v9700_v32 = vld [vmem:[%s15164_s3 + $0xd4] sm:$0xf0]  ;;  %v7621_v33 = vor.u32 %v9697_v31, %v7618_v5  ;;  %v9698_v23 = vld [vmem:[%s15164_s3 + $0xcc] sm:$0xf] }
 0x20c   :  { %v1407_v57 = vmul.f32 %v1385_v55, %v11517_v58  ;;  %v1395_v17 = vmul.f32 %v10198_v0, %v1394_v52  ;;  %v7625_v41 = vor.u32 %v9700_v32, %v7624_v35  ;;  %v7626_v53 = vld [vmem:[%s15164_s3 + $0xd8] sm:$0xf0]  ;;  %v7600_v55 = vld [vmem:[%s15164_s3 + $0xa0] sm:$0xf]  ;;  %v9691_v54 = vld [vmem:[%s15164_s3 + $0x8c] sm:$0xf0] }
 0x20d   :  { %1958 = vmatpush.bf16.msra.mxu1 %v7637_v15  ;;  %v7629_v52 = vor.u32 %v9698_v23, %v7626_v53  ;;  %v9689_v7 = vld [vmem:[%s15164_s3 + $0x84] sm:$0xf]  ;;  %v7585_v8 = vor.u32 %v9691_v54, %v7584_v6  ;;  %v7586_v9 = vld [vmem:[%s15164_s3 + $0x90] sm:$0xf0]  ;;  %v9690_v20 = vld [vmem:[%s15164_s3 + $0x8c] sm:$0xf] }
 0x20e   :  { %v11727_v3 = vadd.f32 %v1408_v18, %v1407_v57  ;;  %v1396_v39 = vadd.f32 %v10198_v0, %v1395_v17  ;;  %1972 = vmatpush.bf16.msra.mxu2 %v7625_v41  ;;  %v9695_v18 = vld [vmem:[%s15164_s3 + $0xac] sm:$0xf0]  ;;  %v9693_v57 = vld [vmem:[%s15164_s3 + $0xa4] sm:$0xf]  ;;  %v7589_v36 = vor.u32 %v9689_v7, %v7586_v9  ;;  %v7568_v5 = vld [vmem:[%s15164_s3 + $0x60] sm:$0xf] }
 0x20f   :  { %1985 = vmatpush.bf16.msrb.mxu3 %v7629_v52  ;;  %v7601_v17 = vor.u32 %v9695_v18, %v7600_v55  ;;  %v9687_v35 = vld [vmem:[%s15164_s3 + $0x6c] sm:$0xf0]  ;;  %v9685_v32 = vld [vmem:[%s15164_s3 + $0x64] sm:$0xf]  ;;  %v7570_v41 = vld [vmem:[%s15164_s3 + $0x70] sm:$0xf0] }
 0x210   :  { %10201 = vtanh.f32 %v11727_v3  ;;  %v1400_v62 = vsel %vm1399_vm6, %v10198_v0, %v1396_v39  ;;  %v9699_v0 = vld [vmem:[%s15164_s3 + $0xcc] sm:$0xf0]  ;;  %v7602_v39 = vld [vmem:[%s15164_s3 + $0xb0] sm:$0xf0]  ;;  %v7573_v23 = vor.u32 %v9685_v32, %v7570_v41  ;;  %v7576_v53 = vld [vmem:[%s15164_s3 + $0x68] sm:$0xf] }
 0x211   :  { %v1405_v61 = vsel %vm1402_vm7, %v1404_v56, %v1400_v62  ;;  %v7617_v40 = vor.u32 %v9699_v0, %v7616_v50  ;;  %1959 = vmatpush.bf16.msra.mxu1 %v7621_v33  ;;  %v7605_v62 = vor.u32 %v9693_v57, %v7602_v39  ;;  %v7609_v56 = vor.u32 %v9696_v60, %v7608_v30  ;;  %v7594_v50 = vld [vmem:[%s15164_s3 + $0x98] sm:$0xf0]  ;;  %v9688_v52 = vld [vmem:[%s15164_s3 + $0x74] sm:$0xf0]  ;;  %v9686_v55 = vld [vmem:[%s15164_s3 + $0x6c] sm:$0xf] }
 0x212   :  { %v7577_v18 = vor.u32 %v9688_v52, %v7576_v53  ;;  %v7578_v57 = vld [vmem:[%s15164_s3 + $0x78] sm:$0xf0]  ;;  %v9683_v39 = vld [vmem:[%s15164_s3 + $0x4c] sm:$0xf0]  ;;  %v9684_v54 = vld [vmem:[%s15164_s3 + $0x54] sm:$0xf0] }
 0x213   :  { %1946 = vmatpush.bf16.msra.mxu0 %v7617_v40  ;;  %1973 = vmatpush.bf16.msra.mxu2 %v7609_v56  ;;  %v7597_v40 = vor.u32 %v9690_v20, %v7594_v50  ;;  %v7581_v30 = vor.u32 %v9686_v55, %v7578_v57  ;;  %v7554_v56 = vld [vmem:[%s15164_s3 + $0x50] sm:$0xf0]  ;;  %v9682_v7 = vld [vmem:[%s15164_s3 + $0x4c] sm:$0xf]  ;;  %v9677_v20 = vld [vmem:[%s15164_s3 + $0x24] sm:$0xf] }
 0x214   :  { %v7546_v32 = vld [vmem:[%s15164_s3 + $0x38] sm:$0xf0]  ;;  %v9675_v41 = vld [vmem:[%s15164_s3 + $0xc] sm:$0xf0]  ;;  %v7528_v57 = vld [vmem:[%s15164_s3 + $0x8] sm:$0xf] }
 0x215   :  { %1960 = vmatpush.bf16.msra.mxu1 %v7605_v62  ;;  %v9681_v62 = vld [vmem:[%s15164_s3 + $0x44] sm:$0xf] }
 0x216   :  { %v10202_v2 = vpop.eup %10201  ;;  %v7557_v6 = vor.u32 %v9681_v62, %v7554_v56  ;;  %v7530_v56 = vld [vmem:[%s15164_s3 + $0x18] sm:$0xf0] }
 0x217   :  { %v11730_v29 = vmul.f32 %v10202_v2, %v1405_v61  ;;  %v9694_v2 = vld [vmem:[%s15164_s3 + $0xac] sm:$0xf]  ;;  %v7610_v61 = vld [vmem:[%s15164_s3 + $0xb8] sm:$0xf0]  ;;  %1947 = vmatpush.bf16.msra.mxu0 %v7601_v17  ;;  %1974 = vmatpush.bf16.msra.mxu2 %v7593_v43  ;;  %v7552_v17 = vld [vmem:[%s15164_s3 + $0x40] sm:$0xf] }
 0x218   :  { %v7553_v60 = vor.u32 %v9683_v39, %v7552_v17  ;;  %v9679_v43 = vld [vmem:[%s15164_s3 + $0x2c] sm:$0xf0] }
 0x219   :  { %v1426_v58 = vpack.c.bf16 %v11730_v29, %v11730_v29  ;;  %1961 = vmatpush.bf16.msra.mxu1 %v7589_v36  ;;  %v7536_v36 = vld [vmem:[%s15164_s3 + $0x20] sm:$0xf] }
 0x21a   :  { %v7537_v50 = vor.u32 %v9679_v43, %v7536_v36 }
 0x21b   :  { %1627 = vmatmul.bf16.vlgmr.msrb.gmra.mxu0 %v1426_v58  ;;  %1640 = vmatmul.bf16.vlgmr.msrb.gmra.mxu1 %v1426_v58 }
 0x21c   :  { %1653 = vmatmul.bf16.vlgmr.msrb.gmra.mxu2 %v1426_v58  ;;  %1666 = vmatmul.bf16.vlgmr.msra.gmra.mxu3 %v1426_v58  ;;  %v7613_v58 = vor.u32 %v9694_v2, %v7610_v61  ;;  %v7560_v2 = vld [vmem:[%s15164_s3 + $0x48] sm:$0xf] }
 0x21d   :  { %1948 = vmatpush.bf16.msra.mxu0 %v7585_v8  ;;  %1962 = vmatpush.bf16.msra.mxu1 %v7573_v23  ;;  %v7562_v8 = vld [vmem:[%s15164_s3 + $0x58] sm:$0xf0]  ;;  %v9673_v23 = vld [vmem:[%s15164_s3 + $0x4] sm:$0xf] }
 0x21e   :  { %1986 = vmatpush.bf16.msrb.mxu3 %v7613_v58  ;;  %1975 = vmatpush.bf16.msra.mxu2 %v7577_v18  ;;  %v7522_v18 = vld [vmem:[%s15164_s3 + $0x10] sm:$0xf0] }
 0x21f   :  { %v7525_v62 = vor.u32 %v9673_v23, %v7522_v18 }
 0x221   :  { %1963 = vmatpush.bf16.msra.mxu1 %v7557_v6 }
 0x222   :  { %1987 = vmatpush.bf16.msrb.mxu3 %v7597_v40 }
 0x226   :  { %1988 = vmatpush.bf16.msrb.mxu3 %v7581_v30  ;;  %v9676_v30 = vld [vmem:[%s15164_s3 + $0x14] sm:$0xf0] }
 0x227   :  { %v7529_v6 = vor.u32 %v9676_v30, %v7528_v57 }
 0x298   :  { %v1628_v15 = vpop.f32.mrf.mxu0  ;;  %v1641_v48 = vpop.f32.mrf.mxu1 }
 0x299   :  { %v1671_v0 = vadd.f32 %v1628_v15, %v11156_v28  ;;  %v1672_v31 = vadd.f32 %v1641_v48, %v11275_v11  ;;  %v7569_v11 = vor.u32 %v9687_v35, %v7568_v5  ;;  %v7561_v15 = vor.u32 %v9684_v54, %v7560_v2  ;;  %v9678_v35 = vld [vmem:[%s15164_s3 + $0x2c] sm:$0xf] }
 0x29a   :  { %v7565_v48 = vor.u32 %v9682_v7, %v7562_v8  ;;  %v7549_v55 = vor.u32 %v9678_v35, %v7546_v32 }
 0x29b   :  { %v7515_v33 = vmul.f32 -1.442695, %v1671_v0  ;;  %v7516_v28 = vmul.f32 -1.442695, %v1672_v31  ;;  %1949 = vmatpush.bf16.msra.mxu0 %v7569_v11  ;;  %v7544_v0 = vld [vmem:[%s15164_s3 + $0x28] sm:$0xf]  ;;  %1976 = vmatpush.bf16.msra.mxu2 %v7561_v15 }
 0x29c   :  { %v9680_v31 = vld [vmem:[%s15164_s3 + $0x34] sm:$0xf0]  ;;  %v7520_v11 = vld [vmem:[%s15164_s3] sm:$0xf]  ;;  %1989 = vmatpush.bf16.msrb.mxu3 %v7565_v48 }
 0x29d   :  { %10203 = vpow2.f32 %v7515_v33  ;;  %v7521_v39 = vor.u32 %v9675_v41, %v7520_v11 }
 0x29e   :  { %10205 = vpow2.f32 %v7516_v28  ;;  %v7545_v28 = vor.u32 %v9680_v31, %v7544_v0 }
 0x29f   :  { %v1654_v61 = vpop.f32.mrf.mxu2  ;;  %v1667_v58 = vpop.f32.mrf.mxu3  ;;  %1950 = vmatpush.bf16.msra.mxu0 %v7553_v60  ;;  %v9674_v60 = vld [vmem:[%s15164_s3 + $0xc] sm:$0xf] }
 0x2a0   :  { %v1674_v9 = vadd.f32 %v1667_v58, %v11238_v12  ;;  %v1630_v34 = vpop.f32.mrf.mxu0  ;;  %v1643_v1 = vpop.f32.mrf.mxu1  ;;  %v7538_v12 = vld [vmem:[%s15164_s3 + $0x30] sm:$0xf0]  ;;  %1977 = vmatpush.bf16.msra.mxu2 %v7545_v28  ;;  %1990 = vmatpush.bf16.msrb.mxu3 %v7549_v55  ;;  %v7533_v54 = vor.u32 %v9674_v60, %v7530_v56 }
 0x2a1   :  { %v7541_v5 = vor.u32 %v9677_v20, %v7538_v12  ;;  %v1673_v34 = vadd.f32 %v1654_v61, %v11309_v25 }
 0x2a2   :  { %v7517_v40 = vmul.f32 -1.442695, %v1674_v9 }
 0x2a3   :  { %v10204_v33 = vpop.eup %10203  ;;  %1951 = vmatpush.bf16.msra.mxu0 %v7537_v50  ;;  %1964 = vmatpush.bf16.msra.mxu1 %v7541_v5 }
 0x2a4   :  { %v10206_v53 = vpop.eup %10205  ;;  %v1678_v52 = vadd.f32 1.0, %v10204_v33  ;;  %10207 = vpow2.f32 %v7517_v40  ;;  %1978 = vmatpush.bf16.msra.mxu2 %v7529_v6  ;;  %1991 = vmatpush.bf16.msrb.mxu3 %v7533_v54  ;;  %v7763_v54 = vld [vmem:[%s15164_s3 + $0xe0] sm:$0xf] }
 0x2a5   :  { %v1697_v17 = vadd.f32 1.0, %v10206_v53 }
 0x2a6   :  { %10209 = vrcp.f32 %v1678_v52  ;;  %v1690_v20 = vand.u32 2147483648, %v1678_v52  ;;  %v1688_v0 = vand.u32 2147483647, %v1678_v52  ;;  %vm1684_vm10 = vweird.f32 %v1678_v52 }
 0x2a7   :  { %10211 = vrcp.f32 %v1697_v17  ;;  %v1656_v2 = vpop.f32.mrf.mxu2  ;;  %v1669_v58 = vpop.f32.mrf.mxu3  ;;  %1952 = vmatpush.bf16.msra.mxu0 %v7521_v39  ;;  %1965 = vmatpush.bf16.msra.mxu1 %v7525_v62  ;;  %v1709_v50 = vand.u32 2147483648, %v1697_v17  ;;  %v1707_v40 = vand.u32 2147483647, %v1697_v17  ;;  %vm1703_vm11 = vweird.f32 %v1697_v17 }
 0x2a8   :  { %v1691_v25 = vor.u32 1.1754944e-38, %v1690_v20  ;;  %vm1689_vm14 = vcmp.eq.f32.partialorder %v1688_v0, 8.507059e+37  ;;  %v7773_v20 = vld [vmem:[%s15164_s3 + $0xf8] sm:$0xf0]  ;;  %v9731_v0 = vld [vmem:[%s15164_s3 + $0xcc] sm:$0xf0] }
 0x2a9   :  { %v1710_v33 = vor.u32 1.1754944e-38, %v1709_v50  ;;  %vm1708_vm15 = vcmp.eq.f32.partialorder %v1707_v40, 8.507059e+37 }
 0x2aa   :  { %v10208_v7 = vpop.eup %10207 }
 0x2ab   :  { %v1717_v8 = vadd.f32 1.0, %v10208_v7  ;;  %v9735_v7 = vld [vmem:[%s15164_s3 + $0xec] sm:$0xf0] }
 0x2ac   :  { %v10210_v9 = vpop.eup %10209 }
 0x2ad   :  { %v10212_v1 = vpop.eup %10211  ;;  %v1680_v15 = vmul.f32 %v10210_v9, %v1678_v52  ;;  %10213 = vrcp.f32 %v1717_v8  ;;  %vm1685_vm8 = vweird.f32 %v10210_v9  ;;  %v1729_v30 = vand.u32 2147483648, %v1717_v8 }
 0x2ae   :  { %v1699_v48 = vmul.f32 %v10212_v1, %v1697_v17  ;;  %10215 = vtanh.f32 %v1673_v34  ;;  %vm1704_vm9 = vweird.f32 %v10212_v1  ;;  %vm1686_vm12 = vmor %vm1684_vm10, %vm1685_vm8  ;;  %vm1723_vm1 = vweird.f32 %v1717_v8  ;;  %v7765_v34 = vld [vmem:[%s15164_s3 + $0xf0] sm:$0xf0] }
 0x2af   :  { %v1681_v36 = vsub.f32 1.0, %v1680_v15  ;;  %vm1705_vm13 = vmor %vm1703_vm11, %vm1704_vm9  ;;  %v1727_v60 = vand.u32 2147483647, %v1717_v8  ;;  %v1730_v56 = vor.u32 1.1754944e-38, %v1729_v30  ;;  %v9736_v15 = vld [vmem:[%s15164_s3 + $0xf4] sm:$0xf0] }
 0x2b0   :  { %v1700_v43 = vsub.f32 1.0, %v1699_v48 }
 0x2b1   :  { %v1682_v12 = vmul.f32 %v10210_v9, %v1681_v36  ;;  %vm1728_vm3 = vcmp.eq.f32.partialorder %v1727_v60, 8.507059e+37  ;;  %v9726_v60 = vld [vmem:[%s15164_s3 + $0xac] sm:$0xf] }
 0x2b2   :  { %v1701_v31 = vmul.f32 %v10212_v1, %v1700_v43  ;;  %v9734_v43 = vld [vmem:[%s15164_s3 + $0xec] sm:$0xf] }
 0x2b3   :  { %v10214_v5 = vpop.eup %10213  ;;  %v1683_v35 = vadd.f32 %v10210_v9, %v1682_v12  ;;  %v7776_v50 = vor.u32 %v9734_v43, %v7773_v20  ;;  %v7747_v12 = vld [vmem:[%s15164_s3 + $0xc0] sm:$0xf] }
 0x2b4   :  { %v1702_v61 = vadd.f32 %v10212_v1, %v1701_v31  ;;  %v1719_v32 = vmul.f32 %v10214_v5, %v1717_v8  ;;  %v10216_v11 = vpop.eup %10215  ;;  %vm1724_vm0 = vweird.f32 %v10214_v5  ;;  %v9733_v8 = vld [vmem:[%s15164_s3 + $0xe4] sm:$0xf]  ;;  %v7748_v40 = vor.u32 %v9731_v0, %v7747_v12  ;;  %v7699_v0 = vld [vmem:[%s15164_s3 + $0x60] sm:$0xf] }
 0x2b5   :  { %v1687_v28 = vsel %vm1686_vm12, %v10210_v9, %v1683_v35  ;;  %vm1725_vm2 = vmor %vm1723_vm1, %vm1724_vm0  ;;  %v7764_v9 = vor.u32 %v9735_v7, %v7763_v54  ;;  %v7768_v48 = vor.u32 %v9733_v8, %v7765_v34  ;;  %v9729_v31 = vld [vmem:[%s15164_s3 + $0xc4] sm:$0xf]  ;;  %2310 = vmatpush.bf16.msra.mxu3 %v7776_v50  ;;  %v7755_v35 = vld [vmem:[%s15164_s3 + $0xc8] sm:$0xf] }
 0x2b6   :  { %v1692_v41 = vsel %vm1689_vm14, %v1691_v25, %v1687_v28  ;;  %v1706_v23 = vsel %vm1705_vm13, %v10212_v1, %v1702_v61  ;;  %v1720_v53 = vsub.f32 1.0, %v1719_v32  ;;  %v7771_v1 = vld [vmem:[%s15164_s3 + $0xe8] sm:$0xf]  ;;  %v9732_v25 = vld [vmem:[%s15164_s3 + $0xd4] sm:$0xf0] }
 0x2b7   :  { %v1711_v55 = vsel %vm1708_vm15, %v1710_v33, %v1706_v23  ;;  %v1734_v18 = vmul.f32 %v10216_v11, %v1692_v41  ;;  %v7772_v36 = vor.u32 %v9736_v15, %v7771_v1  ;;  %2271 = vmatpush.bf16.msrb.mxu0 %v7764_v9  ;;  %2284 = vmatpush.bf16.msrb.mxu1 %v7768_v48  ;;  %v9730_v33 = vld [vmem:[%s15164_s3 + $0xcc] sm:$0xf]  ;;  %v7757_v28 = vld [vmem:[%s15164_s3 + $0xd8] sm:$0xf0]  ;;  %v7731_v41 = vld [vmem:[%s15164_s3 + $0xa0] sm:$0xf] }
 0x2b8   :  { %v1733_v57 = vmul.f32 %v1711_v55, %v11727_v3  ;;  %v1721_v39 = vmul.f32 %v10214_v5, %v1720_v53  ;;  %v7756_v32 = vor.u32 %v9732_v25, %v7755_v35  ;;  %v7760_v11 = vor.u32 %v9730_v33, %v7757_v28  ;;  %v9727_v23 = vld [vmem:[%s15164_s3 + $0xac] sm:$0xf0]  ;;  %v9725_v53 = vld [vmem:[%s15164_s3 + $0xa4] sm:$0xf]  ;;  %v7717_v7 = vld [vmem:[%s15164_s3 + $0x90] sm:$0xf0] }
 0x2b9   :  { %2297 = vmatpush.bf16.msrb.mxu2 %v7772_v36  ;;  %v7732_v55 = vor.u32 %v9727_v23, %v7731_v41  ;;  %v7723_v8 = vld [vmem:[%s15164_s3 + $0x88] sm:$0xf]  ;;  %v9724_v9 = vld [vmem:[%s15164_s3 + $0x94] sm:$0xf0]  ;;  %v9722_v15 = vld [vmem:[%s15164_s3 + $0x8c] sm:$0xf] }
 0x2ba   :  { %v11931_v52 = vadd.f32 %v1734_v18, %v1733_v57  ;;  %v1722_v17 = vadd.f32 %v10214_v5, %v1721_v39  ;;  %2311 = vmatpush.bf16.msra.mxu3 %v7760_v11  ;;  %v7733_v18 = vld [vmem:[%s15164_s3 + $0xb0] sm:$0xf0]  ;;  %v7739_v57 = vld [vmem:[%s15164_s3 + $0xa8] sm:$0xf]  ;;  %v9728_v39 = vld [vmem:[%s15164_s3 + $0xb4] sm:$0xf0]  ;;  %v7724_v1 = vor.u32 %v9724_v9, %v7723_v8 }
 0x2bb   :  { %2272 = vmatpush.bf16.msrb.mxu0 %v7748_v40  ;;  %v7740_v30 = vor.u32 %v9728_v39, %v7739_v57  ;;  %v7725_v48 = vld [vmem:[%s15164_s3 + $0x98] sm:$0xf0]  ;;  %v9717_v40 = vld [vmem:[%s15164_s3 + $0x64] sm:$0xf]  ;;  %v9720_v35 = vld [vmem:[%s15164_s3 + $0x74] sm:$0xf0] }
 0x2bc   :  { %10217 = vtanh.f32 %v11931_v52  ;;  %v1726_v62 = vsel %vm1725_vm2, %v10214_v5, %v1722_v17  ;;  %v7749_v5 = vld [vmem:[%s15164_s3 + $0xd0] sm:$0xf0]  ;;  %v7736_v17 = vor.u32 %v9725_v53, %v7733_v18  ;;  %v7728_v20 = vor.u32 %v9722_v15, %v7725_v48  ;;  %v9718_v28 = vld [vmem:[%s15164_s3 + $0x6c] sm:$0xf]  ;;  %v7709_v11 = vld [vmem:[%s15164_s3 + $0x78] sm:$0xf0] }
 0x2bd   :  { %v1731_v58 = vsel %vm1728_vm3, %v1730_v56, %v1726_v62  ;;  %v7752_v61 = vor.u32 %v9729_v31, %v7749_v5  ;;  %2298 = vmatpush.bf16.msrb.mxu2 %v7756_v32  ;;  %v7741_v62 = vld [vmem:[%s15164_s3 + $0xb8] sm:$0xf0]  ;;  %v9719_v31 = vld [vmem:[%s15164_s3 + $0x6c] sm:$0xf0]  ;;  %v7683_v41 = vld [vmem:[%s15164_s3 + $0x40] sm:$0xf]  ;;  %v7712_v53 = vor.u32 %v9718_v28, %v7709_v11 }
 0x2be   :  { %v7744_v56 = vor.u32 %v9726_v60, %v7741_v62  ;;  %v7700_v5 = vor.u32 %v9719_v31, %v7699_v0  ;;  %v9715_v23 = vld [vmem:[%s15164_s3 + $0x4c] sm:$0xf0]  ;;  %v9713_v18 = vld [vmem:[%s15164_s3 + $0x44] sm:$0xf]  ;;  %v7685_v57 = vld [vmem:[%s15164_s3 + $0x50] sm:$0xf0] }
 0x2bf   :  { %2285 = vmatpush.bf16.msrb.mxu1 %v7752_v61  ;;  %2273 = vmatpush.bf16.msrb.mxu0 %v7732_v55  ;;  %v7684_v55 = vor.u32 %v9715_v23, %v7683_v41  ;;  %v7691_v39 = vld [vmem:[%s15164_s3 + $0x48] sm:$0xf]  ;;  %v9714_v60 = vld [vmem:[%s15164_s3 + $0x4c] sm:$0xf]  ;;  %v7693_v62 = vld [vmem:[%s15164_s3 + $0x58] sm:$0xf0] }
 0x2c0   :  { %2312 = vmatpush.bf16.msra.mxu3 %v7744_v56  ;;  %v9709_v8 = vld [vmem:[%s15164_s3 + $0x24] sm:$0xf]  ;;  %v7669_v48 = vld [vmem:[%s15164_s3 + $0x30] sm:$0xf0]  ;;  %v7651_v0 = vld [vmem:[%s15164_s3] sm:$0xf] }
 0x2c1   :  { %2299 = vmatpush.bf16.msrb.mxu2 %v7740_v30  ;;  %v9716_v30 = vld [vmem:[%s15164_s3 + $0x54] sm:$0xf0]  ;;  %v9706_v11 = vld [vmem:[%s15164_s3 + $0xc] sm:$0xf]  ;;  %v7661_v41 = vld [vmem:[%s15164_s3 + $0x18] sm:$0xf0] }
 0x2c2   :  { %v10218_v2 = vpop.eup %10217 }
 0x2c3   :  { %v11934_v6 = vmul.f32 %v10218_v2, %v1731_v58  ;;  %2286 = vmatpush.bf16.msrb.mxu1 %v7736_v17  ;;  %v7715_v2 = vld [vmem:[%s15164_s3 + $0x80] sm:$0xf]  ;;  %v9723_v58 = vld [vmem:[%s15164_s3 + $0x8c] sm:$0xf0]  ;;  %v7688_v17 = vor.u32 %v9713_v18, %v7685_v57 }
 0x2c4   :  { %v7716_v54 = vor.u32 %v9723_v58, %v7715_v2  ;;  %2313 = vmatpush.bf16.msra.mxu3 %v7728_v20  ;;  %v7692_v58 = vor.u32 %v9716_v30, %v7691_v39  ;;  %v7672_v20 = vor.u32 %v9709_v8, %v7669_v48  ;;  %v7664_v39 = vor.u32 %v9706_v11, %v7661_v41 }
 0x2c5   :  { %v1752_v3 = vpack.c.bf16 %v11934_v6, %v11934_v6  ;;  %2300 = vmatpush.bf16.msrb.mxu2 %v7724_v1 }
 0x2c6   :  { %2274 = vmatpush.bf16.msrb.mxu0 %v7716_v54  ;;  %v7667_v54 = vld [vmem:[%s15164_s3 + $0x20] sm:$0xf] }
 0x2c7   :  { %1953 = vmatmul.bf16.vlgmr.msra.gmra.mxu0 %v1752_v3  ;;  %1966 = vmatmul.bf16.vlgmr.msra.gmra.mxu1 %v1752_v3 }
 0x2c8   :  { %1979 = vmatmul.bf16.vlgmr.msra.gmra.mxu2 %v1752_v3  ;;  %1992 = vmatmul.bf16.vlgmr.msrb.gmra.mxu3 %v1752_v3  ;;  %v9721_v3 = vld [vmem:[%s15164_s3 + $0x84] sm:$0xf] }
 0x2c9   :  { %v7720_v34 = vor.u32 %v9721_v3, %v7717_v7  ;;  %2314 = vmatpush.bf16.msra.mxu3 %v7712_v53  ;;  %v7696_v3 = vor.u32 %v9714_v60, %v7693_v62  ;;  %v9711_v7 = vld [vmem:[%s15164_s3 + $0x2c] sm:$0xf0] }
 0x2ca   :  { %2275 = vmatpush.bf16.msrb.mxu0 %v7700_v5  ;;  %v7668_v15 = vor.u32 %v9711_v7, %v7667_v54  ;;  %v9705_v5 = vld [vmem:[%s15164_s3 + $0x4] sm:$0xf] }
 0x2cb   :  { %2287 = vmatpush.bf16.msrb.mxu1 %v7720_v34 }
 0x2cd   :  { %2315 = vmatpush.bf16.msra.mxu3 %v7696_v3 }
 0x2ce   :  { %2276 = vmatpush.bf16.msrb.mxu0 %v7684_v55 }
 0x2d2   :  { %2277 = vmatpush.bf16.msrb.mxu0 %v7668_v15 }
 0x344   :  { %v1954_v36 = vpop.f32.mrf.mxu0  ;;  %v1967_v43 = vpop.f32.mrf.mxu1 }
 0x345   :  { %v1997_v50 = vadd.f32 %v1954_v36, %v11148_v22  ;;  %v1998_v12 = vadd.f32 %v1967_v43, %v11263_v24  ;;  %v7701_v22 = vld [vmem:[%s15164_s3 + $0x70] sm:$0xf0]  ;;  %v7707_v24 = vld [vmem:[%s15164_s3 + $0x68] sm:$0xf]  ;;  %v9712_v43 = vld [vmem:[%s15164_s3 + $0x34] sm:$0xf0] }
 0x346   :  { %v7704_v32 = vor.u32 %v9717_v40, %v7701_v22  ;;  %v7708_v33 = vor.u32 %v9720_v35, %v7707_v24  ;;  %v7675_v36 = vld [vmem:[%s15164_s3 + $0x28] sm:$0xf]  ;;  %v9707_v40 = vld [vmem:[%s15164_s3 + $0xc] sm:$0xf0]  ;;  %v7653_v35 = vld [vmem:[%s15164_s3 + $0x10] sm:$0xf0] }
 0x347   :  { %v7646_v25 = vmul.f32 -1.442695, %v1997_v50  ;;  %v7647_v61 = vmul.f32 -1.442695, %v1998_v12  ;;  %v9710_v50 = vld [vmem:[%s15164_s3 + $0x2c] sm:$0xf]  ;;  %v7652_v28 = vor.u32 %v9707_v40, %v7651_v0  ;;  %v7656_v53 = vor.u32 %v9705_v5, %v7653_v35 }
 0x348   :  { %2288 = vmatpush.bf16.msrb.mxu1 %v7704_v32  ;;  %2301 = vmatpush.bf16.msrb.mxu2 %v7708_v33  ;;  %v7677_v12 = vld [vmem:[%s15164_s3 + $0x38] sm:$0xf0] }
 0x349   :  { %10219 = vpow2.f32 %v7646_v25  ;;  %v7680_v24 = vor.u32 %v9710_v50, %v7677_v12  ;;  %v7659_v25 = vld [vmem:[%s15164_s3 + $0x8] sm:$0xf]  ;;  %2278 = vmatpush.bf16.msrb.mxu0 %v7652_v28 }
 0x34a   :  { %10221 = vpow2.f32 %v7647_v61  ;;  %v9708_v61 = vld [vmem:[%s15164_s3 + $0x14] sm:$0xf0] }
 0x34b   :  { %v1980_v56 = vpop.f32.mrf.mxu2  ;;  %v1993_v2 = vpop.f32.mrf.mxu3  ;;  %v7660_v55 = vor.u32 %v9708_v61, %v7659_v25  ;;  %2316 = vmatpush.bf16.msra.mxu3 %v7680_v24 }
 0x34c   :  { %v2000_v9 = vadd.f32 %v1993_v2, %v11227_v45  ;;  %v1956_v34 = vpop.f32.mrf.mxu0  ;;  %v1969_v1 = vpop.f32.mrf.mxu1  ;;  %2289 = vmatpush.bf16.msrb.mxu1 %v7688_v17  ;;  %2302 = vmatpush.bf16.msrb.mxu2 %v7692_v58  ;;  %v7676_v45 = vor.u32 %v9712_v43, %v7675_v36  ;;  %v1999_v62 = vadd.f32 %v1980_v56, %v11272_v16 }
 0x34e   :  { %v7648_v31 = vmul.f32 -1.442695, %v2000_v9 }
 0x34f   :  { %v10220_v22 = vpop.eup %10219  ;;  %2317 = vmatpush.bf16.msra.mxu3 %v7664_v39 }
 0x350   :  { %v10222_v32 = vpop.eup %10221  ;;  %v2004_v33 = vadd.f32 1.0, %v10220_v22  ;;  %10223 = vpow2.f32 %v7648_v31  ;;  %2290 = vmatpush.bf16.msrb.mxu1 %v7672_v20  ;;  %2303 = vmatpush.bf16.msrb.mxu2 %v7676_v45 }
 0x351   :  { %v2023_v23 = vadd.f32 1.0, %v10222_v32 }
 0x352   :  { %10225 = vrcp.f32 %v2004_v33  ;;  %v2016_v8 = vand.u32 2147483648, %v2004_v33  ;;  %v2014_v1 = vand.u32 2147483647, %v2004_v33  ;;  %vm2010_vm6 = vweird.f32 %v2004_v33 }
 0x353   :  { %10227 = vrcp.f32 %v2023_v23  ;;  %v1982_v18 = vpop.f32.mrf.mxu2  ;;  %v1995_v57 = vpop.f32.mrf.mxu3  ;;  %v2035_v9 = vand.u32 2147483648, %v2023_v23  ;;  %v2033_v48 = vand.u32 2147483647, %v2023_v23  ;;  %vm2029_vm7 = vweird.f32 %v2023_v23 }
 0x354   :  { %2291 = vmatpush.bf16.msrb.mxu1 %v7656_v53  ;;  %2304 = vmatpush.bf16.msrb.mxu2 %v7660_v55  ;;  %v2017_v16 = vor.u32 1.1754944e-38, %v2016_v8  ;;  %vm2015_vm10 = vcmp.eq.f32.partialorder %v2014_v1, 8.507059e+37  ;;  %v7894_v55 = vld [vmem:[%s15164_s3 + $0xe0] sm:$0xf]  ;;  %v9767_v18 = vld [vmem:[%s15164_s3 + $0xec] sm:$0xf0] }
 0x355   :  { %v2036_v45 = vor.u32 1.1754944e-38, %v2035_v9  ;;  %vm2034_vm11 = vcmp.eq.f32.partialorder %v2033_v48, 8.507059e+37  ;;  %v9765_v57 = vld [vmem:[%s15164_s3 + $0xe4] sm:$0xf]  ;;  %v7895_v39 = vor.u32 %v9767_v18, %v7894_v55  ;;  %v9763_v8 = vld [vmem:[%s15164_s3 + $0xcc] sm:$0xf0] }
 0x356   :  { %v10224_v17 = vpop.eup %10223  ;;  %v9761_v9 = vld [vmem:[%s15164_s3 + $0xc4] sm:$0xf]  ;;  %v7880_v1 = vld [vmem:[%s15164_s3 + $0xd0] sm:$0xf0]  ;;  %v9764_v48 = vld [vmem:[%s15164_s3 + $0xd4] sm:$0xf0] }
 0x357   :  { %v2043_v30 = vadd.f32 1.0, %v10224_v17  ;;  %v7896_v17 = vld [vmem:[%s15164_s3 + $0xf0] sm:$0xf0]  ;;  %2597 = vmatpush.bf16.msra.mxu0 %v7895_v39  ;;  %v9756_v55 = vld [vmem:[%s15164_s3 + $0x94] sm:$0xf0] }
 0x358   :  { %v10226_v60 = vpop.eup %10225  ;;  %v9754_v39 = vld [vmem:[%s15164_s3 + $0x8c] sm:$0xf] }
 0x359   :  { %v10228_v2 = vpop.eup %10227  ;;  %v2006_v58 = vmul.f32 %v10226_v60, %v2004_v33  ;;  %10229 = vrcp.f32 %v2043_v30  ;;  %vm2011_vm4 = vweird.f32 %v10226_v60  ;;  %v2055_v32 = vand.u32 2147483648, %v2043_v30 }
 0x35a   :  { %v2025_v3 = vmul.f32 %v10228_v2, %v2023_v23  ;;  %10231 = vtanh.f32 %v1999_v62  ;;  %vm2030_vm5 = vweird.f32 %v10228_v2  ;;  %vm2012_vm8 = vmor %vm2010_vm6, %vm2011_vm4  ;;  %vm2049_vm13 = vweird.f32 %v2043_v30 }
 0x35b   :  { %v2007_v54 = vsub.f32 1.0, %v2006_v58  ;;  %vm2031_vm9 = vmor %vm2029_vm7, %vm2030_vm5  ;;  %v2053_v33 = vand.u32 2147483647, %v2043_v30  ;;  %v2056_v11 = vor.u32 1.1754944e-38, %v2055_v32  ;;  %v7899_v62 = vor.u32 %v9765_v57, %v7896_v17  ;;  %v9766_v58 = vld [vmem:[%s15164_s3 + $0xec] sm:$0xf] }
 0x35c   :  { %v2026_v7 = vsub.f32 1.0, %v2025_v3  ;;  %v7904_v3 = vld [vmem:[%s15164_s3 + $0xf8] sm:$0xf0] }
 0x35d   :  { %v2008_v34 = vmul.f32 %v10226_v60, %v2007_v54  ;;  %vm2054_vm15 = vcmp.eq.f32.partialorder %v2053_v33, 8.507059e+37  ;;  %v7907_v54 = vor.u32 %v9766_v58, %v7904_v3  ;;  %2610 = vmatpush.bf16.msra.mxu1 %v7899_v62  ;;  %v7846_v33 = vld [vmem:[%s15164_s3 + $0x80] sm:$0xf]  ;;  %v7856_v17 = vld [vmem:[%s15164_s3 + $0x98] sm:$0xf0] }
 0x35e   :  { %v2027_v15 = vmul.f32 %v10228_v2, %v2026_v7  ;;  %v7878_v7 = vld [vmem:[%s15164_s3 + $0xc0] sm:$0xf]  ;;  %v9751_v58 = vld [vmem:[%s15164_s3 + $0x6c] sm:$0xf0]  ;;  %v9749_v3 = vld [vmem:[%s15164_s3 + $0x64] sm:$0xf] }
 0x35f   :  { %v10230_v36 = vpop.eup %10229  ;;  %v2009_v43 = vadd.f32 %v10226_v60, %v2008_v34  ;;  %2636 = vmatpush.bf16.msrb.mxu3 %v7907_v54  ;;  %v7879_v34 = vor.u32 %v9763_v8, %v7878_v7 }
 0x360   :  { %v2028_v56 = vadd.f32 %v10228_v2, %v2027_v15  ;;  %v2045_v20 = vmul.f32 %v10230_v36, %v2043_v30  ;;  %v10232_v12 = vpop.eup %10231  ;;  %vm2050_vm12 = vweird.f32 %v10230_v36  ;;  %v7902_v30 = vld [vmem:[%s15164_s3 + $0xe8] sm:$0xf] }
 0x361   :  { %v2013_v50 = vsel %vm2012_vm8, %v10226_v60, %v2009_v43  ;;  %vm2051_vm14 = vmor %vm2049_vm13, %vm2050_vm12  ;;  %v9768_v60 = vld [vmem:[%s15164_s3 + $0xf4] sm:$0xf0]  ;;  %v7886_v15 = vld [vmem:[%s15164_s3 + $0xc8] sm:$0xf]  ;;  %2598 = vmatpush.bf16.msra.mxu0 %v7879_v34 }
 0x362   :  { %v2018_v0 = vsel %vm2015_vm10, %v2017_v16, %v2013_v50  ;;  %v2032_v31 = vsel %vm2031_vm9, %v10228_v2, %v2028_v56  ;;  %v2046_v40 = vsub.f32 1.0, %v2045_v20  ;;  %v7903_v2 = vor.u32 %v9768_v60, %v7902_v30  ;;  %v9762_v16 = vld [vmem:[%s15164_s3 + $0xcc] sm:$0xf]  ;;  %v7888_v56 = vld [vmem:[%s15164_s3 + $0xd8] sm:$0xf0] }
 0x363   :  { %v2037_v5 = vsel %vm2034_vm11, %v2036_v45, %v2032_v31  ;;  %v2060_v22 = vmul.f32 %v10232_v12, %v2018_v0  ;;  %v7887_v43 = vor.u32 %v9764_v48, %v7886_v15  ;;  %v7891_v20 = vor.u32 %v9762_v16, %v7888_v56  ;;  %v7862_v45 = vld [vmem:[%s15164_s3 + $0xa0] sm:$0xf]  ;;  %v9759_v50 = vld [vmem:[%s15164_s3 + $0xac] sm:$0xf0]  ;;  %v9757_v12 = vld [vmem:[%s15164_s3 + $0xa4] sm:$0xf] }
 0x364   :  { %v2059_v24 = vmul.f32 %v2037_v5, %v11931_v52  ;;  %v2047_v35 = vmul.f32 %v10230_v36, %v2046_v40  ;;  %2623 = vmatpush.bf16.msra.mxu2 %v7903_v2  ;;  %v7863_v0 = vor.u32 %v9759_v50, %v7862_v45  ;;  %v7864_v31 = vld [vmem:[%s15164_s3 + $0xb0] sm:$0xf0]  ;;  %v7870_v40 = vld [vmem:[%s15164_s3 + $0xa8] sm:$0xf]  ;;  %v9760_v5 = vld [vmem:[%s15164_s3 + $0xb4] sm:$0xf0]  ;;  %v7859_v30 = vor.u32 %v9754_v39, %v7856_v17 }
 0x365   :  { %2637 = vmatpush.bf16.msrb.mxu3 %v7891_v20  ;;  %v7830_v2 = vld [vmem:[%s15164_s3 + $0x60] sm:$0xf]  ;;  %v7838_v34 = vld [vmem:[%s15164_s3 + $0x68] sm:$0xf]  ;;  %v9747_v20 = vld [vmem:[%s15164_s3 + $0x4c] sm:$0xf0] }
 0x366   :  { %v12135_v25 = vadd.f32 %v2060_v22, %v2059_v24  ;;  %v2048_v61 = vadd.f32 %v10230_v36, %v2047_v35  ;;  %v7867_v22 = vor.u32 %v9757_v12, %v7864_v31  ;;  %v7871_v24 = vor.u32 %v9760_v5, %v7870_v40  ;;  %v9758_v35 = vld [vmem:[%s15164_s3 + $0xac] sm:$0xf]  ;;  %2599 = vmatpush.bf16.msra.mxu0 %v7863_v0  ;;  %v7814_v56 = vld [vmem:[%s15164_s3 + $0x40] sm:$0xf]  ;;  %v9745_v45 = vld [vmem:[%s15164_s3 + $0x44] sm:$0xf] }
 0x367   :  { %v7831_v8 = vor.u32 %v9751_v58, %v7830_v2  ;;  %v7815_v50 = vor.u32 %v9747_v20, %v7814_v56  ;;  %v7816_v12 = vld [vmem:[%s15164_s3 + $0x50] sm:$0xf0]  ;;  %v7822_v0 = vld [vmem:[%s15164_s3 + $0x48] sm:$0xf]  ;;  %v9748_v31 = vld [vmem:[%s15164_s3 + $0x54] sm:$0xf0] }
 0x368   :  { %10233 = vtanh.f32 %v12135_v25  ;;  %v2052_v28 = vsel %vm2051_vm14, %v10230_v36, %v2048_v61  ;;  %v7883_v36 = vor.u32 %v9761_v9, %v7880_v1  ;;  %2624 = vmatpush.bf16.msra.mxu2 %v7887_v43  ;;  %v7872_v61 = vld [vmem:[%s15164_s3 + $0xb8] sm:$0xf0]  ;;  %v7832_v9 = vld [vmem:[%s15164_s3 + $0x70] sm:$0xf0]  ;;  %v9752_v1 = vld [vmem:[%s15164_s3 + $0x74] sm:$0xf0]  ;;  %v7819_v40 = vor.u32 %v9745_v45, %v7816_v12 }
 0x369   :  { %v2057_v23 = vsel %vm2054_vm15, %v2056_v11, %v2052_v28  ;;  %v7875_v32 = vor.u32 %v9758_v35, %v7872_v61  ;;  %v9755_v28 = vld [vmem:[%s15164_s3 + $0x8c] sm:$0xf0]  ;;  %v9753_v11 = vld [vmem:[%s15164_s3 + $0x84] sm:$0xf]  ;;  %v7835_v15 = vor.u32 %v9749_v3, %v7832_v9  ;;  %v7839_v48 = vor.u32 %v9752_v1, %v7838_v34  ;;  %v7798_v35 = vld [vmem:[%s15164_s3 + $0x20] sm:$0xf] }
 0x36a   :  { %2611 = vmatpush.bf16.msra.mxu1 %v7883_v36  ;;  %v7823_v5 = vor.u32 %v9748_v31, %v7822_v0  ;;  %v9744_v39 = vld [vmem:[%s15164_s3 + $0x34] sm:$0xf0]  ;;  %v9742_v17 = vld [vmem:[%s15164_s3 + $0x2c] sm:$0xf]  ;;  %v9739_v2 = vld [vmem:[%s15164_s3 + $0xc] sm:$0xf0] }
 0x36b   :  { %2638 = vmatpush.bf16.msrb.mxu3 %v7875_v32  ;;  %v7790_v34 = vld [vmem:[%s15164_s3 + $0x8] sm:$0xf]  ;;  %v9740_v1 = vld [vmem:[%s15164_s3 + $0x14] sm:$0xf0] }
 0x36c   :  { %2625 = vmatpush.bf16.msra.mxu2 %v7871_v24  ;;  %v7824_v24 = vld [vmem:[%s15164_s3 + $0x58] sm:$0xf0] }
 0x36e   :  { %v10234_v41 = vpop.eup %10233  ;;  %2612 = vmatpush.bf16.msra.mxu1 %v7867_v22  ;;  %v9746_v22 = vld [vmem:[%s15164_s3 + $0x4c] sm:$0xf] }
 0x36f   :  { %v12138_v53 = vmul.f32 %v10234_v41, %v2057_v23  ;;  %v7847_v41 = vor.u32 %v9755_v28, %v7846_v33  ;;  %v7848_v23 = vld [vmem:[%s15164_s3 + $0x90] sm:$0xf0]  ;;  %2639 = vmatpush.bf16.msrb.mxu3 %v7859_v30  ;;  %v7827_v33 = vor.u32 %v9746_v22, %v7824_v24  ;;  %v9743_v28 = vld [vmem:[%s15164_s3 + $0x2c] sm:$0xf0] }
 0x370   :  { %v7851_v18 = vor.u32 %v9753_v11, %v7848_v23  ;;  %v9741_v11 = vld [vmem:[%s15164_s3 + $0x24] sm:$0xf] }
 0x371   :  { %v2078_v52 = vpack.c.bf16 %v12138_v53, %v12138_v53  ;;  %2600 = vmatpush.bf16.msra.mxu0 %v7847_v41  ;;  %v7800_v41 = vld [vmem:[%s15164_s3 + $0x30] sm:$0xf0] }
 0x372   :  { %2613 = vmatpush.bf16.msra.mxu1 %v7851_v18  ;;  %v7799_v18 = vor.u32 %v9743_v28, %v7798_v35  ;;  %v7803_v30 = vor.u32 %v9741_v11, %v7800_v41 }
 0x373   :  { %2279 = vmatmul.bf16.vlgmr.msrb.gmra.mxu0 %v2078_v52  ;;  %2292 = vmatmul.bf16.vlgmr.msrb.gmra.mxu1 %v2078_v52 }
 0x374   :  { %2305 = vmatmul.bf16.vlgmr.msrb.gmra.mxu2 %v2078_v52  ;;  %2318 = vmatmul.bf16.vlgmr.msra.gmra.mxu3 %v2078_v52  ;;  %v7854_v52 = vld [vmem:[%s15164_s3 + $0x88] sm:$0xf] }
 0x375   :  { %v7855_v57 = vor.u32 %v9756_v55, %v7854_v52  ;;  %2601 = vmatpush.bf16.msra.mxu0 %v7831_v8 }
 0x376   :  { %2614 = vmatpush.bf16.msra.mxu1 %v7835_v15  ;;  %v9738_v15 = vld [vmem:[%s15164_s3 + $0xc] sm:$0xf] }
 0x377   :  { %2626 = vmatpush.bf16.msra.mxu2 %v7855_v57  ;;  %v7806_v57 = vld [vmem:[%s15164_s3 + $0x28] sm:$0xf] }
 0x379   :  { %2602 = vmatpush.bf16.msra.mxu0 %v7815_v50 }
 0x37a   :  { %2615 = vmatpush.bf16.msra.mxu1 %v7819_v40 }
 0x37b   :  { %2627 = vmatpush.bf16.msra.mxu2 %v7839_v48 }
 0x37d   :  { %2603 = vmatpush.bf16.msra.mxu0 %v7799_v18 }
 0x37e   :  { %2616 = vmatpush.bf16.msra.mxu1 %v7803_v30 }
 0x37f   :  { %2628 = vmatpush.bf16.msra.mxu2 %v7823_v5 }
 0x3f0   :  { %v2280_v60 = vpop.f32.mrf.mxu0  ;;  %v2293_v62 = vpop.f32.mrf.mxu1 }
 0x3f1   :  { %v2323_v54 = vadd.f32 %v2280_v60, %v11137_v59  ;;  %v2324_v7 = vadd.f32 %v2293_v62, %v11253_v49  ;;  %v9750_v59 = vld [vmem:[%s15164_s3 + $0x6c] sm:$0xf]  ;;  %v7840_v49 = vld [vmem:[%s15164_s3 + $0x78] sm:$0xf0]  ;;  %v7782_v62 = vld [vmem:[%s15164_s3] sm:$0xf] }
 0x3f2   :  { %v7843_v16 = vor.u32 %v9750_v59, %v7840_v49  ;;  %v7808_v60 = vld [vmem:[%s15164_s3 + $0x38] sm:$0xf0]  ;;  %v7783_v9 = vor.u32 %v9739_v2, %v7782_v62 }
 0x3f3   :  { %v7777_v36 = vmul.f32 -1.442695, %v2323_v54  ;;  %v7778_v43 = vmul.f32 -1.442695, %v2324_v7  ;;  %v7811_v3 = vor.u32 %v9742_v17, %v7808_v60  ;;  %v9737_v54 = vld [vmem:[%s15164_s3 + $0x4] sm:$0xf] }
 0x3f4   :  { %2640 = vmatpush.bf16.msrb.mxu3 %v7843_v16  ;;  %v7784_v7 = vld [vmem:[%s15164_s3 + $0x10] sm:$0xf0]  ;;  %2604 = vmatpush.bf16.msra.mxu0 %v7783_v9 }
 0x3f5   :  { %10235 = vpow2.f32 %v7777_v36  ;;  %v7787_v49 = vor.u32 %v9737_v54, %v7784_v7  ;;  %v7791_v36 = vor.u32 %v9740_v1, %v7790_v34 }
 0x3f6   :  { %10237 = vpow2.f32 %v7778_v43  ;;  %v7792_v43 = vld [vmem:[%s15164_s3 + $0x18] sm:$0xf0] }
 0x3f7   :  { %v2306_v61 = vpop.f32.mrf.mxu2  ;;  %v2319_v32 = vpop.f32.mrf.mxu3  ;;  %v7795_v56 = vor.u32 %v9738_v15, %v7792_v43  ;;  %2617 = vmatpush.bf16.msra.mxu1 %v7787_v49  ;;  %v8025_v49 = vld [vmem:[%s15164_s3 + $0xe0] sm:$0xf]  ;;  %v9797_v43 = vld [vmem:[%s15164_s3 + $0xe4] sm:$0xf] }
 0x3f8   :  { %v2326_v23 = vadd.f32 %v2319_v32, %v11212_v44  ;;  %v2282_v52 = vpop.f32.mrf.mxu0  ;;  %v2295_v55 = vpop.f32.mrf.mxu1  ;;  %2641 = vmatpush.bf16.msrb.mxu3 %v7827_v33  ;;  %v7807_v44 = vor.u32 %v9744_v39, %v7806_v57  ;;  %v2325_v31 = vadd.f32 %v2306_v61, %v11261_v63 }
 0x3fa   :  { %v7779_v58 = vmul.f32 -1.442695, %v2326_v23  ;;  %2629 = vmatpush.bf16.msra.mxu2 %v7807_v44 }
 0x3fb   :  { %v10236_v8 = vpop.eup %10235 }
 0x3fc   :  { %v10238_v48 = vpop.eup %10237  ;;  %v2330_v59 = vadd.f32 1.0, %v10236_v8  ;;  %10239 = vpow2.f32 %v7779_v58  ;;  %2642 = vmatpush.bf16.msrb.mxu3 %v7811_v3 }
 0x3fd   :  { %v2349_v16 = vadd.f32 1.0, %v10238_v48 }
 0x3fe   :  { %10241 = vrcp.f32 %v2330_v59  ;;  %2630 = vmatpush.bf16.msra.mxu2 %v7791_v36  ;;  %v2342_v32 = vand.u32 2147483648, %v2330_v59  ;;  %v2340_v11 = vand.u32 2147483647, %v2330_v59  ;;  %vm2336_vm2 = vweird.f32 %v2330_v59  ;;  %v9799_v36 = vld [vmem:[%s15164_s3 + $0xec] sm:$0xf0] }
 0x3ff   :  { %10243 = vrcp.f32 %v2349_v16  ;;  %v2308_v20 = vpop.f32.mrf.mxu2  ;;  %v2321_v45 = vpop.f32.mrf.mxu3  ;;  %v2361_v33 = vand.u32 2147483648, %v2349_v16  ;;  %v2359_v23 = vand.u32 2147483647, %v2349_v16  ;;  %vm2355_vm3 = vweird.f32 %v2349_v16 }
 0x400   :  { %2643 = vmatpush.bf16.msrb.mxu3 %v7795_v56  ;;  %v2343_v63 = vor.u32 1.1754944e-38, %v2342_v32  ;;  %vm2341_vm6 = vcmp.eq.f32.partialorder %v2340_v11, 8.507059e+37  ;;  %v8027_v56 = vld [vmem:[%s15164_s3 + $0xf0] sm:$0xf0]  ;;  %v8033_v20 = vld [vmem:[%s15164_s3 + $0xe8] sm:$0xf] }
 0x401   :  { %v2362_v57 = vor.u32 1.1754944e-38, %v2361_v33  ;;  %vm2360_vm7 = vcmp.eq.f32.partialorder %v2359_v23, 8.507059e+37  ;;  %v9800_v45 = vld [vmem:[%s15164_s3 + $0xf4] sm:$0xf0]  ;;  %v8011_v32 = vld [vmem:[%s15164_s3 + $0xd0] sm:$0xf0] }
 0x402   :  { %v10240_v50 = vpop.eup %10239  ;;  %v8017_v33 = vld [vmem:[%s15164_s3 + $0xc8] sm:$0xf]  ;;  %v9794_v23 = vld [vmem:[%s15164_s3 + $0xcc] sm:$0xf] }
 0x403   :  { %v2369_v12 = vadd.f32 1.0, %v10240_v50  ;;  %v8030_v50 = vor.u32 %v9797_v43, %v8027_v56  ;;  %v9783_v56 = vld [vmem:[%s15164_s3 + $0x6c] sm:$0xf0] }
 0x404   :  { %v10242_v0 = vpop.eup %10241 }
 0x405   :  { %v10244_v40 = vpop.eup %10243  ;;  %v2332_v5 = vmul.f32 %v10242_v0, %v2330_v59  ;;  %10245 = vrcp.f32 %v2369_v12  ;;  %vm2337_vm0 = vweird.f32 %v10242_v0  ;;  %v2381_v8 = vand.u32 2147483648, %v2369_v12  ;;  %2936 = vmatpush.bf16.msrb.mxu1 %v8030_v50 }
 0x406   :  { %v2351_v22 = vmul.f32 %v10244_v40, %v2349_v16  ;;  %10247 = vtanh.f32 %v2325_v31  ;;  %vm2356_vm1 = vweird.f32 %v10244_v40  ;;  %vm2338_vm4 = vmor %vm2336_vm2, %vm2337_vm0  ;;  %vm2375_vm9 = vweird.f32 %v2369_v12  ;;  %v8035_v31 = vld [vmem:[%s15164_s3 + $0xf8] sm:$0xf0] }
 0x407   :  { %v2333_v24 = vsub.f32 1.0, %v2332_v5  ;;  %vm2357_vm5 = vmor %vm2355_vm3, %vm2356_vm1  ;;  %v2379_v9 = vand.u32 2147483647, %v2369_v12  ;;  %v2382_v1 = vor.u32 1.1754944e-38, %v2381_v8  ;;  %v8026_v16 = vor.u32 %v9799_v36, %v8025_v49  ;;  %v8009_v5 = vld [vmem:[%s15164_s3 + $0xc0] sm:$0xf] }
 0x408   :  { %v2352_v35 = vsub.f32 1.0, %v2351_v22  ;;  %v9795_v22 = vld [vmem:[%s15164_s3 + $0xcc] sm:$0xf0]  ;;  %v9785_v8 = vld [vmem:[%s15164_s3 + $0x84] sm:$0xf] }
 0x409   :  { %v2334_v28 = vmul.f32 %v10242_v0, %v2333_v24  ;;  %vm2380_vm11 = vcmp.eq.f32.partialorder %v2379_v9, 8.507059e+37  ;;  %2923 = vmatpush.bf16.msrb.mxu0 %v8026_v16  ;;  %v9793_v24 = vld [vmem:[%s15164_s3 + $0xc4] sm:$0xf]  ;;  %v9786_v49 = vld [vmem:[%s15164_s3 + $0x8c] sm:$0xf] }
 0x40a   :  { %v2353_v41 = vmul.f32 %v10244_v40, %v2352_v35  ;;  %v8010_v35 = vor.u32 %v9795_v22, %v8009_v5  ;;  %v8014_v11 = vor.u32 %v9793_v24, %v8011_v32  ;;  %v7987_v36 = vld [vmem:[%s15164_s3 + $0x98] sm:$0xf0]  ;;  %v7961_v16 = vld [vmem:[%s15164_s3 + $0x60] sm:$0xf]  ;;  %v9782_v32 = vld [vmem:[%s15164_s3 + $0x6c] sm:$0xf] }
 0x40b   :  { %v10246_v52 = vpop.eup %10245  ;;  %v2335_v55 = vadd.f32 %v10242_v0, %v2334_v28  ;;  %v9796_v28 = vld [vmem:[%s15164_s3 + $0xd4] sm:$0xf0]  ;;  %v7990_v43 = vor.u32 %v9786_v49, %v7987_v36  ;;  %v7939_v49 = vld [vmem:[%s15164_s3 + $0x38] sm:$0xf0] }
 0x40c   :  { %v2354_v61 = vadd.f32 %v10244_v40, %v2353_v41  ;;  %v2371_v18 = vmul.f32 %v10246_v52, %v2369_v12  ;;  %v10248_v17 = vpop.eup %10247  ;;  %vm2376_vm8 = vweird.f32 %v10246_v52  ;;  %v8034_v12 = vor.u32 %v9800_v45, %v8033_v20  ;;  %2937 = vmatpush.bf16.msrb.mxu1 %v8014_v11  ;;  %v9781_v20 = vld [vmem:[%s15164_s3 + $0x64] sm:$0xf] }
 0x40d   :  { %v2339_v39 = vsel %vm2338_vm4, %v10242_v0, %v2335_v55  ;;  %vm2377_vm10 = vmor %vm2375_vm9, %vm2376_vm8  ;;  %v9798_v0 = vld [vmem:[%s15164_s3 + $0xec] sm:$0xf]  ;;  %v8018_v41 = vor.u32 %v9796_v28, %v8017_v33  ;;  %2924 = vmatpush.bf16.msrb.mxu0 %v8010_v35  ;;  %v7971_v33 = vld [vmem:[%s15164_s3 + $0x78] sm:$0xf0] }
 0x40e   :  { %v2344_v30 = vsel %vm2341_vm6, %v2343_v63, %v2339_v39  ;;  %v2358_v44 = vsel %vm2357_vm5, %v10244_v40, %v2354_v61  ;;  %v2372_v60 = vsub.f32 1.0, %v2371_v18  ;;  %v8038_v40 = vor.u32 %v9798_v0, %v8035_v31  ;;  %2949 = vmatpush.bf16.msrb.mxu2 %v8034_v12  ;;  %v7993_v63 = vld [vmem:[%s15164_s3 + $0xa0] sm:$0xf]  ;;  %v9791_v61 = vld [vmem:[%s15164_s3 + $0xac] sm:$0xf0] }
 0x40f   :  { %v2363_v62 = vsel %vm2360_vm7, %v2362_v57, %v2358_v44  ;;  %v2386_v2 = vmul.f32 %v10248_v17, %v2344_v30  ;;  %v9789_v18 = vld [vmem:[%s15164_s3 + $0xa4] sm:$0xf]  ;;  %v7994_v57 = vor.u32 %v9791_v61, %v7993_v63  ;;  %v7995_v39 = vld [vmem:[%s15164_s3 + $0xb0] sm:$0xf0]  ;;  %v8001_v17 = vld [vmem:[%s15164_s3 + $0xa8] sm:$0xf]  ;;  %v7962_v12 = vor.u32 %v9783_v56, %v7961_v16 }
 0x410   :  { %v2385_v58 = vmul.f32 %v2363_v62, %v12135_v25  ;;  %v2373_v3 = vmul.f32 %v10246_v52, %v2372_v60  ;;  %2962 = vmatpush.bf16.msra.mxu3 %v8038_v40  ;;  %v9792_v30 = vld [vmem:[%s15164_s3 + $0xb4] sm:$0xf0]  ;;  %v7998_v44 = vor.u32 %v9789_v18, %v7995_v39  ;;  %v9790_v62 = vld [vmem:[%s15164_s3 + $0xac] sm:$0xf]  ;;  %v7963_v0 = vld [vmem:[%s15164_s3 + $0x70] sm:$0xf0]  ;;  %v7974_v28 = vor.u32 %v9782_v32, %v7971_v33 }
 0x411   :  { %v8002_v60 = vor.u32 %v9792_v30, %v8001_v17  ;;  %2925 = vmatpush.bf16.msrb.mxu0 %v7994_v57  ;;  %v7969_v31 = vld [vmem:[%s15164_s3 + $0x68] sm:$0xf]  ;;  %v9784_v40 = vld [vmem:[%s15164_s3 + $0x74] sm:$0xf0]  ;;  %v7966_v24 = vor.u32 %v9781_v20, %v7963_v0  ;;  %v9778_v57 = vld [vmem:[%s15164_s3 + $0x4c] sm:$0xf] }
 0x412   :  { %v12339_v54 = vadd.f32 %v2386_v2, %v2385_v58  ;;  %v2374_v7 = vadd.f32 %v10246_v52, %v2373_v3  ;;  %2950 = vmatpush.bf16.msrb.mxu2 %v8018_v41  ;;  %v8003_v2 = vld [vmem:[%s15164_s3 + $0xb8] sm:$0xf0]  ;;  %2938 = vmatpush.bf16.msrb.mxu1 %v7998_v44  ;;  %v7977_v3 = vld [vmem:[%s15164_s3 + $0x80] sm:$0xf]  ;;  %v7970_v35 = vor.u32 %v9784_v40, %v7969_v31  ;;  %v7953_v61 = vld [vmem:[%s15164_s3 + $0x48] sm:$0xf] }
 0x413   :  { %v8006_v58 = vor.u32 %v9790_v62, %v8003_v2  ;;  %v9780_v18 = vld [vmem:[%s15164_s3 + $0x54] sm:$0xf0]  ;;  %v7955_v17 = vld [vmem:[%s15164_s3 + $0x58] sm:$0xf0]  ;;  %v7929_v30 = vld [vmem:[%s15164_s3 + $0x20] sm:$0xf] }
 0x414   :  { %10249 = vtanh.f32 %v12339_v54  ;;  %v2378_v34 = vsel %vm2377_vm10, %v10246_v52, %v2374_v7  ;;  %v8019_v52 = vld [vmem:[%s15164_s3 + $0xd8] sm:$0xf0]  ;;  %v9787_v7 = vld [vmem:[%s15164_s3 + $0x8c] sm:$0xf0]  ;;  %v7954_v39 = vor.u32 %v9780_v18, %v7953_v61  ;;  %v7958_v2 = vor.u32 %v9778_v57, %v7955_v17  ;;  %v9769_v56 = vld [vmem:[%s15164_s3 + $0x4] sm:$0xf] }
 0x415   :  { %v2383_v48 = vsel %vm2380_vm11, %v2382_v1, %v2378_v34  ;;  %v8022_v55 = vor.u32 %v9794_v23, %v8019_v52  ;;  %v7978_v9 = vor.u32 %v9787_v7, %v7977_v3  ;;  %v7979_v34 = vld [vmem:[%s15164_s3 + $0x90] sm:$0xf0]  ;;  %v7985_v1 = vld [vmem:[%s15164_s3 + $0x88] sm:$0xf]  ;;  %v9777_v23 = vld [vmem:[%s15164_s3 + $0x44] sm:$0xf] }
 0x416   :  { %2951 = vmatpush.bf16.msrb.mxu2 %v8002_v60  ;;  %v7947_v52 = vld [vmem:[%s15164_s3 + $0x50] sm:$0xf0]  ;;  %v9775_v44 = vld [vmem:[%s15164_s3 + $0x2c] sm:$0xf0]  ;;  %v9773_v3 = vld [vmem:[%s15164_s3 + $0x24] sm:$0xf] }
 0x417   :  { %2963 = vmatpush.bf16.msra.mxu3 %v8022_v55  ;;  %2926 = vmatpush.bf16.msrb.mxu0 %v7978_v9  ;;  %v7950_v63 = vor.u32 %v9777_v23, %v7947_v52  ;;  %v7931_v7 = vld [vmem:[%s15164_s3 + $0x30] sm:$0xf0]  ;;  %v9771_v16 = vld [vmem:[%s15164_s3 + $0xc] sm:$0xf0]  ;;  %v9772_v40 = vld [vmem:[%s15164_s3 + $0x14] sm:$0xf0] }
 0x41a   :  { %v10250_v15 = vpop.eup %10249 }
 0x41b   :  { %v12342_v59 = vmul.f32 %v10250_v15, %v2383_v48  ;;  %2964 = vmatpush.bf16.msra.mxu3 %v8006_v58  ;;  %v9788_v15 = vld [vmem:[%s15164_s3 + $0x94] sm:$0xf0]  ;;  %v7982_v48 = vor.u32 %v9785_v8, %v7979_v34  ;;  %2927 = vmatpush.bf16.msrb.mxu0 %v7962_v12  ;;  %v7930_v58 = vor.u32 %v9775_v44, %v7929_v30  ;;  %v7937_v8 = vld [vmem:[%s15164_s3 + $0x28] sm:$0xf] }
 0x41d   :  { %v2404_v25 = vpack.c.bf16 %v12342_v59, %v12342_v59  ;;  %2939 = vmatpush.bf16.msrb.mxu1 %v7982_v48  ;;  %v9776_v48 = vld [vmem:[%s15164_s3 + $0x34] sm:$0xf0] }
 0x41e   :  { %v7938_v36 = vor.u32 %v9776_v48, %v7937_v8 }
 0x41f   :  { %2605 = vmatmul.bf16.vlgmr.msra.gmra.mxu0 %v2404_v25  ;;  %2618 = vmatmul.bf16.vlgmr.msra.gmra.mxu1 %v2404_v25 }
 0x420   :  { %2631 = vmatmul.bf16.vlgmr.msra.gmra.mxu2 %v2404_v25  ;;  %2644 = vmatmul.bf16.vlgmr.msrb.gmra.mxu3 %v2404_v25  ;;  %v7986_v25 = vor.u32 %v9788_v15, %v7985_v1  ;;  %v7934_v15 = vor.u32 %v9773_v3, %v7931_v7 }
 0x421   :  { %2965 = vmatpush.bf16.msra.mxu3 %v7990_v43  ;;  %2940 = vmatpush.bf16.msrb.mxu1 %v7966_v24 }
 0x422   :  { %2952 = vmatpush.bf16.msrb.mxu2 %v7986_v25  ;;  %v9774_v25 = vld [vmem:[%s15164_s3 + $0x2c] sm:$0xf] }
 0x423   :  { %v7942_v43 = vor.u32 %v9774_v25, %v7939_v49 }
 0x425   :  { %2966 = vmatpush.bf16.msra.mxu3 %v7974_v28  ;;  %2941 = vmatpush.bf16.msrb.mxu1 %v7950_v63 }
 0x426   :  { %2953 = vmatpush.bf16.msrb.mxu2 %v7970_v35 }
 0x429   :  { %2967 = vmatpush.bf16.msra.mxu3 %v7958_v2  ;;  %2942 = vmatpush.bf16.msrb.mxu1 %v7934_v15 }
 0x42a   :  { %2954 = vmatpush.bf16.msrb.mxu2 %v7954_v39 }
 0x42d   :  { %2968 = vmatpush.bf16.msra.mxu3 %v7942_v43 }
 0x42e   :  { %2955 = vmatpush.bf16.msrb.mxu2 %v7938_v36 }
 0x49c   :  { %v2606_v45 = vpop.f32.mrf.mxu0  ;;  %v2619_v50 = vpop.f32.mrf.mxu1 }
 0x49d   :  { %v2649_v5 = vadd.f32 %v2606_v45, %v11125_v13  ;;  %v2650_v22 = vadd.f32 %v2619_v50, %v11240_v26  ;;  %v7945_v13 = vld [vmem:[%s15164_s3 + $0x40] sm:$0xf]  ;;  %v9779_v26 = vld [vmem:[%s15164_s3 + $0x4c] sm:$0xf0]  ;;  %v7915_v45 = vld [vmem:[%s15164_s3 + $0x10] sm:$0xf0] }
 0x49e   :  { %v7946_v55 = vor.u32 %v9779_v26, %v7945_v13  ;;  %v7921_v50 = vld [vmem:[%s15164_s3 + $0x8] sm:$0xf]  ;;  %v7918_v31 = vor.u32 %v9769_v56, %v7915_v45 }
 0x49f   :  { %v7908_v11 = vmul.f32 -1.442695, %v2649_v5  ;;  %v7909_v41 = vmul.f32 -1.442695, %v2650_v22  ;;  %v9770_v5 = vld [vmem:[%s15164_s3 + $0xc] sm:$0xf]  ;;  %v7922_v32 = vor.u32 %v9772_v40, %v7921_v50 }
 0x4a0   :  { %2928 = vmatpush.bf16.msrb.mxu0 %v7946_v55  ;;  %v7923_v22 = vld [vmem:[%s15164_s3 + $0x18] sm:$0xf0]  ;;  %2943 = vmatpush.bf16.msrb.mxu1 %v7918_v31 }
 0x4a1   :  { %10251 = vpow2.f32 %v7908_v11  ;;  %v7926_v28 = vor.u32 %v9770_v5, %v7923_v22  ;;  %2956 = vmatpush.bf16.msrb.mxu2 %v7922_v32 }
 0x4a2   :  { %10253 = vpow2.f32 %v7909_v41 }
 0x4a3   :  { %v2632_v60 = vpop.f32.mrf.mxu2  ;;  %v2645_v62 = vpop.f32.mrf.mxu3  ;;  %2969 = vmatpush.bf16.msra.mxu3 %v7926_v28 }
 0x4a4   :  { %v2652_v9 = vadd.f32 %v2645_v62, %v11204_v27  ;;  %v2608_v34 = vpop.f32.mrf.mxu0  ;;  %v2621_v1 = vpop.f32.mrf.mxu1  ;;  %v7913_v27 = vld [vmem:[%s15164_s3] sm:$0xf]  ;;  %2929 = vmatpush.bf16.msrb.mxu0 %v7930_v58  ;;  %v2651_v52 = vadd.f32 %v2632_v60, %v11248_v42 }
 0x4a5   :  { %v7914_v0 = vor.u32 %v9771_v16, %v7913_v27  ;;  %v3370_v27 = vlaneseq }
 0x4a6   :  { %v7910_v20 = vmul.f32 -1.442695, %v2652_v9 }
 0x4a7   :  { %v10252_v12 = vpop.eup %10251  ;;  %v12546_v45 = vand.u32 127, %v3370_v27 }
 0x4a8   :  { %v10254_v24 = vpop.eup %10253  ;;  %v2656_v35 = vadd.f32 1.0, %v10252_v12  ;;  %10255 = vpow2.f32 %v7910_v20  ;;  %2930 = vmatpush.bf16.msrb.mxu0 %v7914_v0 }
 0x4a9   :  { %v2675_v33 = vadd.f32 1.0, %v10254_v24  ;;  %vm3372_vm7 = vcmp.lt.s32.totalorder %v12546_v45, 32 }
 0x4aa   :  { %10257 = vrcp.f32 %v2656_v35  ;;  %v2668_v39 = vand.u32 2147483648, %v2656_v35  ;;  %v2666_v44 = vand.u32 2147483647, %v2656_v35  ;;  %vm2662_vm14 = vweird.f32 %v2656_v35 }
 0x4ab   :  { %10259 = vrcp.f32 %v2675_v33  ;;  %v2634_v11 = vpop.f32.mrf.mxu2  ;;  %v2647_v41 = vpop.f32.mrf.mxu3  ;;  %v2687_v17 = vand.u32 2147483648, %v2675_v33  ;;  %v2685_v2 = vand.u32 2147483647, %v2675_v33  ;;  %vm2681_vm15 = vweird.f32 %v2675_v33 }
 0x4ac   :  { %v2669_v42 = vor.u32 1.1754944e-38, %v2668_v39  ;;  %vm2667_vm2 = vcmp.eq.f32.partialorder %v2666_v44, 8.507059e+37  ;;  %v3394_v5 = vsel %vm3372_vm7, %v12138_v53, %v12342_v59  ;;  %v3395_v22 = vsel %vm3372_vm7, %v12342_v59, %v12138_v53  ;;  %v8156_v53 = vld [vmem:[%s15164_s3 + $0xe0] sm:$0xf]  ;;  %v9831_v59 = vld [vmem:[%s15164_s3 + $0xec] sm:$0xf0] }
 0x4ad   :  { %v2688_v8 = vor.u32 1.1754944e-38, %v2687_v17  ;;  %vm2686_vm3 = vcmp.eq.f32.partialorder %v2685_v2, 8.507059e+37  ;;  %v8157_v11 = vor.u32 %v9831_v59, %v8156_v53  ;;  %v8158_v41 = vld [vmem:[%s15164_s3 + $0xf0] sm:$0xf0]  ;;  %v9825_v39 = vld [vmem:[%s15164_s3 + $0xc4] sm:$0xf] }
 0x4ae   :  { %v10256_v13 = vpop.eup %10255  ;;  %v8148_v44 = vld [vmem:[%s15164_s3 + $0xc8] sm:$0xf]  ;;  %v9815_v53 = vld [vmem:[%s15164_s3 + $0x6c] sm:$0xf0]  ;;  %v9813_v59 = vld [vmem:[%s15164_s3 + $0x64] sm:$0xf] }
 0x4af   :  { %v2695_v26 = vadd.f32 1.0, %v10256_v13  ;;  %v8164_v13 = vld [vmem:[%s15164_s3 + $0xe8] sm:$0xf]  ;;  %3249 = vmatpush.bf16.msra.mxu0 %v8157_v11  ;;  %v8094_v11 = vld [vmem:[%s15164_s3 + $0x70] sm:$0xf0] }
 0x4b0   :  { %v10258_v23 = vpop.eup %10257 }
 0x4b1   :  { %v10260_v55 = vpop.eup %10259  ;;  %v2658_v63 = vmul.f32 %v10258_v23, %v2656_v35  ;;  %10261 = vrcp.f32 %v2695_v26  ;;  %vm2663_vm12 = vweird.f32 %v10258_v23  ;;  %v2707_v20 = vand.u32 2147483648, %v2695_v26 }
 0x4b2   :  { %v2677_v61 = vmul.f32 %v10260_v55, %v2675_v33  ;;  %10263 = vtanh.f32 %v2651_v52  ;;  %vm2682_vm13 = vweird.f32 %v10260_v55  ;;  %vm2664_vm0 = vmor %vm2662_vm14, %vm2663_vm12  ;;  %vm2701_vm5 = vweird.f32 %v2695_v26 }
 0x4b3   :  { %v2659_v18 = vsub.f32 1.0, %v2658_v63  ;;  %vm2683_vm1 = vmor %vm2681_vm15, %vm2682_vm13  ;;  %v2705_v50 = vand.u32 2147483647, %v2695_v26  ;;  %v2708_v0 = vor.u32 1.1754944e-38, %v2707_v20  ;;  %v8166_v63 = vld [vmem:[%s15164_s3 + $0xf8] sm:$0xf0] }
 0x4b4   :  { %v2678_v57 = vsub.f32 1.0, %v2677_v61  ;;  %v9819_v20 = vld [vmem:[%s15164_s3 + $0x8c] sm:$0xf0] }
 0x4b5   :  { %v2660_v30 = vmul.f32 %v10258_v23, %v2659_v18  ;;  %vm2706_vm8 = vcmp.eq.f32.partialorder %v2705_v50, 8.507059e+37  ;;  %v8140_v18 = vld [vmem:[%s15164_s3 + $0xc0] sm:$0xf]  ;;  %v9817_v50 = vld [vmem:[%s15164_s3 + $0x84] sm:$0xf] }
 0x4b6   :  { %v2679_v62 = vmul.f32 %v10260_v55, %v2678_v57  ;;  %v9827_v57 = vld [vmem:[%s15164_s3 + $0xcc] sm:$0xf0] }
 0x4b7   :  { %v10262_v58 = vpop.eup %10261  ;;  %v2661_v3 = vadd.f32 %v10258_v23, %v2660_v30  ;;  %v8141_v17 = vor.u32 %v9827_v57, %v8140_v18  ;;  %v8142_v30 = vld [vmem:[%s15164_s3 + $0xd0] sm:$0xf0] }
 0x4b8   :  { %v2680_v60 = vadd.f32 %v10260_v55, %v2679_v62  ;;  %v2697_v7 = vmul.f32 %v10262_v58, %v2695_v26  ;;  %v10264_v34 = vpop.eup %10263  ;;  %vm2702_vm4 = vweird.f32 %v10262_v58  ;;  %v9832_v26 = vld [vmem:[%s15164_s3 + $0xf4] sm:$0xf0]  ;;  %v8145_v2 = vor.u32 %v9825_v39, %v8142_v30  ;;  %v9811_v30 = vld [vmem:[%s15164_s3 + $0x4c] sm:$0xf0] }
 0x4b9   :  { %v2665_v9 = vsel %vm2664_vm0, %v10258_v23, %v2661_v3  ;;  %vm2703_vm6 = vmor %vm2701_vm5, %vm2702_vm4  ;;  %v8165_v52 = vor.u32 %v9832_v26, %v8164_v13  ;;  %v9828_v62 = vld [vmem:[%s15164_s3 + $0xd4] sm:$0xf0]  ;;  %v9826_v3 = vld [vmem:[%s15164_s3 + $0xcc] sm:$0xf]  ;;  %3250 = vmatpush.bf16.msra.mxu0 %v8141_v17 }
 0x4ba   :  { %v2670_v1 = vsel %vm2667_vm2, %v2669_v42, %v2665_v9  ;;  %v2684_v15 = vsel %vm2683_vm1, %v10260_v55, %v2680_v60  ;;  %v2698_v48 = vsub.f32 1.0, %v2697_v7  ;;  %v9830_v55 = vld [vmem:[%s15164_s3 + $0xec] sm:$0xf]  ;;  %v8150_v42 = vld [vmem:[%s15164_s3 + $0xd8] sm:$0xf0] }
 0x4bb   :  { %v2689_v25 = vsel %vm2686_vm3, %v2688_v8, %v2684_v15  ;;  %v2712_v49 = vmul.f32 %v10264_v34, %v2670_v1  ;;  %v8169_v61 = vor.u32 %v9830_v55, %v8166_v63  ;;  %3275 = vmatpush.bf16.msra.mxu2 %v8165_v52  ;;  %v8153_v60 = vor.u32 %v9826_v3, %v8150_v42  ;;  %v8124_v7 = vld [vmem:[%s15164_s3 + $0xa0] sm:$0xf]  ;;  %v9823_v8 = vld [vmem:[%s15164_s3 + $0xac] sm:$0xf0]  ;;  %v9821_v9 = vld [vmem:[%s15164_s3 + $0xa4] sm:$0xf] }
 0x4bc   :  { %v2711_v36 = vmul.f32 %v2689_v25, %v12339_v54  ;;  %v2699_v43 = vmul.f32 %v10262_v58, %v2698_v48  ;;  %v8125_v34 = vor.u32 %v9823_v8, %v8124_v7  ;;  %v8126_v1 = vld [vmem:[%s15164_s3 + $0xb0] sm:$0xf0]  ;;  %v8132_v15 = vld [vmem:[%s15164_s3 + $0xa8] sm:$0xf]  ;;  %v9824_v48 = vld [vmem:[%s15164_s3 + $0xb4] sm:$0xf0]  ;;  %v8097_v52 = vor.u32 %v9813_v59, %v8094_v11 }
 0x4bd   :  { %3288 = vmatpush.bf16.msrb.mxu3 %v8169_v61  ;;  %v8129_v25 = vor.u32 %v9821_v9, %v8126_v1  ;;  %v9816_v13 = vld [vmem:[%s15164_s3 + $0x74] sm:$0xf0]  ;;  %v9814_v63 = vld [vmem:[%s15164_s3 + $0x6c] sm:$0xf]  ;;  %v8102_v61 = vld [vmem:[%s15164_s3 + $0x78] sm:$0xf0] }
 0x4be   :  { %v12543_v16 = vadd.f32 %v2712_v49, %v2711_v36  ;;  %v2700_v56 = vadd.f32 %v10262_v58, %v2699_v43  ;;  %v8133_v49 = vor.u32 %v9824_v48, %v8132_v15  ;;  %v9822_v36 = vld [vmem:[%s15164_s3 + $0xac] sm:$0xf]  ;;  %v8134_v43 = vld [vmem:[%s15164_s3 + $0xb8] sm:$0xf0]  ;;  %3251 = vmatpush.bf16.msra.mxu0 %v8125_v34  ;;  %v8105_v39 = vor.u32 %v9814_v63, %v8102_v61  ;;  %v8076_v17 = vld [vmem:[%s15164_s3 + $0x40] sm:$0xf] }
 0x4bf   :  { %v8137_v27 = vor.u32 %v9822_v36, %v8134_v43  ;;  %v8084_v3 = vld [vmem:[%s15164_s3 + $0x48] sm:$0xf]  ;;  %v9812_v42 = vld [vmem:[%s15164_s3 + $0x54] sm:$0xf0]  ;;  %v8086_v8 = vld [vmem:[%s15164_s3 + $0x58] sm:$0xf0] }
 0x4c0   :  { %10265 = vtanh.f32 %v12543_v16  ;;  %v2704_v12 = vsel %vm2703_vm6, %v10262_v58, %v2700_v56  ;;  %v8149_v58 = vor.u32 %v9828_v62, %v8148_v44  ;;  %v8108_v56 = vld [vmem:[%s15164_s3 + $0x80] sm:$0xf]  ;;  %v9809_v44 = vld [vmem:[%s15164_s3 + $0x44] sm:$0xf]  ;;  %v8085_v7 = vor.u32 %v9812_v42, %v8084_v3  ;;  %v9807_v34 = vld [vmem:[%s15164_s3 + $0x2c] sm:$0xf0] }
 0x4c1   :  { %v2709_v31 = vsel %vm2706_vm8, %v2708_v0, %v2704_v12  ;;  %3289 = vmatpush.bf16.msrb.mxu3 %v8153_v60  ;;  %v8109_v12 = vor.u32 %v9819_v20, %v8108_v56  ;;  %v8110_v0 = vld [vmem:[%s15164_s3 + $0x90] sm:$0xf0]  ;;  %v9810_v60 = vld [vmem:[%s15164_s3 + $0x4c] sm:$0xf]  ;;  %v8060_v9 = vld [vmem:[%s15164_s3 + $0x20] sm:$0xf] }
 0x4c2   :  { %3276 = vmatpush.bf16.msra.mxu2 %v8149_v58  ;;  %v8089_v1 = vor.u32 %v9810_v60, %v8086_v8  ;;  %v8061_v15 = vor.u32 %v9807_v34, %v8060_v9  ;;  %v9805_v48 = vld [vmem:[%s15164_s3 + $0x24] sm:$0xf]  ;;  %v9808_v56 = vld [vmem:[%s15164_s3 + $0x34] sm:$0xf0]  ;;  %v9806_v20 = vld [vmem:[%s15164_s3 + $0x2c] sm:$0xf] }
 0x4c3   :  { %3252 = vmatpush.bf16.msra.mxu0 %v8109_v12  ;;  %v9802_v11 = vld [vmem:[%s15164_s3 + $0xc] sm:$0xf] }
 0x4c5   :  { %3290 = vmatpush.bf16.msrb.mxu3 %v8137_v27 }
 0x4c6   :  { %v10266_v54 = vpop.eup %10265  ;;  %3277 = vmatpush.bf16.msra.mxu2 %v8133_v49  ;;  %v8068_v49 = vld [vmem:[%s15164_s3 + $0x28] sm:$0xf] }
 0x4c7   :  { %v2715_v40 = vmul.f32 %v10266_v54, %v2709_v31  ;;  %v8116_v54 = vld [vmem:[%s15164_s3 + $0x88] sm:$0xf]  ;;  %v9820_v31 = vld [vmem:[%s15164_s3 + $0x94] sm:$0xf0] }
 0x4c9   :  { %v2730_v24 = vpack.c.bf16 %v2715_v40, %v2715_v40  ;;  %v3393_v35 = vsel %vm3372_vm7, %v11934_v6, %v2715_v40  ;;  %v3396_v32 = vsel %vm3372_vm7, %v2715_v40, %v11934_v6  ;;  %v9829_v6 = vld [vmem:[%s15164_s3 + $0xe4] sm:$0xf]  ;;  %v8113_v40 = vor.u32 %v9817_v50, %v8110_v0  ;;  %v8070_v50 = vld [vmem:[%s15164_s3 + $0x38] sm:$0xf0] }
 0x4ca   :  { %v12563_v33 = vpack.c.bf16 %v3394_v5, %v3393_v35  ;;  %v12565_v28 = vpack.c.bf16 %v3396_v32, %v3395_v22  ;;  %v8161_v23 = vor.u32 %v9829_v6, %v8158_v41  ;;  %v8117_v5 = vor.u32 %v9820_v31, %v8116_v54  ;;  %v9818_v22 = vld [vmem:[%s15164_s3 + $0x8c] sm:$0xf]  ;;  %v8092_v32 = vld [vmem:[%s15164_s3 + $0x60] sm:$0xf]  ;;  %v8100_v41 = vld [vmem:[%s15164_s3 + $0x68] sm:$0xf] }
 0x4cb   :  { %2931 = vmatmul.bf16.vlgmr.msrb.gmra.mxu0 %v2730_v24  ;;  %2944 = vmatmul.bf16.vlgmr.msrb.gmra.mxu1 %v2730_v24  ;;  %v8093_v6 = vor.u32 %v9815_v53, %v8092_v32  ;;  %v8101_v55 = vor.u32 %v9816_v13, %v8100_v41  ;;  %v8069_v31 = vor.u32 %v9808_v56, %v8068_v49  ;;  %v8052_v32 = vld [vmem:[%s15164_s3 + $0x8] sm:$0xf]  ;;  %v9804_v53 = vld [vmem:[%s15164_s3 + $0x14] sm:$0xf0]  ;;  %v8054_v41 = vld [vmem:[%s15164_s3 + $0x18] sm:$0xf0] }
 0x4cc   :  { %2957 = vmatmul.bf16.vlgmr.msrb.gmra.mxu2 %v2730_v24  ;;  %2970 = vmatmul.bf16.vlgmr.msra.gmra.mxu3 %v2730_v24  ;;  %v8118_v24 = vld [vmem:[%s15164_s3 + $0x98] sm:$0xf0] }
 0x4cd   :  { %3262 = vmatpush.bf16.msra.mxu1 %v8161_v23  ;;  %v8121_v35 = vor.u32 %v9818_v22, %v8118_v24  ;;  %3278 = vmatpush.bf16.msra.mxu2 %v8117_v5  ;;  %v8044_v5 = vld [vmem:[%s15164_s3] sm:$0xf]  ;;  %v9803_v22 = vld [vmem:[%s15164_s3 + $0xc] sm:$0xf0]  ;;  %v9801_v24 = vld [vmem:[%s15164_s3 + $0x4] sm:$0xf] }
 0x4ce   :  { %3253 = vmatpush.bf16.msra.mxu0 %v8093_v6 }
 0x4cf   :  { %3291 = vmatpush.bf16.msrb.mxu3 %v8121_v35  ;;  %v8045_v35 = vor.u32 %v9803_v22, %v8044_v5 }
 0x4d1   :  { %3263 = vmatpush.bf16.msra.mxu1 %v8145_v2  ;;  %3279 = vmatpush.bf16.msra.mxu2 %v8101_v55  ;;  %v8078_v2 = vld [vmem:[%s15164_s3 + $0x50] sm:$0xf0]  ;;  %v8057_v55 = vor.u32 %v9802_v11, %v8054_v41  ;;  %v8401_v11 = vld [vmem:[%s15166_s4 + $0x1e0] sm:$0xf0]  ;;  %v8407_v41 = vld [vmem:[%s15166_s4 + $0x1c8] sm:$0xf] }
 0x4d2   :  { %v8081_v58 = vor.u32 %v9809_v44, %v8078_v2 }
 0x4d3   :  { %3292 = vmatpush.bf16.msrb.mxu3 %v8105_v39 }
 0x4d5   :  { %3264 = vmatpush.bf16.msra.mxu1 %v8129_v25  ;;  %v8062_v25 = vld [vmem:[%s15164_s3 + $0x30] sm:$0xf0]  ;;  %3280 = vmatpush.bf16.msra.mxu2 %v8085_v7 }
 0x4d6   :  { %v8065_v27 = vor.u32 %v9805_v48, %v8062_v25 }
 0x4d7   :  { %3293 = vmatpush.bf16.msrb.mxu3 %v8089_v1 }
 0x4d9   :  { %3265 = vmatpush.bf16.msra.mxu1 %v8113_v40  ;;  %v8073_v40 = vor.u32 %v9806_v20, %v8070_v50  ;;  %3281 = vmatpush.bf16.msra.mxu2 %v8069_v31 }
 0x4db   :  { %3294 = vmatpush.bf16.msrb.mxu3 %v8073_v40 }
 0x4dd   :  { %3266 = vmatpush.bf16.msra.mxu1 %v8097_v52 }
 0x4df   :  { %3295 = vmatpush.bf16.msrb.mxu3 %v8057_v55  ;;  %v8409_v55 = vld [vmem:[%s15166_s4 + $0x1e8] sm:$0xf0] }
 0x4e1   :  { %3267 = vmatpush.bf16.msra.mxu1 %v8081_v58 }
 0x4e5   :  { %3268 = vmatpush.bf16.msra.mxu1 %v8065_v27 }
 0x548   :  { %v2932_v26 = vpop.f32.mrf.mxu0  ;;  %v2945_v23 = vpop.f32.mrf.mxu1 }
 0x549   :  { %v2975_v18 = vadd.f32 %v2932_v26, %v11134_v10  ;;  %v2976_v57 = vadd.f32 %v2945_v23, %v11229_v51  ;;  %v8077_v51 = vor.u32 %v9811_v30, %v8076_v17  ;;  %v8053_v26 = vor.u32 %v9804_v53, %v8052_v32  ;;  %v8399_v32 = vld [vmem:[%s15166_s4 + $0x1c0] sm:$0xf] }
 0x54a   :  { %v9893_v53 = vld [vmem:[%s15166_s4 + $0x1dc] sm:$0xf0] }
 0x54b   :  { %v8039_v62 = vmul.f32 -1.442695, %v2975_v18  ;;  %v8040_v10 = vmul.f32 -1.442695, %v2976_v57  ;;  %3254 = vmatpush.bf16.msra.mxu0 %v8077_v51  ;;  %3282 = vmatpush.bf16.msra.mxu2 %v8053_v26 }
 0x54d   :  { %10267 = vpow2.f32 %v8039_v62 }
 0x54e   :  { %10269 = vpow2.f32 %v8040_v10 }
 0x54f   :  { %v2958_v36 = vpop.f32.mrf.mxu2  ;;  %v2971_v43 = vpop.f32.mrf.mxu3  ;;  %3255 = vmatpush.bf16.msra.mxu0 %v8061_v15 }
 0x550   :  { %v2978_v12 = vadd.f32 %v2971_v43, %v11199_v14  ;;  %v2934_v0 = vpop.f32.mrf.mxu0  ;;  %v2947_v54 = vpop.f32.mrf.mxu1  ;;  %v8046_v14 = vld [vmem:[%s15164_s3 + $0x10] sm:$0xf0]  ;;  %v2977_v30 = vadd.f32 %v2958_v36, %v11235_v21 }
 0x551   :  { %v8049_v6 = vor.u32 %v9801_v24, %v8046_v14 }
 0x552   :  { %v8041_v59 = vmul.f32 -1.442695, %v2978_v12 }
 0x553   :  { %v10268_v13 = vpop.eup %10267  ;;  %3256 = vmatpush.bf16.msra.mxu0 %v8045_v35  ;;  %3269 = vmatpush.bf16.msra.mxu1 %v8049_v6  ;;  %v8400_v6 = vor.u32 %v9893_v53, %v8399_v32 }
 0x554   :  { %v10270_v23 = vpop.eup %10269  ;;  %v2982_v52 = vadd.f32 1.0, %v10268_v13  ;;  %10271 = vpow2.f32 %v8041_v59  ;;  %v9889_v59 = vld [vmem:[%s15166_s4 + $0x1c4] sm:$0xf]  ;;  %v9894_v13 = vld [vmem:[%s15166_s4 + $0x1e4] sm:$0xf0] }
 0x555   :  { %v3001_v63 = vadd.f32 1.0, %v10270_v23  ;;  %v8404_v26 = vor.u32 %v9889_v59, %v8401_v11  ;;  %v8408_v23 = vor.u32 %v9894_v13, %v8407_v41  ;;  %v8273_v59 = vld [vmem:[%s15166_s4 + $0xe0] sm:$0xf0]  ;;  %v9862_v11 = vld [vmem:[%s15166_s4 + $0xe4] sm:$0xf0] }
 0x556   :  { %10273 = vrcp.f32 %v2982_v52  ;;  %v2994_v58 = vand.u32 2147483648, %v2982_v52  ;;  %v2992_v60 = vand.u32 2147483647, %v2982_v52  ;;  %vm2988_vm11 = vweird.f32 %v2982_v52 }
 0x557   :  { %10275 = vrcp.f32 %v3001_v63  ;;  %v2960_v61 = vpop.f32.mrf.mxu2  ;;  %v2973_v18 = vpop.f32.mrf.mxu3  ;;  %v3013_v3 = vand.u32 2147483648, %v3001_v63  ;;  %v3011_v8 = vand.u32 2147483647, %v3001_v63  ;;  %vm3007_vm12 = vweird.f32 %v3001_v63  ;;  %3805 = vmatpush.bf16.msrb.mxu0 %v8400_v6  ;;  %3834 = vmatpush.bf16.msrb.mxu1 %v8404_v26  ;;  %v8279_v6 = vld [vmem:[%s15166_s4 + $0xc8] sm:$0xf] }
 0x558   :  { %v2995_v21 = vor.u32 1.1754944e-38, %v2994_v58  ;;  %vm2993_vm15 = vcmp.eq.f32.partialorder %v2992_v60, 8.507059e+37  ;;  %3863 = vmatpush.bf16.msrb.mxu2 %v8408_v23  ;;  %v8367_v61 = vld [vmem:[%s15166_s4 + $0x180] sm:$0xf]  ;;  %v9873_v60 = vld [vmem:[%s15166_s4 + $0x144] sm:$0xf]  ;;  %v8280_v23 = vor.u32 %v9862_v11, %v8279_v6 }
 0x559   :  { %v3014_v48 = vor.u32 1.1754944e-38, %v3013_v3  ;;  %vm3012_vm0 = vcmp.eq.f32.partialorder %v3011_v8, 8.507059e+37  ;;  %v9885_v18 = vld [vmem:[%s15166_s4 + $0x19c] sm:$0xf0]  ;;  %v8337_v8 = vld [vmem:[%s15166_s4 + $0x160] sm:$0xf0] }
 0x55a   :  { %v10272_v57 = vpop.eup %10271  ;;  %v8335_v3 = vld [vmem:[%s15166_s4 + $0x140] sm:$0xf] }
 0x55b   :  { %v3021_v39 = vadd.f32 1.0, %v10272_v57  ;;  %v9881_v57 = vld [vmem:[%s15166_s4 + $0x184] sm:$0xf] }
 0x55c   :  { %v10274_v17 = vpop.eup %10273 }
 0x55d   :  { %v10276_v44 = vpop.eup %10275  ;;  %v2984_v62 = vmul.f32 %v10274_v17, %v2982_v52  ;;  %10277 = vrcp.f32 %v3021_v39  ;;  %vm2989_vm9 = vweird.f32 %v10274_v17  ;;  %v3033_v31 = vand.u32 2147483648, %v3021_v39  ;;  %v9890_v52 = vld [vmem:[%s15166_s4 + $0x1cc] sm:$0xf] }
 0x55e   :  { %v3003_v10 = vmul.f32 %v10276_v44, %v3001_v63  ;;  %10279 = vtanh.f32 %v2977_v30  ;;  %vm3008_vm10 = vweird.f32 %v10276_v44  ;;  %vm2990_vm13 = vmor %vm2988_vm11, %vm2989_vm9  ;;  %vm3027_vm2 = vweird.f32 %v3021_v39  ;;  %v8375_v30 = vld [vmem:[%s15166_s4 + $0x188] sm:$0xf] }
 0x55f   :  { %v2985_v51 = vsub.f32 1.0, %v2984_v62  ;;  %vm3009_vm14 = vmor %vm3007_vm12, %vm3008_vm10  ;;  %v3031_v40 = vand.u32 2147483647, %v3021_v39  ;;  %v3034_v22 = vor.u32 1.1754944e-38, %v3033_v31  ;;  %v8412_v63 = vor.u32 %v9890_v52, %v8409_v55  ;;  %v9866_v31 = vld [vmem:[%s15166_s4 + $0x10c] sm:$0xf] }
 0x560   :  { %v3004_v2 = vsub.f32 1.0, %v3003_v10  ;;  %v9858_v52 = vld [vmem:[%s15166_s4 + $0xcc] sm:$0xf] }
 0x561   :  { %v2986_v42 = vmul.f32 %v10274_v17, %v2985_v51  ;;  %vm3032_vm4 = vcmp.eq.f32.partialorder %v3031_v40, 8.507059e+37  ;;  %3892 = vmatpush.bf16.msra.mxu3 %v8412_v63  ;;  %v9882_v51 = vld [vmem:[%s15166_s4 + $0x18c] sm:$0xf] }
 0x562   :  { %v3005_v7 = vmul.f32 %v10276_v44, %v3004_v2  ;;  %v8377_v2 = vld [vmem:[%s15166_s4 + $0x1a8] sm:$0xf0] }
 0x563   :  { %v10278_v9 = vpop.eup %10277  ;;  %v2987_v34 = vadd.f32 %v10274_v17, %v2986_v42  ;;  %v8380_v58 = vor.u32 %v9882_v51, %v8377_v2  ;;  %v9877_v42 = vld [vmem:[%s15166_s4 + $0x15c] sm:$0xf0]  ;;  %v8313_v40 = vld [vmem:[%s15166_s4 + $0x128] sm:$0xf0] }
 0x564   :  { %v3006_v1 = vadd.f32 %v10276_v44, %v3005_v7  ;;  %v3023_v15 = vmul.f32 %v10278_v9, %v3021_v39  ;;  %v10280_v49 = vpop.eup %10279  ;;  %vm3028_vm1 = vweird.f32 %v10278_v9  ;;  %v8368_v39 = vor.u32 %v9885_v18, %v8367_v61  ;;  %v8281_v55 = vld [vmem:[%s15166_s4 + $0xe8] sm:$0xf0] }
 0x565   :  { %v2991_v25 = vsel %vm2990_vm13, %v10274_v17, %v2987_v34  ;;  %vm3029_vm3 = vmor %vm3027_vm2, %vm3028_vm1  ;;  %v8369_v17 = vld [vmem:[%s15166_s4 + $0x1a0] sm:$0xf0]  ;;  %3893 = vmatpush.bf16.msra.mxu3 %v8380_v58  ;;  %v8336_v7 = vor.u32 %v9877_v42, %v8335_v3  ;;  %v9878_v34 = vld [vmem:[%s15166_s4 + $0x164] sm:$0xf0]  ;;  %v8284_v63 = vor.u32 %v9858_v52, %v8281_v55 }
 0x566   :  { %v2996_v36 = vsel %vm2993_vm15, %v2995_v21, %v2991_v25  ;;  %v3010_v43 = vsel %vm3009_vm14, %v10276_v44, %v3006_v1  ;;  %v3024_v27 = vsub.f32 1.0, %v3023_v15  ;;  %v9886_v44 = vld [vmem:[%s15166_s4 + $0x1a4] sm:$0xf0]  ;;  %v8372_v62 = vor.u32 %v9881_v57, %v8369_v17  ;;  %3806 = vmatpush.bf16.msrb.mxu0 %v8368_v39  ;;  %v9874_v15 = vld [vmem:[%s15166_s4 + $0x14c] sm:$0xf] }
 0x567   :  { %v3015_v56 = vsel %vm3012_vm0, %v3014_v48, %v3010_v43  ;;  %v3038_v20 = vmul.f32 %v10280_v49, %v2996_v36  ;;  %v8376_v10 = vor.u32 %v9886_v44, %v8375_v30  ;;  %v8340_v21 = vor.u32 %v9873_v60, %v8337_v8  ;;  %v8345_v48 = vld [vmem:[%s15166_s4 + $0x168] sm:$0xf0]  ;;  %v8303_v49 = vld [vmem:[%s15166_s4 + $0x100] sm:$0xf]  ;;  %v9865_v43 = vld [vmem:[%s15166_s4 + $0x104] sm:$0xf] }
 0x568   :  { %v3037_v50 = vmul.f32 %v3015_v56, %v12543_v16  ;;  %v3025_v12 = vmul.f32 %v10278_v9, %v3024_v27  ;;  %3835 = vmatpush.bf16.msrb.mxu1 %v8372_v62  ;;  %v8348_v25 = vor.u32 %v9874_v15, %v8345_v48  ;;  %v9869_v36 = vld [vmem:[%s15166_s4 + $0x11c] sm:$0xf0]  ;;  %v8305_v56 = vld [vmem:[%s15166_s4 + $0x120] sm:$0xf0]  ;;  %v8247_v44 = vld [vmem:[%s15166_s4 + $0x88] sm:$0xf] }
 0x569   :  { %3864 = vmatpush.bf16.msrb.mxu2 %v8376_v10  ;;  %v8304_v27 = vor.u32 %v9869_v36, %v8303_v49  ;;  %v9849_v57 = vld [vmem:[%s15166_s4 + $0x84] sm:$0xf]  ;;  %v9854_v62 = vld [vmem:[%s15166_s4 + $0xa4] sm:$0xf0]  ;;  %v9850_v10 = vld [vmem:[%s15166_s4 + $0x8c] sm:$0xf] }
 0x56a   :  { %v12764_v0 = vadd.f32 %v3038_v20, %v3037_v50  ;;  %v3026_v54 = vadd.f32 %v10278_v9, %v3025_v12  ;;  %3807 = vmatpush.bf16.msrb.mxu0 %v8336_v7  ;;  %3894 = vmatpush.bf16.msra.mxu3 %v8348_v25  ;;  %v8311_v20 = vld [vmem:[%s15166_s4 + $0x108] sm:$0xf]  ;;  %v8308_v12 = vor.u32 %v9865_v43, %v8305_v56  ;;  %v8241_v39 = vld [vmem:[%s15166_s4 + $0xa0] sm:$0xf0]  ;;  %v8249_v2 = vld [vmem:[%s15166_s4 + $0xa8] sm:$0xf0] }
 0x56b   :  { %v9870_v50 = vld [vmem:[%s15166_s4 + $0x124] sm:$0xf0]  ;;  %v8244_v30 = vor.u32 %v9849_v57, %v8241_v39  ;;  %v8248_v51 = vor.u32 %v9854_v62, %v8247_v44  ;;  %v8252_v42 = vor.u32 %v9850_v10, %v8249_v2  ;;  %v8207_v60 = vld [vmem:[%s15166_s4 + $0x40] sm:$0xf]  ;;  %v9841_v8 = vld [vmem:[%s15166_s4 + $0x44] sm:$0xf] }
 0x56c   :  { %10281 = vtanh.f32 %v12764_v0  ;;  %v3030_v5 = vsel %vm3029_vm3, %v10278_v9, %v3026_v54  ;;  %v8343_v9 = vld [vmem:[%s15166_s4 + $0x148] sm:$0xf]  ;;  %3836 = vmatpush.bf16.msrb.mxu1 %v8340_v21  ;;  %v8312_v54 = vor.u32 %v9870_v50, %v8311_v20  ;;  %v9845_v7 = vld [vmem:[%s15166_s4 + $0x5c] sm:$0xf0]  ;;  %v8209_v15 = vld [vmem:[%s15166_s4 + $0x60] sm:$0xf0] }
 0x56d   :  { %v3035_v35 = vsel %vm3032_vm4, %v3034_v22, %v3030_v5  ;;  %v8344_v1 = vor.u32 %v9878_v34, %v8343_v9  ;;  %v8316_v5 = vor.u32 %v9866_v31, %v8313_v40  ;;  %v8271_v22 = vld [vmem:[%s15166_s4 + $0xc0] sm:$0xf]  ;;  %v8215_v48 = vld [vmem:[%s15166_s4 + $0x48] sm:$0xf]  ;;  %v8212_v49 = vor.u32 %v9841_v8, %v8209_v15  ;;  %v8217_v43 = vld [vmem:[%s15166_s4 + $0x68] sm:$0xf0] }
 0x56e   :  { %3808 = vmatpush.bf16.msrb.mxu0 %v8304_v27  ;;  %v9846_v25 = vld [vmem:[%s15166_s4 + $0x64] sm:$0xf0]  ;;  %v8175_v50 = vld [vmem:[%s15166_s4] sm:$0xf]  ;;  %v8425_v57 = vld [vmem:[%s15166_s4 + $0x1f8] sm:$0xf0] }
 0x56f   :  { %3865 = vmatpush.bf16.msrb.mxu2 %v8344_v1  ;;  %3895 = vmatpush.bf16.msra.mxu3 %v8316_v5  ;;  %v8208_v1 = vor.u32 %v9845_v7, %v8207_v60  ;;  %v8216_v36 = vor.u32 %v9846_v25, %v8215_v48  ;;  %v8383_v39 = vld [vmem:[%s15166_s4 + $0x190] sm:$0xf]  ;;  %v9883_v10 = vld [vmem:[%s15166_s4 + $0x194] sm:$0xf]  ;;  %v9896_v7 = vld [vmem:[%s15166_s4 + $0x1f4] sm:$0xf0] }
 0x570   :  { %3837 = vmatpush.bf16.msrb.mxu1 %v8308_v12  ;;  %v9837_v12 = vld [vmem:[%s15166_s4 + $0x1c] sm:$0xf0]  ;;  %v9887_v62 = vld [vmem:[%s15166_s4 + $0x1ac] sm:$0xf0] }
 0x571   :  { %v8176_v5 = vor.u32 %v9837_v12, %v8175_v50 }
 0x572   :  { %v10282_v24 = vpop.eup %10281 }
 0x573   :  { %v12767_v14 = vmul.f32 %v10282_v24, %v3035_v35  ;;  %3866 = vmatpush.bf16.msrb.mxu2 %v8312_v54  ;;  %v9861_v24 = vld [vmem:[%s15166_s4 + $0xdc] sm:$0xf0]  ;;  %v9857_v35 = vld [vmem:[%s15166_s4 + $0xc4] sm:$0xf]  ;;  %3896 = vmatpush.bf16.msra.mxu3 %v8284_v63  ;;  %v9891_v63 = vld [vmem:[%s15166_s4 + $0x1d4] sm:$0xf] }
 0x574   :  { %v8272_v53 = vor.u32 %v9861_v24, %v8271_v22  ;;  %v8276_v26 = vor.u32 %v9857_v35, %v8273_v59  ;;  %v9833_v54 = vld [vmem:[%s15166_s4 + $0x4] sm:$0xf]  ;;  %v8183_v24 = vld [vmem:[%s15166_s4 + $0x8] sm:$0xf]  ;;  %v8185_v59 = vld [vmem:[%s15166_s4 + $0x28] sm:$0xf0] }
 0x575   :  { %v3056_v16 = vpack.c.bf16 %v12767_v14, %v12767_v14  ;;  %v8177_v22 = vld [vmem:[%s15166_s4 + $0x20] sm:$0xf0] }
 0x576   :  { %3809 = vmatpush.bf16.msrb.mxu0 %v8272_v53  ;;  %3838 = vmatpush.bf16.msrb.mxu1 %v8276_v26  ;;  %v9834_v53 = vld [vmem:[%s15166_s4 + $0xc] sm:$0xf]  ;;  %v8415_v26 = vld [vmem:[%s15166_s4 + $0x1d0] sm:$0xf] }
 0x577   :  { %3257 = vmatmul.bf16.vlgmr.msra.gmra.mxu0 %v3056_v16  ;;  %3270 = vmatmul.bf16.vlgmr.msra.gmra.mxu1 %v3056_v16 }
 0x578   :  { %3283 = vmatmul.bf16.vlgmr.msra.gmra.mxu2 %v3056_v16  ;;  %3296 = vmatmul.bf16.vlgmr.msrb.gmra.mxu3 %v3056_v16 }
 0x579   :  { %3867 = vmatpush.bf16.msrb.mxu2 %v8280_v23  ;;  %3897 = vmatpush.bf16.msra.mxu3 %v8252_v42  ;;  %v9895_v23 = vld [vmem:[%s15166_s4 + $0x1ec] sm:$0xf0]  ;;  %v8423_v42 = vld [vmem:[%s15166_s4 + $0x1d8] sm:$0xf] }
 0x57a   :  { %3839 = vmatpush.bf16.msrb.mxu1 %v8244_v30  ;;  %v8416_v55 = vor.u32 %v9895_v23, %v8415_v26  ;;  %v8424_v48 = vor.u32 %v9896_v7, %v8423_v42  ;;  %v8353_v23 = vld [vmem:[%s15166_s4 + $0x170] sm:$0xf0] }
 0x57d   :  { %3868 = vmatpush.bf16.msrb.mxu2 %v8248_v51  ;;  %v8385_v51 = vld [vmem:[%s15166_s4 + $0x1b0] sm:$0xf0] }
 0x57e   :  { %3840 = vmatpush.bf16.msrb.mxu1 %v8212_v49 }
 0x581   :  { %3869 = vmatpush.bf16.msrb.mxu2 %v8216_v36 }
 0x5f4   :  { %v3258_v16 = vpop.f32.mrf.mxu0  ;;  %v3271_v32 = vpop.f32.mrf.mxu1 }
 0x5f5   :  { %v3301_v41 = vadd.f32 %v3258_v16, %v11143_v19  ;;  %v3302_v13 = vadd.f32 %v3271_v32, %v11217_v46  ;;  %v8239_v19 = vld [vmem:[%s15166_s4 + $0x80] sm:$0xf]  ;;  %v8180_v16 = vor.u32 %v9833_v54, %v8177_v22  ;;  %v9838_v32 = vld [vmem:[%s15166_s4 + $0x24] sm:$0xf0] }
 0x5f6   :  { %v9853_v46 = vld [vmem:[%s15166_s4 + $0x9c] sm:$0xf0] }
 0x5f7   :  { %v8170_v61 = vmul.f32 -1.442695, %v3301_v41  ;;  %v8171_v18 = vmul.f32 -1.442695, %v3302_v13  ;;  %v8240_v17 = vor.u32 %v9853_v46, %v8239_v19  ;;  %3841 = vmatpush.bf16.msrb.mxu1 %v8180_v16  ;;  %v8184_v41 = vor.u32 %v9838_v32, %v8183_v24 }
 0x5f8   :  { %v8188_v13 = vor.u32 %v9834_v53, %v8185_v59 }
 0x5f9   :  { %10283 = vpow2.f32 %v8170_v61  ;;  %3810 = vmatpush.bf16.msrb.mxu0 %v8240_v17  ;;  %3870 = vmatpush.bf16.msrb.mxu2 %v8184_v41  ;;  %v8417_v61 = vld [vmem:[%s15166_s4 + $0x1f0] sm:$0xf0]  ;;  %v9879_v41 = vld [vmem:[%s15166_s4 + $0x16c] sm:$0xf0] }
 0x5fa   :  { %10285 = vpow2.f32 %v8171_v18  ;;  %v9892_v18 = vld [vmem:[%s15166_s4 + $0x1dc] sm:$0xf]  ;;  %v8420_v46 = vor.u32 %v9891_v63, %v8417_v61 }
 0x5fb   :  { %v12917_v58 = vpop.f32.mrf.mxu2  ;;  %v3297_v3 = vpop.f32.mrf.mxu3  ;;  %v8428_v44 = vor.u32 %v9892_v18, %v8425_v57  ;;  %v9888_v57 = vld [vmem:[%s15166_s4 + $0x1b4] sm:$0xf0] }
 0x5fc   :  { %v3304_v9 = vadd.f32 %v3297_v3, %v11195_v4  ;;  %v3260_v34 = vpop.f32.mrf.mxu0  ;;  %v3273_v21 = vpop.f32.mrf.mxu1  ;;  %v9842_v4 = vld [vmem:[%s15166_s4 + $0x4c] sm:$0xf]  ;;  %v3303_v30 = vadd.f32 %v12917_v58, %v11225_v47  ;;  %3950 = vmatpush.bf16.msra.mxu1 %v8420_v46  ;;  %v9884_v47 = vld [vmem:[%s15166_s4 + $0x19c] sm:$0xf]  ;;  %v8391_v46 = vld [vmem:[%s15166_s4 + $0x198] sm:$0xf] }
 0x5fd   :  { %v8220_v56 = vor.u32 %v9842_v4, %v8217_v43  ;;  %3811 = vmatpush.bf16.msrb.mxu0 %v8208_v1  ;;  %v8393_v58 = vld [vmem:[%s15166_s4 + $0x1b8] sm:$0xf0]  ;;  %v8388_v34 = vor.u32 %v9883_v10, %v8385_v51  ;;  %3979 = vmatpush.bf16.msra.mxu2 %v8424_v48 }
 0x5fe   :  { %v8172_v27 = vmul.f32 -1.442695, %v3304_v9  ;;  %v8384_v9 = vor.u32 %v9887_v62, %v8383_v39  ;;  %v8396_v21 = vor.u32 %v9884_v47, %v8393_v58  ;;  %v8319_v39 = vld [vmem:[%s15166_s4 + $0x110] sm:$0xf]  ;;  %v8321_v62 = vld [vmem:[%s15166_s4 + $0x130] sm:$0xf0] }
 0x5ff   :  { %v10284_v20 = vpop.eup %10283  ;;  %3898 = vmatpush.bf16.msra.mxu3 %v8220_v56  ;;  %v8359_v47 = vld [vmem:[%s15166_s4 + $0x158] sm:$0xf] }
 0x600   :  { %v10286_v31 = vpop.eup %10285  ;;  %v12953_v40 = vadd.f32 1.0, %v10284_v20  ;;  %10287 = vpow2.f32 %v8172_v27  ;;  %3951 = vmatpush.bf16.msra.mxu1 %v8388_v34  ;;  %v9880_v58 = vld [vmem:[%s15166_s4 + $0x174] sm:$0xf0] }
 0x601   :  { %v12961_v35 = vadd.f32 1.0, %v10286_v31  ;;  %3812 = vmatpush.bf16.msrb.mxu0 %v8176_v5 }
 0x602   :  { %10289 = vrcp.f32 %v12953_v40  ;;  %v3320_v15 = vand.u32 2147483648, %v12953_v40  ;;  %v3318_v36 = vand.u32 2147483647, %v12953_v40  ;;  %vm3314_vm8 = vweird.f32 %v12953_v40 }
 0x603   :  { %10291 = vrcp.f32 %v12961_v35  ;;  %v3286_v6 = vpop.f32.mrf.mxu2  ;;  %v3299_v11 = vpop.f32.mrf.mxu3  ;;  %3899 = vmatpush.bf16.msra.mxu3 %v8188_v13  ;;  %v3339_v25 = vand.u32 2147483648, %v12961_v35  ;;  %v3337_v43 = vand.u32 2147483647, %v12961_v35  ;;  %vm3333_vm9 = vweird.f32 %v12961_v35  ;;  %v9875_v13 = vld [vmem:[%s15166_s4 + $0x154] sm:$0xf] }
 0x604   :  { %v3321_v20 = vor.u32 1.1754944e-38, %v3320_v15  ;;  %vm3319_vm12 = vcmp.eq.f32.partialorder %v3318_v36, 8.507059e+37  ;;  %v8351_v11 = vld [vmem:[%s15166_s4 + $0x150] sm:$0xf]  ;;  %v8356_v61 = vor.u32 %v9875_v13, %v8353_v23  ;;  %v8225_v23 = vld [vmem:[%s15166_s4 + $0x70] sm:$0xf0] }
 0x605   :  { %3921 = vmatpush.bf16.msra.mxu0 %v8416_v55  ;;  %v3340_v54 = vor.u32 1.1754944e-38, %v3339_v25  ;;  %vm3338_vm13 = vcmp.eq.f32.partialorder %v3337_v43, 8.507059e+37  ;;  %v8361_v55 = vld [vmem:[%s15166_s4 + $0x178] sm:$0xf0]  ;;  %v9847_v13 = vld [vmem:[%s15166_s4 + $0x6c] sm:$0xf0] }
 0x606   :  { %v10288_v52 = vpop.eup %10287  ;;  %3952 = vmatpush.bf16.msra.mxu1 %v8356_v61  ;;  %v9860_v43 = vld [vmem:[%s15166_s4 + $0xdc] sm:$0xf] }
 0x607   :  { %v12989_v19 = vadd.f32 1.0, %v10288_v52  ;;  %4008 = vmatpush.bf16.msrb.mxu3 %v8428_v44  ;;  %v9876_v52 = vld [vmem:[%s15166_s4 + $0x15c] sm:$0xf]  ;;  %v9867_v44 = vld [vmem:[%s15166_s4 + $0x114] sm:$0xf] }
 0x608   :  { %v10290_v17 = vpop.eup %10289  ;;  %v8364_v18 = vor.u32 %v9876_v52, %v8361_v55  ;;  %v8324_v51 = vor.u32 %v9867_v44, %v8321_v62  ;;  %v8263_v52 = vld [vmem:[%s15166_s4 + $0x98] sm:$0xf]  ;;  %v8193_v44 = vld [vmem:[%s15166_s4 + $0x30] sm:$0xf0] }
 0x609   :  { %v10292_v2 = vpop.eup %10291  ;;  %v3310_v3 = vmul.f32 %v10290_v17, %v12953_v40  ;;  %10293 = vrcp.f32 %v12989_v19  ;;  %vm3315_vm5 = vweird.f32 %v10290_v17  ;;  %3922 = vmatpush.bf16.msra.mxu0 %v8384_v9  ;;  %v3357_v59 = vand.u32 2147483647, %v12989_v19  ;;  %v9856_v55 = vld [vmem:[%s15166_s4 + $0xb4] sm:$0xf0] }
 0x60a   :  { %v3329_v60 = vmul.f32 %v10292_v2, %v12961_v35  ;;  %10295 = vtanh.f32 %v3303_v30  ;;  %vm3334_vm6 = vweird.f32 %v10292_v2  ;;  %vm3316_vm10 = vmor %vm3314_vm8, %vm3315_vm5  ;;  %v3359_v6 = vand.u32 2147483648, %v12989_v19  ;;  %v9871_v30 = vld [vmem:[%s15166_s4 + $0x12c] sm:$0xf0]  ;;  %3953 = vmatpush.bf16.msra.mxu1 %v8324_v51  ;;  %v8231_v51 = vld [vmem:[%s15166_s4 + $0x58] sm:$0xf] }
 0x60b   :  { %v3311_v8 = vsub.f32 1.0, %v3310_v3  ;;  %4009 = vmatpush.bf16.msrb.mxu3 %v8396_v21  ;;  %vm3335_vm11 = vmor %vm3333_vm9, %vm3334_vm6  ;;  %vm3353_vm15 = vweird.f32 %v12989_v19  ;;  %v8320_v10 = vor.u32 %v9871_v30, %v8319_v39  ;;  %v8329_v3 = vld [vmem:[%s15166_s4 + $0x138] sm:$0xf0]  ;;  %vm3358_vm1 = vcmp.eq.f32.partialorder %v3357_v59, 8.507059e+37  ;;  %v9835_v30 = vld [vmem:[%s15166_s4 + $0x14] sm:$0xf] }
 0x60c   :  { %v3330_v1 = vsub.f32 1.0, %v3329_v60  ;;  %v8360_v60 = vor.u32 %v9880_v58, %v8359_v47  ;;  %v3360_v7 = vor.u32 1.1754944e-38, %v3359_v6  ;;  %v3392_v21 = vsel %vm3372_vm7, %v11730_v29, %v12767_v14  ;;  %v9864_v6 = vld [vmem:[%s15166_s4 + $0xf4] sm:$0xf0]  ;;  %v9836_v58 = vld [vmem:[%s15166_s4 + $0x1c] sm:$0xf] }
 0x60d   :  { %v3312_v49 = vmul.f32 %v10290_v17, %v3311_v8  ;;  %v8264_v61 = vor.u32 %v9856_v55, %v8263_v52  ;;  %v8497_v52 = vld [vmem:[%s15167_s6 + $0x90] sm:$0xf0] }
 0x60e   :  { %v3331_v4 = vmul.f32 %v10292_v2, %v3330_v1  ;;  %v3397_v1 = vsel %vm3372_vm7, %v12767_v14, %v11730_v29  ;;  %v8287_v29 = vld [vmem:[%s15166_s4 + $0xd0] sm:$0xf]  ;;  %v9859_v14 = vld [vmem:[%s15166_s4 + $0xd4] sm:$0xf] }
 0x60f   :  { %v13027_v27 = vpop.eup %10293  ;;  %v3313_v56 = vadd.f32 %v10290_v17, %v3312_v49  ;;  %4010 = vmatpush.bf16.msrb.mxu3 %v8364_v18  ;;  %v9844_v18 = vld [vmem:[%s15166_s4 + $0x5c] sm:$0xf] }
 0x610   :  { %v3332_v50 = vadd.f32 %v10292_v2, %v3331_v4  ;;  %v3349_v12 = vmul.f32 %v13027_v27, %v12989_v19  ;;  %v10296_v5 = vpop.eup %10295  ;;  %vm3354_vm14 = vweird.f32 %v13027_v27  ;;  %v8289_v4 = vld [vmem:[%s15166_s4 + $0xf0] sm:$0xf0] }
 0x611   :  { %v3317_v31 = vsel %vm3316_vm10, %v10290_v17, %v3313_v56  ;;  %v8392_v17 = vor.u32 %v9888_v57, %v8391_v46  ;;  %vm3355_vm0 = vmor %vm3353_vm15, %vm3354_vm14  ;;  %v8292_v56 = vor.u32 %v9859_v14, %v8289_v4  ;;  %v8233_v46 = vld [vmem:[%s15166_s4 + $0x78] sm:$0xf0]  ;;  %v8191_v57 = vld [vmem:[%s15166_s4 + $0x10] sm:$0xf] }
 0x612   :  { %v3322_v22 = vsel %vm3319_vm12, %v3321_v20, %v3317_v31  ;;  %v3336_v24 = vsel %vm3335_vm11, %v10292_v2, %v3332_v50  ;;  %v3350_v16 = vsub.f32 1.0, %v3349_v12  ;;  %v9868_v2 = vld [vmem:[%s15166_s4 + $0x11c] sm:$0xf]  ;;  %v8327_v50 = vld [vmem:[%s15166_s4 + $0x118] sm:$0xf]  ;;  %v8236_v39 = vor.u32 %v9844_v18, %v8233_v46 }
 0x613   :  { %v3341_v32 = vsel %vm3338_vm13, %v3340_v54, %v3336_v24  ;;  %v3364_v53 = vmul.f32 %v10296_v5, %v3322_v22  ;;  %3980 = vmatpush.bf16.msra.mxu2 %v8392_v17  ;;  %v8332_v19 = vor.u32 %v9868_v2, %v8329_v3  ;;  %v9872_v12 = vld [vmem:[%s15166_s4 + $0x134] sm:$0xf0]  ;;  %v8255_v54 = vld [vmem:[%s15166_s4 + $0x90] sm:$0xf]  ;;  %v9851_v22 = vld [vmem:[%s15166_s4 + $0x94] sm:$0xf]  ;;  %3954 = vmatpush.bf16.msra.mxu1 %v8292_v56 }
 0x614   :  { %v3363_v40 = vmul.f32 %v3341_v32, %v12764_v0  ;;  %v3351_v35 = vmul.f32 %v13027_v27, %v3350_v16  ;;  %v8352_v0 = vor.u32 %v9879_v41, %v8351_v11  ;;  %v8328_v31 = vor.u32 %v9872_v12, %v8327_v50  ;;  %v9855_v5 = vld [vmem:[%s15166_s4 + $0xac] sm:$0xf0]  ;;  %v8257_v24 = vld [vmem:[%s15166_s4 + $0xb0] sm:$0xf0]  ;;  %v9848_v2 = vld [vmem:[%s15166_s4 + $0x74] sm:$0xf0] }
 0x615   :  { %4011 = vmatpush.bf16.msrb.mxu3 %v8332_v19  ;;  %v8256_v16 = vor.u32 %v9855_v5, %v8255_v54  ;;  %v8260_v32 = vor.u32 %v9851_v22, %v8257_v24  ;;  %v8223_v41 = vld [vmem:[%s15166_s4 + $0x50] sm:$0xf]  ;;  %v8199_v3 = vld [vmem:[%s15166_s4 + $0x18] sm:$0xf]  ;;  %v8232_v47 = vor.u32 %v9848_v2, %v8231_v51  ;;  %v8527_v14 = vld [vmem:[%s15167_s6 + $0xc0] sm:$0xf] }
 0x616   :  { %v3365_v26 = vadd.f32 %v3364_v53, %v3363_v40  ;;  %v3352_v63 = vadd.f32 %v13027_v27, %v3351_v35  ;;  %3923 = vmatpush.bf16.msra.mxu0 %v8352_v0  ;;  %v9852_v53 = vld [vmem:[%s15166_s4 + $0x9c] sm:$0xf]  ;;  %v8295_v35 = vld [vmem:[%s15166_s4 + $0xd8] sm:$0xf]  ;;  %v8224_v0 = vor.u32 %v9847_v13, %v8223_v41  ;;  %v9839_v17 = vld [vmem:[%s15166_s4 + $0x2c] sm:$0xf0] }
 0x617   :  { %3981 = vmatpush.bf16.msra.mxu2 %v8360_v60  ;;  %v8265_v40 = vld [vmem:[%s15166_s4 + $0xb8] sm:$0xf0]  ;;  %v8296_v11 = vor.u32 %v9864_v6, %v8295_v35  ;;  %3955 = vmatpush.bf16.msra.mxu1 %v8260_v32  ;;  %v8192_v62 = vor.u32 %v9839_v17, %v8191_v57  ;;  %v9840_v19 = vld [vmem:[%s15166_s4 + $0x34] sm:$0xf0]  ;;  %v9921_v4 = vld [vmem:[%s15167_s6 + $0xc4] sm:$0xf] }
 0x618   :  { %10297 = vtanh.f32 %v3365_v26  ;;  %v3356_v42 = vsel %vm3355_vm0, %v13027_v27, %v3352_v63  ;;  %v8297_v27 = vld [vmem:[%s15166_s4 + $0xf8] sm:$0xf0]  ;;  %v8268_v59 = vor.u32 %v9852_v53, %v8265_v40  ;;  %v9843_v26 = vld [vmem:[%s15166_s4 + $0x54] sm:$0xf]  ;;  %v9922_v56 = vld [vmem:[%s15167_s6 + $0xcc] sm:$0xf] }
 0x619   :  { %v3361_v9 = vsel %vm3358_vm1, %v3360_v7, %v3356_v42  ;;  %v8300_v20 = vor.u32 %v9860_v43, %v8297_v27  ;;  %v8228_v63 = vor.u32 %v9843_v26, %v8225_v23  ;;  %v8201_v42 = vld [vmem:[%s15166_s4 + $0x38] sm:$0xf0]  ;;  %v8200_v7 = vor.u32 %v9840_v19, %v8199_v3  ;;  %v8529_v27 = vld [vmem:[%s15167_s6 + $0xd0] sm:$0xf0]  ;;  %v8551_v54 = vld [vmem:[%s15167_s6 + $0xe8] sm:$0xf] }
 0x61a   :  { %3924 = vmatpush.bf16.msra.mxu0 %v8320_v10  ;;  %v8196_v10 = vor.u32 %v9835_v30, %v8193_v44  ;;  %v8204_v60 = vor.u32 %v9836_v58, %v8201_v42  ;;  %v8532_v50 = vor.u32 %v9921_v4, %v8529_v27  ;;  %v8511_v22 = vld [vmem:[%s15167_s6 + $0xa0] sm:$0xf]  ;;  %v9919_v24 = vld [vmem:[%s15167_s6 + $0xac] sm:$0xf0]  ;;  %v8513_v53 = vld [vmem:[%s15167_s6 + $0xb0] sm:$0xf0] }
 0x61b   :  { %4012 = vmatpush.bf16.msrb.mxu3 %v8300_v20  ;;  %3982 = vmatpush.bf16.msra.mxu2 %v8328_v31  ;;  %v8537_v20 = vld [vmem:[%s15167_s6 + $0xd8] sm:$0xf0]  ;;  %v9928_v31 = vld [vmem:[%s15167_s6 + $0xf4] sm:$0xf0]  ;;  %v8512_v32 = vor.u32 %v9919_v24, %v8511_v22  ;;  %v9918_v40 = vld [vmem:[%s15167_s6 + $0xac] sm:$0xf] }
 0x61c   :  { %3956 = vmatpush.bf16.msra.mxu1 %v8228_v63  ;;  %v8540_v12 = vor.u32 %v9922_v56, %v8537_v20  ;;  %v8552_v5 = vor.u32 %v9928_v31, %v8551_v54  ;;  %v8521_v35 = vld [vmem:[%s15167_s6 + $0xb8] sm:$0xf0]  ;;  %v9924_v41 = vld [vmem:[%s15167_s6 + $0xd4] sm:$0xf0]  ;;  %v8495_v13 = vld [vmem:[%s15167_s6 + $0x80] sm:$0xf] }
 0x61d   :  { %v8524_v6 = vor.u32 %v9918_v40, %v8521_v35  ;;  %v9913_v23 = vld [vmem:[%s15167_s6 + $0x84] sm:$0xf]  ;;  %v8505_v18 = vld [vmem:[%s15167_s6 + $0x98] sm:$0xf0]  ;;  %v8519_v46 = vld [vmem:[%s15167_s6 + $0xa8] sm:$0xf] }
 0x61e   :  { %v10298_v8 = vpop.eup %10297  ;;  %v8500_v63 = vor.u32 %v9913_v23, %v8497_v52  ;;  %v8479_v30 = vld [vmem:[%s15167_s6 + $0x60] sm:$0xf]  ;;  %v9911_v44 = vld [vmem:[%s15167_s6 + $0x6c] sm:$0xf0]  ;;  %v8481_v51 = vld [vmem:[%s15167_s6 + $0x70] sm:$0xf0] }
 0x61f   :  { %v3367_v34 = vmul.f32 %v10298_v8, %v3361_v9  ;;  %4013 = vmatpush.bf16.msrb.mxu3 %v8268_v59  ;;  %3983 = vmatpush.bf16.msra.mxu2 %v8296_v11  ;;  %v8543_v8 = vld [vmem:[%s15167_s6 + $0xe0] sm:$0xf]  ;;  %v9927_v9 = vld [vmem:[%s15167_s6 + $0xec] sm:$0xf0]  ;;  %v8535_v11 = vld [vmem:[%s15167_s6 + $0xc8] sm:$0xf] }
 0x620   :  { %3957 = vmatpush.bf16.msra.mxu1 %v8196_v10  ;;  %v8536_v26 = vor.u32 %v9924_v41, %v8535_v11  ;;  %v8480_v10 = vor.u32 %v9911_v44, %v8479_v30  ;;  %v8489_v2 = vld [vmem:[%s15167_s6 + $0x78] sm:$0xf0]  ;;  %v8503_v19 = vld [vmem:[%s15167_s6 + $0x88] sm:$0xf]  ;;  %v9916_v58 = vld [vmem:[%s15167_s6 + $0x94] sm:$0xf0] }
 0x621   :  { %v3391_v15 = vsel %vm3372_vm7, %v11523_v38, %v3367_v34  ;;  %v3398_v48 = vsel %vm3372_vm7, %v3367_v34, %v11523_v38  ;;  %v9863_v38 = vld [vmem:[%s15166_s4 + $0xec] sm:$0xf0]  ;;  %v9925_v34 = vld [vmem:[%s15167_s6 + $0xe4] sm:$0xf]  ;;  %v8463_v42 = vld [vmem:[%s15167_s6 + $0x40] sm:$0xf] }
 0x622   :  { %v13105_v25 = vpack.c.bf16 %v3392_v21, %v3391_v15  ;;  %v13107_v49 = vpack.c.bf16 %v3398_v48, %v3397_v1  ;;  %v8288_v36 = vor.u32 %v9863_v38, %v8287_v29  ;;  %v8544_v21 = vor.u32 %v9927_v9, %v8543_v8  ;;  %v8545_v1 = vld [vmem:[%s15167_s6 + $0xf0] sm:$0xf0]  ;;  %v9926_v15 = vld [vmem:[%s15167_s6 + $0xec] sm:$0xf]  ;;  %v8553_v48 = vld [vmem:[%s15167_s6 + $0xf8] sm:$0xf0] }
 0x623   :  { %3984 = vmatpush.bf16.msra.mxu2 %v8264_v61  ;;  %4014 = vmatpush.bf16.msrb.mxu3 %v8236_v39  ;;  %v8548_v29 = vor.u32 %v9925_v34, %v8545_v1  ;;  %v8556_v38 = vor.u32 %v9926_v15, %v8553_v48  ;;  %v9914_v61 = vld [vmem:[%s15167_s6 + $0x8c] sm:$0xf]  ;;  %v9920_v39 = vld [vmem:[%s15167_s6 + $0xb4] sm:$0xf0]  ;;  %v9905_v8 = vld [vmem:[%s15167_s6 + $0x44] sm:$0xf] }
 0x624   :  { %3813 = vmatmul.bf16.vlgmr.msrb.gmra.mxu0 %v13105_v25  ;;  %3842 = vmatmul.bf16.vlgmr.msrb.gmra.mxu1 %v13105_v25  ;;  %v8508_v57 = vor.u32 %v9914_v61, %v8505_v18  ;;  %v8520_v17 = vor.u32 %v9920_v39, %v8519_v46  ;;  %v8465_v9 = vld [vmem:[%s15167_s6 + $0x50] sm:$0xf0]  ;;  %v9906_v1 = vld [vmem:[%s15167_s6 + $0x4c] sm:$0xf]  ;;  %v8473_v15 = vld [vmem:[%s15167_s6 + $0x58] sm:$0xf0] }
 0x625   :  { %3871 = vmatmul.bf16.vlgmr.msrb.gmra.mxu2 %v13105_v25  ;;  %3900 = vmatmul.bf16.vlgmr.msra.gmra.mxu3 %v13105_v25  ;;  %v8487_v48 = vld [vmem:[%s15167_s6 + $0x68] sm:$0xf]  ;;  %v9903_v4 = vld [vmem:[%s15167_s6 + $0x2c] sm:$0xf0]  ;;  %v8449_v56 = vld [vmem:[%s15167_s6 + $0x30] sm:$0xf0] }
 0x626   :  { %3925 = vmatpush.bf16.msra.mxu0 %v8288_v36  ;;  %v9923_v36 = vld [vmem:[%s15167_s6 + $0xcc] sm:$0xf0]  ;;  %4318 = vmatpush.bf16.msrb.mxu1 %v8548_v29  ;;  %v8476_v29 = vor.u32 %v9906_v1, %v8473_v15  ;;  %v9908_v20 = vld [vmem:[%s15167_s6 + $0x54] sm:$0xf0]  ;;  %v9902_v54 = vld [vmem:[%s15167_s6 + $0x2c] sm:$0xf] }
 0x627   :  { %3985 = vmatpush.bf16.msra.mxu2 %v8232_v47  ;;  %4015 = vmatpush.bf16.msrb.mxu3 %v8204_v60  ;;  %v8528_v43 = vor.u32 %v9923_v36, %v8527_v14  ;;  %v8504_v60 = vor.u32 %v9916_v58, %v8503_v19  ;;  %v8447_v36 = vld [vmem:[%s15167_s6 + $0x20] sm:$0xf]  ;;  %v8457_v31 = vld [vmem:[%s15167_s6 + $0x38] sm:$0xf0]  ;;  %v9899_v24 = vld [vmem:[%s15167_s6 + $0xc] sm:$0xf0] }
 0x628   :  { %v8448_v27 = vor.u32 %v9903_v4, %v8447_v36  ;;  %v8460_v22 = vor.u32 %v9902_v54, %v8457_v31  ;;  %v8455_v35 = vld [vmem:[%s15167_s6 + $0x28] sm:$0xf]  ;;  %v9900_v41 = vld [vmem:[%s15167_s6 + $0x14] sm:$0xf0] }
 0x629   :  { %v8439_v11 = vld [vmem:[%s15167_s6 + $0x8] sm:$0xf] }
 0x62a   :  { %3926 = vmatpush.bf16.msra.mxu0 %v8256_v16  ;;  %4319 = vmatpush.bf16.msrb.mxu1 %v8532_v50  ;;  %v9917_v16 = vld [vmem:[%s15167_s6 + $0xa4] sm:$0xf] }
 0x62b   :  { %3986 = vmatpush.bf16.msra.mxu2 %v8200_v7  ;;  %4344 = vmatpush.bf16.msra.mxu3 %v8556_v38  ;;  %v8516_v59 = vor.u32 %v9917_v16, %v8513_v53  ;;  %v9907_v7 = vld [vmem:[%s15167_s6 + $0x4c] sm:$0xf0]  ;;  %v9912_v38 = vld [vmem:[%s15167_s6 + $0x74] sm:$0xf0]  ;;  %v9897_v16 = vld [vmem:[%s15167_s6 + $0x4] sm:$0xf] }
 0x62c   :  { %v8464_v34 = vor.u32 %v9907_v7, %v8463_v42  ;;  %v8488_v14 = vor.u32 %v9912_v38, %v8487_v48 }
 0x62e   :  { %3927 = vmatpush.bf16.msra.mxu0 %v8224_v0  ;;  %v9915_v0 = vld [vmem:[%s15167_s6 + $0x8c] sm:$0xf0]  ;;  %4320 = vmatpush.bf16.msrb.mxu1 %v8516_v59  ;;  %v9904_v59 = vld [vmem:[%s15167_s6 + $0x34] sm:$0xf0] }
 0x62f   :  { %4331 = vmatpush.bf16.msrb.mxu2 %v8552_v5  ;;  %4345 = vmatpush.bf16.msra.mxu3 %v8540_v12  ;;  %v8496_v55 = vor.u32 %v9915_v0, %v8495_v13  ;;  %v8431_v5 = vld [vmem:[%s15167_s6] sm:$0xf]  ;;  %v9898_v13 = vld [vmem:[%s15167_s6 + $0xc] sm:$0xf]  ;;  %v8441_v0 = vld [vmem:[%s15167_s6 + $0x18] sm:$0xf0] }
 0x630   :  { %v8432_v53 = vor.u32 %v9899_v24, %v8431_v5  ;;  %v8444_v23 = vor.u32 %v9898_v13, %v8441_v0 }
 0x632   :  { %3928 = vmatpush.bf16.msra.mxu0 %v8192_v62  ;;  %4321 = vmatpush.bf16.msrb.mxu1 %v8500_v63  ;;  %v9909_v62 = vld [vmem:[%s15167_s6 + $0x64] sm:$0xf] }
 0x633   :  { %4346 = vmatpush.bf16.msra.mxu3 %v8524_v6  ;;  %4332 = vmatpush.bf16.msrb.mxu2 %v8536_v26  ;;  %v8484_v3 = vor.u32 %v9909_v62, %v8481_v51  ;;  %v8456_v6 = vor.u32 %v9904_v59, %v8455_v35  ;;  %v8440_v26 = vor.u32 %v9900_v41, %v8439_v11 }
 0x634   :  { %3818 = vmatmul.bf16.gmra.mxu0 %v12563_v33  ;;  %3847 = vmatmul.bf16.gmra.mxu1 %v12563_v33 }
 0x635   :  { %3876 = vmatmul.bf16.gmra.mxu2 %v12563_v33  ;;  %3905 = vmatmul.bf16.gmra.mxu3 %v12563_v33 }
 0x636   :  { %4305 = vmatpush.bf16.msrb.mxu0 %v8544_v21  ;;  %4322 = vmatpush.bf16.msrb.mxu1 %v8484_v3  ;;  %v8468_v21 = vor.u32 %v9905_v8, %v8465_v9 }
 0x637   :  { %4347 = vmatpush.bf16.msra.mxu3 %v8508_v57  ;;  %4333 = vmatpush.bf16.msrb.mxu2 %v8520_v17 }
 0x63a   :  { %4306 = vmatpush.bf16.msrb.mxu0 %v8528_v43  ;;  %4323 = vmatpush.bf16.msrb.mxu1 %v8468_v21  ;;  %v9901_v43 = vld [vmem:[%s15167_s6 + $0x24] sm:$0xf] }
 0x63b   :  { %4334 = vmatpush.bf16.msrb.mxu2 %v8504_v60  ;;  %v8452_v50 = vor.u32 %v9901_v43, %v8449_v56 }
 0x63e   :  { %4307 = vmatpush.bf16.msrb.mxu0 %v8512_v32  ;;  %v8433_v32 = vld [vmem:[%s15167_s6 + $0x10] sm:$0xf0]  ;;  %4324 = vmatpush.bf16.msrb.mxu1 %v8452_v50 }
 0x63f   :  { %4335 = vmatpush.bf16.msrb.mxu2 %v8488_v14  ;;  %v8436_v40 = vor.u32 %v9897_v16, %v8433_v32 }
 0x642   :  { %4308 = vmatpush.bf16.msrb.mxu0 %v8496_v55  ;;  %4325 = vmatpush.bf16.msrb.mxu1 %v8436_v40 }
 0x644   :  { %3823 = vmatmul.bf16.gmra.mxu0 %v12565_v28  ;;  %3852 = vmatmul.bf16.gmra.mxu1 %v12565_v28 }
 0x645   :  { %3881 = vmatmul.bf16.gmra.mxu2 %v12565_v28  ;;  %3910 = vmatmul.bf16.gmra.mxu3 %v12565_v28 }
 0x646   :  { %4309 = vmatpush.bf16.msrb.mxu0 %v8480_v10 }
 0x64a   :  { %4310 = vmatpush.bf16.msrb.mxu0 %v8464_v34 }
 0x64e   :  { %4311 = vmatpush.bf16.msrb.mxu0 %v8448_v27 }
 0x652   :  { %4312 = vmatpush.bf16.msrb.mxu0 %v8432_v53 }
 0x654   :  { %3828 = vmatmul.bf16.gmra.mxu0 %v13107_v49  ;;  %3857 = vmatmul.bf16.gmra.mxu1 %v13107_v49 }
 0x655   :  { %3886 = vmatmul.bf16.gmra.mxu2 %v13107_v49  ;;  %3915 = vmatmul.bf16.gmra.mxu3 %v13107_v49 }
 0x664   :  { %3929 = vmatmul.bf16.vlgmr.msra.gmra.mxu0 %v13105_v25  ;;  %3958 = vmatmul.bf16.vlgmr.msra.gmra.mxu1 %v13105_v25 }
 0x665   :  { %3987 = vmatmul.bf16.vlgmr.msra.gmra.mxu2 %v13105_v25  ;;  %4016 = vmatmul.bf16.vlgmr.msrb.gmra.mxu3 %v13105_v25  ;;  %v9910_v25 = vld [vmem:[%s15167_s6 + $0x6c] sm:$0xf] }
 0x666   :  { %v8492_v47 = vor.u32 %v9910_v25, %v8489_v2 }
 0x668   :  { %4348 = vmatpush.bf16.msra.mxu3 %v8492_v47 }
 0x66c   :  { %4349 = vmatpush.bf16.msra.mxu3 %v8476_v29 }
 0x670   :  { %4350 = vmatpush.bf16.msra.mxu3 %v8460_v22 }
 0x674   :  { %3934 = vmatmul.bf16.gmra.mxu0 %v12563_v33  ;;  %3963 = vmatmul.bf16.gmra.mxu1 %v12563_v33 }
 0x675   :  { %3992 = vmatmul.bf16.gmra.mxu2 %v12563_v33  ;;  %4021 = vmatmul.bf16.gmra.mxu3 %v12563_v33  ;;  %v8471_v33 = vld [vmem:[%s15167_s6 + $0x48] sm:$0xf] }
 0x676   :  { %v8472_v12 = vor.u32 %v9908_v20, %v8471_v33  ;;  %4351 = vmatpush.bf16.msra.mxu3 %v8444_v23 }
 0x678   :  { %4336 = vmatpush.bf16.msrb.mxu2 %v8472_v12 }
 0x67c   :  { %4337 = vmatpush.bf16.msrb.mxu2 %v8456_v6 }
 0x680   :  { %4338 = vmatpush.bf16.msrb.mxu2 %v8440_v26 }
 0x684   :  { %3939 = vmatmul.bf16.gmra.mxu0 %v12565_v28  ;;  %3968 = vmatmul.bf16.gmra.mxu1 %v12565_v28 }
 0x685   :  { %3997 = vmatmul.bf16.gmra.mxu2 %v12565_v28  ;;  %4026 = vmatmul.bf16.gmra.mxu3 %v12565_v28 }
 0x694   :  { %3944 = vmatmul.bf16.gmra.mxu0 %v13107_v49  ;;  %3973 = vmatmul.bf16.gmra.mxu1 %v13107_v49 }
 0x695   :  { %4002 = vmatmul.bf16.gmra.mxu2 %v13107_v49  ;;  %4031 = vmatmul.bf16.gmra.mxu3 %v13107_v49  ;;  %v3467_v49 = vld [vmem:[%s15168_s5] sm:$0xff] }
 0x696   :  { %v13454_v46 = vperm.slane %v3467_v49, 0  ;;  %v13456_v57 = vperm.slane %v3467_v49, 1  ;;  %v13468_v10 = vperm.slane %v3467_v49, 2  ;;  %v13470_v51 = vperm.slane %v3467_v49, 3 }
 0x697   :  { %v13502_v5 = vperm.slane %v3467_v49, 4  ;;  %v13504_v22 = vperm.slane %v3467_v49, 5  ;;  %v13514_v13 = vperm.slane %v3467_v49, 6  ;;  %v13516_v26 = vperm.slane %v3467_v49, 7 }
 0x6a1   :  { %v13435_v52 = vpop.f32.mrf.mxu0  ;;  %v13437_v55 = vpop.f32.mrf.mxu1 }
 0x6a4   :  { %4313 = vmatmul.bf16.vlgmr.msrb.gmra.mxu0 %v10427_v37  ;;  %4326 = vmatmul.bf16.vlgmr.msrb.gmra.mxu1 %v10427_v37 }
 0x6a5   :  { %4339 = vmatmul.bf16.vlgmr.msrb.gmra.mxu2 %v10427_v37  ;;  %4352 = vmatmul.bf16.vlgmr.msra.gmra.mxu3 %v10427_v37 }
 0x6a8   :  { %v13443_v28 = vpop.f32.mrf.mxu2  ;;  %v13445_v63 = vpop.f32.mrf.mxu3 }
 0x6a9   :  { %v13447_v61 = vpop.f32.mrf.mxu0  ;;  %v13449_v18 = vpop.f32.mrf.mxu1 }
 0x6b0   :  { %v13458_v39 = vpop.f32.mrf.mxu2  ;;  %v13460_v17 = vpop.f32.mrf.mxu3 }
 0x6b1   :  { %v3819_v37 = vpop.f32.mrf.mxu0  ;;  %v3848_v30 = vpop.f32.mrf.mxu1 }
 0x6b2   :  { %v13463_v44 = vadd.f32 %v3819_v37, %v13454_v46  ;;  %v13466_v62 = vadd.f32 %v3848_v30, %v13456_v57 }
 0x6b8   :  { %v3877_v25 = vpop.f32.mrf.mxu2  ;;  %v3906_v2 = vpop.f32.mrf.mxu3 }
 0x6b9   :  { %v13473_v3 = vadd.f32 %v3877_v25, %v13468_v10  ;;  %v13476_v47 = vadd.f32 %v3906_v2, %v13470_v51  ;;  %v13478_v19 = vpop.f32.mrf.mxu0  ;;  %v13480_v58 = vpop.f32.mrf.mxu1 }
 0x6c0   :  { %v13482_v42 = vpop.f32.mrf.mxu2  ;;  %v13484_v60 = vpop.f32.mrf.mxu3 }
 0x6c1   :  { %v3824_v7 = vpop.f32.mrf.mxu0  ;;  %v3853_v8 = vpop.f32.mrf.mxu1 }
 0x6c2   :  { %v13487_v9 = vadd.f32 %v3824_v7, %v13454_v46  ;;  %v13490_v34 = vadd.f32 %v3853_v8, %v13456_v57 }
 0x6c8   :  { %v3882_v21 = vpop.f32.mrf.mxu2  ;;  %v3911_v1 = vpop.f32.mrf.mxu3 }
 0x6c9   :  { %v13493_v15 = vadd.f32 %v3882_v21, %v13468_v10  ;;  %v13496_v48 = vadd.f32 %v3911_v1, %v13470_v51  ;;  %v3826_v29 = vpop.f32.mrf.mxu0  ;;  %v3855_v38 = vpop.f32.mrf.mxu1 }
 0x6d0   :  { %v3884_v14 = vpop.f32.mrf.mxu2  ;;  %v3913_v36 = vpop.f32.mrf.mxu3 }
 0x6d1   :  { %v3829_v4 = vpop.f32.mrf.mxu0  ;;  %v3858_v43 = vpop.f32.mrf.mxu1 }
 0x6d2   :  { %v3830_v27 = vadd.f32 %v3829_v4, %v13454_v46  ;;  %v3859_v56 = vadd.f32 %v3858_v43, %v13456_v57 }
 0x6d8   :  { %v3887_v33 = vpop.f32.mrf.mxu2  ;;  %v3916_v20 = vpop.f32.mrf.mxu3 }
 0x6d9   :  { %v3888_v50 = vadd.f32 %v3887_v33, %v13468_v10  ;;  %v3917_v12 = vadd.f32 %v3916_v20, %v13470_v51  ;;  %v3831_v54 = vpop.f32.mrf.mxu0  ;;  %v3860_v31 = vpop.f32.mrf.mxu1 }
 0x6da   :  { %v3832_v40 = vadd.f32 %v3831_v54, %v13454_v46  ;;  %v3861_v35 = vadd.f32 %v3860_v31, %v13456_v57 }
 0x6e0   :  { %v3889_v24 = vpop.f32.mrf.mxu2  ;;  %v3918_v16 = vpop.f32.mrf.mxu3 }
 0x6e1   :  { %v3930_v32 = vpop.f32.mrf.mxu0  ;;  %v3959_v53 = vpop.f32.mrf.mxu1  ;;  %v3890_v37 = vadd.f32 %v3889_v24, %v13468_v10  ;;  %v3919_v30 = vadd.f32 %v3918_v16, %v13470_v51 }
 0x6e2   :  { %v3931_v59 = vadd.f32 %v3930_v32, %v13502_v5  ;;  %v3960_v6 = vadd.f32 %v3959_v53, %v13504_v22  ;;  %v3827_v53 = vadd.f32 %v3826_v29, %v13454_v46  ;;  %v3914_v29 = vadd.f32 %v3913_v36, %v13470_v51 }
 0x6e4   :  { %v13510_v11 = vadd.f32 %v3931_v59, %v3832_v40  ;;  %v13512_v41 = vadd.f32 %v3960_v6, %v3861_v35  ;;  %v3856_v40 = vadd.f32 %v3855_v38, %v13456_v57 }
 0x6e8   :  { %v3988_v0 = vpop.f32.mrf.mxu2  ;;  %v4017_v23 = vpop.f32.mrf.mxu3 }
 0x6e9   :  { %v3989_v25 = vadd.f32 %v3988_v0, %v13514_v13  ;;  %v4018_v2 = vadd.f32 %v4017_v23, %v13516_v26  ;;  %v3932_v7 = vpop.f32.mrf.mxu0  ;;  %v3961_v8 = vpop.f32.mrf.mxu1 }
 0x6ea   :  { %v3933_v21 = vadd.f32 %v3932_v7, %v13502_v5  ;;  %v3962_v1 = vadd.f32 %v3961_v8, %v13504_v22 }
 0x6eb   :  { %v13524_v4 = vadd.f32 %v3989_v25, %v3890_v37  ;;  %v13526_v49 = vadd.f32 %v4018_v2, %v3919_v30  ;;  %v3885_v30 = vadd.f32 %v3884_v14, %v13468_v10 }
 0x6ec   :  { %v13528_v43 = vadd.f32 %v3933_v21, %v3830_v27  ;;  %v13530_v33 = vadd.f32 %v3962_v1, %v3859_v56 }
 0x6f0   :  { %v3990_v20 = vpop.f32.mrf.mxu2  ;;  %v4019_v54 = vpop.f32.mrf.mxu3 }
 0x6f1   :  { %v3991_v31 = vadd.f32 %v3990_v20, %v13514_v13  ;;  %v4020_v24 = vadd.f32 %v4019_v54, %v13516_v26  ;;  %v3935_v16 = vpop.f32.mrf.mxu0  ;;  %v3964_v32 = vpop.f32.mrf.mxu1 }
 0x6f2   :  { %v3936_v35 = vadd.f32 %v3935_v16, %v13502_v5  ;;  %v3965_v59 = vadd.f32 %v3964_v32, %v13504_v22  ;;  %v3822_v32 = vadd.f32 %v13478_v19, %v13454_v46  ;;  %v3880_v19 = vadd.f32 %v13482_v42, %v13468_v10 }
 0x6f3   :  { %v13538_v27 = vadd.f32 %v3991_v31, %v3888_v50  ;;  %v13540_v56 = vadd.f32 %v4020_v24, %v3917_v12 }
 0x6f4   :  { %v13542_v6 = vadd.f32 %v3936_v35, %v3827_v53  ;;  %v13544_v0 = vadd.f32 %v3965_v59, %v3856_v40  ;;  %v3851_v53 = vadd.f32 %v13480_v58, %v13456_v57  ;;  %v3909_v58 = vadd.f32 %v13484_v60, %v13470_v51  ;;  %v8674_v60 = vld [vmem:[%s15167_s6 + $0xe0] sm:$0xf] }
 0x6f8   :  { %v3993_v23 = vpop.f32.mrf.mxu2  ;;  %v4022_v37 = vpop.f32.mrf.mxu3 }
 0x6f9   :  { %v3994_v38 = vadd.f32 %v3993_v23, %v13514_v13  ;;  %v4023_v25 = vadd.f32 %v4022_v37, %v13516_v26  ;;  %v3937_v2 = vpop.f32.mrf.mxu0  ;;  %v3966_v7 = vpop.f32.mrf.mxu1 }
 0x6fa   :  { %v3938_v50 = vadd.f32 %v3937_v2, %v13502_v5  ;;  %v3967_v12 = vadd.f32 %v3966_v7, %v13504_v22 }
 0x6fb   :  { %v13552_v8 = vadd.f32 %v3994_v38, %v3885_v30  ;;  %v13554_v21 = vadd.f32 %v4023_v25, %v3914_v29 }
 0x6fc   :  { %v13557_v1 = vadd.f32 %v3938_v50, %v13487_v9  ;;  %v13560_v14 = vadd.f32 %v3967_v12, %v13490_v34 }
 0x700   :  { %v3995_v36 = vpop.f32.mrf.mxu2  ;;  %v4024_v20 = vpop.f32.mrf.mxu3 }
 0x701   :  { %v3996_v54 = vadd.f32 %v3995_v36, %v13514_v13  ;;  %v4025_v31 = vadd.f32 %v4024_v20, %v13516_v26  ;;  %v3940_v24 = vpop.f32.mrf.mxu0  ;;  %v3969_v16 = vpop.f32.mrf.mxu1  ;;  %v9959_v36 = vld [vmem:[%s15167_s6 + $0xec] sm:$0xf0]  ;;  %v9957_v20 = vld [vmem:[%s15167_s6 + $0xe4] sm:$0xf] }
 0x702   :  { %v3941_v9 = vadd.f32 %v3940_v24, %v13502_v5  ;;  %v3970_v40 = vadd.f32 %v3969_v16, %v13504_v22  ;;  %v8675_v24 = vor.u32 %v9959_v36, %v8674_v60  ;;  %v8682_v16 = vld [vmem:[%s15167_s6 + $0xe8] sm:$0xf] }
 0x703   :  { %v13571_v34 = vadd.f32 %v3996_v54, %v13493_v15  ;;  %v13574_v35 = vadd.f32 %v4025_v31, %v13496_v48  ;;  %v3817_v54 = vadd.f32 %v13447_v61, %v13454_v46 }
 0x704   :  { %v13576_v59 = vadd.f32 %v3941_v9, %v3822_v32  ;;  %v13578_v23 = vadd.f32 %v3970_v40, %v3851_v53  ;;  %v9960_v32 = vld [vmem:[%s15167_s6 + $0xf4] sm:$0xf0]  ;;  %4631 = vmatpush.bf16.msra.mxu0 %v8675_v24 }
 0x705   :  { %v9956_v24 = vld [vmem:[%s15167_s6 + $0xd4] sm:$0xf0] }
 0x708   :  { %v3998_v37 = vpop.f32.mrf.mxu2  ;;  %v4027_v30 = vpop.f32.mrf.mxu3 }
 0x709   :  { %v3999_v29 = vadd.f32 %v3998_v37, %v13514_v13  ;;  %v4028_v15 = vadd.f32 %v4027_v30, %v13516_v26  ;;  %v3942_v38 = vpop.f32.mrf.mxu0  ;;  %v3971_v25 = vpop.f32.mrf.mxu1  ;;  %v8683_v30 = vor.u32 %v9960_v32, %v8682_v16  ;;  %v9954_v32 = vld [vmem:[%s15167_s6 + $0xcc] sm:$0xf] }
 0x70a   :  { %v3943_v48 = vadd.f32 %v3942_v38, %v13502_v5  ;;  %v3972_v2 = vadd.f32 %v3971_v25, %v13504_v22 }
 0x70b   :  { %v13588_v7 = vadd.f32 %v3999_v29, %v3880_v19  ;;  %v13590_v50 = vadd.f32 %v4028_v15, %v3909_v58  ;;  %v9958_v19 = vld [vmem:[%s15167_s6 + $0xec] sm:$0xf]  ;;  %v8684_v58 = vld [vmem:[%s15167_s6 + $0xf8] sm:$0xf0]  ;;  %v3846_v29 = vadd.f32 %v13449_v18, %v13456_v57  ;;  %4657 = vmatpush.bf16.msra.mxu2 %v8683_v30  ;;  %v9953_v18 = vld [vmem:[%s15167_s6 + $0xc4] sm:$0xf]  ;;  %v3904_v30 = vadd.f32 %v13460_v17, %v13470_v51 }
 0x70c   :  { %v13593_v12 = vadd.f32 %v3943_v48, %v13463_v44  ;;  %v13596_v42 = vadd.f32 %v3972_v2, %v13466_v62  ;;  %v8676_v62 = vld [vmem:[%s15167_s6 + $0xf0] sm:$0xf0]  ;;  %v8687_v25 = vor.u32 %v9958_v19, %v8684_v58  ;;  %v8658_v48 = vld [vmem:[%s15167_s6 + $0xc0] sm:$0xf]  ;;  %v9955_v2 = vld [vmem:[%s15167_s6 + $0xcc] sm:$0xf0] }
 0x70d   :  { %v8679_v37 = vor.u32 %v9957_v20, %v8676_v62  ;;  %v8659_v20 = vor.u32 %v9955_v2, %v8658_v48 }
 0x70e   :  { %4670 = vmatpush.bf16.msrb.mxu3 %v8687_v25  ;;  %v9952_v25 = vld [vmem:[%s15167_s6 + $0xb4] sm:$0xf0] }
 0x70f   :  { %4644 = vmatpush.bf16.msra.mxu1 %v8679_v37  ;;  %4632 = vmatpush.bf16.msra.mxu0 %v8659_v20  ;;  %v3875_v37 = vadd.f32 %v13458_v39, %v13468_v10 }
 0x710   :  { %v4000_v44 = vpop.f32.mrf.mxu2  ;;  %v4029_v31 = vpop.f32.mrf.mxu3 }
 0x711   :  { %v4001_v53 = vadd.f32 %v4000_v44, %v13514_v13  ;;  %v4030_v9 = vadd.f32 %v4029_v31, %v13516_v26  ;;  %v3945_v61 = vpop.f32.mrf.mxu0  ;;  %v3974_v40 = vpop.f32.mrf.mxu1  ;;  %v8660_v44 = vld [vmem:[%s15167_s6 + $0xd0] sm:$0xf0]  ;;  %v8666_v31 = vld [vmem:[%s15167_s6 + $0xc8] sm:$0xf] }
 0x712   :  { %v3946_v15 = vadd.f32 %v3945_v61, %v13502_v5  ;;  %v3975_v38 = vadd.f32 %v3974_v40, %v13504_v22  ;;  %v8667_v16 = vor.u32 %v9956_v24, %v8666_v31  ;;  %v9951_v61 = vld [vmem:[%s15167_s6 + $0xac] sm:$0xf0]  ;;  %v9949_v40 = vld [vmem:[%s15167_s6 + $0xa4] sm:$0xf]  ;;  %v8652_v31 = vld [vmem:[%s15167_s6 + $0xb8] sm:$0xf0] }
 0x713   :  { %v13640_v60 = vadd.f32 %v4001_v53, %v13473_v3  ;;  %v13643_v36 = vadd.f32 %v4030_v9, %v13476_v47  ;;  %v8663_v47 = vor.u32 %v9953_v18, %v8660_v44  ;;  %v8668_v53 = vld [vmem:[%s15167_s6 + $0xd8] sm:$0xf0]  ;;  %v9950_v44 = vld [vmem:[%s15167_s6 + $0xac] sm:$0xf] }
 0x714   :  { %v13654_v62 = vadd.f32 %v3946_v15, %v3817_v54  ;;  %v13656_v3 = vadd.f32 %v3975_v38, %v3846_v29  ;;  %v8671_v9 = vor.u32 %v9954_v32, %v8668_v53  ;;  %4658 = vmatpush.bf16.msra.mxu2 %v8667_v16  ;;  %v8642_v54 = vld [vmem:[%s15167_s6 + $0xa0] sm:$0xf]  ;;  %v8644_v15 = vld [vmem:[%s15167_s6 + $0xb0] sm:$0xf0]  ;;  %v8650_v38 = vld [vmem:[%s15167_s6 + $0xa8] sm:$0xf]  ;;  %v8655_v24 = vor.u32 %v9950_v44, %v8652_v31 }
 0x715   :  { %4645 = vmatpush.bf16.msra.mxu1 %v8663_v47  ;;  %v8643_v29 = vor.u32 %v9951_v61, %v8642_v54  ;;  %v8647_v18 = vor.u32 %v9949_v40, %v8644_v15  ;;  %v8651_v20 = vor.u32 %v9952_v25, %v8650_v38  ;;  %v8626_v47 = vld [vmem:[%s15167_s6 + $0x80] sm:$0xf]  ;;  %v9947_v16 = vld [vmem:[%s15167_s6 + $0x8c] sm:$0xf0]  ;;  %v9945_v32 = vld [vmem:[%s15167_s6 + $0x84] sm:$0xf]  ;;  %v3815_v15 = vadd.f32 %v13435_v52, %v13454_v46 }
 0x716   :  { %4671 = vmatpush.bf16.msrb.mxu3 %v8671_v9  ;;  %v8627_v40 = vor.u32 %v9947_v16, %v8626_v47  ;;  %v3844_v38 = vadd.f32 %v13437_v55, %v13456_v57  ;;  %v9944_v44 = vld [vmem:[%s15167_s6 + $0x74] sm:$0xf0] }
 0x717   :  { %4633 = vmatpush.bf16.msra.mxu0 %v8643_v29 }
 0x718   :  { %v4003_v19 = vpop.f32.mrf.mxu2  ;;  %v4032_v58 = vpop.f32.mrf.mxu3  ;;  %4659 = vmatpush.bf16.msra.mxu2 %v8651_v20  ;;  %v8618_v20 = vld [vmem:[%s15167_s6 + $0x68] sm:$0xf] }
 0x719   :  { %v4004_v39 = vadd.f32 %v4003_v19, %v13514_v13  ;;  %v4033_v17 = vadd.f32 %v4032_v58, %v13516_v26  ;;  %v3947_v48 = vpop.f32.mrf.mxu0  ;;  %v3976_v2 = vpop.f32.mrf.mxu1  ;;  %4646 = vmatpush.bf16.msra.mxu1 %v8647_v18  ;;  %v8628_v19 = vld [vmem:[%s15167_s6 + $0x90] sm:$0xf0]  ;;  %v8634_v58 = vld [vmem:[%s15167_s6 + $0x88] sm:$0xf]  ;;  %v8619_v16 = vor.u32 %v9944_v44, %v8618_v20  ;;  %v9933_v20 = vld [vmem:[%s15167_s6 + $0x24] sm:$0xf] }
 0x71a   :  { %v3948_v54 = vadd.f32 %v3947_v48, %v13502_v5  ;;  %v3977_v61 = vadd.f32 %v3976_v2, %v13504_v22  ;;  %4672 = vmatpush.bf16.msrb.mxu3 %v8655_v24  ;;  %v9946_v5 = vld [vmem:[%s15167_s6 + $0x8c] sm:$0xf]  ;;  %v8636_v22 = vld [vmem:[%s15167_s6 + $0x98] sm:$0xf0]  ;;  %v9941_v48 = vld [vmem:[%s15167_s6 + $0x64] sm:$0xf] }
 0x71b   :  { %v13703_v53 = vadd.f32 %v4004_v39, %v3875_v37  ;;  %v13705_v9 = vadd.f32 %v4033_v17, %v3904_v30  ;;  %v9948_v37 = vld [vmem:[%s15167_s6 + $0x94] sm:$0xf0]  ;;  %v8631_v30 = vor.u32 %v9945_v32, %v8628_v19  ;;  %4634 = vmatpush.bf16.msra.mxu0 %v8627_v40  ;;  %v8639_v25 = vor.u32 %v9946_v5, %v8636_v22  ;;  %v8610_v39 = vld [vmem:[%s15167_s6 + $0x60] sm:$0xf]  ;;  %v9943_v17 = vld [vmem:[%s15167_s6 + $0x6c] sm:$0xf0] }
 0x71c   :  { %v8635_v29 = vor.u32 %v9948_v37, %v8634_v58  ;;  %v4109_v55 = vadd.f32 %v3948_v54, %v3815_v15  ;;  %v4110_v57 = vadd.f32 %v3977_v61, %v3844_v38  ;;  %v8611_v2 = vor.u32 %v9943_v17, %v8610_v39  ;;  %v8612_v18 = vld [vmem:[%s15167_s6 + $0x70] sm:$0xf0]  ;;  %v9942_v32 = vld [vmem:[%s15167_s6 + $0x6c] sm:$0xf]  ;;  %v8620_v54 = vld [vmem:[%s15167_s6 + $0x78] sm:$0xf0] }
 0x71d   :  { %4647 = vmatpush.bf16.msra.mxu1 %v8631_v30  ;;  %v8615_v47 = vor.u32 %v9941_v48, %v8612_v18  ;;  %v8623_v19 = vor.u32 %v9942_v32, %v8620_v54  ;;  %v8594_v37 = vld [vmem:[%s15167_s6 + $0x40] sm:$0xf]  ;;  %v9939_v30 = vld [vmem:[%s15167_s6 + $0x4c] sm:$0xf0]  ;;  %v3902_v38 = vadd.f32 %v13445_v63, %v13470_v51  ;;  %v8602_v39 = vld [vmem:[%s15167_s6 + $0x48] sm:$0xf] }
 0x71e   :  { %4660 = vmatpush.bf16.msra.mxu2 %v8635_v29  ;;  %4673 = vmatpush.bf16.msrb.mxu3 %v8639_v25  ;;  %v9937_v29 = vld [vmem:[%s15167_s6 + $0x44] sm:$0xf]  ;;  %v8595_v15 = vor.u32 %v9939_v30, %v8594_v37  ;;  %v9940_v17 = vld [vmem:[%s15167_s6 + $0x54] sm:$0xf0]  ;;  %v9938_v48 = vld [vmem:[%s15167_s6 + $0x4c] sm:$0xf] }
 0x71f   :  { %4635 = vmatpush.bf16.msra.mxu0 %v8611_v2  ;;  %v8604_v63 = vld [vmem:[%s15167_s6 + $0x58] sm:$0xf0]  ;;  %v8578_v51 = vld [vmem:[%s15167_s6 + $0x20] sm:$0xf]  ;;  %v8580_v44 = vld [vmem:[%s15167_s6 + $0x30] sm:$0xf0] }
 0x720   :  { %v13737_v52 = vpop.f32.mrf.mxu2  ;;  %v4034_v46 = vpop.f32.mrf.mxu3  ;;  %v8607_v2 = vor.u32 %v9938_v48, %v8604_v63  ;;  %v9936_v32 = vld [vmem:[%s15167_s6 + $0x34] sm:$0xf0]  ;;  %v9934_v54 = vld [vmem:[%s15167_s6 + $0x2c] sm:$0xf] }
 0x721   :  { %v4314_v31 = vpop.f32.mrf.mxu0  ;;  %v4327_v24 = vpop.f32.mrf.mxu1  ;;  %v4035_v58 = vadd.f32 %v4034_v46, %v13516_v26  ;;  %4648 = vmatpush.bf16.msra.mxu1 %v8615_v47  ;;  %v8596_v26 = vld [vmem:[%s15167_s6 + $0x50] sm:$0xf0]  ;;  %v8603_v46 = vor.u32 %v9940_v17, %v8602_v39  ;;  %v9930_v48 = vld [vmem:[%s15167_s6 + $0xc] sm:$0xf] }
 0x722   :  { %v4357_v61 = vadd.f32 %v4314_v31, %v4109_v55  ;;  %v4358_v40 = vadd.f32 %v4327_v24, %v4110_v57  ;;  %4661 = vmatpush.bf16.msra.mxu2 %v8619_v16  ;;  %4674 = vmatpush.bf16.msrb.mxu3 %v8623_v19  ;;  %v8599_v25 = vor.u32 %v9937_v29, %v8596_v26  ;;  %v9935_v55 = vld [vmem:[%s15167_s6 + $0x2c] sm:$0xf0]  ;;  %v8586_v31 = vld [vmem:[%s15167_s6 + $0x28] sm:$0xf]  ;;  %v8562_v29 = vld [vmem:[%s15167_s6] sm:$0xf] }
 0x723   :  { %4636 = vmatpush.bf16.msra.mxu0 %v8595_v15  ;;  %v4112_v57 = vadd.f32 %v4035_v58, %v3902_v38  ;;  %v8579_v18 = vor.u32 %v9935_v55, %v8578_v51  ;;  %v8583_v16 = vor.u32 %v9933_v20, %v8580_v44  ;;  %v8587_v37 = vor.u32 %v9936_v32, %v8586_v31  ;;  %v8564_v26 = vld [vmem:[%s15167_s6 + $0x10] sm:$0xf0]  ;;  %v8570_v38 = vld [vmem:[%s15167_s6 + $0x8] sm:$0xf] }
 0x724   :  { %v8557_v5 = vmul.f32 -1.442695, %v4357_v61  ;;  %v8558_v22 = vmul.f32 -1.442695, %v4358_v40  ;;  %v8588_v61 = vld [vmem:[%s15167_s6 + $0x38] sm:$0xf0]  ;;  %v4006_v20 = vadd.f32 %v13737_v52, %v13514_v13 }
 0x725   :  { %4649 = vmatpush.bf16.msra.mxu1 %v8599_v25  ;;  %v8591_v30 = vor.u32 %v9934_v54, %v8588_v61  ;;  %v9932_v25 = vld [vmem:[%s15167_s6 + $0x14] sm:$0xf0] }
 0x726   :  { %10299 = vpow2.f32 %v8557_v5  ;;  %4662 = vmatpush.bf16.msra.mxu2 %v8603_v46  ;;  %4675 = vmatpush.bf16.msrb.mxu3 %v8607_v2  ;;  %v9931_v5 = vld [vmem:[%s15167_s6 + $0xc] sm:$0xf0]  ;;  %v8572_v46 = vld [vmem:[%s15167_s6 + $0x18] sm:$0xf0]  ;;  %v8571_v51 = vor.u32 %v9932_v25, %v8570_v38 }
 0x727   :  { %10301 = vpow2.f32 %v8558_v22  ;;  %v9929_v22 = vld [vmem:[%s15167_s6 + $0x4] sm:$0xf]  ;;  %4637 = vmatpush.bf16.msra.mxu0 %v8579_v18  ;;  %v8563_v15 = vor.u32 %v9931_v5, %v8562_v29  ;;  %v8575_v2 = vor.u32 %v9930_v48, %v8572_v46 }
 0x728   :  { %v4340_v24 = vpop.f32.mrf.mxu2  ;;  %v4353_v47 = vpop.f32.mrf.mxu3  ;;  %v8567_v17 = vor.u32 %v9929_v22, %v8564_v26 }
 0x729   :  { %v4360_v40 = vadd.f32 %v4353_v47, %v4112_v57  ;;  %v4316_v19 = vpop.f32.mrf.mxu0  ;;  %v4329_v58 = vpop.f32.mrf.mxu1  ;;  %4650 = vmatpush.bf16.msra.mxu1 %v8583_v16  ;;  %v3873_v47 = vadd.f32 %v13443_v28, %v13468_v10 }
 0x72a   :  { %4663 = vmatpush.bf16.msra.mxu2 %v8587_v37  ;;  %4676 = vmatpush.bf16.msrb.mxu3 %v8591_v30 }
 0x72b   :  { %v8559_v39 = vmul.f32 -1.442695, %v4360_v40  ;;  %4638 = vmatpush.bf16.msra.mxu0 %v8563_v15  ;;  %v4111_v32 = vadd.f32 %v4006_v20, %v3873_v47 }
 0x72c   :  { %v10300_v63 = vpop.eup %10299 }
 0x72d   :  { %v10302_v55 = vpop.eup %10301  ;;  %v4364_v57 = vadd.f32 1.0, %v10300_v63  ;;  %10303 = vpow2.f32 %v8559_v39  ;;  %4651 = vmatpush.bf16.msra.mxu1 %v8567_v17  ;;  %v4359_v40 = vadd.f32 %v4340_v24, %v4111_v32 }
 0x72e   :  { %v4383_v18 = vadd.f32 1.0, %v10302_v55  ;;  %4664 = vmatpush.bf16.msra.mxu2 %v8571_v51  ;;  %4677 = vmatpush.bf16.msrb.mxu3 %v8575_v2 }
 0x72f   :  { %10305 = vrcp.f32 %v4364_v57  ;;  %v4376_v30 = vand.u32 2147483648, %v4364_v57  ;;  %v4374_v22 = vand.u32 2147483647, %v4364_v57  ;;  %vm4370_vm4 = vweird.f32 %v4364_v57 }
 0x730   :  { %10307 = vrcp.f32 %v4383_v18  ;;  %v4355_v44 = vpop.f32.mrf.mxu3  ;;  %v4342_v31 = vpop.f32.mrf.mxu2  ;;  %v4395_v29 = vand.u32 2147483648, %v4383_v18  ;;  %v4393_v28 = vand.u32 2147483647, %v4383_v18  ;;  %vm4389_vm5 = vweird.f32 %v4383_v18 }
 0x731   :  { %v4377_v24 = vor.u32 1.1754944e-38, %v4376_v30  ;;  %vm4375_vm8 = vcmp.eq.f32.partialorder %v4374_v22, 8.507059e+37  ;;  %v8807_v30 = vld [vmem:[%s15167_s6 + $0xf0] sm:$0xf0] }
 0x732   :  { %v4396_v39 = vor.u32 1.1754944e-38, %v4395_v29  ;;  %vm4394_vm10 = vcmp.eq.f32.partialorder %v4393_v28, 8.507059e+37  ;;  %v8813_v29 = vld [vmem:[%s15167_s6 + $0xe8] sm:$0xf]  ;;  %v9990_v28 = vld [vmem:[%s15167_s6 + $0xec] sm:$0xf] }
 0x733   :  { %v10304_v16 = vpop.eup %10303 }
 0x734   :  { %v4403_v54 = vadd.f32 1.0, %v10304_v16 }
 0x735   :  { %v10306_v61 = vpop.eup %10305 }
 0x736   :  { %v10308_v19 = vpop.eup %10307  ;;  %v4366_v58 = vmul.f32 %v10306_v61, %v4364_v57  ;;  %10309 = vrcp.f32 %v4403_v54  ;;  %vm4371_vm2 = vweird.f32 %v10306_v61  ;;  %vm4409_vm12 = vweird.f32 %v4403_v54 }
 0x737   :  { %v4385_v37 = vmul.f32 %v10308_v19, %v4383_v18  ;;  %10311 = vtanh.f32 %v4359_v40  ;;  %vm4390_vm3 = vweird.f32 %v10308_v19  ;;  %vm4372_vm6 = vmor %vm4370_vm4, %vm4371_vm2  ;;  %v4415_v18 = vand.u32 2147483648, %v4403_v54 }
 0x738   :  { %v4367_v13 = vsub.f32 1.0, %v4366_v58  ;;  %vm4391_vm9 = vmor %vm4389_vm5, %vm4390_vm3  ;;  %v4413_v47 = vand.u32 2147483647, %v4403_v54 }
 0x739   :  { %v4386_v52 = vsub.f32 1.0, %v4385_v37  ;;  %v4416_v32 = vor.u32 1.1754944e-38, %v4415_v18  ;;  %v8805_v37 = vld [vmem:[%s15167_s6 + $0xe0] sm:$0xf]  ;;  %v9981_v18 = vld [vmem:[%s15167_s6 + $0xa4] sm:$0xf] }
 0x73a   :  { %v4368_v5 = vmul.f32 %v10306_v61, %v4367_v13  ;;  %vm4414_vm14 = vcmp.eq.f32.partialorder %v4413_v47, 8.507059e+37  ;;  %v9989_v13 = vld [vmem:[%s15167_s6 + $0xe4] sm:$0xf] }
 0x73b   :  { %v4387_v15 = vmul.f32 %v10308_v19, %v4386_v52  ;;  %v8810_v22 = vor.u32 %v9989_v13, %v8807_v30  ;;  %v9979_v30 = vld [vmem:[%s15167_s6 + $0x8c] sm:$0xf0] }
 0x73c   :  { %v10310_v10 = vpop.eup %10309  ;;  %v4369_v26 = vadd.f32 %v10306_v61, %v4368_v5  ;;  %v9992_v5 = vld [vmem:[%s15167_s6 + $0xf4] sm:$0xf0] }
 0x73d   :  { %v4388_v38 = vadd.f32 %v10308_v19, %v4387_v15  ;;  %v4405_v25 = vmul.f32 %v10310_v10, %v4403_v54  ;;  %v10312_v48 = vpop.eup %10311  ;;  %vm4410_vm11 = vweird.f32 %v10310_v10  ;;  %v9991_v54 = vld [vmem:[%s15167_s6 + $0xec] sm:$0xf0]  ;;  %v8814_v15 = vor.u32 %v9992_v5, %v8813_v29  ;;  %4970 = vmatpush.bf16.msrb.mxu1 %v8810_v22  ;;  %v9977_v29 = vld [vmem:[%s15167_s6 + $0x84] sm:$0xf]  ;;  %v8759_v22 = vld [vmem:[%s15167_s6 + $0x90] sm:$0xf0] }
 0x73e   :  { %v4373_v17 = vsel %vm4372_vm6, %v10306_v61, %v4369_v26  ;;  %vm4411_vm13 = vmor %vm4409_vm12, %vm4410_vm11  ;;  %v8806_v52 = vor.u32 %v9991_v54, %v8805_v37  ;;  %v9982_v37 = vld [vmem:[%s15167_s6 + $0xac] sm:$0xf]  ;;  %v8783_v54 = vld [vmem:[%s15167_s6 + $0xb8] sm:$0xf0] }
 0x73f   :  { %v4378_v46 = vsel %vm4375_vm8, %v4377_v24, %v4373_v17  ;;  %v4392_v63 = vsel %vm4391_vm9, %v10308_v19, %v4388_v38  ;;  %v4406_v51 = vsub.f32 1.0, %v4405_v25  ;;  %4983 = vmatpush.bf16.msrb.mxu2 %v8814_v15  ;;  %v8789_v24 = vld [vmem:[%s15167_s6 + $0xc0] sm:$0xf]  ;;  %v9987_v38 = vld [vmem:[%s15167_s6 + $0xcc] sm:$0xf0]  ;;  %v8786_v13 = vor.u32 %v9982_v37, %v8783_v54 }
 0x740   :  { %v4397_v55 = vsel %vm4394_vm10, %v4396_v39, %v4392_v63  ;;  %v4420_v2 = vmul.f32 %v10312_v48, %v4378_v46  ;;  %4957 = vmatpush.bf16.msrb.mxu0 %v8806_v52  ;;  %v9985_v25 = vld [vmem:[%s15167_s6 + $0xc4] sm:$0xf]  ;;  %v8790_v39 = vor.u32 %v9987_v38, %v8789_v24  ;;  %v8791_v17 = vld [vmem:[%s15167_s6 + $0xd0] sm:$0xf0]  ;;  %v8797_v48 = vld [vmem:[%s15167_s6 + $0xc8] sm:$0xf] }
 0x741   :  { %v4419_v20 = vmul.f32 0.0, %v4397_v55  ;;  %v4407_v44 = vmul.f32 %v10310_v10, %v4406_v51  ;;  %v9988_v46 = vld [vmem:[%s15167_s6 + $0xd4] sm:$0xf0]  ;;  %v8794_v63 = vor.u32 %v9985_v25, %v8791_v17  ;;  %v9986_v55 = vld [vmem:[%s15167_s6 + $0xcc] sm:$0xf] }
 0x742   :  { %v8798_v51 = vor.u32 %v9988_v46, %v8797_v48  ;;  %v8757_v52 = vld [vmem:[%s15167_s6 + $0x80] sm:$0xf]  ;;  %v8765_v15 = vld [vmem:[%s15167_s6 + $0x88] sm:$0xf]  ;;  %v9978_v24 = vld [vmem:[%s15167_s6 + $0x8c] sm:$0xf] }
 0x743   :  { %v13833_v31 = vadd.f32 %v4420_v2, %v4419_v20  ;;  %v4408_v57 = vadd.f32 %v10310_v10, %v4407_v44  ;;  %v8799_v2 = vld [vmem:[%s15167_s6 + $0xd8] sm:$0xf0]  ;;  %4971 = vmatpush.bf16.msrb.mxu1 %v8794_v63  ;;  %v8773_v44 = vld [vmem:[%s15167_s6 + $0xa0] sm:$0xf]  ;;  %v8758_v5 = vor.u32 %v9979_v30, %v8757_v52  ;;  %v9975_v17 = vld [vmem:[%s15167_s6 + $0x6c] sm:$0xf0] }
 0x744   :  { %4958 = vmatpush.bf16.msrb.mxu0 %v8790_v39  ;;  %v8802_v20 = vor.u32 %v9986_v55, %v8799_v2  ;;  %4984 = vmatpush.bf16.msrb.mxu2 %v8798_v51  ;;  %v8767_v38 = vld [vmem:[%s15167_s6 + $0x98] sm:$0xf0]  ;;  %v8741_v39 = vld [vmem:[%s15167_s6 + $0x60] sm:$0xf]  ;;  %v9973_v48 = vld [vmem:[%s15167_s6 + $0x64] sm:$0xf] }
 0x745   :  { %10313 = vtanh.f32 %v13833_v31  ;;  %v4412_v16 = vsel %vm4411_vm13, %v10310_v10, %v4408_v57  ;;  %v8815_v10 = vld [vmem:[%s15167_s6 + $0xf8] sm:$0xf0]  ;;  %v9983_v57 = vld [vmem:[%s15167_s6 + $0xac] sm:$0xf0]  ;;  %v8770_v25 = vor.u32 %v9978_v24, %v8767_v38  ;;  %v8742_v46 = vor.u32 %v9975_v17, %v8741_v39  ;;  %v8743_v63 = vld [vmem:[%s15167_s6 + $0x70] sm:$0xf0] }
 0x746   :  { %v4417_v40 = vsel %vm4414_vm14, %v4416_v32, %v4412_v16  ;;  %v8818_v26 = vor.u32 %v9990_v28, %v8815_v10  ;;  %v8774_v47 = vor.u32 %v9983_v57, %v8773_v44  ;;  %v8775_v16 = vld [vmem:[%s15167_s6 + $0xb0] sm:$0xf0]  ;;  %v8781_v32 = vld [vmem:[%s15167_s6 + $0xa8] sm:$0xf]  ;;  %v9980_v28 = vld [vmem:[%s15167_s6 + $0x94] sm:$0xf0]  ;;  %v8762_v10 = vor.u32 %v9977_v29, %v8759_v22 }
 0x747   :  { %v8749_v51 = vld [vmem:[%s15167_s6 + $0x68] sm:$0xf]  ;;  %v9976_v55 = vld [vmem:[%s15167_s6 + $0x74] sm:$0xf0]  ;;  %v8746_v44 = vor.u32 %v9973_v48, %v8743_v63  ;;  %v9969_v37 = vld [vmem:[%s15167_s6 + $0x44] sm:$0xf] }
 0x748   :  { %4996 = vmatpush.bf16.msra.mxu3 %v8818_v26  ;;  %4959 = vmatpush.bf16.msrb.mxu0 %v8774_v47  ;;  %v8766_v26 = vor.u32 %v9980_v28, %v8765_v15  ;;  %v8750_v57 = vor.u32 %v9976_v55, %v8749_v51  ;;  %v8751_v47 = vld [vmem:[%s15167_s6 + $0x78] sm:$0xf0]  ;;  %v8733_v30 = vld [vmem:[%s15167_s6 + $0x48] sm:$0xf]  ;;  %v9972_v29 = vld [vmem:[%s15167_s6 + $0x54] sm:$0xf0] }
 0x749   :  { %v8734_v22 = vor.u32 %v9972_v29, %v8733_v30  ;;  %v8735_v15 = vld [vmem:[%s15167_s6 + $0x58] sm:$0xf0]  ;;  %v8709_v28 = vld [vmem:[%s15167_s6 + $0x20] sm:$0xf]  ;;  %v9965_v38 = vld [vmem:[%s15167_s6 + $0x24] sm:$0xf] }
 0x74a   :  { %v8717_v39 = vld [vmem:[%s15167_s6 + $0x28] sm:$0xf]  ;;  %v9968_v63 = vld [vmem:[%s15167_s6 + $0x34] sm:$0xf0]  ;;  %v9966_v51 = vld [vmem:[%s15167_s6 + $0x2c] sm:$0xf] }
 0x74b   :  { %v10314_v61 = vpop.eup %10313  ;;  %v8719_v55 = vld [vmem:[%s15167_s6 + $0x38] sm:$0xf0] }
 0x74c   :  { %v13836_v19 = vmul.f32 %v10314_v61, %v4417_v40  ;;  %4997 = vmatpush.bf16.msra.mxu3 %v8802_v20  ;;  %v9984_v61 = vld [vmem:[%s15167_s6 + $0xb4] sm:$0xf0]  ;;  %v8778_v40 = vor.u32 %v9981_v18, %v8775_v16  ;;  %4960 = vmatpush.bf16.msrb.mxu0 %v8758_v5  ;;  %v9974_v18 = vld [vmem:[%s15167_s6 + $0x6c] sm:$0xf] }
 0x74d   :  { %v9970_v5 = vld [vmem:[%s15167_s6 + $0x4c] sm:$0xf] }
 0x74e   :  { %v4438_v58 = vpack.c.bf16 %v13836_v19, %v13836_v19  ;;  %4972 = vmatpush.bf16.msrb.mxu1 %v8778_v40  ;;  %v8725_v40 = vld [vmem:[%s15167_s6 + $0x40] sm:$0xf] }
 0x750   :  { %4639 = vmatmul.bf16.vlgmr.msra.gmra.mxu0 %v4438_v58  ;;  %4652 = vmatmul.bf16.vlgmr.msra.gmra.mxu1 %v4438_v58 }
 0x751   :  { %4665 = vmatmul.bf16.vlgmr.msra.gmra.mxu2 %v4438_v58  ;;  %4678 = vmatmul.bf16.vlgmr.msrb.gmra.mxu3 %v4438_v58  ;;  %v8782_v58 = vor.u32 %v9984_v61, %v8781_v32  ;;  %v8754_v61 = vor.u32 %v9974_v18, %v8751_v47  ;;  %v8722_v18 = vor.u32 %v9966_v51, %v8719_v55  ;;  %v8693_v47 = vld [vmem:[%s15167_s6] sm:$0xf] }
 0x752   :  { %4998 = vmatpush.bf16.msra.mxu3 %v8786_v13  ;;  %4973 = vmatpush.bf16.msrb.mxu1 %v8762_v10  ;;  %v8727_v13 = vld [vmem:[%s15167_s6 + $0x50] sm:$0xf0]  ;;  %v9967_v10 = vld [vmem:[%s15167_s6 + $0x2c] sm:$0xf0] }
 0x753   :  { %4985 = vmatpush.bf16.msrb.mxu2 %v8782_v58  ;;  %4961 = vmatpush.bf16.msrb.mxu0 %v8742_v46  ;;  %v9971_v58 = vld [vmem:[%s15167_s6 + $0x4c] sm:$0xf0]  ;;  %v8730_v52 = vor.u32 %v9969_v37, %v8727_v13  ;;  %v8710_v24 = vor.u32 %v9967_v10, %v8709_v28 }
 0x756   :  { %4999 = vmatpush.bf16.msra.mxu3 %v8770_v25  ;;  %4974 = vmatpush.bf16.msrb.mxu1 %v8746_v44  ;;  %v8711_v25 = vld [vmem:[%s15167_s6 + $0x30] sm:$0xf0] }
 0x757   :  { %4986 = vmatpush.bf16.msrb.mxu2 %v8766_v26  ;;  %v8738_v26 = vor.u32 %v9970_v5, %v8735_v15  ;;  %v8714_v46 = vor.u32 %v9965_v38, %v8711_v25 }
 0x75a   :  { %5000 = vmatpush.bf16.msra.mxu3 %v8754_v61  ;;  %4975 = vmatpush.bf16.msrb.mxu1 %v8730_v52 }
 0x75b   :  { %4987 = vmatpush.bf16.msrb.mxu2 %v8750_v57  ;;  %v8718_v57 = vor.u32 %v9968_v63, %v8717_v39 }
 0x75e   :  { %5001 = vmatpush.bf16.msra.mxu3 %v8738_v26  ;;  %4976 = vmatpush.bf16.msrb.mxu1 %v8714_v46 }
 0x75f   :  { %4988 = vmatpush.bf16.msrb.mxu2 %v8734_v22 }
 0x762   :  { %5002 = vmatpush.bf16.msra.mxu3 %v8722_v18 }
 0x763   :  { %4989 = vmatpush.bf16.msrb.mxu2 %v8718_v57 }
 0x7cd   :  { %v4640_v2 = vpop.f32.mrf.mxu0  ;;  %v4653_v20 = vpop.f32.mrf.mxu1 }
 0x7ce   :  { %v4683_v16 = vadd.f32 %v4640_v2, %v13654_v62  ;;  %v4684_v32 = vadd.f32 %v4653_v20, %v13656_v3  ;;  %v8726_v3 = vor.u32 %v9971_v58, %v8725_v40  ;;  %v8701_v40 = vld [vmem:[%s15167_s6 + $0x8] sm:$0xf]  ;;  %v9964_v58 = vld [vmem:[%s15167_s6 + $0x14] sm:$0xf0] }
 0x7cf   :  { %v8702_v52 = vor.u32 %v9964_v58, %v8701_v40 }
 0x7d0   :  { %v8688_v54 = vmul.f32 -1.442695, %v4683_v16  ;;  %v8689_v62 = vmul.f32 -1.442695, %v4684_v32  ;;  %4962 = vmatpush.bf16.msrb.mxu0 %v8726_v3  ;;  %v9963_v16 = vld [vmem:[%s15167_s6 + $0xc] sm:$0xf0] }
 0x7d1   :  { %v9961_v32 = vld [vmem:[%s15167_s6 + $0x4] sm:$0xf]  ;;  %v8694_v61 = vor.u32 %v9963_v16, %v8693_v47  ;;  %v8703_v3 = vld [vmem:[%s15167_s6 + $0x18] sm:$0xf0]  ;;  %4990 = vmatpush.bf16.msrb.mxu2 %v8702_v52 }
 0x7d2   :  { %10315 = vpow2.f32 %v8688_v54 }
 0x7d3   :  { %10317 = vpow2.f32 %v8689_v62  ;;  %v9962_v62 = vld [vmem:[%s15167_s6 + $0xc] sm:$0xf] }
 0x7d4   :  { %v4666_v17 = vpop.f32.mrf.mxu2  ;;  %v4679_v48 = vpop.f32.mrf.mxu3  ;;  %4963 = vmatpush.bf16.msrb.mxu0 %v8710_v24  ;;  %v8706_v5 = vor.u32 %v9962_v62, %v8703_v3 }
 0x7d5   :  { %v4686_v2 = vadd.f32 %v4679_v48, %v13705_v9  ;;  %v4642_v20 = vpop.f32.mrf.mxu0  ;;  %v4655_v44 = vpop.f32.mrf.mxu1  ;;  %v8695_v9 = vld [vmem:[%s15167_s6 + $0x10] sm:$0xf0]  ;;  %v4685_v38 = vadd.f32 %v4666_v17, %v13703_v53 }
 0x7d6   :  { %v8698_v54 = vor.u32 %v9961_v32, %v8695_v9  ;;  %5003 = vmatpush.bf16.msra.mxu3 %v8706_v5 }
 0x7d7   :  { %v8690_v37 = vmul.f32 -1.442695, %v4686_v2 }
 0x7d8   :  { %v10316_v13 = vpop.eup %10315  ;;  %4964 = vmatpush.bf16.msrb.mxu0 %v8694_v61  ;;  %4977 = vmatpush.bf16.msrb.mxu1 %v8698_v54 }
 0x7d9   :  { %v10318_v30 = vpop.eup %10317  ;;  %v4690_v29 = vadd.f32 1.0, %v10316_v13  ;;  %10319 = vpow2.f32 %v8690_v37 }
 0x7da   :  { %v4709_v22 = vadd.f32 1.0, %v10318_v30 }
 0x7db   :  { %10321 = vrcp.f32 %v4690_v29  ;;  %v4702_v51 = vand.u32 2147483648, %v4690_v29  ;;  %v4700_v20 = vand.u32 2147483647, %v4690_v29  ;;  %vm4696_vm1 = vweird.f32 %v4690_v29 }
 0x7dc   :  { %10323 = vrcp.f32 %v4709_v22  ;;  %v4668_v15 = vpop.f32.mrf.mxu2  ;;  %v4681_v28 = vpop.f32.mrf.mxu3  ;;  %v4721_v55 = vand.u32 2147483648, %v4709_v22  ;;  %v4719_v57 = vand.u32 2147483647, %v4709_v22  ;;  %vm4715_vm2 = vweird.f32 %v4709_v22 }
 0x7dd   :  { %v4703_v53 = vor.u32 1.1754944e-38, %v4702_v51  ;;  %vm4701_vm5 = vcmp.eq.f32.partialorder %v4700_v20, 8.507059e+37  ;;  %v8946_v20 = vld [vmem:[%s15167_s6 + $0xf8] sm:$0xf0] }
 0x7de   :  { %v4722_v32 = vor.u32 1.1754944e-38, %v4721_v55  ;;  %vm4720_vm6 = vcmp.eq.f32.partialorder %v4719_v57, 8.507059e+37  ;;  %v8920_v57 = vld [vmem:[%s15167_s6 + $0xc0] sm:$0xf] }
 0x7df   :  { %v10320_v10 = vpop.eup %10319 }
 0x7e0   :  { %v4729_v26 = vadd.f32 1.0, %v10320_v10 }
 0x7e1   :  { %v10322_v24 = vpop.eup %10321 }
 0x7e2   :  { %v10324_v25 = vpop.eup %10323  ;;  %v4692_v39 = vmul.f32 %v10322_v24, %v4690_v29  ;;  %10325 = vrcp.f32 %v4729_v26  ;;  %vm4697_vm15 = vweird.f32 %v10322_v24  ;;  %v4741_v29 = vand.u32 2147483648, %v4729_v26 }
 0x7e3   :  { %v4711_v48 = vmul.f32 %v10324_v25, %v4709_v22  ;;  %10327 = vtanh.f32 %v4685_v38  ;;  %vm4716_vm0 = vweird.f32 %v10324_v25  ;;  %vm4698_vm3 = vmor %vm4696_vm1, %vm4697_vm15  ;;  %vm4735_vm9 = vweird.f32 %v4729_v26  ;;  %v8936_v38 = vld [vmem:[%s15167_s6 + $0xe0] sm:$0xf] }
 0x7e4   :  { %v4693_v46 = vsub.f32 1.0, %v4692_v39  ;;  %vm4717_vm4 = vmor %vm4715_vm2, %vm4716_vm0  ;;  %v4739_v5 = vand.u32 2147483647, %v4729_v26  ;;  %v4742_v15 = vor.u32 1.1754944e-38, %v4741_v29  ;;  %v8912_v29 = vld [vmem:[%s15167_s6 + $0xa8] sm:$0xf] }
 0x7e5   :  { %v4712_v63 = vsub.f32 1.0, %v4711_v48  ;;  %v8938_v48 = vld [vmem:[%s15167_s6 + $0xf0] sm:$0xf0] }
 0x7e6   :  { %v4694_v2 = vmul.f32 %v10322_v24, %v4693_v46  ;;  %vm4740_vm11 = vcmp.eq.f32.partialorder %v4739_v5, 8.507059e+37  ;;  %v8944_v46 = vld [vmem:[%s15167_s6 + $0xe8] sm:$0xf]  ;;  %v10016_v5 = vld [vmem:[%s15167_s6 + $0xb4] sm:$0xf0] }
 0x7e7   :  { %v4713_v44 = vmul.f32 %v10324_v25, %v4712_v63  ;;  %v10024_v63 = vld [vmem:[%s15167_s6 + $0xf4] sm:$0xf0] }
 0x7e8   :  { %v10326_v18 = vpop.eup %10325  ;;  %v4695_v47 = vadd.f32 %v10322_v24, %v4694_v2  ;;  %v8945_v55 = vor.u32 %v10024_v63, %v8944_v46  ;;  %v10022_v2 = vld [vmem:[%s15167_s6 + $0xec] sm:$0xf]  ;;  %v8896_v46 = vld [vmem:[%s15167_s6 + $0x88] sm:$0xf]  ;;  %v10012_v63 = vld [vmem:[%s15167_s6 + $0x94] sm:$0xf0] }
 0x7e9   :  { %v4714_v17 = vadd.f32 %v10324_v25, %v4713_v44  ;;  %v4731_v16 = vmul.f32 %v10326_v18, %v4729_v26  ;;  %v10328_v9 = vpop.eup %10327  ;;  %vm4736_vm8 = vweird.f32 %v10326_v18  ;;  %v10023_v26 = vld [vmem:[%s15167_s6 + $0xec] sm:$0xf0]  ;;  %v8949_v44 = vor.u32 %v10022_v2, %v8946_v20  ;;  %v10010_v2 = vld [vmem:[%s15167_s6 + $0x8c] sm:$0xf]  ;;  %v8898_v20 = vld [vmem:[%s15167_s6 + $0x98] sm:$0xf0] }
 0x7ea   :  { %v4699_v61 = vsel %vm4698_vm3, %v10322_v24, %v4695_v47  ;;  %vm4737_vm10 = vmor %vm4735_vm9, %vm4736_vm8  ;;  %v8937_v39 = vor.u32 %v10023_v26, %v8936_v38  ;;  %5309 = vmatpush.bf16.msra.mxu2 %v8945_v55  ;;  %v10017_v47 = vld [vmem:[%s15167_s6 + $0xc4] sm:$0xf]  ;;  %v8888_v38 = vld [vmem:[%s15167_s6 + $0x80] sm:$0xf]  ;;  %v8897_v55 = vor.u32 %v10012_v63, %v8896_v46 }
 0x7eb   :  { %v4704_v40 = vsel %vm4701_vm5, %v4703_v53, %v4699_v61  ;;  %v4718_v58 = vsel %vm4717_vm4, %v10324_v25, %v4714_v17  ;;  %v4732_v37 = vsub.f32 1.0, %v4731_v16  ;;  %v10021_v25 = vld [vmem:[%s15167_s6 + $0xe4] sm:$0xf]  ;;  %5322 = vmatpush.bf16.msrb.mxu3 %v8949_v44  ;;  %v8922_v17 = vld [vmem:[%s15167_s6 + $0xd0] sm:$0xf0]  ;;  %v8901_v44 = vor.u32 %v10010_v2, %v8898_v20 }
 0x7ec   :  { %v4723_v54 = vsel %vm4720_vm6, %v4722_v32, %v4718_v58  ;;  %v4746_v62 = vmul.f32 %v10328_v9, %v4704_v40  ;;  %v8941_v51 = vor.u32 %v10021_v25, %v8938_v48  ;;  %5283 = vmatpush.bf16.msra.mxu0 %v8937_v39  ;;  %v8928_v16 = vld [vmem:[%s15167_s6 + $0xc8] sm:$0xf]  ;;  %v10020_v32 = vld [vmem:[%s15167_s6 + $0xd4] sm:$0xf0]  ;;  %v8925_v61 = vor.u32 %v10017_v47, %v8922_v17  ;;  %v10018_v40 = vld [vmem:[%s15167_s6 + $0xcc] sm:$0xf] }
 0x7ed   :  { %v4745_v3 = vmul.f32 %v4723_v54, %v13833_v31  ;;  %v4733_v13 = vmul.f32 %v10326_v18, %v4732_v37  ;;  %v8929_v9 = vor.u32 %v10020_v32, %v8928_v16  ;;  %v8930_v58 = vld [vmem:[%s15167_s6 + $0xd8] sm:$0xf0]  ;;  %v8904_v54 = vld [vmem:[%s15167_s6 + $0xa0] sm:$0xf]  ;;  %v10011_v26 = vld [vmem:[%s15167_s6 + $0x8c] sm:$0xf0] }
 0x7ee   :  { %5296 = vmatpush.bf16.msra.mxu1 %v8941_v51  ;;  %v8933_v37 = vor.u32 %v10018_v40, %v8930_v58  ;;  %v10009_v25 = vld [vmem:[%s15167_s6 + $0x84] sm:$0xf]  ;;  %v8889_v39 = vor.u32 %v10011_v26, %v8888_v38  ;;  %v8890_v48 = vld [vmem:[%s15167_s6 + $0x90] sm:$0xf0]  ;;  %v8880_v16 = vld [vmem:[%s15167_s6 + $0x68] sm:$0xf] }
 0x7ef   :  { %v14037_v52 = vadd.f32 %v4746_v62, %v4745_v3  ;;  %v4734_v30 = vadd.f32 %v10326_v18, %v4733_v13  ;;  %5310 = vmatpush.bf16.msra.mxu2 %v8929_v9  ;;  %v10015_v62 = vld [vmem:[%s15167_s6 + $0xac] sm:$0xf0]  ;;  %v10013_v3 = vld [vmem:[%s15167_s6 + $0xa4] sm:$0xf]  ;;  %v8893_v51 = vor.u32 %v10009_v25, %v8890_v48  ;;  %v8874_v17 = vld [vmem:[%s15167_s6 + $0x70] sm:$0xf0] }
 0x7f0   :  { %5323 = vmatpush.bf16.msrb.mxu3 %v8933_v37  ;;  %v8905_v13 = vor.u32 %v10015_v62, %v8904_v54  ;;  %v10005_v47 = vld [vmem:[%s15167_s6 + $0x64] sm:$0xf]  ;;  %v10008_v32 = vld [vmem:[%s15167_s6 + $0x74] sm:$0xf0]  ;;  %v10006_v37 = vld [vmem:[%s15167_s6 + $0x6c] sm:$0xf] }
 0x7f1   :  { %10329 = vtanh.f32 %v14037_v52  ;;  %v4738_v22 = vsel %vm4737_vm10, %v10326_v18, %v4734_v30  ;;  %v10019_v18 = vld [vmem:[%s15167_s6 + $0xcc] sm:$0xf0]  ;;  %v8906_v30 = vld [vmem:[%s15167_s6 + $0xb0] sm:$0xf0]  ;;  %v8877_v40 = vor.u32 %v10005_v47, %v8874_v17  ;;  %v8881_v58 = vor.u32 %v10008_v32, %v8880_v16  ;;  %v8882_v54 = vld [vmem:[%s15167_s6 + $0x78] sm:$0xf0] }
 0x7f2   :  { %v4743_v10 = vsel %vm4740_vm11, %v4742_v15, %v4738_v22  ;;  %v8921_v53 = vor.u32 %v10019_v18, %v8920_v57  ;;  %5297 = vmatpush.bf16.msra.mxu1 %v8925_v61  ;;  %v8909_v22 = vor.u32 %v10013_v3, %v8906_v30  ;;  %v8913_v15 = vor.u32 %v10016_v5, %v8912_v29  ;;  %v8872_v57 = vld [vmem:[%s15167_s6 + $0x60] sm:$0xf]  ;;  %v10007_v18 = vld [vmem:[%s15167_s6 + $0x6c] sm:$0xf0]  ;;  %v10001_v5 = vld [vmem:[%s15167_s6 + $0x44] sm:$0xf] }
 0x7f3   :  { %v8856_v30 = vld [vmem:[%s15167_s6 + $0x40] sm:$0xf]  ;;  %v10003_v29 = vld [vmem:[%s15167_s6 + $0x4c] sm:$0xf0]  ;;  %v10002_v38 = vld [vmem:[%s15167_s6 + $0x4c] sm:$0xf] }
 0x7f4   :  { %5284 = vmatpush.bf16.msra.mxu0 %v8921_v53  ;;  %5311 = vmatpush.bf16.msra.mxu2 %v8913_v15  ;;  %v8873_v53 = vor.u32 %v10007_v18, %v8872_v57  ;;  %v8858_v15 = vld [vmem:[%s15167_s6 + $0x50] sm:$0xf0]  ;;  %v8866_v25 = vld [vmem:[%s15167_s6 + $0x58] sm:$0xf0]  ;;  %v9999_v48 = vld [vmem:[%s15167_s6 + $0x2c] sm:$0xf0] }
 0x7f5   :  { %v8869_v46 = vor.u32 %v10002_v38, %v8866_v25  ;;  %v8848_v2 = vld [vmem:[%s15167_s6 + $0x28] sm:$0xf]  ;;  %v10000_v18 = vld [vmem:[%s15167_s6 + $0x34] sm:$0xf0]  ;;  %v9998_v47 = vld [vmem:[%s15167_s6 + $0x2c] sm:$0xf] }
 0x7f6   :  { %5298 = vmatpush.bf16.msra.mxu1 %v8909_v22 }
 0x7f7   :  { %v10330_v28 = vpop.eup %10329 }
 0x7f8   :  { %v14040_v24 = vmul.f32 %v10330_v28, %v4743_v10  ;;  %v10014_v28 = vld [vmem:[%s15167_s6 + $0xac] sm:$0xf]  ;;  %v8914_v10 = vld [vmem:[%s15167_s6 + $0xb8] sm:$0xf0]  ;;  %5285 = vmatpush.bf16.msra.mxu0 %v8905_v13  ;;  %5312 = vmatpush.bf16.msra.mxu2 %v8897_v55  ;;  %v8885_v13 = vor.u32 %v10006_v37, %v8882_v54  ;;  %v8842_v55 = vld [vmem:[%s15167_s6 + $0x30] sm:$0xf0] }
 0x7f9   :  { %v9993_v37 = vld [vmem:[%s15167_s6 + $0x4] sm:$0xf] }
 0x7fa   :  { %v4764_v31 = vpack.c.bf16 %v14040_v24, %v14040_v24  ;;  %5299 = vmatpush.bf16.msra.mxu1 %v8893_v51  ;;  %v9997_v51 = vld [vmem:[%s15167_s6 + $0x24] sm:$0xf] }
 0x7fb   :  { %v8845_v57 = vor.u32 %v9997_v51, %v8842_v55 }
 0x7fc   :  { %4965 = vmatmul.bf16.vlgmr.msrb.gmra.mxu0 %v4764_v31  ;;  %4978 = vmatmul.bf16.vlgmr.msrb.gmra.mxu1 %v4764_v31 }
 0x7fd   :  { %4991 = vmatmul.bf16.vlgmr.msrb.gmra.mxu2 %v4764_v31  ;;  %5004 = vmatmul.bf16.vlgmr.msra.gmra.mxu3 %v4764_v31  ;;  %v8917_v31 = vor.u32 %v10014_v28, %v8914_v10  ;;  %v8861_v28 = vor.u32 %v10001_v5, %v8858_v15  ;;  %v8864_v10 = vld [vmem:[%s15167_s6 + $0x48] sm:$0xf]  ;;  %v8834_v5 = vld [vmem:[%s15167_s6 + $0x18] sm:$0xf0] }
 0x7fe   :  { %5286 = vmatpush.bf16.msra.mxu0 %v8889_v39  ;;  %5300 = vmatpush.bf16.msra.mxu1 %v8877_v40  ;;  %v8840_v39 = vld [vmem:[%s15167_s6 + $0x20] sm:$0xf] }
 0x7ff   :  { %5324 = vmatpush.bf16.msrb.mxu3 %v8917_v31  ;;  %5313 = vmatpush.bf16.msra.mxu2 %v8881_v58  ;;  %v10004_v31 = vld [vmem:[%s15167_s6 + $0x54] sm:$0xf0]  ;;  %v8841_v63 = vor.u32 %v9999_v48, %v8840_v39  ;;  %v8824_v40 = vld [vmem:[%s15167_s6] sm:$0xf]  ;;  %v9995_v58 = vld [vmem:[%s15167_s6 + $0xc] sm:$0xf0] }
 0x800   :  { %v8865_v26 = vor.u32 %v10004_v31, %v8864_v10  ;;  %v8825_v54 = vor.u32 %v9995_v58, %v8824_v40 }
 0x802   :  { %5287 = vmatpush.bf16.msra.mxu0 %v8873_v53  ;;  %5301 = vmatpush.bf16.msra.mxu1 %v8861_v28  ;;  %v8850_v53 = vld [vmem:[%s15167_s6 + $0x38] sm:$0xf0] }
 0x803   :  { %5325 = vmatpush.bf16.msrb.mxu3 %v8901_v44  ;;  %5314 = vmatpush.bf16.msra.mxu2 %v8865_v26 }
 0x806   :  { %5302 = vmatpush.bf16.msra.mxu1 %v8845_v57 }
 0x807   :  { %5326 = vmatpush.bf16.msrb.mxu3 %v8885_v13 }
 0x80b   :  { %5327 = vmatpush.bf16.msrb.mxu3 %v8869_v46 }
 0x879   :  { %v4966_v61 = vpop.f32.mrf.mxu0  ;;  %v4979_v9 = vpop.f32.mrf.mxu1 }
 0x87a   :  { %v5009_v62 = vadd.f32 %v4966_v61, %v13593_v12  ;;  %v5010_v3 = vadd.f32 %v4979_v9, %v13596_v42  ;;  %v8857_v42 = vor.u32 %v10003_v29, %v8856_v30  ;;  %v8849_v61 = vor.u32 %v10000_v18, %v8848_v2  ;;  %v9994_v29 = vld [vmem:[%s15167_s6 + $0xc] sm:$0xf] }
 0x87b   :  { %v8853_v9 = vor.u32 %v9998_v47, %v8850_v53  ;;  %v8837_v28 = vor.u32 %v9994_v29, %v8834_v5 }
 0x87c   :  { %v8819_v22 = vmul.f32 -1.442695, %v5009_v62  ;;  %v8820_v12 = vmul.f32 -1.442695, %v5010_v3  ;;  %5288 = vmatpush.bf16.msra.mxu0 %v8857_v42  ;;  %v8832_v62 = vld [vmem:[%s15167_s6 + $0x8] sm:$0xf]  ;;  %5315 = vmatpush.bf16.msra.mxu2 %v8849_v61 }
 0x87d   :  { %v9996_v3 = vld [vmem:[%s15167_s6 + $0x14] sm:$0xf0]  ;;  %5328 = vmatpush.bf16.msrb.mxu3 %v8853_v9 }
 0x87e   :  { %10331 = vpow2.f32 %v8819_v22 }
 0x87f   :  { %10333 = vpow2.f32 %v8820_v12  ;;  %v8833_v12 = vor.u32 %v9996_v3, %v8832_v62 }
 0x880   :  { %v4992_v20 = vpop.f32.mrf.mxu2  ;;  %v5005_v44 = vpop.f32.mrf.mxu3  ;;  %5289 = vmatpush.bf16.msra.mxu0 %v8841_v63 }
 0x881   :  { %v5012_v17 = vadd.f32 %v5005_v44, %v13643_v36  ;;  %v4968_v16 = vpop.f32.mrf.mxu0  ;;  %v4981_v32 = vpop.f32.mrf.mxu1  ;;  %v8826_v36 = vld [vmem:[%s15167_s6 + $0x10] sm:$0xf0]  ;;  %5316 = vmatpush.bf16.msra.mxu2 %v8833_v12  ;;  %5329 = vmatpush.bf16.msrb.mxu3 %v8837_v28  ;;  %v5011_v48 = vadd.f32 %v4992_v20, %v13640_v60 }
 0x882   :  { %v8829_v30 = vor.u32 %v9993_v37, %v8826_v36 }
 0x883   :  { %v8821_v13 = vmul.f32 -1.442695, %v5012_v17 }
 0x884   :  { %v10332_v22 = vpop.eup %10331  ;;  %5290 = vmatpush.bf16.msra.mxu0 %v8825_v54  ;;  %5303 = vmatpush.bf16.msra.mxu1 %v8829_v30 }
 0x885   :  { %v10334_v42 = vpop.eup %10333  ;;  %v5016_v15 = vadd.f32 1.0, %v10332_v22  ;;  %10335 = vpow2.f32 %v8821_v13 }
 0x886   :  { %v5035_v10 = vadd.f32 1.0, %v10334_v42 }
 0x887   :  { %10337 = vrcp.f32 %v5016_v15  ;;  %v5028_v44 = vand.u32 2147483648, %v5016_v15  ;;  %v5026_v47 = vand.u32 2147483647, %v5016_v15  ;;  %vm5022_vm14 = vweird.f32 %v5016_v15 }
 0x888   :  { %10339 = vrcp.f32 %v5035_v10  ;;  %v4994_v31 = vpop.f32.mrf.mxu2  ;;  %v5007_v38 = vpop.f32.mrf.mxu3  ;;  %v5047_v57 = vand.u32 2147483648, %v5035_v10  ;;  %v5045_v17 = vand.u32 2147483647, %v5035_v10  ;;  %vm5041_vm15 = vweird.f32 %v5035_v10 }
 0x889   :  { %v5029_v60 = vor.u32 1.1754944e-38, %v5028_v44  ;;  %vm5027_vm2 = vcmp.eq.f32.partialorder %v5026_v47, 8.507059e+37  ;;  %v9067_v38 = vld [vmem:[%s15167_s6 + $0xe0] sm:$0xf]  ;;  %v9077_v44 = vld [vmem:[%s15167_s6 + $0xf8] sm:$0xf0] }
 0x88a   :  { %v5048_v9 = vor.u32 1.1754944e-38, %v5047_v57  ;;  %vm5046_vm3 = vcmp.eq.f32.partialorder %v5045_v17, 8.507059e+37  ;;  %v10051_v47 = vld [vmem:[%s15167_s6 + $0xcc] sm:$0xf0] }
 0x88b   :  { %v10336_v26 = vpop.eup %10335 }
 0x88c   :  { %v5055_v25 = vadd.f32 1.0, %v10336_v26  ;;  %v10055_v26 = vld [vmem:[%s15167_s6 + $0xec] sm:$0xf0] }
 0x88d   :  { %v10338_v39 = vpop.eup %10337 }
 0x88e   :  { %v10340_v46 = vpop.eup %10339  ;;  %v5018_v63 = vmul.f32 %v10338_v39, %v5016_v15  ;;  %10341 = vrcp.f32 %v5055_v25  ;;  %vm5023_vm12 = vweird.f32 %v10338_v39  ;;  %v5067_v22 = vand.u32 2147483648, %v5055_v25 }
 0x88f   :  { %v5037_v51 = vmul.f32 %v10340_v46, %v5035_v10  ;;  %10343 = vtanh.f32 %v5011_v48  ;;  %vm5042_vm13 = vweird.f32 %v10340_v46  ;;  %vm5024_vm0 = vmor %vm5022_vm14, %vm5023_vm12  ;;  %vm5061_vm5 = vweird.f32 %v5055_v25  ;;  %v9069_v48 = vld [vmem:[%s15167_s6 + $0xf0] sm:$0xf0] }
 0x890   :  { %v5019_v55 = vsub.f32 1.0, %v5018_v63  ;;  %vm5043_vm1 = vmor %vm5041_vm15, %vm5042_vm13  ;;  %v5065_v12 = vand.u32 2147483647, %v5055_v25  ;;  %v5068_v15 = vor.u32 1.1754944e-38, %v5067_v22  ;;  %v10056_v63 = vld [vmem:[%s15167_s6 + $0xf4] sm:$0xf0] }
 0x891   :  { %v5038_v2 = vsub.f32 1.0, %v5037_v51 }
 0x892   :  { %v5020_v18 = vmul.f32 %v10338_v39, %v5019_v55  ;;  %vm5066_vm8 = vcmp.eq.f32.partialorder %v5065_v12, 8.507059e+37  ;;  %v10046_v12 = vld [vmem:[%s15167_s6 + $0xac] sm:$0xf] }
 0x893   :  { %v5039_v53 = vmul.f32 %v10340_v46, %v5038_v2  ;;  %v10054_v2 = vld [vmem:[%s15167_s6 + $0xec] sm:$0xf] }
 0x894   :  { %v10342_v16 = vpop.eup %10341  ;;  %v5021_v32 = vadd.f32 %v10338_v39, %v5020_v18  ;;  %v9080_v57 = vor.u32 %v10054_v2, %v9077_v44  ;;  %v9051_v18 = vld [vmem:[%s15167_s6 + $0xc0] sm:$0xf]  ;;  %v10039_v44 = vld [vmem:[%s15167_s6 + $0x6c] sm:$0xf0] }
 0x895   :  { %v5040_v20 = vadd.f32 %v10340_v46, %v5039_v53  ;;  %v5057_v61 = vmul.f32 %v10342_v16, %v5055_v25  ;;  %v10344_v58 = vpop.eup %10343  ;;  %vm5062_vm4 = vweird.f32 %v10342_v16  ;;  %v10053_v25 = vld [vmem:[%s15167_s6 + $0xe4] sm:$0xf]  ;;  %v9052_v17 = vor.u32 %v10051_v47, %v9051_v18  ;;  %v9003_v2 = vld [vmem:[%s15167_s6 + $0x60] sm:$0xf]  ;;  %v9005_v47 = vld [vmem:[%s15167_s6 + $0x70] sm:$0xf0] }
 0x896   :  { %v5025_v40 = vsel %vm5024_vm0, %v10338_v39, %v5021_v32  ;;  %vm5063_vm6 = vmor %vm5061_vm5, %vm5062_vm4  ;;  %v9068_v39 = vor.u32 %v10055_v26, %v9067_v38  ;;  %v9072_v51 = vor.u32 %v10053_v25, %v9069_v48  ;;  %v10049_v53 = vld [vmem:[%s15167_s6 + $0xc4] sm:$0xf]  ;;  %5648 = vmatpush.bf16.msra.mxu3 %v9080_v57  ;;  %v9059_v32 = vld [vmem:[%s15167_s6 + $0xc8] sm:$0xf]  ;;  %v9004_v18 = vor.u32 %v10039_v44, %v9003_v2 }
 0x897   :  { %v5030_v37 = vsel %vm5027_vm2, %v5029_v60, %v5025_v40  ;;  %v5044_v54 = vsel %vm5043_vm1, %v10340_v46, %v5040_v20  ;;  %v5058_v36 = vsub.f32 1.0, %v5057_v61  ;;  %v9075_v46 = vld [vmem:[%s15167_s6 + $0xe8] sm:$0xf]  ;;  %v10052_v60 = vld [vmem:[%s15167_s6 + $0xd4] sm:$0xf0] }
 0x898   :  { %v5049_v62 = vsel %vm5046_vm3, %v5048_v9, %v5044_v54  ;;  %v5072_v3 = vmul.f32 %v10344_v58, %v5030_v37  ;;  %v9076_v55 = vor.u32 %v10056_v63, %v9075_v46  ;;  %5609 = vmatpush.bf16.msrb.mxu0 %v9068_v39  ;;  %5622 = vmatpush.bf16.msrb.mxu1 %v9072_v51  ;;  %v10050_v9 = vld [vmem:[%s15167_s6 + $0xcc] sm:$0xf]  ;;  %v9061_v40 = vld [vmem:[%s15167_s6 + $0xd8] sm:$0xf0]  ;;  %v9035_v37 = vld [vmem:[%s15167_s6 + $0xa0] sm:$0xf] }
 0x899   :  { %v5071_v13 = vmul.f32 %v5049_v62, %v14037_v52  ;;  %v5059_v30 = vmul.f32 %v10342_v16, %v5058_v36  ;;  %v9060_v61 = vor.u32 %v10052_v60, %v9059_v32  ;;  %v9064_v58 = vor.u32 %v10050_v9, %v9061_v40  ;;  %v10047_v54 = vld [vmem:[%s15167_s6 + $0xac] sm:$0xf0]  ;;  %v10045_v36 = vld [vmem:[%s15167_s6 + $0xa4] sm:$0xf]  ;;  %v9021_v26 = vld [vmem:[%s15167_s6 + $0x90] sm:$0xf0] }
 0x89a   :  { %5635 = vmatpush.bf16.msrb.mxu2 %v9076_v55  ;;  %v9036_v62 = vor.u32 %v10047_v54, %v9035_v37  ;;  %v9027_v25 = vld [vmem:[%s15167_s6 + $0x88] sm:$0xf]  ;;  %v10044_v39 = vld [vmem:[%s15167_s6 + $0x94] sm:$0xf0]  ;;  %v10042_v63 = vld [vmem:[%s15167_s6 + $0x8c] sm:$0xf] }
 0x89b   :  { %v14241_v29 = vadd.f32 %v5072_v3, %v5071_v13  ;;  %v5060_v5 = vadd.f32 %v10342_v16, %v5059_v30  ;;  %5649 = vmatpush.bf16.msra.mxu3 %v9064_v58  ;;  %v9037_v3 = vld [vmem:[%s15167_s6 + $0xb0] sm:$0xf0]  ;;  %v9043_v13 = vld [vmem:[%s15167_s6 + $0xa8] sm:$0xf]  ;;  %v10048_v30 = vld [vmem:[%s15167_s6 + $0xb4] sm:$0xf0]  ;;  %v9028_v46 = vor.u32 %v10044_v39, %v9027_v25 }
 0x89c   :  { %5610 = vmatpush.bf16.msrb.mxu0 %v9052_v17  ;;  %v9044_v22 = vor.u32 %v10048_v30, %v9043_v13  ;;  %v9029_v51 = vld [vmem:[%s15167_s6 + $0x98] sm:$0xf0]  ;;  %v10037_v57 = vld [vmem:[%s15167_s6 + $0x64] sm:$0xf]  ;;  %v10040_v17 = vld [vmem:[%s15167_s6 + $0x74] sm:$0xf0] }
 0x89d   :  { %10345 = vtanh.f32 %v14241_v29  ;;  %v5064_v42 = vsel %vm5063_vm6, %v10342_v16, %v5060_v5  ;;  %v9053_v16 = vld [vmem:[%s15167_s6 + $0xd0] sm:$0xf0]  ;;  %v9040_v5 = vor.u32 %v10045_v36, %v9037_v3  ;;  %v9032_v55 = vor.u32 %v10042_v63, %v9029_v51  ;;  %v9013_v9 = vld [vmem:[%s15167_s6 + $0x78] sm:$0xf0]  ;;  %v8987_v54 = vld [vmem:[%s15167_s6 + $0x40] sm:$0xf] }
 0x89e   :  { %v5069_v10 = vsel %vm5066_vm8, %v5068_v15, %v5064_v42  ;;  %v9056_v20 = vor.u32 %v10049_v53, %v9053_v16  ;;  %5636 = vmatpush.bf16.msrb.mxu2 %v9060_v61  ;;  %v9045_v42 = vld [vmem:[%s15167_s6 + $0xb8] sm:$0xf0]  ;;  %v9011_v53 = vld [vmem:[%s15167_s6 + $0x68] sm:$0xf]  ;;  %v9008_v60 = vor.u32 %v10037_v57, %v9005_v47  ;;  %v10038_v61 = vld [vmem:[%s15167_s6 + $0x6c] sm:$0xf] }
 0x89f   :  { %v9048_v15 = vor.u32 %v10046_v12, %v9045_v42  ;;  %v9016_v37 = vor.u32 %v10038_v61, %v9013_v9  ;;  %v10035_v36 = vld [vmem:[%s15167_s6 + $0x4c] sm:$0xf0]  ;;  %v8989_v13 = vld [vmem:[%s15167_s6 + $0x50] sm:$0xf0]  ;;  %v10034_v12 = vld [vmem:[%s15167_s6 + $0x4c] sm:$0xf] }
 0x8a0   :  { %5623 = vmatpush.bf16.msrb.mxu1 %v9056_v20  ;;  %5611 = vmatpush.bf16.msrb.mxu0 %v9036_v62  ;;  %v9012_v20 = vor.u32 %v10040_v17, %v9011_v53  ;;  %v10033_v62 = vld [vmem:[%s15167_s6 + $0x44] sm:$0xf]  ;;  %v8973_v25 = vld [vmem:[%s15167_s6 + $0x30] sm:$0xf0]  ;;  %v8979_v39 = vld [vmem:[%s15167_s6 + $0x28] sm:$0xf] }
 0x8a1   :  { %5650 = vmatpush.bf16.msra.mxu3 %v9048_v15  ;;  %v8992_v30 = vor.u32 %v10033_v62, %v8989_v13  ;;  %v8997_v15 = vld [vmem:[%s15167_s6 + $0x58] sm:$0xf0]  ;;  %v10032_v51 = vld [vmem:[%s15167_s6 + $0x34] sm:$0xf0]  ;;  %v8955_v17 = vld [vmem:[%s15167_s6] sm:$0xf] }
 0x8a2   :  { %5637 = vmatpush.bf16.msrb.mxu2 %v9044_v22  ;;  %v10036_v22 = vld [vmem:[%s15167_s6 + $0x54] sm:$0xf0]  ;;  %v8981_v2 = vld [vmem:[%s15167_s6 + $0x38] sm:$0xf0]  ;;  %v8980_v47 = vor.u32 %v10032_v51, %v8979_v39 }
 0x8a3   :  { %v10346_v28 = vpop.eup %10345  ;;  %v10028_v61 = vld [vmem:[%s15167_s6 + $0x14] sm:$0xf0] }
 0x8a4   :  { %v14244_v31 = vmul.f32 %v10346_v28, %v5069_v10  ;;  %5624 = vmatpush.bf16.msrb.mxu1 %v9040_v5  ;;  %v9019_v28 = vld [vmem:[%s15167_s6 + $0x80] sm:$0xf]  ;;  %v10043_v10 = vld [vmem:[%s15167_s6 + $0x8c] sm:$0xf0]  ;;  %v8995_v5 = vld [vmem:[%s15167_s6 + $0x48] sm:$0xf] }
 0x8a5   :  { %v9020_v38 = vor.u32 %v10043_v10, %v9019_v28  ;;  %5651 = vmatpush.bf16.msra.mxu3 %v9032_v55  ;;  %v8996_v42 = vor.u32 %v10036_v22, %v8995_v5  ;;  %v8971_v28 = vld [vmem:[%s15167_s6 + $0x20] sm:$0xf]  ;;  %v10031_v10 = vld [vmem:[%s15167_s6 + $0x2c] sm:$0xf0]  ;;  %v10030_v55 = vld [vmem:[%s15167_s6 + $0x2c] sm:$0xf] }
 0x8a6   :  { %v5090_v52 = vpack.c.bf16 %v14244_v31, %v14244_v31  ;;  %5638 = vmatpush.bf16.msrb.mxu2 %v9028_v46  ;;  %v8984_v53 = vor.u32 %v10030_v55, %v8981_v2 }
 0x8a7   :  { %5612 = vmatpush.bf16.msrb.mxu0 %v9020_v38  ;;  %v8972_v38 = vor.u32 %v10031_v10, %v8971_v28 }
 0x8a8   :  { %5291 = vmatmul.bf16.vlgmr.msra.gmra.mxu0 %v5090_v52  ;;  %5304 = vmatmul.bf16.vlgmr.msra.gmra.mxu1 %v5090_v52 }
 0x8a9   :  { %5317 = vmatmul.bf16.vlgmr.msra.gmra.mxu2 %v5090_v52  ;;  %5330 = vmatmul.bf16.vlgmr.msrb.gmra.mxu3 %v5090_v52  ;;  %v10041_v52 = vld [vmem:[%s15167_s6 + $0x84] sm:$0xf] }
 0x8aa   :  { %v9024_v48 = vor.u32 %v10041_v52, %v9021_v26  ;;  %5639 = vmatpush.bf16.msrb.mxu2 %v9012_v20  ;;  %5652 = vmatpush.bf16.msra.mxu3 %v9016_v37  ;;  %v9000_v52 = vor.u32 %v10034_v12, %v8997_v15  ;;  %v10029_v26 = vld [vmem:[%s15167_s6 + $0x24] sm:$0xf]  ;;  %v8963_v20 = vld [vmem:[%s15167_s6 + $0x8] sm:$0xf]  ;;  %v8965_v37 = vld [vmem:[%s15167_s6 + $0x18] sm:$0xf0] }
 0x8ab   :  { %5613 = vmatpush.bf16.msrb.mxu0 %v9004_v18  ;;  %v8976_v63 = vor.u32 %v10029_v26, %v8973_v25 }
 0x8ac   :  { %5625 = vmatpush.bf16.msrb.mxu1 %v9024_v48 }
 0x8ae   :  { %5640 = vmatpush.bf16.msrb.mxu2 %v8996_v42  ;;  %5653 = vmatpush.bf16.msra.mxu3 %v9000_v52 }
 0x8b0   :  { %5626 = vmatpush.bf16.msrb.mxu1 %v9008_v60 }
 0x8b2   :  { %5641 = vmatpush.bf16.msrb.mxu2 %v8980_v47  ;;  %5654 = vmatpush.bf16.msra.mxu3 %v8984_v53 }
 0x8b4   :  { %5627 = vmatpush.bf16.msrb.mxu1 %v8992_v30 }
 0x8b8   :  { %5628 = vmatpush.bf16.msrb.mxu1 %v8976_v63 }
 0x925   :  { %v5292_v16 = vpop.f32.mrf.mxu0  ;;  %v5305_v32 = vpop.f32.mrf.mxu1 }
 0x926   :  { %v5335_v40 = vadd.f32 %v5292_v16, %v13576_v59  ;;  %v5336_v58 = vadd.f32 %v5305_v32, %v13578_v23  ;;  %v8988_v23 = vor.u32 %v10035_v36, %v8987_v54  ;;  %v10027_v16 = vld [vmem:[%s15167_s6 + $0xc] sm:$0xf0]  ;;  %v10025_v32 = vld [vmem:[%s15167_s6 + $0x4] sm:$0xf]  ;;  %v8964_v36 = vor.u32 %v10028_v61, %v8963_v20 }
 0x927   :  { %v8956_v60 = vor.u32 %v10027_v16, %v8955_v17 }
 0x928   :  { %v8950_v3 = vmul.f32 -1.442695, %v5335_v40  ;;  %v8951_v59 = vmul.f32 -1.442695, %v5336_v58  ;;  %5614 = vmatpush.bf16.msrb.mxu0 %v8988_v23  ;;  %v10026_v58 = vld [vmem:[%s15167_s6 + $0xc] sm:$0xf]  ;;  %5642 = vmatpush.bf16.msrb.mxu2 %v8964_v36 }
 0x92a   :  { %10347 = vpow2.f32 %v8950_v3 }
 0x92b   :  { %10349 = vpow2.f32 %v8951_v59  ;;  %v8968_v59 = vor.u32 %v10026_v58, %v8965_v37 }
 0x92c   :  { %v5318_v48 = vpop.f32.mrf.mxu2  ;;  %v5331_v46 = vpop.f32.mrf.mxu3  ;;  %5615 = vmatpush.bf16.msrb.mxu0 %v8972_v38 }
 0x92d   :  { %v5338_v44 = vadd.f32 %v5331_v46, %v13590_v50  ;;  %v5294_v57 = vpop.f32.mrf.mxu0  ;;  %v5307_v18 = vpop.f32.mrf.mxu1  ;;  %v8957_v50 = vld [vmem:[%s15167_s6 + $0x10] sm:$0xf0]  ;;  %5655 = vmatpush.bf16.msra.mxu3 %v8968_v59  ;;  %v5337_v42 = vadd.f32 %v5318_v48, %v13588_v7  ;;  %v9198_v59 = vld [vmem:[%s15167_s6 + $0xe0] sm:$0xf] }
 0x92e   :  { %v8960_v40 = vor.u32 %v10025_v32, %v8957_v50 }
 0x92f   :  { %v8952_v9 = vmul.f32 -1.442695, %v5338_v44 }
 0x930   :  { %v10348_v54 = vpop.eup %10347  ;;  %5616 = vmatpush.bf16.msrb.mxu0 %v8956_v60  ;;  %5629 = vmatpush.bf16.msrb.mxu1 %v8960_v40 }
 0x931   :  { %v10350_v62 = vpop.eup %10349  ;;  %v5342_v3 = vadd.f32 1.0, %v10348_v54  ;;  %10351 = vpow2.f32 %v8952_v9 }
 0x932   :  { %v5361_v23 = vadd.f32 1.0, %v10350_v62 }
 0x933   :  { %10353 = vrcp.f32 %v5342_v3  ;;  %v5354_v26 = vand.u32 2147483648, %v5342_v3  ;;  %v5352_v46 = vand.u32 2147483647, %v5342_v3  ;;  %vm5348_vm11 = vweird.f32 %v5342_v3 }
 0x934   :  { %10355 = vrcp.f32 %v5361_v23  ;;  %v5320_v13 = vpop.f32.mrf.mxu2  ;;  %v5333_v30 = vpop.f32.mrf.mxu3  ;;  %v5373_v25 = vand.u32 2147483648, %v5361_v23  ;;  %v5371_v51 = vand.u32 2147483647, %v5361_v23  ;;  %vm5367_vm12 = vweird.f32 %v5361_v23 }
 0x935   :  { %v5355_v7 = vor.u32 1.1754944e-38, %v5354_v26  ;;  %vm5353_vm15 = vcmp.eq.f32.partialorder %v5352_v46, 8.507059e+37  ;;  %v10085_v13 = vld [vmem:[%s15167_s6 + $0xe4] sm:$0xf]  ;;  %v10083_v26 = vld [vmem:[%s15167_s6 + $0xcc] sm:$0xf0] }
 0x936   :  { %v5374_v57 = vor.u32 1.1754944e-38, %v5373_v25  ;;  %vm5372_vm0 = vcmp.eq.f32.partialorder %v5371_v51, 8.507059e+37  ;;  %v10081_v25 = vld [vmem:[%s15167_s6 + $0xc4] sm:$0xf]  ;;  %v9184_v46 = vld [vmem:[%s15167_s6 + $0xd0] sm:$0xf0] }
 0x937   :  { %v10352_v5 = vpop.eup %10351  ;;  %v10084_v51 = vld [vmem:[%s15167_s6 + $0xd4] sm:$0xf0] }
 0x938   :  { %v5381_v22 = vadd.f32 1.0, %v10352_v5  ;;  %v9200_v5 = vld [vmem:[%s15167_s6 + $0xf0] sm:$0xf0] }
 0x939   :  { %v10354_v12 = vpop.eup %10353 }
 0x93a   :  { %v10356_v15 = vpop.eup %10355  ;;  %v5344_v28 = vmul.f32 %v10354_v12, %v5342_v3  ;;  %10357 = vrcp.f32 %v5381_v22  ;;  %vm5349_vm9 = vweird.f32 %v10354_v12  ;;  %v5393_v40 = vand.u32 2147483648, %v5381_v22 }
 0x93b   :  { %v5363_v10 = vmul.f32 %v10356_v15, %v5361_v23  ;;  %10359 = vtanh.f32 %v5337_v42  ;;  %vm5368_vm10 = vweird.f32 %v10356_v15  ;;  %vm5350_vm13 = vmor %vm5348_vm11, %vm5349_vm9  ;;  %vm5387_vm2 = vweird.f32 %v5381_v22  ;;  %v10087_v23 = vld [vmem:[%s15167_s6 + $0xec] sm:$0xf0] }
 0x93c   :  { %v5345_v52 = vsub.f32 1.0, %v5344_v28  ;;  %vm5369_vm14 = vmor %vm5367_vm12, %vm5368_vm10  ;;  %v5391_v58 = vand.u32 2147483647, %v5381_v22  ;;  %v5394_v54 = vor.u32 1.1754944e-38, %v5393_v40  ;;  %v9199_v30 = vor.u32 %v10087_v23, %v9198_v59  ;;  %v10086_v28 = vld [vmem:[%s15167_s6 + $0xec] sm:$0xf] }
 0x93d   :  { %v5364_v38 = vsub.f32 1.0, %v5363_v10  ;;  %v9203_v42 = vor.u32 %v10085_v13, %v9200_v5  ;;  %v9208_v10 = vld [vmem:[%s15167_s6 + $0xf8] sm:$0xf0]  ;;  %v10076_v59 = vld [vmem:[%s15167_s6 + $0x94] sm:$0xf0] }
 0x93e   :  { %v5346_v39 = vmul.f32 %v10354_v12, %v5345_v52  ;;  %vm5392_vm4 = vcmp.eq.f32.partialorder %v5391_v58, 8.507059e+37  ;;  %5935 = vmatpush.bf16.msra.mxu0 %v9199_v30  ;;  %v9211_v52 = vor.u32 %v10086_v28, %v9208_v10  ;;  %v9150_v58 = vld [vmem:[%s15167_s6 + $0x80] sm:$0xf]  ;;  %v10074_v30 = vld [vmem:[%s15167_s6 + $0x8c] sm:$0xf] }
 0x93f   :  { %v5365_v63 = vmul.f32 %v10356_v15, %v5364_v38  ;;  %5948 = vmatpush.bf16.msra.mxu1 %v9203_v42  ;;  %v9182_v38 = vld [vmem:[%s15167_s6 + $0xc0] sm:$0xf]  ;;  %v9160_v5 = vld [vmem:[%s15167_s6 + $0x98] sm:$0xf0]  ;;  %v10071_v42 = vld [vmem:[%s15167_s6 + $0x6c] sm:$0xf0] }
 0x940   :  { %v10358_v55 = vpop.eup %10357  ;;  %v5347_v2 = vadd.f32 %v10354_v12, %v5346_v39  ;;  %5974 = vmatpush.bf16.msrb.mxu3 %v9211_v52  ;;  %v9183_v39 = vor.u32 %v10083_v26, %v9182_v38  ;;  %v9136_v10 = vld [vmem:[%s15167_s6 + $0x70] sm:$0xf0]  ;;  %v9142_v52 = vld [vmem:[%s15167_s6 + $0x68] sm:$0xf]  ;;  %v10072_v38 = vld [vmem:[%s15167_s6 + $0x74] sm:$0xf0] }
 0x941   :  { %v5366_v48 = vadd.f32 %v10356_v15, %v5365_v63  ;;  %v5383_v44 = vmul.f32 %v10358_v55, %v5381_v22  ;;  %v10360_v47 = vpop.eup %10359  ;;  %vm5388_vm1 = vweird.f32 %v10358_v55  ;;  %v9206_v22 = vld [vmem:[%s15167_s6 + $0xe8] sm:$0xf] }
 0x942   :  { %v5351_v18 = vsel %vm5350_vm13, %v10354_v12, %v5347_v2  ;;  %vm5389_vm3 = vmor %vm5387_vm2, %vm5388_vm1  ;;  %v10088_v12 = vld [vmem:[%s15167_s6 + $0xf4] sm:$0xf0]  ;;  %v9190_v63 = vld [vmem:[%s15167_s6 + $0xc8] sm:$0xf]  ;;  %5936 = vmatpush.bf16.msra.mxu0 %v9183_v39 }
 0x943   :  { %v5356_v53 = vsel %vm5353_vm15, %v5355_v7, %v5351_v18  ;;  %v5370_v17 = vsel %vm5369_vm14, %v10356_v15, %v5366_v48  ;;  %v5384_v16 = vsub.f32 1.0, %v5383_v44  ;;  %v9207_v15 = vor.u32 %v10088_v12, %v9206_v22  ;;  %v10082_v7 = vld [vmem:[%s15167_s6 + $0xcc] sm:$0xf]  ;;  %v9192_v48 = vld [vmem:[%s15167_s6 + $0xd8] sm:$0xf0] }
 0x944   :  { %v5375_v32 = vsel %vm5372_vm0, %v5374_v57, %v5370_v17  ;;  %v5398_v60 = vmul.f32 %v10360_v47, %v5356_v53  ;;  %v9191_v2 = vor.u32 %v10084_v51, %v9190_v63  ;;  %v9195_v44 = vor.u32 %v10082_v7, %v9192_v48  ;;  %v9166_v57 = vld [vmem:[%s15167_s6 + $0xa0] sm:$0xf]  ;;  %v10079_v18 = vld [vmem:[%s15167_s6 + $0xac] sm:$0xf0]  ;;  %v10077_v47 = vld [vmem:[%s15167_s6 + $0xa4] sm:$0xf] }
 0x945   :  { %v5397_v50 = vmul.f32 %v5375_v32, %v14241_v29  ;;  %v5385_v20 = vmul.f32 %v10358_v55, %v5384_v16  ;;  %5961 = vmatpush.bf16.msra.mxu2 %v9207_v15  ;;  %v9167_v53 = vor.u32 %v10079_v18, %v9166_v57  ;;  %v9168_v17 = vld [vmem:[%s15167_s6 + $0xb0] sm:$0xf0]  ;;  %v9174_v16 = vld [vmem:[%s15167_s6 + $0xa8] sm:$0xf]  ;;  %v10080_v32 = vld [vmem:[%s15167_s6 + $0xb4] sm:$0xf0]  ;;  %v9163_v22 = vor.u32 %v10074_v30, %v9160_v5 }
 0x946   :  { %5975 = vmatpush.bf16.msrb.mxu3 %v9195_v44  ;;  %v9134_v12 = vld [vmem:[%s15167_s6 + $0x60] sm:$0xf]  ;;  %v10069_v15 = vld [vmem:[%s15167_s6 + $0x64] sm:$0xf]  ;;  %v10070_v63 = vld [vmem:[%s15167_s6 + $0x6c] sm:$0xf] }
 0x947   :  { %v14445_v61 = vadd.f32 %v5398_v60, %v5397_v50  ;;  %v5386_v9 = vadd.f32 %v10358_v55, %v5385_v20  ;;  %v9171_v60 = vor.u32 %v10077_v47, %v9168_v17  ;;  %v9175_v50 = vor.u32 %v10080_v32, %v9174_v16  ;;  %v10078_v20 = vld [vmem:[%s15167_s6 + $0xac] sm:$0xf]  ;;  %5937 = vmatpush.bf16.msra.mxu0 %v9167_v53  ;;  %v9144_v51 = vld [vmem:[%s15167_s6 + $0x78] sm:$0xf0]  ;;  %v9118_v48 = vld [vmem:[%s15167_s6 + $0x40] sm:$0xf] }
 0x948   :  { %v9135_v28 = vor.u32 %v10071_v42, %v9134_v12  ;;  %v9139_v39 = vor.u32 %v10069_v15, %v9136_v10  ;;  %v9147_v7 = vor.u32 %v10070_v63, %v9144_v51  ;;  %v10067_v44 = vld [vmem:[%s15167_s6 + $0x4c] sm:$0xf0]  ;;  %v10065_v57 = vld [vmem:[%s15167_s6 + $0x44] sm:$0xf]  ;;  %v9120_v47 = vld [vmem:[%s15167_s6 + $0x50] sm:$0xf0] }
 0x949   :  { %10361 = vtanh.f32 %v14445_v61  ;;  %v5390_v37 = vsel %vm5389_vm3, %v10358_v55, %v5386_v9  ;;  %v9187_v55 = vor.u32 %v10081_v25, %v9184_v46  ;;  %5962 = vmatpush.bf16.msra.mxu2 %v9191_v2  ;;  %v9176_v9 = vld [vmem:[%s15167_s6 + $0xb8] sm:$0xf0]  ;;  %v9143_v46 = vor.u32 %v10072_v38, %v9142_v52  ;;  %v9126_v17 = vld [vmem:[%s15167_s6 + $0x48] sm:$0xf]  ;;  %v10068_v16 = vld [vmem:[%s15167_s6 + $0x54] sm:$0xf0] }
 0x94a   :  { %v5395_v62 = vsel %vm5392_vm4, %v5394_v54, %v5390_v37  ;;  %v9179_v40 = vor.u32 %v10078_v20, %v9176_v9  ;;  %v10075_v37 = vld [vmem:[%s15167_s6 + $0x8c] sm:$0xf0]  ;;  %v10073_v54 = vld [vmem:[%s15167_s6 + $0x84] sm:$0xf]  ;;  %v9123_v53 = vor.u32 %v10065_v57, %v9120_v47  ;;  %v10066_v32 = vld [vmem:[%s15167_s6 + $0x4c] sm:$0xf] }
 0x94b   :  { %5949 = vmatpush.bf16.msra.mxu1 %v9187_v55  ;;  %v9102_v20 = vld [vmem:[%s15167_s6 + $0x20] sm:$0xf]  ;;  %v10063_v9 = vld [vmem:[%s15167_s6 + $0x2c] sm:$0xf0]  ;;  %v9112_v30 = vld [vmem:[%s15167_s6 + $0x38] sm:$0xf0] }
 0x94c   :  { %5976 = vmatpush.bf16.msrb.mxu3 %v9179_v40  ;;  %v10059_v10 = vld [vmem:[%s15167_s6 + $0xc] sm:$0xf0]  ;;  %v10057_v52 = vld [vmem:[%s15167_s6 + $0x4] sm:$0xf]  ;;  %v10058_v63 = vld [vmem:[%s15167_s6 + $0xc] sm:$0xf] }
 0x94d   :  { %5963 = vmatpush.bf16.msra.mxu2 %v9175_v50  ;;  %v9128_v50 = vld [vmem:[%s15167_s6 + $0x58] sm:$0xf0] }
 0x94e   :  { %v9131_v40 = vor.u32 %v10066_v32, %v9128_v50  ;;  %v9096_v51 = vld [vmem:[%s15167_s6 + $0x18] sm:$0xf0] }
 0x94f   :  { %v10362_v36 = vpop.eup %10361  ;;  %5950 = vmatpush.bf16.msra.mxu1 %v9171_v60  ;;  %v9127_v60 = vor.u32 %v10068_v16, %v9126_v17 }
 0x950   :  { %v14448_v3 = vmul.f32 %v10362_v36, %v5395_v62  ;;  %v9151_v36 = vor.u32 %v10075_v37, %v9150_v58  ;;  %v9152_v62 = vld [vmem:[%s15167_s6 + $0x90] sm:$0xf0]  ;;  %5977 = vmatpush.bf16.msrb.mxu3 %v9163_v22  ;;  %v9103_v58 = vor.u32 %v10063_v9, %v9102_v20  ;;  %v10061_v37 = vld [vmem:[%s15167_s6 + $0x24] sm:$0xf] }
 0x951   :  { %v9155_v23 = vor.u32 %v10073_v54, %v9152_v62  ;;  %v9104_v54 = vld [vmem:[%s15167_s6 + $0x30] sm:$0xf0] }
 0x952   :  { %v5416_v29 = vpack.c.bf16 %v14448_v3, %v14448_v3  ;;  %5938 = vmatpush.bf16.msra.mxu0 %v9151_v36  ;;  %v9110_v36 = vld [vmem:[%s15167_s6 + $0x28] sm:$0xf] }
 0x953   :  { %5951 = vmatpush.bf16.msra.mxu1 %v9155_v23  ;;  %v10064_v23 = vld [vmem:[%s15167_s6 + $0x34] sm:$0xf0] }
 0x954   :  { %5617 = vmatmul.bf16.vlgmr.msrb.gmra.mxu0 %v5416_v29  ;;  %5630 = vmatmul.bf16.vlgmr.msrb.gmra.mxu1 %v5416_v29  ;;  %v9111_v42 = vor.u32 %v10064_v23, %v9110_v36 }
 0x955   :  { %5643 = vmatmul.bf16.vlgmr.msrb.gmra.mxu2 %v5416_v29  ;;  %5656 = vmatmul.bf16.vlgmr.msra.gmra.mxu3 %v5416_v29  ;;  %v9158_v29 = vld [vmem:[%s15167_s6 + $0x88] sm:$0xf] }
 0x956   :  { %v9159_v13 = vor.u32 %v10076_v59, %v9158_v29  ;;  %5939 = vmatpush.bf16.msra.mxu0 %v9135_v28  ;;  %5978 = vmatpush.bf16.msrb.mxu3 %v9147_v7  ;;  %v9107_v59 = vor.u32 %v10061_v37, %v9104_v54  ;;  %v9086_v28 = vld [vmem:[%s15167_s6] sm:$0xf] }
 0x957   :  { %5952 = vmatpush.bf16.msra.mxu1 %v9139_v39  ;;  %v9087_v38 = vor.u32 %v10059_v10, %v9086_v28 }
 0x958   :  { %5964 = vmatpush.bf16.msra.mxu2 %v9159_v13  ;;  %v10062_v13 = vld [vmem:[%s15167_s6 + $0x2c] sm:$0xf] }
 0x959   :  { %v9115_v15 = vor.u32 %v10062_v13, %v9112_v30 }
 0x95a   :  { %5979 = vmatpush.bf16.msrb.mxu3 %v9131_v40 }
 0x95b   :  { %5953 = vmatpush.bf16.msra.mxu1 %v9123_v53 }
 0x95c   :  { %5965 = vmatpush.bf16.msra.mxu2 %v9143_v46 }
 0x95e   :  { %5980 = vmatpush.bf16.msrb.mxu3 %v9115_v15 }
 0x95f   :  { %5954 = vmatpush.bf16.msra.mxu1 %v9107_v59 }
 0x960   :  { %5966 = vmatpush.bf16.msra.mxu2 %v9127_v60 }
 0x964   :  { %5967 = vmatpush.bf16.msra.mxu2 %v9111_v42 }
 0x9d1   :  { %v5618_v26 = vpop.f32.mrf.mxu0  ;;  %v5631_v25 = vpop.f32.mrf.mxu1 }
 0x9d2   :  { %v5661_v55 = vadd.f32 %v5618_v26, %v13557_v1  ;;  %v5662_v2 = vadd.f32 %v5631_v25, %v13560_v14  ;;  %v9119_v14 = vor.u32 %v10067_v44, %v9118_v48  ;;  %v9094_v26 = vld [vmem:[%s15167_s6 + $0x8] sm:$0xf]  ;;  %v10060_v25 = vld [vmem:[%s15167_s6 + $0x14] sm:$0xf0]  ;;  %v9099_v44 = vor.u32 %v10058_v63, %v9096_v51 }
 0x9d4   :  { %v9081_v18 = vmul.f32 -1.442695, %v5661_v55  ;;  %v9082_v1 = vmul.f32 -1.442695, %v5662_v2  ;;  %5940 = vmatpush.bf16.msra.mxu0 %v9119_v14  ;;  %v9095_v2 = vor.u32 %v10060_v25, %v9094_v26  ;;  %5981 = vmatpush.bf16.msrb.mxu3 %v9099_v44 }
 0x9d6   :  { %10363 = vpow2.f32 %v9081_v18  ;;  %5968 = vmatpush.bf16.msra.mxu2 %v9095_v2  ;;  %v9329_v2 = vld [vmem:[%s15167_s6 + $0xe0] sm:$0xf] }
 0x9d7   :  { %10365 = vpow2.f32 %v9082_v1 }
 0x9d8   :  { %v5644_v62 = vpop.f32.mrf.mxu2  ;;  %v5657_v29 = vpop.f32.mrf.mxu3  ;;  %5941 = vmatpush.bf16.msra.mxu0 %v9103_v58 }
 0x9d9   :  { %v5664_v5 = vadd.f32 %v5657_v29, %v13574_v35  ;;  %v5620_v22 = vpop.f32.mrf.mxu0  ;;  %v5633_v12 = vpop.f32.mrf.mxu1  ;;  %v9088_v35 = vld [vmem:[%s15167_s6 + $0x10] sm:$0xf0]  ;;  %v5663_v17 = vadd.f32 %v5644_v62, %v13571_v34 }
 0x9da   :  { %v9091_v46 = vor.u32 %v10057_v52, %v9088_v35 }
 0x9db   :  { %v9083_v39 = vmul.f32 -1.442695, %v5664_v5 }
 0x9dc   :  { %v10364_v55 = vpop.eup %10363  ;;  %5942 = vmatpush.bf16.msra.mxu0 %v9087_v38  ;;  %5955 = vmatpush.bf16.msra.mxu1 %v9091_v46 }
 0x9dd   :  { %v10366_v7 = vpop.eup %10365  ;;  %v5668_v48 = vadd.f32 1.0, %v10364_v55  ;;  %10367 = vpow2.f32 %v9083_v39 }
 0x9de   :  { %v5687_v57 = vadd.f32 1.0, %v10366_v7  ;;  %v10119_v7 = vld [vmem:[%s15167_s6 + $0xec] sm:$0xf0] }
 0x9df   :  { %10369 = vrcp.f32 %v5668_v48  ;;  %v5680_v9 = vand.u32 2147483648, %v5668_v48  ;;  %v5678_v37 = vand.u32 2147483647, %v5668_v48  ;;  %vm5674_vm8 = vweird.f32 %v5668_v48 }
 0x9e0   :  { %10371 = vrcp.f32 %v5687_v57  ;;  %v5646_v18 = vpop.f32.mrf.mxu2  ;;  %v5659_v1 = vpop.f32.mrf.mxu3  ;;  %v5699_v40 = vand.u32 2147483648, %v5687_v57  ;;  %v5697_v36 = vand.u32 2147483647, %v5687_v57  ;;  %vm5693_vm9 = vweird.f32 %v5687_v57 }
 0x9e1   :  { %v5681_v34 = vor.u32 1.1754944e-38, %v5680_v9  ;;  %vm5679_vm12 = vcmp.eq.f32.partialorder %v5678_v37, 8.507059e+37  ;;  %v9330_v44 = vor.u32 %v10119_v7, %v9329_v2  ;;  %v9337_v18 = vld [vmem:[%s15167_s6 + $0xe8] sm:$0xf]  ;;  %v10120_v1 = vld [vmem:[%s15167_s6 + $0xf4] sm:$0xf0] }
 0x9e2   :  { %v5700_v13 = vor.u32 1.1754944e-38, %v5699_v40  ;;  %vm5698_vm13 = vcmp.eq.f32.partialorder %v5697_v36, 8.507059e+37  ;;  %v9315_v9 = vld [vmem:[%s15167_s6 + $0xd0] sm:$0xf0]  ;;  %v9321_v40 = vld [vmem:[%s15167_s6 + $0xc8] sm:$0xf] }
 0x9e3   :  { %v10368_v14 = vpop.eup %10367  ;;  %6261 = vmatpush.bf16.msrb.mxu0 %v9330_v44  ;;  %v10114_v36 = vld [vmem:[%s15167_s6 + $0xcc] sm:$0xf]  ;;  %v9291_v7 = vld [vmem:[%s15167_s6 + $0x98] sm:$0xf0]  ;;  %v9265_v44 = vld [vmem:[%s15167_s6 + $0x60] sm:$0xf] }
 0x9e4   :  { %v5707_v47 = vadd.f32 1.0, %v10368_v14  ;;  %v10106_v2 = vld [vmem:[%s15167_s6 + $0x8c] sm:$0xf] }
 0x9e5   :  { %v10370_v53 = vpop.eup %10369 }
 0x9e6   :  { %v10372_v16 = vpop.eup %10371  ;;  %v5670_v32 = vmul.f32 %v10370_v53, %v5668_v48  ;;  %10373 = vrcp.f32 %v5707_v47  ;;  %vm5675_vm5 = vweird.f32 %v10370_v53  ;;  %v5719_v26 = vand.u32 2147483648, %v5707_v47  ;;  %v10117_v48 = vld [vmem:[%s15167_s6 + $0xe4] sm:$0xf] }
 0x9e7   :  { %v5689_v60 = vmul.f32 %v10372_v16, %v5687_v57  ;;  %10375 = vtanh.f32 %v5663_v17  ;;  %vm5694_vm6 = vweird.f32 %v10372_v16  ;;  %vm5676_vm10 = vmor %vm5674_vm8, %vm5675_vm5  ;;  %vm5713_vm15 = vweird.f32 %v5707_v47  ;;  %v9331_v57 = vld [vmem:[%s15167_s6 + $0xf0] sm:$0xf0]  ;;  %v9339_v17 = vld [vmem:[%s15167_s6 + $0xf8] sm:$0xf0] }
 0x9e8   :  { %v5671_v50 = vsub.f32 1.0, %v5670_v32  ;;  %vm5695_vm11 = vmor %vm5693_vm9, %vm5694_vm6  ;;  %v5717_v25 = vand.u32 2147483647, %v5707_v47  ;;  %v5720_v46 = vor.u32 1.1754944e-38, %v5719_v26  ;;  %v9334_v14 = vor.u32 %v10117_v48, %v9331_v57  ;;  %v9313_v32 = vld [vmem:[%s15167_s6 + $0xc0] sm:$0xf] }
 0x9e9   :  { %v5690_v20 = vsub.f32 1.0, %v5689_v60  ;;  %v10115_v60 = vld [vmem:[%s15167_s6 + $0xcc] sm:$0xf0]  ;;  %v10105_v26 = vld [vmem:[%s15167_s6 + $0x84] sm:$0xf]  ;;  %v9294_v48 = vor.u32 %v10106_v2, %v9291_v7 }
 0x9ea   :  { %v5672_v58 = vmul.f32 %v10370_v53, %v5671_v50  ;;  %vm5718_vm1 = vcmp.eq.f32.partialorder %v5717_v25, 8.507059e+37  ;;  %6274 = vmatpush.bf16.msrb.mxu1 %v9334_v14  ;;  %v10113_v50 = vld [vmem:[%s15167_s6 + $0xc4] sm:$0xf]  ;;  %v10103_v57 = vld [vmem:[%s15167_s6 + $0x6c] sm:$0xf0] }
 0x9eb   :  { %v5691_v54 = vmul.f32 %v10372_v16, %v5690_v20  ;;  %v9314_v20 = vor.u32 %v10115_v60, %v9313_v32  ;;  %v9318_v37 = vor.u32 %v10113_v50, %v9315_v9  ;;  %v9267_v14 = vld [vmem:[%s15167_s6 + $0x70] sm:$0xf0]  ;;  %v10102_v50 = vld [vmem:[%s15167_s6 + $0x6c] sm:$0xf] }
 0x9ec   :  { %v10374_v29 = vpop.eup %10373  ;;  %v5673_v59 = vadd.f32 %v10370_v53, %v5672_v58  ;;  %v10116_v58 = vld [vmem:[%s15167_s6 + $0xd4] sm:$0xf0] }
 0x9ed   :  { %v5692_v62 = vadd.f32 %v10372_v16, %v5691_v54  ;;  %v5709_v23 = vmul.f32 %v10374_v29, %v5707_v47  ;;  %v10376_v5 = vpop.eup %10375  ;;  %vm5714_vm14 = vweird.f32 %v10374_v29  ;;  %v9338_v47 = vor.u32 %v10120_v1, %v9337_v18  ;;  %6262 = vmatpush.bf16.msrb.mxu0 %v9314_v20  ;;  %v10101_v18 = vld [vmem:[%s15167_s6 + $0x64] sm:$0xf]  ;;  %v9275_v20 = vld [vmem:[%s15167_s6 + $0x78] sm:$0xf0] }
 0x9ee   :  { %v5677_v30 = vsel %vm5676_vm10, %v10370_v53, %v5673_v59  ;;  %vm5715_vm0 = vmor %vm5713_vm15, %vm5714_vm14  ;;  %v10118_v53 = vld [vmem:[%s15167_s6 + $0xec] sm:$0xf]  ;;  %v9322_v54 = vor.u32 %v10116_v58, %v9321_v40  ;;  %6275 = vmatpush.bf16.msrb.mxu1 %v9318_v37  ;;  %v9266_v1 = vor.u32 %v10103_v57, %v9265_v44  ;;  %v9270_v32 = vor.u32 %v10101_v18, %v9267_v14  ;;  %v9249_v37 = vld [vmem:[%s15167_s6 + $0x40] sm:$0xf] }
 0x9ef   :  { %v5682_v22 = vsel %vm5679_vm12, %v5681_v34, %v5677_v30  ;;  %v5696_v12 = vsel %vm5695_vm11, %v10372_v16, %v5692_v62  ;;  %v5710_v42 = vsub.f32 1.0, %v5709_v23  ;;  %v9342_v16 = vor.u32 %v10118_v53, %v9339_v17  ;;  %6287 = vmatpush.bf16.msrb.mxu2 %v9338_v47  ;;  %v9297_v34 = vld [vmem:[%s15167_s6 + $0xa0] sm:$0xf]  ;;  %v10111_v62 = vld [vmem:[%s15167_s6 + $0xac] sm:$0xf0] }
 0x9f0   :  { %v5701_v15 = vsel %vm5698_vm13, %v5700_v13, %v5696_v12  ;;  %v5724_v28 = vmul.f32 %v10376_v5, %v5682_v22  ;;  %v10109_v23 = vld [vmem:[%s15167_s6 + $0xa4] sm:$0xf]  ;;  %v9298_v13 = vor.u32 %v10111_v62, %v9297_v34  ;;  %v9299_v30 = vld [vmem:[%s15167_s6 + $0xb0] sm:$0xf0]  ;;  %v9305_v5 = vld [vmem:[%s15167_s6 + $0xa8] sm:$0xf]  ;;  %v9278_v58 = vor.u32 %v10102_v50, %v9275_v20 }
 0x9f1   :  { %v5723_v10 = vmul.f32 %v5701_v15, %v14445_v61  ;;  %v5711_v52 = vmul.f32 %v10374_v29, %v5710_v42  ;;  %6300 = vmatpush.bf16.msra.mxu3 %v9342_v16  ;;  %v10112_v22 = vld [vmem:[%s15167_s6 + $0xb4] sm:$0xf0]  ;;  %v9302_v12 = vor.u32 %v10109_v23, %v9299_v30  ;;  %v10110_v15 = vld [vmem:[%s15167_s6 + $0xac] sm:$0xf]  ;;  %v9273_v47 = vld [vmem:[%s15167_s6 + $0x68] sm:$0xf] }
 0x9f2   :  { %v9306_v42 = vor.u32 %v10112_v22, %v9305_v5  ;;  %6263 = vmatpush.bf16.msrb.mxu0 %v9298_v13  ;;  %v10104_v53 = vld [vmem:[%s15167_s6 + $0x74] sm:$0xf0]  ;;  %v9257_v62 = vld [vmem:[%s15167_s6 + $0x48] sm:$0xf]  ;;  %v10098_v13 = vld [vmem:[%s15167_s6 + $0x4c] sm:$0xf] }
 0x9f3   :  { %v14649_v38 = vadd.f32 %v5724_v28, %v5723_v10  ;;  %v5712_v35 = vadd.f32 %v10374_v29, %v5711_v52  ;;  %6288 = vmatpush.bf16.msrb.mxu2 %v9322_v54  ;;  %v9307_v28 = vld [vmem:[%s15167_s6 + $0xb8] sm:$0xf0]  ;;  %6276 = vmatpush.bf16.msrb.mxu1 %v9302_v12  ;;  %v9281_v52 = vld [vmem:[%s15167_s6 + $0x80] sm:$0xf]  ;;  %v9274_v60 = vor.u32 %v10104_v53, %v9273_v47  ;;  %v10099_v54 = vld [vmem:[%s15167_s6 + $0x4c] sm:$0xf0] }
 0x9f4   :  { %v9310_v10 = vor.u32 %v10110_v15, %v9307_v28  ;;  %v10100_v23 = vld [vmem:[%s15167_s6 + $0x54] sm:$0xf0]  ;;  %v9259_v5 = vld [vmem:[%s15167_s6 + $0x58] sm:$0xf0]  ;;  %v9233_v22 = vld [vmem:[%s15167_s6 + $0x20] sm:$0xf] }
 0x9f5   :  { %10377 = vtanh.f32 %v14649_v38  ;;  %v5716_v39 = vsel %vm5715_vm0, %v10374_v29, %v5712_v35  ;;  %v9323_v29 = vld [vmem:[%s15167_s6 + $0xd8] sm:$0xf0]  ;;  %v10107_v35 = vld [vmem:[%s15167_s6 + $0x8c] sm:$0xf0]  ;;  %v9258_v30 = vor.u32 %v10100_v23, %v9257_v62  ;;  %v10093_v28 = vld [vmem:[%s15167_s6 + $0x24] sm:$0xf] }
 0x9f6   :  { %v5721_v51 = vsel %vm5718_vm1, %v5720_v46, %v5716_v39  ;;  %v9326_v59 = vor.u32 %v10114_v36, %v9323_v29  ;;  %v9282_v25 = vor.u32 %v10107_v35, %v9281_v52  ;;  %v9283_v39 = vld [vmem:[%s15167_s6 + $0x90] sm:$0xf0]  ;;  %v9289_v46 = vld [vmem:[%s15167_s6 + $0x88] sm:$0xf]  ;;  %v10097_v36 = vld [vmem:[%s15167_s6 + $0x44] sm:$0xf] }
 0x9f7   :  { %6289 = vmatpush.bf16.msrb.mxu2 %v9306_v42  ;;  %v10095_v12 = vld [vmem:[%s15167_s6 + $0x2c] sm:$0xf0]  ;;  %v9262_v42 = vor.u32 %v10098_v13, %v9259_v5  ;;  %v9241_v52 = vld [vmem:[%s15167_s6 + $0x28] sm:$0xf]  ;;  %v9217_v44 = vld [vmem:[%s15167_s6] sm:$0xf] }
 0x9f8   :  { %6301 = vmatpush.bf16.msra.mxu3 %v9326_v59  ;;  %6264 = vmatpush.bf16.msrb.mxu0 %v9282_v25  ;;  %v9251_v59 = vld [vmem:[%s15167_s6 + $0x50] sm:$0xf0]  ;;  %v9234_v15 = vor.u32 %v10095_v12, %v9233_v22  ;;  %v10091_v57 = vld [vmem:[%s15167_s6 + $0xc] sm:$0xf0]  ;;  %v10089_v18 = vld [vmem:[%s15167_s6 + $0x4] sm:$0xf] }
 0x9f9   :  { %v9254_v34 = vor.u32 %v10097_v36, %v9251_v59  ;;  %v9225_v14 = vld [vmem:[%s15167_s6 + $0x8] sm:$0xf]  ;;  %v10092_v47 = vld [vmem:[%s15167_s6 + $0x14] sm:$0xf0] }
 0x9fa   :  { %v9226_v50 = vor.u32 %v10092_v47, %v9225_v14 }
 0x9fb   :  { %v10378_v63 = vpop.eup %10377 }
 0x9fc   :  { %v14652_v55 = vmul.f32 %v10378_v63, %v5721_v51  ;;  %6302 = vmatpush.bf16.msra.mxu3 %v9310_v10  ;;  %v10108_v63 = vld [vmem:[%s15167_s6 + $0x94] sm:$0xf0]  ;;  %v9286_v51 = vor.u32 %v10105_v26, %v9283_v39  ;;  %6265 = vmatpush.bf16.msrb.mxu0 %v9266_v1  ;;  %v9235_v10 = vld [vmem:[%s15167_s6 + $0x30] sm:$0xf0]  ;;  %v9218_v1 = vor.u32 %v10091_v57, %v9217_v44 }
 0x9fd   :  { %v9238_v25 = vor.u32 %v10093_v28, %v9235_v10  ;;  %v10096_v39 = vld [vmem:[%s15167_s6 + $0x34] sm:$0xf0] }
 0x9fe   :  { %v5742_v61 = vpack.c.bf16 %v14652_v55, %v14652_v55  ;;  %6277 = vmatpush.bf16.msrb.mxu1 %v9286_v51  ;;  %v9242_v7 = vor.u32 %v10096_v39, %v9241_v52 }
 0xa00   :  { %5943 = vmatmul.bf16.vlgmr.msra.gmra.mxu0 %v5742_v61  ;;  %5956 = vmatmul.bf16.vlgmr.msra.gmra.mxu1 %v5742_v61 }
 0xa01   :  { %5969 = vmatmul.bf16.vlgmr.msra.gmra.mxu2 %v5742_v61  ;;  %5982 = vmatmul.bf16.vlgmr.msrb.gmra.mxu3 %v5742_v61  ;;  %v9290_v61 = vor.u32 %v10108_v63, %v9289_v46  ;;  %v10094_v46 = vld [vmem:[%s15167_s6 + $0x2c] sm:$0xf]  ;;  %v9243_v63 = vld [vmem:[%s15167_s6 + $0x38] sm:$0xf0] }
 0xa02   :  { %6303 = vmatpush.bf16.msra.mxu3 %v9294_v48  ;;  %6278 = vmatpush.bf16.msrb.mxu1 %v9270_v32  ;;  %v9246_v48 = vor.u32 %v10094_v46, %v9243_v63  ;;  %v9227_v32 = vld [vmem:[%s15167_s6 + $0x18] sm:$0xf0] }
 0xa03   :  { %6290 = vmatpush.bf16.msrb.mxu2 %v9290_v61 }
 0xa06   :  { %6304 = vmatpush.bf16.msra.mxu3 %v9278_v58  ;;  %6279 = vmatpush.bf16.msrb.mxu1 %v9254_v34 }
 0xa07   :  { %6291 = vmatpush.bf16.msrb.mxu2 %v9274_v60 }
 0xa0a   :  { %6305 = vmatpush.bf16.msra.mxu3 %v9262_v42  ;;  %6280 = vmatpush.bf16.msrb.mxu1 %v9238_v25 }
 0xa0b   :  { %6292 = vmatpush.bf16.msrb.mxu2 %v9258_v30 }
 0xa0e   :  { %6306 = vmatpush.bf16.msra.mxu3 %v9246_v48 }
 0xa0f   :  { %6293 = vmatpush.bf16.msrb.mxu2 %v9242_v7 }
 0xa13   :  { %6294 = vmatpush.bf16.msrb.mxu2 %v9226_v50 }
 0xa7d   :  { %v5944_v17 = vpop.f32.mrf.mxu0  ;;  %v5957_v16 = vpop.f32.mrf.mxu1 }
 0xa7e   :  { %v5987_v9 = vadd.f32 %v5944_v17, %v13542_v6  ;;  %v5988_v40 = vadd.f32 %v5957_v16, %v13544_v0  ;;  %v9250_v0 = vor.u32 %v10099_v54, %v9249_v37  ;;  %v10090_v16 = vld [vmem:[%s15167_s6 + $0xc] sm:$0xf] }
 0xa80   :  { %v9212_v29 = vmul.f32 -1.442695, %v5987_v9  ;;  %v9213_v6 = vmul.f32 -1.442695, %v5988_v40  ;;  %6266 = vmatpush.bf16.msrb.mxu0 %v9250_v0  ;;  %v9230_v40 = vor.u32 %v10090_v16, %v9227_v32 }
 0xa82   :  { %10379 = vpow2.f32 %v9212_v29  ;;  %6307 = vmatpush.bf16.msra.mxu3 %v9230_v40 }
 0xa83   :  { %10381 = vpow2.f32 %v9213_v6 }
 0xa84   :  { %v5970_v35 = vpop.f32.mrf.mxu2  ;;  %v5983_v26 = vpop.f32.mrf.mxu3  ;;  %6267 = vmatpush.bf16.msrb.mxu0 %v9234_v15 }
 0xa85   :  { %v5990_v51 = vadd.f32 %v5983_v26, %v13554_v21  ;;  %v5946_v61 = vpop.f32.mrf.mxu0  ;;  %v5959_v2 = vpop.f32.mrf.mxu1  ;;  %v9219_v21 = vld [vmem:[%s15167_s6 + $0x10] sm:$0xf0]  ;;  %v5989_v0 = vadd.f32 %v5970_v35, %v13552_v8 }
 0xa86   :  { %v9222_v17 = vor.u32 %v10089_v18, %v9219_v21 }
 0xa87   :  { %v9214_v53 = vmul.f32 -1.442695, %v5990_v51 }
 0xa88   :  { %v10380_v60 = vpop.eup %10379  ;;  %6268 = vmatpush.bf16.msrb.mxu0 %v9218_v1  ;;  %6281 = vmatpush.bf16.msrb.mxu1 %v9222_v17 }
 0xa89   :  { %v10382_v20 = vpop.eup %10381  ;;  %v5994_v9 = vadd.f32 1.0, %v10380_v60  ;;  %10383 = vpow2.f32 %v9214_v53  ;;  %v14871_v60 = vsel %vm3372_vm7, %v14652_v55, %v14448_v3 }
 0xa8a   :  { %v6013_v58 = vadd.f32 1.0, %v10382_v20 }
 0xa8b   :  { %10385 = vrcp.f32 %v5994_v9  ;;  %v6006_v30 = vand.u32 2147483648, %v5994_v9  ;;  %v6004_v12 = vand.u32 2147483647, %v5994_v9  ;;  %vm6000_vm4 = vweird.f32 %v5994_v9 }
 0xa8c   :  { %10387 = vrcp.f32 %v6013_v58  ;;  %v5972_v37 = vpop.f32.mrf.mxu2  ;;  %v5985_v54 = vpop.f32.mrf.mxu3  ;;  %v6025_v5 = vand.u32 2147483648, %v6013_v58  ;;  %v6023_v15 = vand.u32 2147483647, %v6013_v58  ;;  %vm6019_vm5 = vweird.f32 %v6013_v58 }
 0xa8d   :  { %v6007_v8 = vor.u32 1.1754944e-38, %v6006_v30  ;;  %vm6005_vm9 = vcmp.eq.f32.partialorder %v6004_v12, 8.507059e+37  ;;  %v9468_v37 = vld [vmem:[%s15167_s6 + $0xe8] sm:$0xf]  ;;  %v10152_v54 = vld [vmem:[%s15167_s6 + $0xf4] sm:$0xf0] }
 0xa8e   :  { %v6026_v26 = vor.u32 1.1754944e-38, %v6025_v5  ;;  %vm6024_vm10 = vcmp.eq.f32.partialorder %v6023_v15, 8.507059e+37  ;;  %v9446_v30 = vld [vmem:[%s15167_s6 + $0xd0] sm:$0xf0]  ;;  %v9452_v5 = vld [vmem:[%s15167_s6 + $0xc8] sm:$0xf] }
 0xa8f   :  { %v10384_v36 = vpop.eup %10383  ;;  %v10146_v15 = vld [vmem:[%s15167_s6 + $0xcc] sm:$0xf] }
 0xa90   :  { %v6033_v29 = vadd.f32 1.0, %v10384_v36 }
 0xa91   :  { %v10386_v6 = vpop.eup %10385 }
 0xa92   :  { %v10388_v59 = vpop.eup %10387  ;;  %v5996_v34 = vmul.f32 %v10386_v6, %v5994_v9  ;;  %10389 = vrcp.f32 %v6033_v29  ;;  %vm6001_vm2 = vweird.f32 %v10386_v6  ;;  %v6045_v18 = vand.u32 2147483648, %v6033_v29 }
 0xa93   :  { %v6015_v62 = vmul.f32 %v10388_v59, %v6013_v58  ;;  %10391 = vtanh.f32 %v5989_v0  ;;  %vm6020_vm3 = vweird.f32 %v10388_v59  ;;  %vm6002_vm6 = vmor %vm6000_vm4, %vm6001_vm2  ;;  %vm6039_vm12 = vweird.f32 %v6033_v29  ;;  %v9462_v58 = vld [vmem:[%s15167_s6 + $0xf0] sm:$0xf0]  ;;  %v9470_v0 = vld [vmem:[%s15167_s6 + $0xf8] sm:$0xf0] }
 0xa94   :  { %v5997_v23 = vsub.f32 1.0, %v5996_v34  ;;  %vm6021_vm8 = vmor %vm6019_vm5, %vm6020_vm3  ;;  %v6043_v1 = vand.u32 2147483647, %v6033_v29  ;;  %v6046_v14 = vor.u32 1.1754944e-38, %v6045_v18  ;;  %v9444_v34 = vld [vmem:[%s15167_s6 + $0xc0] sm:$0xf] }
 0xa95   :  { %v6016_v13 = vsub.f32 1.0, %v6015_v62  ;;  %v10147_v62 = vld [vmem:[%s15167_s6 + $0xcc] sm:$0xf0]  ;;  %v10137_v18 = vld [vmem:[%s15167_s6 + $0x84] sm:$0xf] }
 0xa96   :  { %v5998_v22 = vmul.f32 %v10386_v6, %v5997_v23  ;;  %vm6044_vm14 = vcmp.eq.f32.partialorder %v6043_v1, 8.507059e+37  ;;  %v10145_v23 = vld [vmem:[%s15167_s6 + $0xc4] sm:$0xf] }
 0xa97   :  { %v6017_v42 = vmul.f32 %v10388_v59, %v6016_v13  ;;  %v9445_v13 = vor.u32 %v10147_v62, %v9444_v34  ;;  %v9449_v12 = vor.u32 %v10145_v23, %v9446_v30  ;;  %v10134_v62 = vld [vmem:[%s15167_s6 + $0x6c] sm:$0xf]  ;;  %v9406_v23 = vld [vmem:[%s15167_s6 + $0x78] sm:$0xf0] }
 0xa98   :  { %v10390_v28 = vpop.eup %10389  ;;  %v5999_v10 = vadd.f32 %v10386_v6, %v5998_v22  ;;  %v10148_v22 = vld [vmem:[%s15167_s6 + $0xd4] sm:$0xf0] }
 0xa99   :  { %v6018_v52 = vadd.f32 %v10388_v59, %v6017_v42  ;;  %v6035_v35 = vmul.f32 %v10390_v28, %v6033_v29  ;;  %v10392_v39 = vpop.eup %10391  ;;  %vm6040_vm11 = vweird.f32 %v10390_v28  ;;  %v9469_v29 = vor.u32 %v10152_v54, %v9468_v37  ;;  %v9398_v54 = vld [vmem:[%s15167_s6 + $0x70] sm:$0xf0] }
 0xa9a   :  { %v6003_v25 = vsel %vm6002_vm6, %v10386_v6, %v5999_v10  ;;  %vm6041_vm13 = vmor %vm6039_vm12, %vm6040_vm11  ;;  %v10150_v6 = vld [vmem:[%s15167_s6 + $0xec] sm:$0xf]  ;;  %v9453_v42 = vor.u32 %v10148_v22, %v9452_v5  ;;  %v9409_v5 = vor.u32 %v10134_v62, %v9406_v23  ;;  %v9380_v22 = vld [vmem:[%s15167_s6 + $0x40] sm:$0xf] }
 0xa9b   :  { %v6008_v46 = vsel %vm6005_vm9, %v6007_v8, %v6003_v25  ;;  %v6022_v63 = vsel %vm6021_vm8, %v10388_v59, %v6018_v52  ;;  %v6036_v51 = vsub.f32 1.0, %v6035_v35  ;;  %v9473_v59 = vor.u32 %v10150_v6, %v9470_v0  ;;  %6613 = vmatpush.bf16.msra.mxu2 %v9469_v29  ;;  %v9428_v8 = vld [vmem:[%s15167_s6 + $0xa0] sm:$0xf]  ;;  %v10143_v52 = vld [vmem:[%s15167_s6 + $0xac] sm:$0xf0] }
 0xa9c   :  { %v6027_v61 = vsel %vm6024_vm10, %v6026_v26, %v6022_v63  ;;  %v6050_v2 = vmul.f32 %v10392_v39, %v6008_v46  ;;  %v10141_v35 = vld [vmem:[%s15167_s6 + $0xa4] sm:$0xf]  ;;  %v9429_v26 = vor.u32 %v10143_v52, %v9428_v8  ;;  %v9430_v25 = vld [vmem:[%s15167_s6 + $0xb0] sm:$0xf0]  ;;  %v9436_v39 = vld [vmem:[%s15167_s6 + $0xa8] sm:$0xf] }
 0xa9d   :  { %v6049_v7 = vmul.f32 %v6027_v61, %v14649_v38  ;;  %v6037_v48 = vmul.f32 %v10390_v28, %v6036_v51  ;;  %v14860_v38 = vsel %vm3372_vm7, %v14448_v3, %v14652_v55  ;;  %v9460_v3 = vld [vmem:[%s15167_s6 + $0xe0] sm:$0xf]  ;;  %v10151_v55 = vld [vmem:[%s15167_s6 + $0xec] sm:$0xf0]  ;;  %6626 = vmatpush.bf16.msrb.mxu3 %v9473_v59  ;;  %v10144_v46 = vld [vmem:[%s15167_s6 + $0xb4] sm:$0xf0]  ;;  %v9433_v63 = vor.u32 %v10141_v35, %v9430_v25 }
 0xa9e   :  { %v9461_v40 = vor.u32 %v10151_v55, %v9460_v3  ;;  %v9437_v51 = vor.u32 %v10144_v46, %v9436_v39  ;;  %v10142_v61 = vld [vmem:[%s15167_s6 + $0xac] sm:$0xf]  ;;  %v9422_v3 = vld [vmem:[%s15167_s6 + $0x98] sm:$0xf0]  ;;  %v10136_v29 = vld [vmem:[%s15167_s6 + $0x74] sm:$0xf0] }
 0xa9f   :  { %v14853_v44 = vadd.f32 %v6050_v2, %v6049_v7  ;;  %v6038_v57 = vadd.f32 %v10390_v28, %v6037_v48  ;;  %6614 = vmatpush.bf16.msra.mxu2 %v9453_v42  ;;  %v9438_v2 = vld [vmem:[%s15167_s6 + $0xb8] sm:$0xf0]  ;;  %v9412_v48 = vld [vmem:[%s15167_s6 + $0x80] sm:$0xf]  ;;  %v10129_v42 = vld [vmem:[%s15167_s6 + $0x44] sm:$0xf] }
 0xaa0   :  { %6587 = vmatpush.bf16.msra.mxu0 %v9461_v40  ;;  %v9441_v7 = vor.u32 %v10142_v61, %v9438_v2  ;;  %v10135_v40 = vld [vmem:[%s15167_s6 + $0x6c] sm:$0xf0]  ;;  %v9388_v8 = vld [vmem:[%s15167_s6 + $0x48] sm:$0xf]  ;;  %v10132_v52 = vld [vmem:[%s15167_s6 + $0x54] sm:$0xf0] }
 0xaa1   :  { %10393 = vtanh.f32 %v14853_v44  ;;  %v6042_v21 = vsel %vm6041_vm13, %v10390_v28, %v6038_v57  ;;  %v9454_v28 = vld [vmem:[%s15167_s6 + $0xd8] sm:$0xf0]  ;;  %v10139_v57 = vld [vmem:[%s15167_s6 + $0x8c] sm:$0xf0]  ;;  %v10130_v35 = vld [vmem:[%s15167_s6 + $0x4c] sm:$0xf] }
 0xaa2   :  { %v6047_v53 = vsel %vm6044_vm14, %v6046_v14, %v6042_v21  ;;  %v9457_v10 = vor.u32 %v10146_v15, %v9454_v28  ;;  %v9413_v1 = vor.u32 %v10139_v57, %v9412_v48  ;;  %v9414_v21 = vld [vmem:[%s15167_s6 + $0x90] sm:$0xf0]  ;;  %v9420_v14 = vld [vmem:[%s15167_s6 + $0x88] sm:$0xf]  ;;  %v9390_v25 = vld [vmem:[%s15167_s6 + $0x58] sm:$0xf0] }
 0xaa3   :  { %6615 = vmatpush.bf16.msra.mxu2 %v9437_v51  ;;  %v9382_v28 = vld [vmem:[%s15167_s6 + $0x50] sm:$0xf0]  ;;  %v9364_v39 = vld [vmem:[%s15167_s6 + $0x20] sm:$0xf]  ;;  %v10127_v46 = vld [vmem:[%s15167_s6 + $0x2c] sm:$0xf0] }
 0xaa4   :  { %6588 = vmatpush.bf16.msra.mxu0 %v9445_v13  ;;  %6627 = vmatpush.bf16.msrb.mxu3 %v9457_v10  ;;  %v9385_v10 = vor.u32 %v10129_v42, %v9382_v28  ;;  %v9365_v51 = vor.u32 %v10127_v46, %v9364_v39  ;;  %v10125_v61 = vld [vmem:[%s15167_s6 + $0x24] sm:$0xf]  ;;  %v9366_v2 = vld [vmem:[%s15167_s6 + $0x30] sm:$0xf0] }
 0xaa7   :  { %v10394_v47 = vpop.eup %10393 }
 0xaa8   :  { %v6053_v17 = vmul.f32 %v10394_v47, %v6047_v53  ;;  %6589 = vmatpush.bf16.msra.mxu0 %v9429_v26  ;;  %6628 = vmatpush.bf16.msrb.mxu3 %v9441_v7  ;;  %v10140_v47 = vld [vmem:[%s15167_s6 + $0x94] sm:$0xf0]  ;;  %v9417_v53 = vor.u32 %v10137_v18, %v9414_v21  ;;  %v9389_v26 = vor.u32 %v10132_v52, %v9388_v8  ;;  %v9372_v7 = vld [vmem:[%s15167_s6 + $0x28] sm:$0xf]  ;;  %v10126_v21 = vld [vmem:[%s15167_s6 + $0x2c] sm:$0xf] }
 0xaa9   :  { %v9369_v18 = vor.u32 %v10125_v61, %v9366_v2 }
 0xaaa   :  { %v6068_v16 = vpack.c.bf16 %v6053_v17, %v6053_v17  ;;  %v14865_v32 = vsel %vm3372_vm7, %v14244_v31, %v6053_v17  ;;  %v14876_v50 = vsel %vm3372_vm7, %v6053_v17, %v14244_v31  ;;  %v10149_v31 = vld [vmem:[%s15167_s6 + $0xe4] sm:$0xf]  ;;  %v9421_v17 = vor.u32 %v10140_v47, %v9420_v14  ;;  %v9374_v14 = vld [vmem:[%s15167_s6 + $0x38] sm:$0xf0] }
 0xaab   :  { %v6733_v20 = vpack.c.bf16 %v14860_v38, %v14865_v32  ;;  %v6734_v9 = vpack.c.bf16 %v14876_v50, %v14871_v60  ;;  %v9465_v36 = vor.u32 %v10149_v31, %v9462_v58  ;;  %v9396_v31 = vld [vmem:[%s15167_s6 + $0x60] sm:$0xf]  ;;  %v10133_v58 = vld [vmem:[%s15167_s6 + $0x64] sm:$0xf] }
 0xaac   :  { %6269 = vmatmul.bf16.vlgmr.msrb.gmra.mxu0 %v6068_v16  ;;  %6282 = vmatmul.bf16.vlgmr.msrb.gmra.mxu1 %v6068_v16  ;;  %v9397_v37 = vor.u32 %v10135_v40, %v9396_v31  ;;  %v9401_v59 = vor.u32 %v10133_v58, %v9398_v54  ;;  %v10123_v31 = vld [vmem:[%s15167_s6 + $0xc] sm:$0xf0]  ;;  %v10121_v40 = vld [vmem:[%s15167_s6 + $0x4] sm:$0xf]  ;;  %v10124_v54 = vld [vmem:[%s15167_s6 + $0x14] sm:$0xf0] }
 0xaad   :  { %6295 = vmatmul.bf16.vlgmr.msrb.gmra.mxu2 %v6068_v16  ;;  %6308 = vmatmul.bf16.vlgmr.msra.gmra.mxu3 %v6068_v16  ;;  %v10138_v16 = vld [vmem:[%s15167_s6 + $0x8c] sm:$0xf] }
 0xaae   :  { %6600 = vmatpush.bf16.msra.mxu1 %v9465_v36  ;;  %6590 = vmatpush.bf16.msra.mxu0 %v9413_v1  ;;  %v9425_v55 = vor.u32 %v10138_v16, %v9422_v3  ;;  %v9404_v36 = vld [vmem:[%s15167_s6 + $0x68] sm:$0xf]  ;;  %v10128_v1 = vld [vmem:[%s15167_s6 + $0x34] sm:$0xf0]  ;;  %v9377_v3 = vor.u32 %v10126_v21, %v9374_v14 }
 0xaaf   :  { %6616 = vmatpush.bf16.msra.mxu2 %v9421_v17  ;;  %v9405_v34 = vor.u32 %v10136_v29, %v9404_v36  ;;  %v9373_v16 = vor.u32 %v10128_v1, %v9372_v7 }
 0xab0   :  { %6629 = vmatpush.bf16.msrb.mxu3 %v9425_v55  ;;  %v9348_v55 = vld [vmem:[%s15167_s6] sm:$0xf] }
 0xab1   :  { %v9349_v58 = vor.u32 %v10123_v31, %v9348_v55 }
 0xab2   :  { %6601 = vmatpush.bf16.msra.mxu1 %v9449_v12  ;;  %6591 = vmatpush.bf16.msra.mxu0 %v9397_v37  ;;  %v10131_v12 = vld [vmem:[%s15167_s6 + $0x4c] sm:$0xf0]  ;;  %v9356_v37 = vld [vmem:[%s15167_s6 + $0x8] sm:$0xf] }
 0xab3   :  { %6617 = vmatpush.bf16.msra.mxu2 %v9405_v34  ;;  %v9357_v34 = vor.u32 %v10124_v54, %v9356_v37 }
 0xab4   :  { %6630 = vmatpush.bf16.msrb.mxu3 %v9409_v5 }
 0xab6   :  { %6602 = vmatpush.bf16.msra.mxu1 %v9433_v63  ;;  %v9393_v63 = vor.u32 %v10130_v35, %v9390_v25 }
 0xab7   :  { %6618 = vmatpush.bf16.msra.mxu2 %v9389_v26 }
 0xab8   :  { %6631 = vmatpush.bf16.msrb.mxu3 %v9393_v63 }
 0xaba   :  { %6603 = vmatpush.bf16.msra.mxu1 %v9417_v53 }
 0xabb   :  { %6619 = vmatpush.bf16.msra.mxu2 %v9373_v16 }
 0xabc   :  { %6632 = vmatpush.bf16.msrb.mxu3 %v9377_v3 }
 0xabe   :  { %6604 = vmatpush.bf16.msra.mxu1 %v9401_v59 }
 0xabf   :  { %6620 = vmatpush.bf16.msra.mxu2 %v9357_v34 }
 0xac2   :  { %6605 = vmatpush.bf16.msra.mxu1 %v9385_v10 }
 0xac6   :  { %6606 = vmatpush.bf16.msra.mxu1 %v9369_v18 }
 0xb29   :  { %v6270_v6 = vpop.f32.mrf.mxu0  ;;  %v6283_v0 = vpop.f32.mrf.mxu1 }
 0xb2a   :  { %v6313_v13 = vadd.f32 %v6270_v6, %v13528_v43  ;;  %v6314_v30 = vadd.f32 %v6283_v0, %v13530_v33  ;;  %v9381_v33 = vor.u32 %v10131_v12, %v9380_v22  ;;  %v10122_v6 = vld [vmem:[%s15167_s6 + $0xc] sm:$0xf]  ;;  %v9358_v0 = vld [vmem:[%s15167_s6 + $0x18] sm:$0xf0] }
 0xb2c   :  { %v9343_v15 = vmul.f32 -1.442695, %v6313_v13  ;;  %v9344_v43 = vmul.f32 -1.442695, %v6314_v30  ;;  %6592 = vmatpush.bf16.msra.mxu0 %v9381_v33  ;;  %v9361_v13 = vor.u32 %v10122_v6, %v9358_v0  ;;  %v10159_v6 = vld [vmem:[%s15170_s7 + $0x30] sm:$0xff]  ;;  %v10158_v0 = vld [vmem:[%s15170_s7 + $0x28] sm:$0xff] }
 0xb2e   :  { %10395 = vpow2.f32 %v9343_v15  ;;  %6633 = vmatpush.bf16.msrb.mxu3 %v9361_v13 }
 0xb2f   :  { %10397 = vpow2.f32 %v9344_v43 }
 0xb30   :  { %v6296_v48 = vpop.f32.mrf.mxu2  ;;  %v6309_v57 = vpop.f32.mrf.mxu3  ;;  %6593 = vmatpush.bf16.msra.mxu0 %v9365_v51 }
 0xb31   :  { %v6316_v47 = vadd.f32 %v6309_v57, %v13540_v56  ;;  %v6272_v53 = vpop.f32.mrf.mxu0  ;;  %v6285_v17 = vpop.f32.mrf.mxu1  ;;  %v9350_v56 = vld [vmem:[%s15167_s6 + $0x10] sm:$0xf0]  ;;  %v6315_v43 = vadd.f32 %v6296_v48, %v13538_v27 }
 0xb32   :  { %v9353_v29 = vor.u32 %v10121_v40, %v9350_v56 }
 0xb33   :  { %v9345_v36 = vmul.f32 -1.442695, %v6316_v47 }
 0xb34   :  { %v10396_v59 = vpop.eup %10395  ;;  %6594 = vmatpush.bf16.msra.mxu0 %v9349_v58  ;;  %6607 = vmatpush.bf16.msra.mxu1 %v9353_v29  ;;  %v10160_v29 = vld [vmem:[%s15170_s7 + $0x38] sm:$0xff] }
 0xb35   :  { %v10398_v62 = vpop.eup %10397  ;;  %v6320_v23 = vadd.f32 1.0, %v10396_v59  ;;  %10399 = vpow2.f32 %v9345_v36  ;;  %v10157_v59 = vld [vmem:[%s15170_s7 + $0x20] sm:$0xff] }
 0xb36   :  { %v6339_v30 = vadd.f32 1.0, %v10398_v62 }
 0xb37   :  { %10401 = vrcp.f32 %v6320_v23  ;;  %v6332_v35 = vand.u32 2147483648, %v6320_v23  ;;  %v6330_v39 = vand.u32 2147483647, %v6320_v23  ;;  %vm6326_vm1 = vweird.f32 %v6320_v23 }
 0xb38   :  { %10403 = vrcp.f32 %v6339_v30  ;;  %v6298_v5 = vpop.f32.mrf.mxu2  ;;  %v6311_v22 = vpop.f32.mrf.mxu3  ;;  %v6351_v26 = vand.u32 2147483648, %v6339_v30  ;;  %v6349_v63 = vand.u32 2147483647, %v6339_v30  ;;  %vm6345_vm2 = vweird.f32 %v6339_v30  ;;  %6804 = vmatpush.bf16.msrb.mxu0 %v10160_v29 }
 0xb39   :  { %v6333_v27 = vor.u32 1.1754944e-38, %v6332_v35  ;;  %vm6331_vm5 = vcmp.eq.f32.partialorder %v6330_v39, 8.507059e+37 }
 0xb3a   :  { %v6352_v48 = vor.u32 1.1754944e-38, %v6351_v26  ;;  %vm6350_vm6 = vcmp.eq.f32.partialorder %v6349_v63, 8.507059e+37 }
 0xb3b   :  { %v10400_v12 = vpop.eup %10399 }
 0xb3c   :  { %v6359_v42 = vadd.f32 1.0, %v10400_v12  ;;  %6805 = vmatpush.bf16.msrb.mxu0 %v10159_v6  ;;  %v10155_v12 = vld [vmem:[%s15170_s7 + $0x10] sm:$0xff] }
 0xb3d   :  { %v10402_v15 = vpop.eup %10401 }
 0xb3e   :  { %v10404_v33 = vpop.eup %10403  ;;  %v6322_v28 = vmul.f32 %v10402_v15, %v6320_v23  ;;  %10405 = vrcp.f32 %v6359_v42  ;;  %vm6327_vm15 = vweird.f32 %v10402_v15  ;;  %v6371_v31 = vand.u32 2147483648, %v6359_v42  ;;  %v10156_v23 = vld [vmem:[%s15170_s7 + $0x18] sm:$0xff] }
 0xb3f   :  { %v6341_v10 = vmul.f32 %v10404_v33, %v6339_v30  ;;  %10407 = vtanh.f32 %v6315_v43  ;;  %vm6346_vm0 = vweird.f32 %v10404_v33  ;;  %vm6328_vm3 = vmor %vm6326_vm1, %vm6327_vm15  ;;  %vm6365_vm9 = vweird.f32 %v6359_v42 }
 0xb40   :  { %v6323_v8 = vsub.f32 1.0, %v6322_v28  ;;  %vm6347_vm4 = vmor %vm6345_vm2, %vm6346_vm0  ;;  %v6369_v40 = vand.u32 2147483647, %v6359_v42  ;;  %v6372_v56 = vor.u32 1.1754944e-38, %v6371_v31  ;;  %6806 = vmatpush.bf16.msrb.mxu0 %v10158_v0 }
 0xb41   :  { %v6342_v52 = vsub.f32 1.0, %v6341_v10  ;;  %v10153_v10 = vld [vmem:[%s15170_s7] sm:$0xff] }
 0xb42   :  { %v6324_v25 = vmul.f32 %v10402_v15, %v6323_v8  ;;  %vm6370_vm11 = vcmp.eq.f32.partialorder %v6369_v40, 8.507059e+37 }
 0xb43   :  { %v6343_v46 = vmul.f32 %v10404_v33, %v6342_v52 }
 0xb44   :  { %v10406_v51 = vpop.eup %10405  ;;  %v6325_v61 = vadd.f32 %v10402_v15, %v6324_v25  ;;  %6807 = vmatpush.bf16.msrb.mxu0 %v10157_v59 }
 0xb45   :  { %v6344_v2 = vadd.f32 %v10404_v33, %v6343_v46  ;;  %v6361_v7 = vmul.f32 %v10406_v51, %v6359_v42  ;;  %v10408_v18 = vpop.eup %10407  ;;  %vm6366_vm8 = vweird.f32 %v10406_v51  ;;  %v10154_v42 = vld [vmem:[%s15170_s7 + $0x8] sm:$0xff] }
 0xb46   :  { %v6329_v57 = vsel %vm6328_vm3, %v10402_v15, %v6325_v61  ;;  %vm6367_vm10 = vmor %vm6365_vm9, %vm6366_vm8 }
 0xb47   :  { %v6334_v1 = vsel %vm6331_vm5, %v6333_v27, %v6329_v57  ;;  %v6348_v21 = vsel %vm6347_vm4, %v10404_v33, %v6344_v2  ;;  %v6362_v14 = vsub.f32 1.0, %v6361_v7 }
 0xb48   :  { %v6353_v47 = vsel %vm6350_vm6, %v6352_v48, %v6348_v21  ;;  %v6376_v53 = vmul.f32 %v10408_v18, %v6334_v1  ;;  %6808 = vmatpush.bf16.msrb.mxu0 %v10156_v23 }
 0xb49   :  { %v6375_v17 = vmul.f32 %v6353_v47, %v14853_v44  ;;  %v6363_v16 = vmul.f32 %v10406_v51, %v6362_v14 }
 0xb4b   :  { %v15079_v3 = vadd.f32 %v6376_v53, %v6375_v17  ;;  %v6364_v55 = vadd.f32 %v10406_v51, %v6363_v16 }
 0xb4c   :  { %6809 = vmatpush.bf16.msrb.mxu0 %v10155_v12 }
 0xb4d   :  { %10409 = vtanh.f32 %v15079_v3  ;;  %v6368_v58 = vsel %vm6367_vm10, %v10406_v51, %v6364_v55 }
 0xb4e   :  { %v6373_v54 = vsel %vm6370_vm11, %v6372_v56, %v6368_v58 }
 0xb50   :  { %6810 = vmatpush.bf16.msrb.mxu0 %v10154_v42 }
 0xb53   :  { %v10410_v37 = vpop.eup %10409 }
 0xb54   :  { %v15082_v36 = vmul.f32 %v10410_v37, %v6373_v54  ;;  %6811 = vmatpush.bf16.msrb.mxu0 %v10153_v10 }
 0xb56   :  { %v6394_v44 = vpack.c.bf16 %v15082_v36, %v15082_v36 }
 0xb58   :  { %6595 = vmatmul.bf16.vlgmr.msra.gmra.mxu0 %v6394_v44  ;;  %6608 = vmatmul.bf16.vlgmr.msra.gmra.mxu1 %v6394_v44 }
 0xb59   :  { %6621 = vmatmul.bf16.vlgmr.msra.gmra.mxu2 %v6394_v44  ;;  %6634 = vmatmul.bf16.vlgmr.msrb.gmra.mxu3 %v6394_v44 }
 0xbd5   :  { %v6596_v34 = vpop.f32.mrf.mxu0  ;;  %v6609_v62 = vpop.f32.mrf.mxu1 }
 0xbd6   :  { %v6639_v13 = vadd.f32 %v6596_v34, %v13510_v11  ;;  %v6640_v30 = vadd.f32 %v6609_v62, %v13512_v41 }
 0xbd8   :  { %v9474_v5 = vmul.f32 -1.442695, %v6639_v13  ;;  %v9475_v22 = vmul.f32 -1.442695, %v6640_v30 }
 0xbda   :  { %10411 = vpow2.f32 %v9474_v5 }
 0xbdb   :  { %10413 = vpow2.f32 %v9475_v22 }
 0xbdc   :  { %v6622_v15 = vpop.f32.mrf.mxu2  ;;  %v6635_v43 = vpop.f32.mrf.mxu3 }
 0xbdd   :  { %v6642_v11 = vadd.f32 %v6635_v43, %v13526_v49  ;;  %v6598_v33 = vpop.f32.mrf.mxu0  ;;  %v6611_v41 = vpop.f32.mrf.mxu1  ;;  %v6641_v51 = vadd.f32 %v6622_v15, %v13524_v4  ;;  %v6730_v15 = vsel %vm3372_vm7, %v15082_v36, %v14040_v24 }
 0xbdf   :  { %v9476_v28 = vmul.f32 -1.442695, %v6642_v11 }
 0xbe0   :  { %v10412_v8 = vpop.eup %10411 }
 0xbe1   :  { %v10414_v52 = vpop.eup %10413  ;;  %v6646_v35 = vadd.f32 1.0, %v10412_v8  ;;  %10415 = vpow2.f32 %v9476_v28 }
 0xbe2   :  { %v6665_v26 = vadd.f32 1.0, %v10414_v52 }
 0xbe3   :  { %10417 = vrcp.f32 %v6646_v35  ;;  %v6658_v57 = vand.u32 2147483648, %v6646_v35  ;;  %v6656_v21 = vand.u32 2147483647, %v6646_v35  ;;  %vm6652_vm14 = vweird.f32 %v6646_v35 }
 0xbe4   :  { %10419 = vrcp.f32 %v6665_v26  ;;  %v6624_v25 = vpop.f32.mrf.mxu2  ;;  %v6637_v39 = vpop.f32.mrf.mxu3  ;;  %v6677_v18 = vand.u32 2147483648, %v6665_v26  ;;  %v6675_v47 = vand.u32 2147483647, %v6665_v26  ;;  %vm6671_vm15 = vweird.f32 %v6665_v26 }
 0xbe5   :  { %v6659_v4 = vor.u32 1.1754944e-38, %v6658_v57  ;;  %vm6657_vm2 = vcmp.eq.f32.partialorder %v6656_v21, 8.507059e+37 }
 0xbe6   :  { %v6678_v31 = vor.u32 1.1754944e-38, %v6677_v18  ;;  %vm6676_vm3 = vcmp.eq.f32.partialorder %v6675_v47, 8.507059e+37 }
 0xbe7   :  { %v10416_v46 = vpop.eup %10415 }
 0xbe8   :  { %v6685_v49 = vadd.f32 1.0, %v10416_v46 }
 0xbe9   :  { %v10418_v63 = vpop.eup %10417 }
 0xbea   :  { %v10420_v61 = vpop.eup %10419  ;;  %v6648_v27 = vmul.f32 %v10418_v63, %v6646_v35  ;;  %10421 = vrcp.f32 %v6685_v49  ;;  %vm6653_vm12 = vweird.f32 %v10418_v63  ;;  %v6697_v62 = vand.u32 2147483648, %v6685_v49 }
 0xbeb   :  { %v6667_v2 = vmul.f32 %v10420_v61, %v6665_v26  ;;  %10423 = vtanh.f32 %v6641_v51  ;;  %vm6672_vm13 = vweird.f32 %v10420_v61  ;;  %vm6654_vm0 = vmor %vm6652_vm14, %vm6653_vm12  ;;  %vm6691_vm5 = vweird.f32 %v6685_v49 }
 0xbec   :  { %v6649_v7 = vsub.f32 1.0, %v6648_v27  ;;  %vm6673_vm1 = vmor %vm6671_vm15, %vm6672_vm13  ;;  %v6695_v23 = vand.u32 2147483647, %v6685_v49  ;;  %v6698_v30 = vor.u32 1.1754944e-38, %v6697_v62 }
 0xbed   :  { %v6668_v48 = vsub.f32 1.0, %v6667_v2 }
 0xbee   :  { %v6650_v1 = vmul.f32 %v10418_v63, %v6649_v7  ;;  %vm6696_vm8 = vcmp.eq.f32.partialorder %v6695_v23, 8.507059e+37 }
 0xbef   :  { %v6669_v14 = vmul.f32 %v10420_v61, %v6668_v48 }
 0xbf0   :  { %v10422_v53 = vpop.eup %10421  ;;  %v6651_v17 = vadd.f32 %v10418_v63, %v6650_v1 }
 0xbf1   :  { %v6670_v16 = vadd.f32 %v10420_v61, %v6669_v14  ;;  %v6687_v55 = vmul.f32 %v10422_v53, %v6685_v49  ;;  %v10424_v58 = vpop.eup %10423  ;;  %vm6692_vm4 = vweird.f32 %v10422_v53 }
 0xbf2   :  { %v6655_v40 = vsel %vm6654_vm0, %v10418_v63, %v6651_v17  ;;  %vm6693_vm6 = vmor %vm6691_vm5, %vm6692_vm4 }
 0xbf3   :  { %v6660_v56 = vsel %vm6657_vm2, %v6659_v4, %v6655_v40  ;;  %v6674_v37 = vsel %vm6673_vm1, %v10420_v61, %v6670_v16  ;;  %v6688_v54 = vsub.f32 1.0, %v6687_v55 }
 0xbf4   :  { %v6679_v44 = vsel %vm6676_vm3, %v6678_v31, %v6674_v37  ;;  %v6702_v29 = vmul.f32 %v10424_v58, %v6660_v56 }
 0xbf5   :  { %v6701_v6 = vmul.f32 %v6679_v44, %v15079_v3  ;;  %v6689_v0 = vmul.f32 %v10422_v53, %v6688_v54  ;;  %v6725_v3 = vsel %vm3372_vm7, %v14040_v24, %v15082_v36  ;;  %v10170_v24 = vld [vmem:[%s15169_s8] ss:$0 sm:$0xff] }
 0xbf7   :  { %v6703_v59 = vadd.f32 %v6702_v29, %v6701_v6  ;;  %v6690_v34 = vadd.f32 %v10422_v53, %v6689_v0 }
 0xbf9   :  { %10425 = vtanh.f32 %v6703_v59  ;;  %v6694_v13 = vsel %vm6693_vm6, %v10422_v53, %v6690_v34 }
 0xbfa   :  { %v6699_v22 = vsel %vm6696_vm8, %v6698_v30, %v6694_v13 }
 0xbff   :  { %v10426_v5 = vpop.eup %10425 }
 0xc00   :  { %v6705_v12 = vmul.f32 %v10426_v5, %v6699_v22 }
 0xc02   :  { %v6724_v42 = vsel %vm3372_vm7, %v13836_v19, %v6705_v12  ;;  %v6731_v43 = vsel %vm3372_vm7, %v6705_v12, %v13836_v19 }
 0xc03   :  { %v6732_v11 = vpack.c.bf16 %v6725_v3, %v6724_v42  ;;  %v6735_v33 = vpack.c.bf16 %v6731_v43, %v6730_v15 }
 0xc05   :  { %6812 = vmatmul.bf16.vlgmr.msrb.gmra.mxu0 %v6732_v11 }
 0xc15   :  { %6817 = vmatmul.bf16.gmra.mxu0 %v6733_v20 }
 0xc25   :  { %6822 = vmatmul.bf16.gmra.mxu0 %v6734_v9 }
 0xc35   :  { %6827 = vmatmul.bf16.gmra.mxu0 %v6735_v33 }
 0xc82   :  { %v6813_v36 = vpop.f32.mrf.mxu0 }
 0xc83   :  { %v6814_v41 = vadd.f32 %v10170_v24, %v6813_v36 }
 0xc85   :  { %v6833_v45 = vmax.f32 %v6814_v41, 0.0 }
 0xc87   :  { %6841 = vst [vmem:[%s15171_s9] sm:$0xff] %v6833_v45 }
 0xc8a   :  { %v6815_v19 = vpop.f32.mrf.mxu0 }
 0xc8b   :  { %v6816_v28 = vadd.f32 %v10170_v24, %v6815_v19 }
 0xc8d   :  { %v6834_v38 = vmax.f32 %v6816_v28, 0.0 }
 0xc8f   :  { %6842 = vst [vmem:[%s15171_s9 + $0x8] sm:$0xff] %v6834_v38 }
 0xc92   :  { %v6818_v32 = vpop.f32.mrf.mxu0 }
 0xc93   :  { %v6819_v60 = vadd.f32 %v10170_v24, %v6818_v32 }
 0xc95   :  { %v6835_v50 = vmax.f32 %v6819_v60, 0.0 }
 0xc97   :  { %6843 = vst [vmem:[%s15171_s9 + $0x10] sm:$0xff] %v6835_v50 }
 0xc9a   :  { %v6820_v20 = vpop.f32.mrf.mxu0 }
 0xc9b   :  { %v6821_v9 = vadd.f32 %v10170_v24, %v6820_v20 }
 0xc9d   :  { %v6836_v10 = vmax.f32 %v6821_v9, 0.0 }
 0xc9f   :  { %6844 = vst [vmem:[%s15171_s9 + $0x18] sm:$0xff] %v6836_v10 }
 0xca2   :  { %v6823_v8 = vpop.f32.mrf.mxu0 }
 0xca3   :  { %v6824_v52 = vadd.f32 %v10170_v24, %v6823_v8 }
 0xca5   :  { %v6837_v35 = vmax.f32 %v6824_v52, 0.0 }
 0xca7   :  { %6845 = vst [vmem:[%s15171_s9 + $0x20] sm:$0xff] %v6837_v35 }
 0xcaa   :  { %v6825_v26 = vpop.f32.mrf.mxu0 }
 0xcab   :  { %v6826_v25 = vadd.f32 %v10170_v24, %v6825_v26 }
 0xcad   :  { %v6838_v39 = vmax.f32 %v6826_v25, 0.0 }
 0xcaf   :  { %6846 = vst [vmem:[%s15171_s9 + $0x28] sm:$0xff] %v6838_v39 }
 0xcb2   :  { %v6828_v46 = vpop.f32.mrf.mxu0 }
 0xcb3   :  { %v6829_v49 = vadd.f32 %v10170_v24, %v6828_v46 }
 0xcb5   :  { %v6839_v63 = vmax.f32 %v6829_v49, 0.0 }
 0xcb7   :  { %6847 = vst [vmem:[%s15171_s9 + $0x30] sm:$0xff] %v6839_v63 }
 0xcba   :  { %v6830_v51 = vpop.f32.mrf.mxu0 }
 0xcbb   :  { %v6831_v61 = vadd.f32 %v10170_v24, %v6830_v51 }
 0xcbd   :  { %v6840_v27 = vmax.f32 %v6831_v61, 0.0 }
 0xcbf   :  { %6848 = vst [vmem:[%s15171_s9 + $0x38] sm:$0xff] %v6840_v27 }

</bundles_post_ra>
